<compile_context>
chip_gen: v7x
topology: tpu7x:2x2x1
jax: 0.10.0
libtpu: 0.0.40
codegen_flags: <defaults>
</compile_context>

<pallas_src>
import jax
import jax.numpy as jnp
from jax.experimental import pallas as pl
from jax.experimental.pallas import tpu as pltpu

_TM_MAX = 256


def _round_up(x, m):
    return ((x + m - 1) // m) * m


# ----------------------------- Pallas kernels ------------------------------


def _make_mm_kernel(binarize_a, binarize_out, has_residual):
    """Fused conv-as-matmul kernel.

    y = dot(bin?(A), B) * scale + shift ; y = prelu(y, alpha)
    if has_residual: y = prelu(y + R, alpha_res)
    if binarize_out: y = where(y > 0, 1, -1)
    """

    def kernel(*refs):
        if has_residual:
            a_ref, b_ref, eps_ref, r_ref, o_ref = refs
        else:
            a_ref, b_ref, eps_ref, o_ref = refs
        a = a_ref[...]
        if binarize_a:
            a = jnp.where(a > 0, 1.0, -1.0)
        a = a.astype(b_ref.dtype)
        acc = jnp.dot(a, b_ref[...], preferred_element_type=jnp.float32)
        scale = eps_ref[0:1, :]
        shift = eps_ref[1:2, :]
        alpha = eps_ref[2:3, :]
        y = acc * scale + shift
        y = jnp.where(y >= 0, y, y * alpha)
        if has_residual:
            alpha_r = eps_ref[3:4, :]
            y = y + r_ref[...]
            y = jnp.where(y >= 0, y, y * alpha_r)
        if binarize_out:
            y = jnp.where(y > 0, 1.0, -1.0)
        o_ref[...] = y.astype(o_ref.dtype)

    return kernel


def matmul_fused(a, b, eps, residual=None, binarize_a=False, binarize_out=False):
    """a: [M, Kp], b: [Kp, Np] (Kp, Np multiples of 128), eps: [4, Np] f32."""
    M, Kp = a.shape
    Kp2, Np = b.shape
    assert Kp == Kp2 and Kp % 128 == 0 and Np % 128 == 0
    TM = M if M <= _TM_MAX else _TM_MAX
    grid = (pl.cdiv(M, TM),)
    out_dtype = jnp.bfloat16 if binarize_out else jnp.float32
    in_specs = [
        pl.BlockSpec((TM, Kp), lambda i: (i, 0)),
        pl.BlockSpec((Kp, Np), lambda i: (0, 0)),   # weight: resident across grid
        pl.BlockSpec((4, Np), lambda i: (0, 0)),    # epilogue params: resident
    ]
    args = [a, b, eps]
    if residual is not None:
        in_specs.append(pl.BlockSpec((TM, Np), lambda i: (i, 0)))
        args.append(residual)
    return pl.pallas_call(
        _make_mm_kernel(binarize_a, binarize_out, residual is not None),
        out_shape=jax.ShapeDtypeStruct((M, Np), out_dtype),
        grid=grid,
        in_specs=in_specs,
        out_specs=pl.BlockSpec((TM, Np), lambda i: (i, 0)),
        compiler_params=pltpu.CompilerParams(dimension_semantics=("parallel",)),
    )(*args)


def _affine_act_kernel(x_ref, s_ref, t_ref, a_ref, o_ref):
    y = x_ref[...] * s_ref[...] + t_ref[...]
    o_ref[...] = jnp.where(y >= 0, y, y * a_ref[...])


def affine_act(x, scale, shift, alpha):
    """Per-channel affine (eval BatchNorm) + PReLU/ReLU on a small NHWC tensor."""
    N, H, W, C = x.shape
    flat = x.reshape(N * H * W, C).astype(jnp.float32)
    s = jnp.asarray(scale, jnp.float32).reshape(1, C)
    t = jnp.asarray(shift, jnp.float32).reshape(1, C)
    a = jnp.broadcast_to(jnp.asarray(alpha, jnp.float32).reshape(1, -1), (1, C))
    out = pl.pallas_call(
        _affine_act_kernel,
        out_shape=jax.ShapeDtypeStruct(flat.shape, jnp.float32),
    )(flat, s, t, a)
    return out.reshape(N, H, W, C)


# ----------------------------- conv helpers --------------------------------


def _im2col(x, KH, KW, stride, padding, dilation):
    N, H, W, C = x.shape
    sh, sw = stride
    ph, pw = padding
    dh, dw = dilation
    OH = (H + 2 * ph - dh * (KH - 1) - 1) // sh + 1
    OW = (W + 2 * pw - dw * (KW - 1) - 1) // sw + 1
    if (KH, KW) == (1, 1) and (sh, sw) == (1, 1) and (ph, pw) == (0, 0):
        return x.reshape(N * H * W, C), OH, OW
    xp = jnp.pad(x, ((0, 0), (ph, ph), (pw, pw), (0, 0)))
    cols = []
    for i in range(KH):
        for j in range(KW):
            sl = jax.lax.slice(
                xp,
                (0, i * dh, j * dw, 0),
                (N, i * dh + (OH - 1) * sh + 1, j * dw + (OW - 1) * sw + 1, C),
                (1, sh, sw, 1))
            cols.append(sl)
    patches = jnp.stack(cols, axis=3).reshape(N * OH * OW, KH * KW * C)
    return patches, OH, OW


def conv_nhwc(x, cv, stride=(1, 1), padding=(0, 0), dilation=(1, 1),
              binarize_a=False, binarize_out=False, residual=None):
    KH, KW = cv["k"]
    N = x.shape[0]
    patches, OH, OW = _im2col(x, KH, KW, stride, padding, dilation)
    Kp = cv["wm"].shape[0]
    K = patches.shape[1]
    if K != Kp:
        patches = jnp.pad(patches, ((0, 0), (0, Kp - K)))
    res2 = None
    if residual is not None:
        Cr = residual.shape[-1]
        Np = cv["eps"].shape[1]
        res2 = residual.reshape(-1, Cr).astype(jnp.float32)
        if Cr != Np:
            res2 = jnp.pad(res2, ((0, 0), (0, Np - Cr)))
    out = matmul_fused(patches, cv["wm"], cv["eps"], residual=res2,
                       binarize_a=binarize_a, binarize_out=binarize_out)
    return out[:, :cv["cout"]].reshape(N, OH, OW, cv["cout"])


def tconv_nhwc(x, cv, stride=2, padding=1, output_padding=1,
               binarize_out=False, residual=None):
    """Binarized ConvTranspose2d = zero-dilate + pad + conv with the prepared
    flipped / in-out-swapped weight. Input must already be binarized (+/-1)."""
    N, H, W, C = x.shape
    KH, KW = cv["k"]
    Hd = (H - 1) * stride + 1
    Wd = (W - 1) * stride + 1
    xd = jnp.zeros((N, Hd, Wd, C), x.dtype).at[:, ::stride, ::stride, :].set(x)
    top = KH - 1 - padding
    left = KW - 1 - padding
    xdp = jnp.pad(xd, ((0, 0), (top, top + output_padding),
                       (left, left + output_padding), (0, 0)))
    return conv_nhwc(xdp, cv, binarize_a=False, binarize_out=binarize_out,
                     residual=residual)


# ----------------------------- pooling glue (plain JAX) --------------------


def maxpool2x2(x):
    N, H, W, C = x.shape
    win = x.reshape(N, H // 2, 2, W // 2, 2, C).transpose(0, 1, 3, 2, 4, 5)
    win = win.reshape(N, H // 2, W // 2, 4, C)
    return jnp.max(win, axis=3), jnp.argmax(win, axis=3)


def maxunpool2x2(x, arg):
    N, Ho, Wo, C = x.shape
    k = jnp.arange(4).reshape(1, 1, 1, 4, 1)
    win = jnp.where(k == arg[:, :, :, None, :], x[:, :, :, None, :], 0.0)
    win = win.reshape(N, Ho, Wo, 2, 2, C).transpose(0, 1, 3, 2, 4, 5)
    return win.reshape(N, Ho * 2, Wo * 2, C)


# ----------------------------- parameters ----------------------------------


class _KeyGen:
    def __init__(self, seed):
        self._key = jax.random.PRNGKey(seed)

    def __call__(self):
        self._key, sub = jax.random.split(self._key)
        return sub


def _conv_w(kg, o, i, kh, kw):
    return 0.1 * jax.random.normal(kg(), (o, i, kh, kw), jnp.float32)


def _bn(c, eps=1e-5):
    gamma = jnp.ones((c,), jnp.float32)
    beta = jnp.zeros((c,), jnp.float32)
    mean = jnp.zeros((c,), jnp.float32)
    var = jnp.ones((c,), jnp.float32)
    scale = gamma / jnp.sqrt(var + eps)
    shift = beta - mean * scale
    return scale, shift


def _finish_prep(wm, K, O, bn, alpha, alpha_res, bias, KH, KW):
    Kp = _round_up(K, 128)
    Np = _round_up(O, 128)
    wm = jnp.pad(wm, ((0, Kp - K), (0, Np - O)))
    if bn is None:
        scale = jnp.ones((O,), jnp.float32)
        shift = jnp.zeros((O,), jnp.float32)
    else:
        scale = jnp.asarray(bn[0], jnp.float32)
        shift = jnp.asarray(bn[1], jnp.float32)
    if bias is not None:
        shift = shift + jnp.asarray(bias, jnp.float32) * scale
    alpha = jnp.broadcast_to(jnp.asarray(alpha, jnp.float32), (O,))
    alpha_res = jnp.broadcast_to(jnp.asarray(alpha_res, jnp.float32), (O,))
    eps = jnp.stack([
        jnp.pad(scale, (0, Np - O)),
        jnp.pad(shift, (0, Np - O)),
        jnp.pad(alpha, (0, Np - O), constant_values=1.0),
        jnp.pad(alpha_res, (0, Np - O), constant_values=1.0),
    ], axis=0)
    return {"wm": wm, "eps": eps, "k": (KH, KW), "cout": O}


def _prep_conv(w_oihw, *, binary=True, bn=None, alpha=1.0, alpha_res=1.0, bias=None):
    O, I, KH, KW = w_oihw.shape
    if binary:
        w = jnp.where(w_oihw > 0, jnp.float32(1.0), jnp.float32(-1.0)).astype(jnp.bfloat16)
    else:
        w = w_oihw.astype(jnp.float32)
    wm = jnp.transpose(w, (2, 3, 1, 0)).reshape(KH * KW * I, O)
    return _finish_prep(wm, KH * KW * I, O, bn, alpha, alpha_res, bias, KH, KW)


def _prep_tconv(w_iohw, *, bn=None, alpha=1.0, alpha_res=1.0):
    I, O, KH, KW = w_iohw.shape
    w = jnp.where(w_iohw > 0, jnp.float32(1.0), jnp.float32(-1.0)).astype(jnp.bfloat16)
    w = w[:, :, ::-1, ::-1]                      # spatial flip
    wm = jnp.transpose(w, (2, 3, 0, 1)).reshape(KH * KW * I, O)
    return _finish_prep(wm, KH * KW * I, O, bn, alpha, alpha_res, None, KH, KW)


def make_bottleneck(kg, in_ch, out_ch=None, dilation=1, downsample=False,
                    upsample=False, asymetric=False, use_prelu=True):
    pad = 0
    if out_ch is None:
        out_ch = in_ch
    else:
        pad = out_ch - in_ch
    inter = in_ch // 4
    alpha = 0.25 if use_prelu else 0.0          # PReLU(init=0.25) or ReLU
    p = {"cfg": dict(pad=pad, dilation=dilation, downsample=downsample,
                     upsample=upsample, asymetric=asymetric)}
    if upsample:
        p["spatil"] = _prep_conv(_conv_w(kg, out_ch, in_ch, 1, 1),
                                 bn=_bn(out_ch), alpha=1.0)          # BN only
    if downsample:
        w1 = _conv_w(kg, inter, in_ch, 2, 2)
    else:
        w1 = _conv_w(kg, inter, in_ch, 1, 1)
    p["c1"] = _prep_conv(w1, bn=_bn(inter), alpha=alpha)
    if asymetric:
        p["c2a"] = _prep_conv(_conv_w(kg, inter, inter, 1, 5), bn=_bn(inter), alpha=alpha)
        p["c2b"] = _prep_conv(_conv_w(kg, inter, inter, 5, 1), bn=_bn(inter), alpha=alpha)
    elif upsample:
        wt = 0.1 * jax.random.normal(kg(), (inter, inter, 3, 3), jnp.float32)
        p["c2t"] = _prep_tconv(wt, bn=_bn(inter), alpha=alpha)
    else:
        p["c2"] = _prep_conv(_conv_w(kg, inter, inter, 3, 3), bn=_bn(inter), alpha=alpha)
    p["c3"] = _prep_conv(_conv_w(kg, out_ch, inter, 1, 1),
                         bn=_bn(out_ch), alpha=alpha, alpha_res=alpha)
    return p


def build_binenet_params(num_classes, in_channels=3, seed=42):
    kg = _KeyGen(seed)
    P = {"in_channels": in_channels}
    w0 = _conv_w(kg, 16 - in_channels, in_channels, 3, 3)
    b0 = 0.1 * jax.random.normal(kg(), (16 - in_channels,), jnp.float32)
    bn_s, bn_t = _bn(16)
    alpha16 = jnp.full((16,), 0.25, jnp.float32)   # PReLU(16)
    P["init_pool"] = (bn_s[:in_channels], bn_t[:in_channels], alpha16[:in_channels])
    P["init_conv"] = _prep_conv(w0, binary=False,
                                bn=(bn_s[in_channels:], bn_t[in_channels:]),
                                alpha=alpha16[in_channels:], bias=b0)
    P["b10"] = make_bottleneck(kg, 16, 64, downsample=True)
    for n in ("b11", "b12", "b13", "b14"):
        P[n] = make_bottleneck(kg, 64)
    P["b20"] = make_bottleneck(kg, 64, 128, downsample=True)
    P["b21"] = make_bottleneck(kg, 128)
    P["b22"] = make_bottleneck(kg, 128, dilation=2)
    P["b23"] = make_bottleneck(kg, 128, asymetric=True)
    P["b24"] = make_bottleneck(kg, 128, dilation=4)
    P["b25"] = make_bottleneck(kg, 128)
    P["b26"] = make_bottleneck(kg, 128, dilation=8)
    P["b27"] = make_bottleneck(kg, 128, asymetric=True)
    P["b28"] = make_bottleneck(kg, 128, dilation=16)
    P["b31"] = make_bottleneck(kg, 128)
    P["b32"] = make_bottleneck(kg, 128, dilation=2)
    P["b33"] = make_bottleneck(kg, 128, asymetric=True)
    P["b34"] = make_bottleneck(kg, 128, dilation=4)
    P["b35"] = make_bottleneck(kg, 128)
    P["b36"] = make_bottleneck(kg, 128, dilation=8)
    P["b37"] = make_bottleneck(kg, 128, asymetric=True)
    P["b38"] = make_bottleneck(kg, 128, dilation=16)
    P["b40"] = make_bottleneck(kg, 128, 64, upsample=True, use_prelu=False)
    P["b41"] = make_bottleneck(kg, 64, use_prelu=False)
    P["b42"] = make_bottleneck(kg, 64, use_prelu=False)
    P["b50"] = make_bottleneck(kg, 64, 16, upsample=True, use_prelu=False)
    P["b51"] = make_bottleneck(kg, 16, use_prelu=False)
    # Scale_2d (x * 0.001 per class) folded into the fullconv epilogue.
    P["fullconv"] = _prep_tconv(
        0.1 * jax.random.normal(kg(), (16, num_classes, 3, 3), jnp.float32),
        bn=(jnp.full((num_classes,), 0.001, jnp.float32),
            jnp.zeros((num_classes,), jnp.float32)),
        alpha=1.0)
    return P


# ----------------------------- forward pass --------------------------------


def initial_block(P, x):
    pooled, _ = maxpool2x2(x)
    s, t, a = P["init_pool"]
    pooled = affine_act(pooled, s, t, a)                 # BN+PReLU for pool channels
    conv = conv_nhwc(x, P["init_conv"], stride=(2, 2), padding=(1, 1))
    return jnp.concatenate([pooled, conv], axis=-1)


def bottleneck_forward(p, x, indices=None, binarize_output=False):
    cfg = p["cfg"]
    binarize_a = (x.dtype != jnp.bfloat16)   # bf16 inputs are already +/-1
    identity = x
    idx = None
    if cfg["upsample"]:
        identity = conv_nhwc(identity, p["spatil"], binarize_a=binarize_a)
        identity = maxunpool2x2(identity, indices)
    elif cfg["downsample"]:
        identity, idx = maxpool2x2(identity)
    if cfg["pad"] > 0:
        N, H, W, C = identity.shape
        identity = jnp.concatenate(
            [identity, jnp.zeros((N, H, W, cfg["pad"]), identity.dtype)], axis=-1)

    stride = (2, 2) if cfg["downsample"] else (1, 1)
    y = conv_nhwc(x, p["c1"], stride=stride,
                  binarize_a=binarize_a, binarize_out=True)
    if cfg["asymetric"]:
        y = conv_nhwc(y, p["c2a"], padding=(0, 2), binarize_out=True)
        y = conv_nhwc(y, p["c2b"], padding=(2, 0), binarize_out=True)
    elif cfg["upsample"]:
        y = tconv_nhwc(y, p["c2t"], binarize_out=True)
    else:
        d = cfg["dilation"]
        y = conv_nhwc(y, p["c2"], padding=(d, d), dilation=(d, d), binarize_out=True)
    # TODO(synk): Dropout2d is stochastic in train mode; eval-mode identity used here.
    y = conv_nhwc(y, p["c3"], residual=identity, binarize_out=binarize_output)
    if cfg["downsample"]:
        return y, idx
    return y


def binenet_forward(P, x_nchw):
    x = jnp.transpose(x_nchw, (0, 2, 3, 1)).astype(jnp.float32)   # NCHW -> NHWC
    x = initial_block(P, x)
    x, idx1 = bottleneck_forward(P["b10"], x)
    for n in ("b11", "b12", "b13", "b14"):
        x = bottleneck_forward(P[n], x)
    x, idx2 = bottleneck_forward(P["b20"], x)
    for n in ("b21", "b22", "b23", "b24", "b25", "b26", "b27", "b28",
              "b31", "b32", "b33", "b34", "b35", "b36", "b37"):
        x = bottleneck_forward(P[n], x)
    # b38 / b42 / b51 feed only binarizing consumers -> emit +/-1 bf16 directly.
    x = bottleneck_forward(P["b38"], x, binarize_output=True)
    x = bottleneck_forward(P["b40"], x, indices=idx2)
    x = bottleneck_forward(P["b41"], x)
    x = bottleneck_forward(P["b42"], x, binarize_output=True)
    x = bottleneck_forward(P["b50"], x, indices=idx1)
    x = bottleneck_forward(P["b51"], x, binarize_output=True)
    x = tconv_nhwc(x, P["fullconv"])     # Scale_2d folded into the epilogue
    return jnp.transpose(x, (0, 3, 1, 2))   # back to NCHW


if __name__ == "__main__":
    num_classes = 8
    params = build_binenet_params(num_classes=num_classes, in_channels=3, seed=42)
    x = jax.random.normal(jax.random.PRNGKey(0), (2, 3, 16, 16), jnp.float32)
    fwd = jax.jit(lambda inp: binenet_forward(params, inp))
    out = jax.block_until_ready(fwd(x))
    assert out.shape == (2, num_classes, 16, 16), out.shape
    assert bool(jnp.all(jnp.isfinite(out)))
    print("KERNEL_OK")
</pallas_src>

<mosaic_0001>
module attributes {stable_mosaic.version = 11 : i64} {
  func.func @kernel(%arg0: i32, %arg1: memref<128x128xf32, #tpu.memory_space<vmem>>, %arg2: memref<128x128xf32, #tpu.memory_space<vmem>>, %arg3: memref<4x128xf32, #tpu.memory_space<vmem>>, %arg4: memref<128x128xf32, #tpu.memory_space<vmem>>) attributes {dimension_semantics = [#tpu.dimension_semantics<parallel>], iteration_bounds = array<i64: 1>, scalar_prefetch = 0 : i64, scratch_operands = 0 : i64, tpu.core_type = #tpu.core_type<tc>, window_params = [{transform_indices = @transform_0, window_bounds = array<i64: 128, 128>}, {pipeline_mode = #tpu.pipeline_mode<synchronous>, transform_indices = @transform_1, window_bounds = array<i64: 128, 128>}, {pipeline_mode = #tpu.pipeline_mode<synchronous>, transform_indices = @transform_2, window_bounds = array<i64: 4, 128>}, {transform_indices = @transform_3, window_bounds = array<i64: 128, 128>}]} {
    %c0 = arith.constant 0 : index
    %c0_0 = arith.constant 0 : index
    %0 = vector.load %arg1[%c0, %c0_0] : memref<128x128xf32, #tpu.memory_space<vmem>>, vector<128x128xf32>
    %c0_1 = arith.constant 0 : index
    %c0_2 = arith.constant 0 : index
    %1 = vector.load %arg2[%c0_1, %c0_2] : memref<128x128xf32, #tpu.memory_space<vmem>>, vector<128x128xf32>
    %cst = arith.constant dense<0.000000e+00> : vector<128x128xf32>
    %2 = tpu.matmul %0, %1, %cst {dimension_numbers = #tpu.dot_dimension_numbers<[1], [0], [0], [1], [0, 0, 1, 1], [], []>} : vector<128x128xf32>, vector<128x128xf32>, vector<128x128xf32> -> vector<128x128xf32>
    %c0_3 = arith.constant 0 : index
    %c0_4 = arith.constant 0 : index
    %3 = vector.load %arg3[%c0_3, %c0_4] : memref<4x128xf32, #tpu.memory_space<vmem>>, vector<1x128xf32>
    %c1 = arith.constant 1 : index
    %c0_5 = arith.constant 0 : index
    %4 = vector.load %arg3[%c1, %c0_5] : memref<4x128xf32, #tpu.memory_space<vmem>>, vector<1x128xf32>
    %c2 = arith.constant 2 : index
    %c0_6 = arith.constant 0 : index
    %5 = vector.load %arg3[%c2, %c0_6] : memref<4x128xf32, #tpu.memory_space<vmem>>, vector<1x128xf32>
    %6 = vector.broadcast %3 : vector<1x128xf32> to vector<128x128xf32>
    %7 = arith.mulf %2, %6 : vector<128x128xf32>
    %8 = vector.broadcast %4 : vector<1x128xf32> to vector<128x128xf32>
    %9 = arith.addf %7, %8 : vector<128x128xf32>
    %cst_7 = arith.constant 0.000000e+00 : f32
    %10 = vector.broadcast %cst_7 : f32 to vector<128x128xf32>
    %11 = arith.cmpf oge, %9, %10 : vector<128x128xf32>
    %12 = vector.broadcast %5 : vector<1x128xf32> to vector<128x128xf32>
    %13 = arith.mulf %9, %12 : vector<128x128xf32>
    %14 = arith.select %11, %9, %13 : vector<128x128xi1>, vector<128x128xf32>
    %c0_8 = arith.constant 0 : index
    %c0_9 = arith.constant 0 : index
    %15 = vector.load %arg4[%c0_8, %c0_9] : memref<128x128xf32, #tpu.memory_space<vmem>>, vector<128x128xf32>
    tpu.vector_store %arg4[%c0_8, %c0_9], %14 {strides = array<i32>} : memref<128x128xf32, #tpu.memory_space<vmem>>, vector<128x128xf32>,
    return
  }
  func.func @transform_0(%arg0: i32) -> (i32, i32) {
    %c0_i32 = arith.constant 0 : i32
    %c0_i32_0 = arith.constant 0 : i32
    return %arg0, %c0_i32 : i32, i32
  }
  func.func @transform_1(%arg0: i32) -> (i32, i32) {
    %c0_i32 = arith.constant 0 : i32
    %c0_i32_0 = arith.constant 0 : i32
    %c0_i32_1 = arith.constant 0 : i32
    return %c0_i32, %c0_i32_0 : i32, i32
  }
  func.func @transform_2(%arg0: i32) -> (i32, i32) {
    %c0_i32 = arith.constant 0 : i32
    %c0_i32_0 = arith.constant 0 : i32
    %c0_i32_1 = arith.constant 0 : i32
    return %c0_i32, %c0_i32_0 : i32, i32
  }
  func.func @transform_3(%arg0: i32) -> (i32, i32) {
    %c0_i32 = arith.constant 0 : i32
    %c0_i32_0 = arith.constant 0 : i32
    return %arg0, %c0_i32 : i32, i32
  }
}

module attributes {stable_mosaic.version = 11 : i64} {
  func.func @_affine_act_kernel(%arg0: memref<128x3xf32, #tpu.memory_space<vmem>>, %arg1: memref<1x3xf32, #tpu.memory_space<vmem>>, %arg2: memref<1x3xf32, #tpu.memory_space<vmem>>, %arg3: memref<1x3xf32, #tpu.memory_space<vmem>>, %arg4: memref<128x3xf32, #tpu.memory_space<vmem>>) attributes {dimension_semantics = [], scalar_prefetch = 0 : i64, scratch_operands = 0 : i64, tpu.core_type = #tpu.core_type<tc>} {
    %c0 = arith.constant 0 : index
    %c0_0 = arith.constant 0 : index
    %0 = vector.load %arg0[%c0, %c0_0] : memref<128x3xf32, #tpu.memory_space<vmem>>, vector<128x3xf32>
    %c0_1 = arith.constant 0 : index
    %c0_2 = arith.constant 0 : index
    %1 = vector.load %arg1[%c0_1, %c0_2] : memref<1x3xf32, #tpu.memory_space<vmem>>, vector<1x3xf32>
    %2 = vector.broadcast %1 : vector<1x3xf32> to vector<128x3xf32>
    %3 = arith.mulf %0, %2 : vector<128x3xf32>
    %c0_3 = arith.constant 0 : index
    %c0_4 = arith.constant 0 : index
    %4 = vector.load %arg2[%c0_3, %c0_4] : memref<1x3xf32, #tpu.memory_space<vmem>>, vector<1x3xf32>
    %5 = vector.broadcast %4 : vector<1x3xf32> to vector<128x3xf32>
    %6 = arith.addf %3, %5 : vector<128x3xf32>
    %cst = arith.constant 0.000000e+00 : f32
    %7 = vector.broadcast %cst : f32 to vector<128x3xf32>
    %8 = arith.cmpf oge, %6, %7 : vector<128x3xf32>
    %c0_5 = arith.constant 0 : index
    %c0_6 = arith.constant 0 : index
    %9 = vector.load %arg3[%c0_5, %c0_6] : memref<1x3xf32, #tpu.memory_space<vmem>>, vector<1x3xf32>
    %10 = vector.broadcast %9 : vector<1x3xf32> to vector<128x3xf32>
    %11 = arith.mulf %6, %10 : vector<128x3xf32>
    %12 = arith.select %8, %6, %11 : vector<128x3xi1>, vector<128x3xf32>
    %c0_7 = arith.constant 0 : index
    %c0_8 = arith.constant 0 : index
    %13 = vector.load %arg4[%c0_7, %c0_8] : memref<128x3xf32, #tpu.memory_space<vmem>>, vector<128x3xf32>
    tpu.vector_store %arg4[%c0_7, %c0_8], %12 {strides = array<i32>} : memref<128x3xf32, #tpu.memory_space<vmem>>, vector<128x3xf32>,
    return
  }
}

module attributes {stable_mosaic.version = 11 : i64} {
  func.func @kernel(%arg0: i32, %arg1: memref<32x128xf32, #tpu.memory_space<vmem>>, %arg2: memref<128x128xbf16, #tpu.memory_space<vmem>>, %arg3: memref<4x128xf32, #tpu.memory_space<vmem>>, %arg4: memref<32x128xbf16, #tpu.memory_space<vmem>>) attributes {dimension_semantics = [#tpu.dimension_semantics<parallel>], iteration_bounds = array<i64: 1>, scalar_prefetch = 0 : i64, scratch_operands = 0 : i64, tpu.core_type = #tpu.core_type<tc>, window_params = [{transform_indices = @transform_0, window_bounds = array<i64: 32, 128>}, {pipeline_mode = #tpu.pipeline_mode<synchronous>, transform_indices = @transform_1, window_bounds = array<i64: 128, 128>}, {pipeline_mode = #tpu.pipeline_mode<synchronous>, transform_indices = @transform_2, window_bounds = array<i64: 4, 128>}, {transform_indices = @transform_3, window_bounds = array<i64: 32, 128>}]} {
    %c0 = arith.constant 0 : index
    %c0_0 = arith.constant 0 : index
    %0 = vector.load %arg1[%c0, %c0_0] : memref<32x128xf32, #tpu.memory_space<vmem>>, vector<32x128xf32>
    %cst = arith.constant 0.000000e+00 : f32
    %1 = vector.broadcast %cst : f32 to vector<32x128xf32>
    %2 = arith.cmpf ogt, %0, %1 : vector<32x128xf32>
    %cst_1 = arith.constant 1.000000e+00 : f32
    %cst_2 = arith.constant -1.000000e+00 : f32
    %3 = vector.broadcast %cst_1 : f32 to vector<32x128xf32>
    %4 = vector.broadcast %cst_2 : f32 to vector<32x128xf32>
    %5 = arith.select %2, %3, %4 : vector<32x128xi1>, vector<32x128xf32>
    %6 = arith.truncf %5 : vector<32x128xf32> to vector<32x128xbf16>
    %c0_3 = arith.constant 0 : index
    %c0_4 = arith.constant 0 : index
    %7 = vector.load %arg2[%c0_3, %c0_4] : memref<128x128xbf16, #tpu.memory_space<vmem>>, vector<128x128xbf16>
    %cst_5 = arith.constant dense<0.000000e+00> : vector<32x128xf32>
    %8 = tpu.matmul %6, %7, %cst_5 {dimension_numbers = #tpu.dot_dimension_numbers<[1], [0], [0], [1], [0, 0, 1, 1], [], []>} : vector<32x128xbf16>, vector<128x128xbf16>, vector<32x128xf32> -> vector<32x128xf32>
    %c0_6 = arith.constant 0 : index
    %c0_7 = arith.constant 0 : index
    %9 = vector.load %arg3[%c0_6, %c0_7] : memref<4x128xf32, #tpu.memory_space<vmem>>, vector<1x128xf32>
    %c1 = arith.constant 1 : index
    %c0_8 = arith.constant 0 : index
    %10 = vector.load %arg3[%c1, %c0_8] : memref<4x128xf32, #tpu.memory_space<vmem>>, vector<1x128xf32>
    %c2 = arith.constant 2 : index
    %c0_9 = arith.constant 0 : index
    %11 = vector.load %arg3[%c2, %c0_9] : memref<4x128xf32, #tpu.memory_space<vmem>>, vector<1x128xf32>
    %12 = vector.broadcast %9 : vector<1x128xf32> to vector<32x128xf32>
    %13 = arith.mulf %8, %12 : vector<32x128xf32>
    %14 = vector.broadcast %10 : vector<1x128xf32> to vector<32x128xf32>
    %15 = arith.addf %13, %14 : vector<32x128xf32>
    %cst_10 = arith.constant 0.000000e+00 : f32
    %16 = vector.broadcast %cst_10 : f32 to vector<32x128xf32>
    %17 = arith.cmpf oge, %15, %16 : vector<32x128xf32>
    %18 = vector.broadcast %11 : vector<1x128xf32> to vector<32x128xf32>
    %19 = arith.mulf %15, %18 : vector<32x128xf32>
    %20 = arith.select %17, %15, %19 : vector<32x128xi1>, vector<32x128xf32>
    %cst_11 = arith.constant 0.000000e+00 : f32
    %21 = vector.broadcast %cst_11 : f32 to vector<32x128xf32>
    %22 = arith.cmpf ogt, %20, %21 : vector<32x128xf32>
    %cst_12 = arith.constant 1.000000e+00 : f32
    %cst_13 = arith.constant -1.000000e+00 : f32
    %23 = vector.broadcast %cst_12 : f32 to vector<32x128xf32>
    %24 = vector.broadcast %cst_13 : f32 to vector<32x128xf32>
    %25 = arith.select %22, %23, %24 : vector<32x128xi1>, vector<32x128xf32>
    %26 = arith.truncf %25 : vector<32x128xf32> to vector<32x128xbf16>
    %c0_14 = arith.constant 0 : index
    %c0_15 = arith.constant 0 : index
    %27 = vector.load %arg4[%c0_14, %c0_15] : memref<32x128xbf16, #tpu.memory_space<vmem>>, vector<32x128xbf16>
    tpu.vector_store %arg4[%c0_14, %c0_15], %26 {strides = array<i32>} : memref<32x128xbf16, #tpu.memory_space<vmem>>, vector<32x128xbf16>,
    return
  }
  func.func @transform_0(%arg0: i32) -> (i32, i32) {
    %c0_i32 = arith.constant 0 : i32
    %c0_i32_0 = arith.constant 0 : i32
    return %arg0, %c0_i32 : i32, i32
  }
  func.func @transform_1(%arg0: i32) -> (i32, i32) {
    %c0_i32 = arith.constant 0 : i32
    %c0_i32_0 = arith.constant 0 : i32
    %c0_i32_1 = arith.constant 0 : i32
    return %c0_i32, %c0_i32_0 : i32, i32
  }
  func.func @transform_2(%arg0: i32) -> (i32, i32) {
    %c0_i32 = arith.constant 0 : i32
    %c0_i32_0 = arith.constant 0 : i32
    %c0_i32_1 = arith.constant 0 : i32
    return %c0_i32, %c0_i32_0 : i32, i32
  }
  func.func @transform_3(%arg0: i32) -> (i32, i32) {
    %c0_i32 = arith.constant 0 : i32
    %c0_i32_0 = arith.constant 0 : i32
    return %arg0, %c0_i32 : i32, i32
  }
}

module attributes {stable_mosaic.version = 11 : i64} {
  func.func @kernel(%arg0: i32, %arg1: memref<32x128xbf16, #tpu.memory_space<vmem>>, %arg2: memref<128x128xbf16, #tpu.memory_space<vmem>>, %arg3: memref<4x128xf32, #tpu.memory_space<vmem>>, %arg4: memref<32x128xbf16, #tpu.memory_space<vmem>>) attributes {dimension_semantics = [#tpu.dimension_semantics<parallel>], iteration_bounds = array<i64: 1>, scalar_prefetch = 0 : i64, scratch_operands = 0 : i64, tpu.core_type = #tpu.core_type<tc>, window_params = [{transform_indices = @transform_0, window_bounds = array<i64: 32, 128>}, {pipeline_mode = #tpu.pipeline_mode<synchronous>, transform_indices = @transform_1, window_bounds = array<i64: 128, 128>}, {pipeline_mode = #tpu.pipeline_mode<synchronous>, transform_indices = @transform_2, window_bounds = array<i64: 4, 128>}, {transform_indices = @transform_3, window_bounds = array<i64: 32, 128>}]} {
    %c0 = arith.constant 0 : index
    %c0_0 = arith.constant 0 : index
    %0 = vector.load %arg1[%c0, %c0_0] : memref<32x128xbf16, #tpu.memory_space<vmem>>, vector<32x128xbf16>
    %c0_1 = arith.constant 0 : index
    %c0_2 = arith.constant 0 : index
    %1 = vector.load %arg2[%c0_1, %c0_2] : memref<128x128xbf16, #tpu.memory_space<vmem>>, vector<128x128xbf16>
    %cst = arith.constant dense<0.000000e+00> : vector<32x128xf32>
    %2 = tpu.matmul %0, %1, %cst {dimension_numbers = #tpu.dot_dimension_numbers<[1], [0], [0], [1], [0, 0, 1, 1], [], []>} : vector<32x128xbf16>, vector<128x128xbf16>, vector<32x128xf32> -> vector<32x128xf32>
    %c0_3 = arith.constant 0 : index
    %c0_4 = arith.constant 0 : index
    %3 = vector.load %arg3[%c0_3, %c0_4] : memref<4x128xf32, #tpu.memory_space<vmem>>, vector<1x128xf32>
    %c1 = arith.constant 1 : index
    %c0_5 = arith.constant 0 : index
    %4 = vector.load %arg3[%c1, %c0_5] : memref<4x128xf32, #tpu.memory_space<vmem>>, vector<1x128xf32>
    %c2 = arith.constant 2 : index
    %c0_6 = arith.constant 0 : index
    %5 = vector.load %arg3[%c2, %c0_6] : memref<4x128xf32, #tpu.memory_space<vmem>>, vector<1x128xf32>
    %6 = vector.broadcast %3 : vector<1x128xf32> to vector<32x128xf32>
    %7 = arith.mulf %2, %6 : vector<32x128xf32>
    %8 = vector.broadcast %4 : vector<1x128xf32> to vector<32x128xf32>
    %9 = arith.addf %7, %8 : vector<32x128xf32>
    %cst_7 = arith.constant 0.000000e+00 : f32
    %10 = vector.broadcast %cst_7 : f32 to vector<32x128xf32>
    %11 = arith.cmpf oge, %9, %10 : vector<32x128xf32>
    %12 = vector.broadcast %5 : vector<1x128xf32> to vector<32x128xf32>
    %13 = arith.mulf %9, %12 : vector<32x128xf32>
    %14 = arith.select %11, %9, %13 : vector<32x128xi1>, vector<32x128xf32>
    %cst_8 = arith.constant 0.000000e+00 : f32
    %15 = vector.broadcast %cst_8 : f32 to vector<32x128xf32>
    %16 = arith.cmpf ogt, %14, %15 : vector<32x128xf32>
    %cst_9 = arith.constant 1.000000e+00 : f32
    %cst_10 = arith.constant -1.000000e+00 : f32
    %17 = vector.broadcast %cst_9 : f32 to vector<32x128xf32>
    %18 = vector.broadcast %cst_10 : f32 to vector<32x128xf32>
    %19 = arith.select %16, %17, %18 : vector<32x128xi1>, vector<32x128xf32>
    %20 = arith.truncf %19 : vector<32x128xf32> to vector<32x128xbf16>
    %c0_11 = arith.constant 0 : index
    %c0_12 = arith.constant 0 : index
    %21 = vector.load %arg4[%c0_11, %c0_12] : memref<32x128xbf16, #tpu.memory_space<vmem>>, vector<32x128xbf16>
    tpu.vector_store %arg4[%c0_11, %c0_12], %20 {strides = array<i32>} : memref<32x128xbf16, #tpu.memory_space<vmem>>, vector<32x128xbf16>,
    return
  }
  func.func @transform_0(%arg0: i32) -> (i32, i32) {
    %c0_i32 = arith.constant 0 : i32
    %c0_i32_0 = arith.constant 0 : i32
    return %arg0, %c0_i32 : i32, i32
  }
  func.func @transform_1(%arg0: i32) -> (i32, i32) {
    %c0_i32 = arith.constant 0 : i32
    %c0_i32_0 = arith.constant 0 : i32
    %c0_i32_1 = arith.constant 0 : i32
    return %c0_i32, %c0_i32_0 : i32, i32
  }
  func.func @transform_2(%arg0: i32) -> (i32, i32) {
    %c0_i32 = arith.constant 0 : i32
    %c0_i32_0 = arith.constant 0 : i32
    %c0_i32_1 = arith.constant 0 : i32
    return %c0_i32, %c0_i32_0 : i32, i32
  }
  func.func @transform_3(%arg0: i32) -> (i32, i32) {
    %c0_i32 = arith.constant 0 : i32
    %c0_i32_0 = arith.constant 0 : i32
    return %arg0, %c0_i32 : i32, i32
  }
}

module attributes {stable_mosaic.version = 11 : i64} {
  func.func @kernel(%arg0: i32, %arg1: memref<32x128xbf16, #tpu.memory_space<vmem>>, %arg2: memref<128x128xbf16, #tpu.memory_space<vmem>>, %arg3: memref<4x128xf32, #tpu.memory_space<vmem>>, %arg4: memref<32x128xf32, #tpu.memory_space<vmem>>, %arg5: memref<32x128xf32, #tpu.memory_space<vmem>>) attributes {dimension_semantics = [#tpu.dimension_semantics<parallel>], iteration_bounds = array<i64: 1>, scalar_prefetch = 0 : i64, scratch_operands = 0 : i64, tpu.core_type = #tpu.core_type<tc>, window_params = [{transform_indices = @transform_0, window_bounds = array<i64: 32, 128>}, {pipeline_mode = #tpu.pipeline_mode<synchronous>, transform_indices = @transform_1, window_bounds = array<i64: 128, 128>}, {pipeline_mode = #tpu.pipeline_mode<synchronous>, transform_indices = @transform_2, window_bounds = array<i64: 4, 128>}, {transform_indices = @transform_3, window_bounds = array<i64: 32, 128>}, {transform_indices = @transform_4, window_bounds = array<i64: 32, 128>}]} {
    %c0 = arith.constant 0 : index
    %c0_0 = arith.constant 0 : index
    %0 = vector.load %arg1[%c0, %c0_0] : memref<32x128xbf16, #tpu.memory_space<vmem>>, vector<32x128xbf16>
    %c0_1 = arith.constant 0 : index
    %c0_2 = arith.constant 0 : index
    %1 = vector.load %arg2[%c0_1, %c0_2] : memref<128x128xbf16, #tpu.memory_space<vmem>>, vector<128x128xbf16>
    %cst = arith.constant dense<0.000000e+00> : vector<32x128xf32>
    %2 = tpu.matmul %0, %1, %cst {dimension_numbers = #tpu.dot_dimension_numbers<[1], [0], [0], [1], [0, 0, 1, 1], [], []>} : vector<32x128xbf16>, vector<128x128xbf16>, vector<32x128xf32> -> vector<32x128xf32>
    %c0_3 = arith.constant 0 : index
    %c0_4 = arith.constant 0 : index
    %3 = vector.load %arg3[%c0_3, %c0_4] : memref<4x128xf32, #tpu.memory_space<vmem>>, vector<1x128xf32>
    %c1 = arith.constant 1 : index
    %c0_5 = arith.constant 0 : index
    %4 = vector.load %arg3[%c1, %c0_5] : memref<4x128xf32, #tpu.memory_space<vmem>>, vector<1x128xf32>
    %c2 = arith.constant 2 : index
    %c0_6 = arith.constant 0 : index
    %5 = vector.load %arg3[%c2, %c0_6] : memref<4x128xf32, #tpu.memory_space<vmem>>, vector<1x128xf32>
    %6 = vector.broadcast %3 : vector<1x128xf32> to vector<32x128xf32>
    %7 = arith.mulf %2, %6 : vector<32x128xf32>
    %8 = vector.broadcast %4 : vector<1x128xf32> to vector<32x128xf32>
    %9 = arith.addf %7, %8 : vector<32x128xf32>
    %cst_7 = arith.constant 0.000000e+00 : f32
    %10 = vector.broadcast %cst_7 : f32 to vector<32x128xf32>
    %11 = arith.cmpf oge, %9, %10 : vector<32x128xf32>
    %12 = vector.broadcast %5 : vector<1x128xf32> to vector<32x128xf32>
    %13 = arith.mulf %9, %12 : vector<32x128xf32>
    %14 = arith.select %11, %9, %13 : vector<32x128xi1>, vector<32x128xf32>
    %c3 = arith.constant 3 : index
    %c0_8 = arith.constant 0 : index
    %15 = vector.load %arg3[%c3, %c0_8] : memref<4x128xf32, #tpu.memory_space<vmem>>, vector<1x128xf32>
    %c0_9 = arith.constant 0 : index
    %c0_10 = arith.constant 0 : index
    %16 = vector.load %arg4[%c0_9, %c0_10] : memref<32x128xf32, #tpu.memory_space<vmem>>, vector<32x128xf32>
    %17 = arith.addf %14, %16 : vector<32x128xf32>
    %cst_11 = arith.constant 0.000000e+00 : f32
    %18 = vector.broadcast %cst_11 : f32 to vector<32x128xf32>
    %19 = arith.cmpf oge, %17, %18 : vector<32x128xf32>
    %20 = vector.broadcast %15 : vector<1x128xf32> to vector<32x128xf32>
    %21 = arith.mulf %17, %20 : vector<32x128xf32>
    %22 = arith.select %19, %17, %21 : vector<32x128xi1>, vector<32x128xf32>
    %c0_12 = arith.constant 0 : index
    %c0_13 = arith.constant 0 : index
    %23 = vector.load %arg5[%c0_12, %c0_13] : memref<32x128xf32, #tpu.memory_space<vmem>>, vector<32x128xf32>
    tpu.vector_store %arg5[%c0_12, %c0_13], %22 {strides = array<i32>} : memref<32x128xf32, #tpu.memory_space<vmem>>, vector<32x128xf32>,
    return
  }
  func.func @transform_0(%arg0: i32) -> (i32, i32) {
    %c0_i32 = arith.constant 0 : i32
    %c0_i32_0 = arith.constant 0 : i32
    return %arg0, %c0_i32 : i32, i32
  }
  func.func @transform_1(%arg0: i32) -> (i32, i32) {
    %c0_i32 = arith.constant 0 : i32
    %c0_i32_0 = arith.constant 0 : i32
    %c0_i32_1 = arith.constant 0 : i32
    return %c0_i32, %c0_i32_0 : i32, i32
  }
  func.func @transform_2(%arg0: i32) -> (i32, i32) {
    %c0_i32 = arith.constant 0 : i32
    %c0_i32_0 = arith.constant 0 : i32
    %c0_i32_1 = arith.constant 0 : i32
    return %c0_i32, %c0_i32_0 : i32, i32
  }
  func.func @transform_3(%arg0: i32) -> (i32, i32) {
    %c0_i32 = arith.constant 0 : i32
    %c0_i32_0 = arith.constant 0 : i32
    return %arg0, %c0_i32 : i32, i32
  }
  func.func @transform_4(%arg0: i32) -> (i32, i32) {
    %c0_i32 = arith.constant 0 : i32
    %c0_i32_0 = arith.constant 0 : i32
    return %arg0, %c0_i32 : i32, i32
  }
}

module attributes {stable_mosaic.version = 11 : i64} {
  func.func @kernel(%arg0: i32, %arg1: memref<32x256xbf16, #tpu.memory_space<vmem>>, %arg2: memref<256x128xbf16, #tpu.memory_space<vmem>>, %arg3: memref<4x128xf32, #tpu.memory_space<vmem>>, %arg4: memref<32x128xbf16, #tpu.memory_space<vmem>>) attributes {dimension_semantics = [#tpu.dimension_semantics<parallel>], iteration_bounds = array<i64: 1>, scalar_prefetch = 0 : i64, scratch_operands = 0 : i64, tpu.core_type = #tpu.core_type<tc>, window_params = [{transform_indices = @transform_0, window_bounds = array<i64: 32, 256>}, {pipeline_mode = #tpu.pipeline_mode<synchronous>, transform_indices = @transform_1, window_bounds = array<i64: 256, 128>}, {pipeline_mode = #tpu.pipeline_mode<synchronous>, transform_indices = @transform_2, window_bounds = array<i64: 4, 128>}, {transform_indices = @transform_3, window_bounds = array<i64: 32, 128>}]} {
    %c0 = arith.constant 0 : index
    %c0_0 = arith.constant 0 : index
    %0 = vector.load %arg1[%c0, %c0_0] : memref<32x256xbf16, #tpu.memory_space<vmem>>, vector<32x256xbf16>
    %c0_1 = arith.constant 0 : index
    %c0_2 = arith.constant 0 : index
    %1 = vector.load %arg2[%c0_1, %c0_2] : memref<256x128xbf16, #tpu.memory_space<vmem>>, vector<256x128xbf16>
    %cst = arith.constant dense<0.000000e+00> : vector<32x128xf32>
    %2 = tpu.matmul %0, %1, %cst {dimension_numbers = #tpu.dot_dimension_numbers<[1], [0], [0], [1], [0, 0, 1, 1], [], []>} : vector<32x256xbf16>, vector<256x128xbf16>, vector<32x128xf32> -> vector<32x128xf32>
    %c0_3 = arith.constant 0 : index
    %c0_4 = arith.constant 0 : index
    %3 = vector.load %arg3[%c0_3, %c0_4] : memref<4x128xf32, #tpu.memory_space<vmem>>, vector<1x128xf32>
    %c1 = arith.constant 1 : index
    %c0_5 = arith.constant 0 : index
    %4 = vector.load %arg3[%c1, %c0_5] : memref<4x128xf32, #tpu.memory_space<vmem>>, vector<1x128xf32>
    %c2 = arith.constant 2 : index
    %c0_6 = arith.constant 0 : index
    %5 = vector.load %arg3[%c2, %c0_6] : memref<4x128xf32, #tpu.memory_space<vmem>>, vector<1x128xf32>
    %6 = vector.broadcast %3 : vector<1x128xf32> to vector<32x128xf32>
    %7 = arith.mulf %2, %6 : vector<32x128xf32>
    %8 = vector.broadcast %4 : vector<1x128xf32> to vector<32x128xf32>
    %9 = arith.addf %7, %8 : vector<32x128xf32>
    %cst_7 = arith.constant 0.000000e+00 : f32
    %10 = vector.broadcast %cst_7 : f32 to vector<32x128xf32>
    %11 = arith.cmpf oge, %9, %10 : vector<32x128xf32>
    %12 = vector.broadcast %5 : vector<1x128xf32> to vector<32x128xf32>
    %13 = arith.mulf %9, %12 : vector<32x128xf32>
    %14 = arith.select %11, %9, %13 : vector<32x128xi1>, vector<32x128xf32>
    %cst_8 = arith.constant 0.000000e+00 : f32
    %15 = vector.broadcast %cst_8 : f32 to vector<32x128xf32>
    %16 = arith.cmpf ogt, %14, %15 : vector<32x128xf32>
    %cst_9 = arith.constant 1.000000e+00 : f32
    %cst_10 = arith.constant -1.000000e+00 : f32
    %17 = vector.broadcast %cst_9 : f32 to vector<32x128xf32>
    %18 = vector.broadcast %cst_10 : f32 to vector<32x128xf32>
    %19 = arith.select %16, %17, %18 : vector<32x128xi1>, vector<32x128xf32>
    %20 = arith.truncf %19 : vector<32x128xf32> to vector<32x128xbf16>
    %c0_11 = arith.constant 0 : index
    %c0_12 = arith.constant 0 : index
    %21 = vector.load %arg4[%c0_11, %c0_12] : memref<32x128xbf16, #tpu.memory_space<vmem>>, vector<32x128xbf16>
    tpu.vector_store %arg4[%c0_11, %c0_12], %20 {strides = array<i32>} : memref<32x128xbf16, #tpu.memory_space<vmem>>, vector<32x128xbf16>,
    return
  }
  func.func @transform_0(%arg0: i32) -> (i32, i32) {
    %c0_i32 = arith.constant 0 : i32
    %c0_i32_0 = arith.constant 0 : i32
    return %arg0, %c0_i32 : i32, i32
  }
  func.func @transform_1(%arg0: i32) -> (i32, i32) {
    %c0_i32 = arith.constant 0 : i32
    %c0_i32_0 = arith.constant 0 : i32
    %c0_i32_1 = arith.constant 0 : i32
    return %c0_i32, %c0_i32_0 : i32, i32
  }
  func.func @transform_2(%arg0: i32) -> (i32, i32) {
    %c0_i32 = arith.constant 0 : i32
    %c0_i32_0 = arith.constant 0 : i32
    %c0_i32_1 = arith.constant 0 : i32
    return %c0_i32, %c0_i32_0 : i32, i32
  }
  func.func @transform_3(%arg0: i32) -> (i32, i32) {
    %c0_i32 = arith.constant 0 : i32
    %c0_i32_0 = arith.constant 0 : i32
    return %arg0, %c0_i32 : i32, i32
  }
}

module attributes {stable_mosaic.version = 11 : i64} {
  func.func @kernel(%arg0: i32, %arg1: memref<8x256xf32, #tpu.memory_space<vmem>>, %arg2: memref<256x128xbf16, #tpu.memory_space<vmem>>, %arg3: memref<4x128xf32, #tpu.memory_space<vmem>>, %arg4: memref<8x128xbf16, #tpu.memory_space<vmem>>) attributes {dimension_semantics = [#tpu.dimension_semantics<parallel>], iteration_bounds = array<i64: 1>, scalar_prefetch = 0 : i64, scratch_operands = 0 : i64, tpu.core_type = #tpu.core_type<tc>, window_params = [{transform_indices = @transform_0, window_bounds = array<i64: 8, 256>}, {pipeline_mode = #tpu.pipeline_mode<synchronous>, transform_indices = @transform_1, window_bounds = array<i64: 256, 128>}, {pipeline_mode = #tpu.pipeline_mode<synchronous>, transform_indices = @transform_2, window_bounds = array<i64: 4, 128>}, {transform_indices = @transform_3, window_bounds = array<i64: 8, 128>}]} {
    %c0 = arith.constant 0 : index
    %c0_0 = arith.constant 0 : index
    %0 = vector.load %arg1[%c0, %c0_0] : memref<8x256xf32, #tpu.memory_space<vmem>>, vector<8x256xf32>
    %cst = arith.constant 0.000000e+00 : f32
    %1 = vector.broadcast %cst : f32 to vector<8x256xf32>
    %2 = arith.cmpf ogt, %0, %1 : vector<8x256xf32>
    %cst_1 = arith.constant 1.000000e+00 : f32
    %cst_2 = arith.constant -1.000000e+00 : f32
    %3 = vector.broadcast %cst_1 : f32 to vector<8x256xf32>
    %4 = vector.broadcast %cst_2 : f32 to vector<8x256xf32>
    %5 = arith.select %2, %3, %4 : vector<8x256xi1>, vector<8x256xf32>
    %6 = arith.truncf %5 : vector<8x256xf32> to vector<8x256xbf16>
    %c0_3 = arith.constant 0 : index
    %c0_4 = arith.constant 0 : index
    %7 = vector.load %arg2[%c0_3, %c0_4] : memref<256x128xbf16, #tpu.memory_space<vmem>>, vector<256x128xbf16>
    %cst_5 = arith.constant dense<0.000000e+00> : vector<8x128xf32>
    %8 = tpu.matmul %6, %7, %cst_5 {dimension_numbers = #tpu.dot_dimension_numbers<[1], [0], [0], [1], [0, 0, 1, 1], [], []>} : vector<8x256xbf16>, vector<256x128xbf16>, vector<8x128xf32> -> vector<8x128xf32>
    %c0_6 = arith.constant 0 : index
    %c0_7 = arith.constant 0 : index
    %9 = vector.load %arg3[%c0_6, %c0_7] : memref<4x128xf32, #tpu.memory_space<vmem>>, vector<1x128xf32>
    %c1 = arith.constant 1 : index
    %c0_8 = arith.constant 0 : index
    %10 = vector.load %arg3[%c1, %c0_8] : memref<4x128xf32, #tpu.memory_space<vmem>>, vector<1x128xf32>
    %c2 = arith.constant 2 : index
    %c0_9 = arith.constant 0 : index
    %11 = vector.load %arg3[%c2, %c0_9] : memref<4x128xf32, #tpu.memory_space<vmem>>, vector<1x128xf32>
    %12 = vector.broadcast %9 : vector<1x128xf32> to vector<8x128xf32>
    %13 = arith.mulf %8, %12 : vector<8x128xf32>
    %14 = vector.broadcast %10 : vector<1x128xf32> to vector<8x128xf32>
    %15 = arith.addf %13, %14 : vector<8x128xf32>
    %cst_10 = arith.constant 0.000000e+00 : f32
    %16 = vector.broadcast %cst_10 : f32 to vector<8x128xf32>
    %17 = arith.cmpf oge, %15, %16 : vector<8x128xf32>
    %18 = vector.broadcast %11 : vector<1x128xf32> to vector<8x128xf32>
    %19 = arith.mulf %15, %18 : vector<8x128xf32>
    %20 = arith.select %17, %15, %19 : vector<8x128xi1>, vector<8x128xf32>
    %cst_11 = arith.constant 0.000000e+00 : f32
    %21 = vector.broadcast %cst_11 : f32 to vector<8x128xf32>
    %22 = arith.cmpf ogt, %20, %21 : vector<8x128xf32>
    %cst_12 = arith.constant 1.000000e+00 : f32
    %cst_13 = arith.constant -1.000000e+00 : f32
    %23 = vector.broadcast %cst_12 : f32 to vector<8x128xf32>
    %24 = vector.broadcast %cst_13 : f32 to vector<8x128xf32>
    %25 = arith.select %22, %23, %24 : vector<8x128xi1>, vector<8x128xf32>
    %26 = arith.truncf %25 : vector<8x128xf32> to vector<8x128xbf16>
    %c0_14 = arith.constant 0 : index
    %c0_15 = arith.constant 0 : index
    %27 = vector.load %arg4[%c0_14, %c0_15] : memref<8x128xbf16, #tpu.memory_space<vmem>>, vector<8x128xbf16>
    tpu.vector_store %arg4[%c0_14, %c0_15], %26 {strides = array<i32>} : memref<8x128xbf16, #tpu.memory_space<vmem>>, vector<8x128xbf16>,
    return
  }
  func.func @transform_0(%arg0: i32) -> (i32, i32) {
    %c0_i32 = arith.constant 0 : i32
    %c0_i32_0 = arith.constant 0 : i32
    return %arg0, %c0_i32 : i32, i32
  }
  func.func @transform_1(%arg0: i32) -> (i32, i32) {
    %c0_i32 = arith.constant 0 : i32
    %c0_i32_0 = arith.constant 0 : i32
    %c0_i32_1 = arith.constant 0 : i32
    return %c0_i32, %c0_i32_0 : i32, i32
  }
  func.func @transform_2(%arg0: i32) -> (i32, i32) {
    %c0_i32 = arith.constant 0 : i32
    %c0_i32_0 = arith.constant 0 : i32
    %c0_i32_1 = arith.constant 0 : i32
    return %c0_i32, %c0_i32_0 : i32, i32
  }
  func.func @transform_3(%arg0: i32) -> (i32, i32) {
    %c0_i32 = arith.constant 0 : i32
    %c0_i32_0 = arith.constant 0 : i32
    return %arg0, %c0_i32 : i32, i32
  }
}

module attributes {stable_mosaic.version = 11 : i64} {
  func.func @kernel(%arg0: i32, %arg1: memref<8x128xf32, #tpu.memory_space<vmem>>, %arg2: memref<128x128xbf16, #tpu.memory_space<vmem>>, %arg3: memref<4x128xf32, #tpu.memory_space<vmem>>, %arg4: memref<8x128xbf16, #tpu.memory_space<vmem>>) attributes {dimension_semantics = [#tpu.dimension_semantics<parallel>], iteration_bounds = array<i64: 1>, scalar_prefetch = 0 : i64, scratch_operands = 0 : i64, tpu.core_type = #tpu.core_type<tc>, window_params = [{transform_indices = @transform_0, window_bounds = array<i64: 8, 128>}, {pipeline_mode = #tpu.pipeline_mode<synchronous>, transform_indices = @transform_1, window_bounds = array<i64: 128, 128>}, {pipeline_mode = #tpu.pipeline_mode<synchronous>, transform_indices = @transform_2, window_bounds = array<i64: 4, 128>}, {transform_indices = @transform_3, window_bounds = array<i64: 8, 128>}]} {
    %c0 = arith.constant 0 : index
    %c0_0 = arith.constant 0 : index
    %0 = vector.load %arg1[%c0, %c0_0] : memref<8x128xf32, #tpu.memory_space<vmem>>, vector<8x128xf32>
    %cst = arith.constant 0.000000e+00 : f32
    %1 = vector.broadcast %cst : f32 to vector<8x128xf32>
    %2 = arith.cmpf ogt, %0, %1 : vector<8x128xf32>
    %cst_1 = arith.constant 1.000000e+00 : f32
    %cst_2 = arith.constant -1.000000e+00 : f32
    %3 = vector.broadcast %cst_1 : f32 to vector<8x128xf32>
    %4 = vector.broadcast %cst_2 : f32 to vector<8x128xf32>
    %5 = arith.select %2, %3, %4 : vector<8x128xi1>, vector<8x128xf32>
    %6 = arith.truncf %5 : vector<8x128xf32> to vector<8x128xbf16>
    %c0_3 = arith.constant 0 : index
    %c0_4 = arith.constant 0 : index
    %7 = vector.load %arg2[%c0_3, %c0_4] : memref<128x128xbf16, #tpu.memory_space<vmem>>, vector<128x128xbf16>
    %cst_5 = arith.constant dense<0.000000e+00> : vector<8x128xf32>
    %8 = tpu.matmul %6, %7, %cst_5 {dimension_numbers = #tpu.dot_dimension_numbers<[1], [0], [0], [1], [0, 0, 1, 1], [], []>} : vector<8x128xbf16>, vector<128x128xbf16>, vector<8x128xf32> -> vector<8x128xf32>
    %c0_6 = arith.constant 0 : index
    %c0_7 = arith.constant 0 : index
    %9 = vector.load %arg3[%c0_6, %c0_7] : memref<4x128xf32, #tpu.memory_space<vmem>>, vector<1x128xf32>
    %c1 = arith.constant 1 : index
    %c0_8 = arith.constant 0 : index
    %10 = vector.load %arg3[%c1, %c0_8] : memref<4x128xf32, #tpu.memory_space<vmem>>, vector<1x128xf32>
    %c2 = arith.constant 2 : index
    %c0_9 = arith.constant 0 : index
    %11 = vector.load %arg3[%c2, %c0_9] : memref<4x128xf32, #tpu.memory_space<vmem>>, vector<1x128xf32>
    %12 = vector.broadcast %9 : vector<1x128xf32> to vector<8x128xf32>
    %13 = arith.mulf %8, %12 : vector<8x128xf32>
    %14 = vector.broadcast %10 : vector<1x128xf32> to vector<8x128xf32>
    %15 = arith.addf %13, %14 : vector<8x128xf32>
    %cst_10 = arith.constant 0.000000e+00 : f32
    %16 = vector.broadcast %cst_10 : f32 to vector<8x128xf32>
    %17 = arith.cmpf oge, %15, %16 : vector<8x128xf32>
    %18 = vector.broadcast %11 : vector<1x128xf32> to vector<8x128xf32>
    %19 = arith.mulf %15, %18 : vector<8x128xf32>
    %20 = arith.select %17, %15, %19 : vector<8x128xi1>, vector<8x128xf32>
    %cst_11 = arith.constant 0.000000e+00 : f32
    %21 = vector.broadcast %cst_11 : f32 to vector<8x128xf32>
    %22 = arith.cmpf ogt, %20, %21 : vector<8x128xf32>
    %cst_12 = arith.constant 1.000000e+00 : f32
    %cst_13 = arith.constant -1.000000e+00 : f32
    %23 = vector.broadcast %cst_12 : f32 to vector<8x128xf32>
    %24 = vector.broadcast %cst_13 : f32 to vector<8x128xf32>
    %25 = arith.select %22, %23, %24 : vector<8x128xi1>, vector<8x128xf32>
    %26 = arith.truncf %25 : vector<8x128xf32> to vector<8x128xbf16>
    %c0_14 = arith.constant 0 : index
    %c0_15 = arith.constant 0 : index
    %27 = vector.load %arg4[%c0_14, %c0_15] : memref<8x128xbf16, #tpu.memory_space<vmem>>, vector<8x128xbf16>
    tpu.vector_store %arg4[%c0_14, %c0_15], %26 {strides = array<i32>} : memref<8x128xbf16, #tpu.memory_space<vmem>>, vector<8x128xbf16>,
    return
  }
  func.func @transform_0(%arg0: i32) -> (i32, i32) {
    %c0_i32 = arith.constant 0 : i32
    %c0_i32_0 = arith.constant 0 : i32
    return %arg0, %c0_i32 : i32, i32
  }
  func.func @transform_1(%arg0: i32) -> (i32, i32) {
    %c0_i32 = arith.constant 0 : i32
    %c0_i32_0 = arith.constant 0 : i32
    %c0_i32_1 = arith.constant 0 : i32
    return %c0_i32, %c0_i32_0 : i32, i32
  }
  func.func @transform_2(%arg0: i32) -> (i32, i32) {
    %c0_i32 = arith.constant 0 : i32
    %c0_i32_0 = arith.constant 0 : i32
    %c0_i32_1 = arith.constant 0 : i32
    return %c0_i32, %c0_i32_0 : i32, i32
  }
  func.func @transform_3(%arg0: i32) -> (i32, i32) {
    %c0_i32 = arith.constant 0 : i32
    %c0_i32_0 = arith.constant 0 : i32
    return %arg0, %c0_i32 : i32, i32
  }
}

module attributes {stable_mosaic.version = 11 : i64} {
  func.func @kernel(%arg0: i32, %arg1: memref<8x256xbf16, #tpu.memory_space<vmem>>, %arg2: memref<256x128xbf16, #tpu.memory_space<vmem>>, %arg3: memref<4x128xf32, #tpu.memory_space<vmem>>, %arg4: memref<8x128xbf16, #tpu.memory_space<vmem>>) attributes {dimension_semantics = [#tpu.dimension_semantics<parallel>], iteration_bounds = array<i64: 1>, scalar_prefetch = 0 : i64, scratch_operands = 0 : i64, tpu.core_type = #tpu.core_type<tc>, window_params = [{transform_indices = @transform_0, window_bounds = array<i64: 8, 256>}, {pipeline_mode = #tpu.pipeline_mode<synchronous>, transform_indices = @transform_1, window_bounds = array<i64: 256, 128>}, {pipeline_mode = #tpu.pipeline_mode<synchronous>, transform_indices = @transform_2, window_bounds = array<i64: 4, 128>}, {transform_indices = @transform_3, window_bounds = array<i64: 8, 128>}]} {
    %c0 = arith.constant 0 : index
    %c0_0 = arith.constant 0 : index
    %0 = vector.load %arg1[%c0, %c0_0] : memref<8x256xbf16, #tpu.memory_space<vmem>>, vector<8x256xbf16>
    %c0_1 = arith.constant 0 : index
    %c0_2 = arith.constant 0 : index
    %1 = vector.load %arg2[%c0_1, %c0_2] : memref<256x128xbf16, #tpu.memory_space<vmem>>, vector<256x128xbf16>
    %cst = arith.constant dense<0.000000e+00> : vector<8x128xf32>
    %2 = tpu.matmul %0, %1, %cst {dimension_numbers = #tpu.dot_dimension_numbers<[1], [0], [0], [1], [0, 0, 1, 1], [], []>} : vector<8x256xbf16>, vector<256x128xbf16>, vector<8x128xf32> -> vector<8x128xf32>
    %c0_3 = arith.constant 0 : index
    %c0_4 = arith.constant 0 : index
    %3 = vector.load %arg3[%c0_3, %c0_4] : memref<4x128xf32, #tpu.memory_space<vmem>>, vector<1x128xf32>
    %c1 = arith.constant 1 : index
    %c0_5 = arith.constant 0 : index
    %4 = vector.load %arg3[%c1, %c0_5] : memref<4x128xf32, #tpu.memory_space<vmem>>, vector<1x128xf32>
    %c2 = arith.constant 2 : index
    %c0_6 = arith.constant 0 : index
    %5 = vector.load %arg3[%c2, %c0_6] : memref<4x128xf32, #tpu.memory_space<vmem>>, vector<1x128xf32>
    %6 = vector.broadcast %3 : vector<1x128xf32> to vector<8x128xf32>
    %7 = arith.mulf %2, %6 : vector<8x128xf32>
    %8 = vector.broadcast %4 : vector<1x128xf32> to vector<8x128xf32>
    %9 = arith.addf %7, %8 : vector<8x128xf32>
    %cst_7 = arith.constant 0.000000e+00 : f32
    %10 = vector.broadcast %cst_7 : f32 to vector<8x128xf32>
    %11 = arith.cmpf oge, %9, %10 : vector<8x128xf32>
    %12 = vector.broadcast %5 : vector<1x128xf32> to vector<8x128xf32>
    %13 = arith.mulf %9, %12 : vector<8x128xf32>
    %14 = arith.select %11, %9, %13 : vector<8x128xi1>, vector<8x128xf32>
    %cst_8 = arith.constant 0.000000e+00 : f32
    %15 = vector.broadcast %cst_8 : f32 to vector<8x128xf32>
    %16 = arith.cmpf ogt, %14, %15 : vector<8x128xf32>
    %cst_9 = arith.constant 1.000000e+00 : f32
    %cst_10 = arith.constant -1.000000e+00 : f32
    %17 = vector.broadcast %cst_9 : f32 to vector<8x128xf32>
    %18 = vector.broadcast %cst_10 : f32 to vector<8x128xf32>
    %19 = arith.select %16, %17, %18 : vector<8x128xi1>, vector<8x128xf32>
    %20 = arith.truncf %19 : vector<8x128xf32> to vector<8x128xbf16>
    %c0_11 = arith.constant 0 : index
    %c0_12 = arith.constant 0 : index
    %21 = vector.load %arg4[%c0_11, %c0_12] : memref<8x128xbf16, #tpu.memory_space<vmem>>, vector<8x128xbf16>
    tpu.vector_store %arg4[%c0_11, %c0_12], %20 {strides = array<i32>} : memref<8x128xbf16, #tpu.memory_space<vmem>>, vector<8x128xbf16>,
    return
  }
  func.func @transform_0(%arg0: i32) -> (i32, i32) {
    %c0_i32 = arith.constant 0 : i32
    %c0_i32_0 = arith.constant 0 : i32
    return %arg0, %c0_i32 : i32, i32
  }
  func.func @transform_1(%arg0: i32) -> (i32, i32) {
    %c0_i32 = arith.constant 0 : i32
    %c0_i32_0 = arith.constant 0 : i32
    %c0_i32_1 = arith.constant 0 : i32
    return %c0_i32, %c0_i32_0 : i32, i32
  }
  func.func @transform_2(%arg0: i32) -> (i32, i32) {
    %c0_i32 = arith.constant 0 : i32
    %c0_i32_0 = arith.constant 0 : i32
    %c0_i32_1 = arith.constant 0 : i32
    return %c0_i32, %c0_i32_0 : i32, i32
  }
  func.func @transform_3(%arg0: i32) -> (i32, i32) {
    %c0_i32 = arith.constant 0 : i32
    %c0_i32_0 = arith.constant 0 : i32
    return %arg0, %c0_i32 : i32, i32
  }
}

module attributes {stable_mosaic.version = 11 : i64} {
  func.func @kernel(%arg0: i32, %arg1: memref<8x128xbf16, #tpu.memory_space<vmem>>, %arg2: memref<128x128xbf16, #tpu.memory_space<vmem>>, %arg3: memref<4x128xf32, #tpu.memory_space<vmem>>, %arg4: memref<8x128xf32, #tpu.memory_space<vmem>>, %arg5: memref<8x128xf32, #tpu.memory_space<vmem>>) attributes {dimension_semantics = [#tpu.dimension_semantics<parallel>], iteration_bounds = array<i64: 1>, scalar_prefetch = 0 : i64, scratch_operands = 0 : i64, tpu.core_type = #tpu.core_type<tc>, window_params = [{transform_indices = @transform_0, window_bounds = array<i64: 8, 128>}, {pipeline_mode = #tpu.pipeline_mode<synchronous>, transform_indices = @transform_1, window_bounds = array<i64: 128, 128>}, {pipeline_mode = #tpu.pipeline_mode<synchronous>, transform_indices = @transform_2, window_bounds = array<i64: 4, 128>}, {transform_indices = @transform_3, window_bounds = array<i64: 8, 128>}, {transform_indices = @transform_4, window_bounds = array<i64: 8, 128>}]} {
    %c0 = arith.constant 0 : index
    %c0_0 = arith.constant 0 : index
    %0 = vector.load %arg1[%c0, %c0_0] : memref<8x128xbf16, #tpu.memory_space<vmem>>, vector<8x128xbf16>
    %c0_1 = arith.constant 0 : index
    %c0_2 = arith.constant 0 : index
    %1 = vector.load %arg2[%c0_1, %c0_2] : memref<128x128xbf16, #tpu.memory_space<vmem>>, vector<128x128xbf16>
    %cst = arith.constant dense<0.000000e+00> : vector<8x128xf32>
    %2 = tpu.matmul %0, %1, %cst {dimension_numbers = #tpu.dot_dimension_numbers<[1], [0], [0], [1], [0, 0, 1, 1], [], []>} : vector<8x128xbf16>, vector<128x128xbf16>, vector<8x128xf32> -> vector<8x128xf32>
    %c0_3 = arith.constant 0 : index
    %c0_4 = arith.constant 0 : index
    %3 = vector.load %arg3[%c0_3, %c0_4] : memref<4x128xf32, #tpu.memory_space<vmem>>, vector<1x128xf32>
    %c1 = arith.constant 1 : index
    %c0_5 = arith.constant 0 : index
    %4 = vector.load %arg3[%c1, %c0_5] : memref<4x128xf32, #tpu.memory_space<vmem>>, vector<1x128xf32>
    %c2 = arith.constant 2 : index
    %c0_6 = arith.constant 0 : index
    %5 = vector.load %arg3[%c2, %c0_6] : memref<4x128xf32, #tpu.memory_space<vmem>>, vector<1x128xf32>
    %6 = vector.broadcast %3 : vector<1x128xf32> to vector<8x128xf32>
    %7 = arith.mulf %2, %6 : vector<8x128xf32>
    %8 = vector.broadcast %4 : vector<1x128xf32> to vector<8x128xf32>
    %9 = arith.addf %7, %8 : vector<8x128xf32>
    %cst_7 = arith.constant 0.000000e+00 : f32
    %10 = vector.broadcast %cst_7 : f32 to vector<8x128xf32>
    %11 = arith.cmpf oge, %9, %10 : vector<8x128xf32>
    %12 = vector.broadcast %5 : vector<1x128xf32> to vector<8x128xf32>
    %13 = arith.mulf %9, %12 : vector<8x128xf32>
    %14 = arith.select %11, %9, %13 : vector<8x128xi1>, vector<8x128xf32>
    %c3 = arith.constant 3 : index
    %c0_8 = arith.constant 0 : index
    %15 = vector.load %arg3[%c3, %c0_8] : memref<4x128xf32, #tpu.memory_space<vmem>>, vector<1x128xf32>
    %c0_9 = arith.constant 0 : index
    %c0_10 = arith.constant 0 : index
    %16 = vector.load %arg4[%c0_9, %c0_10] : memref<8x128xf32, #tpu.memory_space<vmem>>, vector<8x128xf32>
    %17 = arith.addf %14, %16 : vector<8x128xf32>
    %cst_11 = arith.constant 0.000000e+00 : f32
    %18 = vector.broadcast %cst_11 : f32 to vector<8x128xf32>
    %19 = arith.cmpf oge, %17, %18 : vector<8x128xf32>
    %20 = vector.broadcast %15 : vector<1x128xf32> to vector<8x128xf32>
    %21 = arith.mulf %17, %20 : vector<8x128xf32>
    %22 = arith.select %19, %17, %21 : vector<8x128xi1>, vector<8x128xf32>
    %c0_12 = arith.constant 0 : index
    %c0_13 = arith.constant 0 : index
    %23 = vector.load %arg5[%c0_12, %c0_13] : memref<8x128xf32, #tpu.memory_space<vmem>>, vector<8x128xf32>
    tpu.vector_store %arg5[%c0_12, %c0_13], %22 {strides = array<i32>} : memref<8x128xf32, #tpu.memory_space<vmem>>, vector<8x128xf32>,
    return
  }
  func.func @transform_0(%arg0: i32) -> (i32, i32) {
    %c0_i32 = arith.constant 0 : i32
    %c0_i32_0 = arith.constant 0 : i32
    return %arg0, %c0_i32 : i32, i32
  }
  func.func @transform_1(%arg0: i32) -> (i32, i32) {
    %c0_i32 = arith.constant 0 : i32
    %c0_i32_0 = arith.constant 0 : i32
    %c0_i32_1 = arith.constant 0 : i32
    return %c0_i32, %c0_i32_0 : i32, i32
  }
  func.func @transform_2(%arg0: i32) -> (i32, i32) {
    %c0_i32 = arith.constant 0 : i32
    %c0_i32_0 = arith.constant 0 : i32
    %c0_i32_1 = arith.constant 0 : i32
    return %c0_i32, %c0_i32_0 : i32, i32
  }
  func.func @transform_3(%arg0: i32) -> (i32, i32) {
    %c0_i32 = arith.constant 0 : i32
    %c0_i32_0 = arith.constant 0 : i32
    return %arg0, %c0_i32 : i32, i32
  }
  func.func @transform_4(%arg0: i32) -> (i32, i32) {
    %c0_i32 = arith.constant 0 : i32
    %c0_i32_0 = arith.constant 0 : i32
    return %arg0, %c0_i32 : i32, i32
  }
}

module attributes {stable_mosaic.version = 11 : i64} {
  func.func @kernel(%arg0: i32, %arg1: memref<8x384xbf16, #tpu.memory_space<vmem>>, %arg2: memref<384x128xbf16, #tpu.memory_space<vmem>>, %arg3: memref<4x128xf32, #tpu.memory_space<vmem>>, %arg4: memref<8x128xbf16, #tpu.memory_space<vmem>>) attributes {dimension_semantics = [#tpu.dimension_semantics<parallel>], iteration_bounds = array<i64: 1>, scalar_prefetch = 0 : i64, scratch_operands = 0 : i64, tpu.core_type = #tpu.core_type<tc>, window_params = [{transform_indices = @transform_0, window_bounds = array<i64: 8, 384>}, {pipeline_mode = #tpu.pipeline_mode<synchronous>, transform_indices = @transform_1, window_bounds = array<i64: 384, 128>}, {pipeline_mode = #tpu.pipeline_mode<synchronous>, transform_indices = @transform_2, window_bounds = array<i64: 4, 128>}, {transform_indices = @transform_3, window_bounds = array<i64: 8, 128>}]} {
    %c0 = arith.constant 0 : index
    %c0_0 = arith.constant 0 : index
    %0 = vector.load %arg1[%c0, %c0_0] : memref<8x384xbf16, #tpu.memory_space<vmem>>, vector<8x384xbf16>
    %c0_1 = arith.constant 0 : index
    %c0_2 = arith.constant 0 : index
    %1 = vector.load %arg2[%c0_1, %c0_2] : memref<384x128xbf16, #tpu.memory_space<vmem>>, vector<384x128xbf16>
    %cst = arith.constant dense<0.000000e+00> : vector<8x128xf32>
    %2 = tpu.matmul %0, %1, %cst {dimension_numbers = #tpu.dot_dimension_numbers<[1], [0], [0], [1], [0, 0, 1, 1], [], []>} : vector<8x384xbf16>, vector<384x128xbf16>, vector<8x128xf32> -> vector<8x128xf32>
    %c0_3 = arith.constant 0 : index
    %c0_4 = arith.constant 0 : index
    %3 = vector.load %arg3[%c0_3, %c0_4] : memref<4x128xf32, #tpu.memory_space<vmem>>, vector<1x128xf32>
    %c1 = arith.constant 1 : index
    %c0_5 = arith.constant 0 : index
    %4 = vector.load %arg3[%c1, %c0_5] : memref<4x128xf32, #tpu.memory_space<vmem>>, vector<1x128xf32>
    %c2 = arith.constant 2 : index
    %c0_6 = arith.constant 0 : index
    %5 = vector.load %arg3[%c2, %c0_6] : memref<4x128xf32, #tpu.memory_space<vmem>>, vector<1x128xf32>
    %6 = vector.broadcast %3 : vector<1x128xf32> to vector<8x128xf32>
    %7 = arith.mulf %2, %6 : vector<8x128xf32>
    %8 = vector.broadcast %4 : vector<1x128xf32> to vector<8x128xf32>
    %9 = arith.addf %7, %8 : vector<8x128xf32>
    %cst_7 = arith.constant 0.000000e+00 : f32
    %10 = vector.broadcast %cst_7 : f32 to vector<8x128xf32>
    %11 = arith.cmpf oge, %9, %10 : vector<8x128xf32>
    %12 = vector.broadcast %5 : vector<1x128xf32> to vector<8x128xf32>
    %13 = arith.mulf %9, %12 : vector<8x128xf32>
    %14 = arith.select %11, %9, %13 : vector<8x128xi1>, vector<8x128xf32>
    %cst_8 = arith.constant 0.000000e+00 : f32
    %15 = vector.broadcast %cst_8 : f32 to vector<8x128xf32>
    %16 = arith.cmpf ogt, %14, %15 : vector<8x128xf32>
    %cst_9 = arith.constant 1.000000e+00 : f32
    %cst_10 = arith.constant -1.000000e+00 : f32
    %17 = vector.broadcast %cst_9 : f32 to vector<8x128xf32>
    %18 = vector.broadcast %cst_10 : f32 to vector<8x128xf32>
    %19 = arith.select %16, %17, %18 : vector<8x128xi1>, vector<8x128xf32>
    %20 = arith.truncf %19 : vector<8x128xf32> to vector<8x128xbf16>
    %c0_11 = arith.constant 0 : index
    %c0_12 = arith.constant 0 : index
    %21 = vector.load %arg4[%c0_11, %c0_12] : memref<8x128xbf16, #tpu.memory_space<vmem>>, vector<8x128xbf16>
    tpu.vector_store %arg4[%c0_11, %c0_12], %20 {strides = array<i32>} : memref<8x128xbf16, #tpu.memory_space<vmem>>, vector<8x128xbf16>,
    return
  }
  func.func @transform_0(%arg0: i32) -> (i32, i32) {
    %c0_i32 = arith.constant 0 : i32
    %c0_i32_0 = arith.constant 0 : i32
    return %arg0, %c0_i32 : i32, i32
  }
  func.func @transform_1(%arg0: i32) -> (i32, i32) {
    %c0_i32 = arith.constant 0 : i32
    %c0_i32_0 = arith.constant 0 : i32
    %c0_i32_1 = arith.constant 0 : i32
    return %c0_i32, %c0_i32_0 : i32, i32
  }
  func.func @transform_2(%arg0: i32) -> (i32, i32) {
    %c0_i32 = arith.constant 0 : i32
    %c0_i32_0 = arith.constant 0 : i32
    %c0_i32_1 = arith.constant 0 : i32
    return %c0_i32, %c0_i32_0 : i32, i32
  }
  func.func @transform_3(%arg0: i32) -> (i32, i32) {
    %c0_i32 = arith.constant 0 : i32
    %c0_i32_0 = arith.constant 0 : i32
    return %arg0, %c0_i32 : i32, i32
  }
}

module attributes {stable_mosaic.version = 11 : i64} {
  func.func @kernel(%arg0: i32, %arg1: memref<8x128xbf16, #tpu.memory_space<vmem>>, %arg2: memref<128x128xbf16, #tpu.memory_space<vmem>>, %arg3: memref<4x128xf32, #tpu.memory_space<vmem>>, %arg4: memref<8x128xf32, #tpu.memory_space<vmem>>, %arg5: memref<8x128xbf16, #tpu.memory_space<vmem>>) attributes {dimension_semantics = [#tpu.dimension_semantics<parallel>], iteration_bounds = array<i64: 1>, scalar_prefetch = 0 : i64, scratch_operands = 0 : i64, tpu.core_type = #tpu.core_type<tc>, window_params = [{transform_indices = @transform_0, window_bounds = array<i64: 8, 128>}, {pipeline_mode = #tpu.pipeline_mode<synchronous>, transform_indices = @transform_1, window_bounds = array<i64: 128, 128>}, {pipeline_mode = #tpu.pipeline_mode<synchronous>, transform_indices = @transform_2, window_bounds = array<i64: 4, 128>}, {transform_indices = @transform_3, window_bounds = array<i64: 8, 128>}, {transform_indices = @transform_4, window_bounds = array<i64: 8, 128>}]} {
    %c0 = arith.constant 0 : index
    %c0_0 = arith.constant 0 : index
    %0 = vector.load %arg1[%c0, %c0_0] : memref<8x128xbf16, #tpu.memory_space<vmem>>, vector<8x128xbf16>
    %c0_1 = arith.constant 0 : index
    %c0_2 = arith.constant 0 : index
    %1 = vector.load %arg2[%c0_1, %c0_2] : memref<128x128xbf16, #tpu.memory_space<vmem>>, vector<128x128xbf16>
    %cst = arith.constant dense<0.000000e+00> : vector<8x128xf32>
    %2 = tpu.matmul %0, %1, %cst {dimension_numbers = #tpu.dot_dimension_numbers<[1], [0], [0], [1], [0, 0, 1, 1], [], []>} : vector<8x128xbf16>, vector<128x128xbf16>, vector<8x128xf32> -> vector<8x128xf32>
    %c0_3 = arith.constant 0 : index
    %c0_4 = arith.constant 0 : index
    %3 = vector.load %arg3[%c0_3, %c0_4] : memref<4x128xf32, #tpu.memory_space<vmem>>, vector<1x128xf32>
    %c1 = arith.constant 1 : index
    %c0_5 = arith.constant 0 : index
    %4 = vector.load %arg3[%c1, %c0_5] : memref<4x128xf32, #tpu.memory_space<vmem>>, vector<1x128xf32>
    %c2 = arith.constant 2 : index
    %c0_6 = arith.constant 0 : index
    %5 = vector.load %arg3[%c2, %c0_6] : memref<4x128xf32, #tpu.memory_space<vmem>>, vector<1x128xf32>
    %6 = vector.broadcast %3 : vector<1x128xf32> to vector<8x128xf32>
    %7 = arith.mulf %2, %6 : vector<8x128xf32>
    %8 = vector.broadcast %4 : vector<1x128xf32> to vector<8x128xf32>
    %9 = arith.addf %7, %8 : vector<8x128xf32>
    %cst_7 = arith.constant 0.000000e+00 : f32
    %10 = vector.broadcast %cst_7 : f32 to vector<8x128xf32>
    %11 = arith.cmpf oge, %9, %10 : vector<8x128xf32>
    %12 = vector.broadcast %5 : vector<1x128xf32> to vector<8x128xf32>
    %13 = arith.mulf %9, %12 : vector<8x128xf32>
    %14 = arith.select %11, %9, %13 : vector<8x128xi1>, vector<8x128xf32>
    %c3 = arith.constant 3 : index
    %c0_8 = arith.constant 0 : index
    %15 = vector.load %arg3[%c3, %c0_8] : memref<4x128xf32, #tpu.memory_space<vmem>>, vector<1x128xf32>
    %c0_9 = arith.constant 0 : index
    %c0_10 = arith.constant 0 : index
    %16 = vector.load %arg4[%c0_9, %c0_10] : memref<8x128xf32, #tpu.memory_space<vmem>>, vector<8x128xf32>
    %17 = arith.addf %14, %16 : vector<8x128xf32>
    %cst_11 = arith.constant 0.000000e+00 : f32
    %18 = vector.broadcast %cst_11 : f32 to vector<8x128xf32>
    %19 = arith.cmpf oge, %17, %18 : vector<8x128xf32>
    %20 = vector.broadcast %15 : vector<1x128xf32> to vector<8x128xf32>
    %21 = arith.mulf %17, %20 : vector<8x128xf32>
    %22 = arith.select %19, %17, %21 : vector<8x128xi1>, vector<8x128xf32>
    %cst_12 = arith.constant 0.000000e+00 : f32
    %23 = vector.broadcast %cst_12 : f32 to vector<8x128xf32>
    %24 = arith.cmpf ogt, %22, %23 : vector<8x128xf32>
    %cst_13 = arith.constant 1.000000e+00 : f32
    %cst_14 = arith.constant -1.000000e+00 : f32
    %25 = vector.broadcast %cst_13 : f32 to vector<8x128xf32>
    %26 = vector.broadcast %cst_14 : f32 to vector<8x128xf32>
    %27 = arith.select %24, %25, %26 : vector<8x128xi1>, vector<8x128xf32>
    %28 = arith.truncf %27 : vector<8x128xf32> to vector<8x128xbf16>
    %c0_15 = arith.constant 0 : index
    %c0_16 = arith.constant 0 : index
    %29 = vector.load %arg5[%c0_15, %c0_16] : memref<8x128xbf16, #tpu.memory_space<vmem>>, vector<8x128xbf16>
    tpu.vector_store %arg5[%c0_15, %c0_16], %28 {strides = array<i32>} : memref<8x128xbf16, #tpu.memory_space<vmem>>, vector<8x128xbf16>,
    return
  }
  func.func @transform_0(%arg0: i32) -> (i32, i32) {
    %c0_i32 = arith.constant 0 : i32
    %c0_i32_0 = arith.constant 0 : i32
    return %arg0, %c0_i32 : i32, i32
  }
  func.func @transform_1(%arg0: i32) -> (i32, i32) {
    %c0_i32 = arith.constant 0 : i32
    %c0_i32_0 = arith.constant 0 : i32
    %c0_i32_1 = arith.constant 0 : i32
    return %c0_i32, %c0_i32_0 : i32, i32
  }
  func.func @transform_2(%arg0: i32) -> (i32, i32) {
    %c0_i32 = arith.constant 0 : i32
    %c0_i32_0 = arith.constant 0 : i32
    %c0_i32_1 = arith.constant 0 : i32
    return %c0_i32, %c0_i32_0 : i32, i32
  }
  func.func @transform_3(%arg0: i32) -> (i32, i32) {
    %c0_i32 = arith.constant 0 : i32
    %c0_i32_0 = arith.constant 0 : i32
    return %arg0, %c0_i32 : i32, i32
  }
  func.func @transform_4(%arg0: i32) -> (i32, i32) {
    %c0_i32 = arith.constant 0 : i32
    %c0_i32_0 = arith.constant 0 : i32
    return %arg0, %c0_i32 : i32, i32
  }
}

module attributes {stable_mosaic.version = 11 : i64} {
  func.func @kernel(%arg0: i32, %arg1: memref<8x128xbf16, #tpu.memory_space<vmem>>, %arg2: memref<128x128xbf16, #tpu.memory_space<vmem>>, %arg3: memref<4x128xf32, #tpu.memory_space<vmem>>, %arg4: memref<8x128xbf16, #tpu.memory_space<vmem>>) attributes {dimension_semantics = [#tpu.dimension_semantics<parallel>], iteration_bounds = array<i64: 1>, scalar_prefetch = 0 : i64, scratch_operands = 0 : i64, tpu.core_type = #tpu.core_type<tc>, window_params = [{transform_indices = @transform_0, window_bounds = array<i64: 8, 128>}, {pipeline_mode = #tpu.pipeline_mode<synchronous>, transform_indices = @transform_1, window_bounds = array<i64: 128, 128>}, {pipeline_mode = #tpu.pipeline_mode<synchronous>, transform_indices = @transform_2, window_bounds = array<i64: 4, 128>}, {transform_indices = @transform_3, window_bounds = array<i64: 8, 128>}]} {
    %c0 = arith.constant 0 : index
    %c0_0 = arith.constant 0 : index
    %0 = vector.load %arg1[%c0, %c0_0] : memref<8x128xbf16, #tpu.memory_space<vmem>>, vector<8x128xbf16>
    %c0_1 = arith.constant 0 : index
    %c0_2 = arith.constant 0 : index
    %1 = vector.load %arg2[%c0_1, %c0_2] : memref<128x128xbf16, #tpu.memory_space<vmem>>, vector<128x128xbf16>
    %cst = arith.constant dense<0.000000e+00> : vector<8x128xf32>
    %2 = tpu.matmul %0, %1, %cst {dimension_numbers = #tpu.dot_dimension_numbers<[1], [0], [0], [1], [0, 0, 1, 1], [], []>} : vector<8x128xbf16>, vector<128x128xbf16>, vector<8x128xf32> -> vector<8x128xf32>
    %c0_3 = arith.constant 0 : index
    %c0_4 = arith.constant 0 : index
    %3 = vector.load %arg3[%c0_3, %c0_4] : memref<4x128xf32, #tpu.memory_space<vmem>>, vector<1x128xf32>
    %c1 = arith.constant 1 : index
    %c0_5 = arith.constant 0 : index
    %4 = vector.load %arg3[%c1, %c0_5] : memref<4x128xf32, #tpu.memory_space<vmem>>, vector<1x128xf32>
    %c2 = arith.constant 2 : index
    %c0_6 = arith.constant 0 : index
    %5 = vector.load %arg3[%c2, %c0_6] : memref<4x128xf32, #tpu.memory_space<vmem>>, vector<1x128xf32>
    %6 = vector.broadcast %3 : vector<1x128xf32> to vector<8x128xf32>
    %7 = arith.mulf %2, %6 : vector<8x128xf32>
    %8 = vector.broadcast %4 : vector<1x128xf32> to vector<8x128xf32>
    %9 = arith.addf %7, %8 : vector<8x128xf32>
    %cst_7 = arith.constant 0.000000e+00 : f32
    %10 = vector.broadcast %cst_7 : f32 to vector<8x128xf32>
    %11 = arith.cmpf oge, %9, %10 : vector<8x128xf32>
    %12 = vector.broadcast %5 : vector<1x128xf32> to vector<8x128xf32>
    %13 = arith.mulf %9, %12 : vector<8x128xf32>
    %14 = arith.select %11, %9, %13 : vector<8x128xi1>, vector<8x128xf32>
    %cst_8 = arith.constant 0.000000e+00 : f32
    %15 = vector.broadcast %cst_8 : f32 to vector<8x128xf32>
    %16 = arith.cmpf ogt, %14, %15 : vector<8x128xf32>
    %cst_9 = arith.constant 1.000000e+00 : f32
    %cst_10 = arith.constant -1.000000e+00 : f32
    %17 = vector.broadcast %cst_9 : f32 to vector<8x128xf32>
    %18 = vector.broadcast %cst_10 : f32 to vector<8x128xf32>
    %19 = arith.select %16, %17, %18 : vector<8x128xi1>, vector<8x128xf32>
    %20 = arith.truncf %19 : vector<8x128xf32> to vector<8x128xbf16>
    %c0_11 = arith.constant 0 : index
    %c0_12 = arith.constant 0 : index
    %21 = vector.load %arg4[%c0_11, %c0_12] : memref<8x128xbf16, #tpu.memory_space<vmem>>, vector<8x128xbf16>
    tpu.vector_store %arg4[%c0_11, %c0_12], %20 {strides = array<i32>} : memref<8x128xbf16, #tpu.memory_space<vmem>>, vector<8x128xbf16>,
    return
  }
  func.func @transform_0(%arg0: i32) -> (i32, i32) {
    %c0_i32 = arith.constant 0 : i32
    %c0_i32_0 = arith.constant 0 : i32
    return %arg0, %c0_i32 : i32, i32
  }
  func.func @transform_1(%arg0: i32) -> (i32, i32) {
    %c0_i32 = arith.constant 0 : i32
    %c0_i32_0 = arith.constant 0 : i32
    %c0_i32_1 = arith.constant 0 : i32
    return %c0_i32, %c0_i32_0 : i32, i32
  }
  func.func @transform_2(%arg0: i32) -> (i32, i32) {
    %c0_i32 = arith.constant 0 : i32
    %c0_i32_0 = arith.constant 0 : i32
    %c0_i32_1 = arith.constant 0 : i32
    return %c0_i32, %c0_i32_0 : i32, i32
  }
  func.func @transform_3(%arg0: i32) -> (i32, i32) {
    %c0_i32 = arith.constant 0 : i32
    %c0_i32_0 = arith.constant 0 : i32
    return %arg0, %c0_i32 : i32, i32
  }
}

module attributes {stable_mosaic.version = 11 : i64} {
  func.func @kernel(%arg0: i32, %arg1: memref<8x128xbf16, #tpu.memory_space<vmem>>, %arg2: memref<128x128xbf16, #tpu.memory_space<vmem>>, %arg3: memref<4x128xf32, #tpu.memory_space<vmem>>, %arg4: memref<8x128xf32, #tpu.memory_space<vmem>>) attributes {dimension_semantics = [#tpu.dimension_semantics<parallel>], iteration_bounds = array<i64: 1>, scalar_prefetch = 0 : i64, scratch_operands = 0 : i64, tpu.core_type = #tpu.core_type<tc>, window_params = [{transform_indices = @transform_0, window_bounds = array<i64: 8, 128>}, {pipeline_mode = #tpu.pipeline_mode<synchronous>, transform_indices = @transform_1, window_bounds = array<i64: 128, 128>}, {pipeline_mode = #tpu.pipeline_mode<synchronous>, transform_indices = @transform_2, window_bounds = array<i64: 4, 128>}, {transform_indices = @transform_3, window_bounds = array<i64: 8, 128>}]} {
    %c0 = arith.constant 0 : index
    %c0_0 = arith.constant 0 : index
    %0 = vector.load %arg1[%c0, %c0_0] : memref<8x128xbf16, #tpu.memory_space<vmem>>, vector<8x128xbf16>
    %c0_1 = arith.constant 0 : index
    %c0_2 = arith.constant 0 : index
    %1 = vector.load %arg2[%c0_1, %c0_2] : memref<128x128xbf16, #tpu.memory_space<vmem>>, vector<128x128xbf16>
    %cst = arith.constant dense<0.000000e+00> : vector<8x128xf32>
    %2 = tpu.matmul %0, %1, %cst {dimension_numbers = #tpu.dot_dimension_numbers<[1], [0], [0], [1], [0, 0, 1, 1], [], []>} : vector<8x128xbf16>, vector<128x128xbf16>, vector<8x128xf32> -> vector<8x128xf32>
    %c0_3 = arith.constant 0 : index
    %c0_4 = arith.constant 0 : index
    %3 = vector.load %arg3[%c0_3, %c0_4] : memref<4x128xf32, #tpu.memory_space<vmem>>, vector<1x128xf32>
    %c1 = arith.constant 1 : index
    %c0_5 = arith.constant 0 : index
    %4 = vector.load %arg3[%c1, %c0_5] : memref<4x128xf32, #tpu.memory_space<vmem>>, vector<1x128xf32>
    %c2 = arith.constant 2 : index
    %c0_6 = arith.constant 0 : index
    %5 = vector.load %arg3[%c2, %c0_6] : memref<4x128xf32, #tpu.memory_space<vmem>>, vector<1x128xf32>
    %6 = vector.broadcast %3 : vector<1x128xf32> to vector<8x128xf32>
    %7 = arith.mulf %2, %6 : vector<8x128xf32>
    %8 = vector.broadcast %4 : vector<1x128xf32> to vector<8x128xf32>
    %9 = arith.addf %7, %8 : vector<8x128xf32>
    %cst_7 = arith.constant 0.000000e+00 : f32
    %10 = vector.broadcast %cst_7 : f32 to vector<8x128xf32>
    %11 = arith.cmpf oge, %9, %10 : vector<8x128xf32>
    %12 = vector.broadcast %5 : vector<1x128xf32> to vector<8x128xf32>
    %13 = arith.mulf %9, %12 : vector<8x128xf32>
    %14 = arith.select %11, %9, %13 : vector<8x128xi1>, vector<8x128xf32>
    %c0_8 = arith.constant 0 : index
    %c0_9 = arith.constant 0 : index
    %15 = vector.load %arg4[%c0_8, %c0_9] : memref<8x128xf32, #tpu.memory_space<vmem>>, vector<8x128xf32>
    tpu.vector_store %arg4[%c0_8, %c0_9], %14 {strides = array<i32>} : memref<8x128xf32, #tpu.memory_space<vmem>>, vector<8x128xf32>,
    return
  }
  func.func @transform_0(%arg0: i32) -> (i32, i32) {
    %c0_i32 = arith.constant 0 : i32
    %c0_i32_0 = arith.constant 0 : i32
    return %arg0, %c0_i32 : i32, i32
  }
  func.func @transform_1(%arg0: i32) -> (i32, i32) {
    %c0_i32 = arith.constant 0 : i32
    %c0_i32_0 = arith.constant 0 : i32
    %c0_i32_1 = arith.constant 0 : i32
    return %c0_i32, %c0_i32_0 : i32, i32
  }
  func.func @transform_2(%arg0: i32) -> (i32, i32) {
    %c0_i32 = arith.constant 0 : i32
    %c0_i32_0 = arith.constant 0 : i32
    %c0_i32_1 = arith.constant 0 : i32
    return %c0_i32, %c0_i32_0 : i32, i32
  }
  func.func @transform_3(%arg0: i32) -> (i32, i32) {
    %c0_i32 = arith.constant 0 : i32
    %c0_i32_0 = arith.constant 0 : i32
    return %arg0, %c0_i32 : i32, i32
  }
}

module attributes {stable_mosaic.version = 11 : i64} {
  func.func @kernel(%arg0: i32, %arg1: memref<32x384xbf16, #tpu.memory_space<vmem>>, %arg2: memref<384x128xbf16, #tpu.memory_space<vmem>>, %arg3: memref<4x128xf32, #tpu.memory_space<vmem>>, %arg4: memref<32x128xbf16, #tpu.memory_space<vmem>>) attributes {dimension_semantics = [#tpu.dimension_semantics<parallel>], iteration_bounds = array<i64: 1>, scalar_prefetch = 0 : i64, scratch_operands = 0 : i64, tpu.core_type = #tpu.core_type<tc>, window_params = [{transform_indices = @transform_0, window_bounds = array<i64: 32, 384>}, {pipeline_mode = #tpu.pipeline_mode<synchronous>, transform_indices = @transform_1, window_bounds = array<i64: 384, 128>}, {pipeline_mode = #tpu.pipeline_mode<synchronous>, transform_indices = @transform_2, window_bounds = array<i64: 4, 128>}, {transform_indices = @transform_3, window_bounds = array<i64: 32, 128>}]} {
    %c0 = arith.constant 0 : index
    %c0_0 = arith.constant 0 : index
    %0 = vector.load %arg1[%c0, %c0_0] : memref<32x384xbf16, #tpu.memory_space<vmem>>, vector<32x384xbf16>
    %c0_1 = arith.constant 0 : index
    %c0_2 = arith.constant 0 : index
    %1 = vector.load %arg2[%c0_1, %c0_2] : memref<384x128xbf16, #tpu.memory_space<vmem>>, vector<384x128xbf16>
    %cst = arith.constant dense<0.000000e+00> : vector<32x128xf32>
    %2 = tpu.matmul %0, %1, %cst {dimension_numbers = #tpu.dot_dimension_numbers<[1], [0], [0], [1], [0, 0, 1, 1], [], []>} : vector<32x384xbf16>, vector<384x128xbf16>, vector<32x128xf32> -> vector<32x128xf32>
    %c0_3 = arith.constant 0 : index
    %c0_4 = arith.constant 0 : index
    %3 = vector.load %arg3[%c0_3, %c0_4] : memref<4x128xf32, #tpu.memory_space<vmem>>, vector<1x128xf32>
    %c1 = arith.constant 1 : index
    %c0_5 = arith.constant 0 : index
    %4 = vector.load %arg3[%c1, %c0_5] : memref<4x128xf32, #tpu.memory_space<vmem>>, vector<1x128xf32>
    %c2 = arith.constant 2 : index
    %c0_6 = arith.constant 0 : index
    %5 = vector.load %arg3[%c2, %c0_6] : memref<4x128xf32, #tpu.memory_space<vmem>>, vector<1x128xf32>
    %6 = vector.broadcast %3 : vector<1x128xf32> to vector<32x128xf32>
    %7 = arith.mulf %2, %6 : vector<32x128xf32>
    %8 = vector.broadcast %4 : vector<1x128xf32> to vector<32x128xf32>
    %9 = arith.addf %7, %8 : vector<32x128xf32>
    %cst_7 = arith.constant 0.000000e+00 : f32
    %10 = vector.broadcast %cst_7 : f32 to vector<32x128xf32>
    %11 = arith.cmpf oge, %9, %10 : vector<32x128xf32>
    %12 = vector.broadcast %5 : vector<1x128xf32> to vector<32x128xf32>
    %13 = arith.mulf %9, %12 : vector<32x128xf32>
    %14 = arith.select %11, %9, %13 : vector<32x128xi1>, vector<32x128xf32>
    %cst_8 = arith.constant 0.000000e+00 : f32
    %15 = vector.broadcast %cst_8 : f32 to vector<32x128xf32>
    %16 = arith.cmpf ogt, %14, %15 : vector<32x128xf32>
    %cst_9 = arith.constant 1.000000e+00 : f32
    %cst_10 = arith.constant -1.000000e+00 : f32
    %17 = vector.broadcast %cst_9 : f32 to vector<32x128xf32>
    %18 = vector.broadcast %cst_10 : f32 to vector<32x128xf32>
    %19 = arith.select %16, %17, %18 : vector<32x128xi1>, vector<32x128xf32>
    %20 = arith.truncf %19 : vector<32x128xf32> to vector<32x128xbf16>
    %c0_11 = arith.constant 0 : index
    %c0_12 = arith.constant 0 : index
    %21 = vector.load %arg4[%c0_11, %c0_12] : memref<32x128xbf16, #tpu.memory_space<vmem>>, vector<32x128xbf16>
    tpu.vector_store %arg4[%c0_11, %c0_12], %20 {strides = array<i32>} : memref<32x128xbf16, #tpu.memory_space<vmem>>, vector<32x128xbf16>,
    return
  }
  func.func @transform_0(%arg0: i32) -> (i32, i32) {
    %c0_i32 = arith.constant 0 : i32
    %c0_i32_0 = arith.constant 0 : i32
    return %arg0, %c0_i32 : i32, i32
  }
  func.func @transform_1(%arg0: i32) -> (i32, i32) {
    %c0_i32 = arith.constant 0 : i32
    %c0_i32_0 = arith.constant 0 : i32
    %c0_i32_1 = arith.constant 0 : i32
    return %c0_i32, %c0_i32_0 : i32, i32
  }
  func.func @transform_2(%arg0: i32) -> (i32, i32) {
    %c0_i32 = arith.constant 0 : i32
    %c0_i32_0 = arith.constant 0 : i32
    %c0_i32_1 = arith.constant 0 : i32
    return %c0_i32, %c0_i32_0 : i32, i32
  }
  func.func @transform_3(%arg0: i32) -> (i32, i32) {
    %c0_i32 = arith.constant 0 : i32
    %c0_i32_0 = arith.constant 0 : i32
    return %arg0, %c0_i32 : i32, i32
  }
}

module attributes {stable_mosaic.version = 11 : i64} {
  func.func @kernel(%arg0: i32, %arg1: memref<32x128xbf16, #tpu.memory_space<vmem>>, %arg2: memref<128x128xbf16, #tpu.memory_space<vmem>>, %arg3: memref<4x128xf32, #tpu.memory_space<vmem>>, %arg4: memref<32x128xf32, #tpu.memory_space<vmem>>, %arg5: memref<32x128xbf16, #tpu.memory_space<vmem>>) attributes {dimension_semantics = [#tpu.dimension_semantics<parallel>], iteration_bounds = array<i64: 1>, scalar_prefetch = 0 : i64, scratch_operands = 0 : i64, tpu.core_type = #tpu.core_type<tc>, window_params = [{transform_indices = @transform_0, window_bounds = array<i64: 32, 128>}, {pipeline_mode = #tpu.pipeline_mode<synchronous>, transform_indices = @transform_1, window_bounds = array<i64: 128, 128>}, {pipeline_mode = #tpu.pipeline_mode<synchronous>, transform_indices = @transform_2, window_bounds = array<i64: 4, 128>}, {transform_indices = @transform_3, window_bounds = array<i64: 32, 128>}, {transform_indices = @transform_4, window_bounds = array<i64: 32, 128>}]} {
    %c0 = arith.constant 0 : index
    %c0_0 = arith.constant 0 : index
    %0 = vector.load %arg1[%c0, %c0_0] : memref<32x128xbf16, #tpu.memory_space<vmem>>, vector<32x128xbf16>
    %c0_1 = arith.constant 0 : index
    %c0_2 = arith.constant 0 : index
    %1 = vector.load %arg2[%c0_1, %c0_2] : memref<128x128xbf16, #tpu.memory_space<vmem>>, vector<128x128xbf16>
    %cst = arith.constant dense<0.000000e+00> : vector<32x128xf32>
    %2 = tpu.matmul %0, %1, %cst {dimension_numbers = #tpu.dot_dimension_numbers<[1], [0], [0], [1], [0, 0, 1, 1], [], []>} : vector<32x128xbf16>, vector<128x128xbf16>, vector<32x128xf32> -> vector<32x128xf32>
    %c0_3 = arith.constant 0 : index
    %c0_4 = arith.constant 0 : index
    %3 = vector.load %arg3[%c0_3, %c0_4] : memref<4x128xf32, #tpu.memory_space<vmem>>, vector<1x128xf32>
    %c1 = arith.constant 1 : index
    %c0_5 = arith.constant 0 : index
    %4 = vector.load %arg3[%c1, %c0_5] : memref<4x128xf32, #tpu.memory_space<vmem>>, vector<1x128xf32>
    %c2 = arith.constant 2 : index
    %c0_6 = arith.constant 0 : index
    %5 = vector.load %arg3[%c2, %c0_6] : memref<4x128xf32, #tpu.memory_space<vmem>>, vector<1x128xf32>
    %6 = vector.broadcast %3 : vector<1x128xf32> to vector<32x128xf32>
    %7 = arith.mulf %2, %6 : vector<32x128xf32>
    %8 = vector.broadcast %4 : vector<1x128xf32> to vector<32x128xf32>
    %9 = arith.addf %7, %8 : vector<32x128xf32>
    %cst_7 = arith.constant 0.000000e+00 : f32
    %10 = vector.broadcast %cst_7 : f32 to vector<32x128xf32>
    %11 = arith.cmpf oge, %9, %10 : vector<32x128xf32>
    %12 = vector.broadcast %5 : vector<1x128xf32> to vector<32x128xf32>
    %13 = arith.mulf %9, %12 : vector<32x128xf32>
    %14 = arith.select %11, %9, %13 : vector<32x128xi1>, vector<32x128xf32>
    %c3 = arith.constant 3 : index
    %c0_8 = arith.constant 0 : index
    %15 = vector.load %arg3[%c3, %c0_8] : memref<4x128xf32, #tpu.memory_space<vmem>>, vector<1x128xf32>
    %c0_9 = arith.constant 0 : index
    %c0_10 = arith.constant 0 : index
    %16 = vector.load %arg4[%c0_9, %c0_10] : memref<32x128xf32, #tpu.memory_space<vmem>>, vector<32x128xf32>
    %17 = arith.addf %14, %16 : vector<32x128xf32>
    %cst_11 = arith.constant 0.000000e+00 : f32
    %18 = vector.broadcast %cst_11 : f32 to vector<32x128xf32>
    %19 = arith.cmpf oge, %17, %18 : vector<32x128xf32>
    %20 = vector.broadcast %15 : vector<1x128xf32> to vector<32x128xf32>
    %21 = arith.mulf %17, %20 : vector<32x128xf32>
    %22 = arith.select %19, %17, %21 : vector<32x128xi1>, vector<32x128xf32>
    %cst_12 = arith.constant 0.000000e+00 : f32
    %23 = vector.broadcast %cst_12 : f32 to vector<32x128xf32>
    %24 = arith.cmpf ogt, %22, %23 : vector<32x128xf32>
    %cst_13 = arith.constant 1.000000e+00 : f32
    %cst_14 = arith.constant -1.000000e+00 : f32
    %25 = vector.broadcast %cst_13 : f32 to vector<32x128xf32>
    %26 = vector.broadcast %cst_14 : f32 to vector<32x128xf32>
    %27 = arith.select %24, %25, %26 : vector<32x128xi1>, vector<32x128xf32>
    %28 = arith.truncf %27 : vector<32x128xf32> to vector<32x128xbf16>
    %c0_15 = arith.constant 0 : index
    %c0_16 = arith.constant 0 : index
    %29 = vector.load %arg5[%c0_15, %c0_16] : memref<32x128xbf16, #tpu.memory_space<vmem>>, vector<32x128xbf16>
    tpu.vector_store %arg5[%c0_15, %c0_16], %28 {strides = array<i32>} : memref<32x128xbf16, #tpu.memory_space<vmem>>, vector<32x128xbf16>,
    return
  }
  func.func @transform_0(%arg0: i32) -> (i32, i32) {
    %c0_i32 = arith.constant 0 : i32
    %c0_i32_0 = arith.constant 0 : i32
    return %arg0, %c0_i32 : i32, i32
  }
  func.func @transform_1(%arg0: i32) -> (i32, i32) {
    %c0_i32 = arith.constant 0 : i32
    %c0_i32_0 = arith.constant 0 : i32
    %c0_i32_1 = arith.constant 0 : i32
    return %c0_i32, %c0_i32_0 : i32, i32
  }
  func.func @transform_2(%arg0: i32) -> (i32, i32) {
    %c0_i32 = arith.constant 0 : i32
    %c0_i32_0 = arith.constant 0 : i32
    %c0_i32_1 = arith.constant 0 : i32
    return %c0_i32, %c0_i32_0 : i32, i32
  }
  func.func @transform_3(%arg0: i32) -> (i32, i32) {
    %c0_i32 = arith.constant 0 : i32
    %c0_i32_0 = arith.constant 0 : i32
    return %arg0, %c0_i32 : i32, i32
  }
  func.func @transform_4(%arg0: i32) -> (i32, i32) {
    %c0_i32 = arith.constant 0 : i32
    %c0_i32_0 = arith.constant 0 : i32
    return %arg0, %c0_i32 : i32, i32
  }
}

module attributes {stable_mosaic.version = 11 : i64} {
  func.func @kernel(%arg0: i32, %arg1: memref<32x128xbf16, #tpu.memory_space<vmem>>, %arg2: memref<128x128xbf16, #tpu.memory_space<vmem>>, %arg3: memref<4x128xf32, #tpu.memory_space<vmem>>, %arg4: memref<32x128xf32, #tpu.memory_space<vmem>>) attributes {dimension_semantics = [#tpu.dimension_semantics<parallel>], iteration_bounds = array<i64: 1>, scalar_prefetch = 0 : i64, scratch_operands = 0 : i64, tpu.core_type = #tpu.core_type<tc>, window_params = [{transform_indices = @transform_0, window_bounds = array<i64: 32, 128>}, {pipeline_mode = #tpu.pipeline_mode<synchronous>, transform_indices = @transform_1, window_bounds = array<i64: 128, 128>}, {pipeline_mode = #tpu.pipeline_mode<synchronous>, transform_indices = @transform_2, window_bounds = array<i64: 4, 128>}, {transform_indices = @transform_3, window_bounds = array<i64: 32, 128>}]} {
    %c0 = arith.constant 0 : index
    %c0_0 = arith.constant 0 : index
    %0 = vector.load %arg1[%c0, %c0_0] : memref<32x128xbf16, #tpu.memory_space<vmem>>, vector<32x128xbf16>
    %c0_1 = arith.constant 0 : index
    %c0_2 = arith.constant 0 : index
    %1 = vector.load %arg2[%c0_1, %c0_2] : memref<128x128xbf16, #tpu.memory_space<vmem>>, vector<128x128xbf16>
    %cst = arith.constant dense<0.000000e+00> : vector<32x128xf32>
    %2 = tpu.matmul %0, %1, %cst {dimension_numbers = #tpu.dot_dimension_numbers<[1], [0], [0], [1], [0, 0, 1, 1], [], []>} : vector<32x128xbf16>, vector<128x128xbf16>, vector<32x128xf32> -> vector<32x128xf32>
    %c0_3 = arith.constant 0 : index
    %c0_4 = arith.constant 0 : index
    %3 = vector.load %arg3[%c0_3, %c0_4] : memref<4x128xf32, #tpu.memory_space<vmem>>, vector<1x128xf32>
    %c1 = arith.constant 1 : index
    %c0_5 = arith.constant 0 : index
    %4 = vector.load %arg3[%c1, %c0_5] : memref<4x128xf32, #tpu.memory_space<vmem>>, vector<1x128xf32>
    %c2 = arith.constant 2 : index
    %c0_6 = arith.constant 0 : index
    %5 = vector.load %arg3[%c2, %c0_6] : memref<4x128xf32, #tpu.memory_space<vmem>>, vector<1x128xf32>
    %6 = vector.broadcast %3 : vector<1x128xf32> to vector<32x128xf32>
    %7 = arith.mulf %2, %6 : vector<32x128xf32>
    %8 = vector.broadcast %4 : vector<1x128xf32> to vector<32x128xf32>
    %9 = arith.addf %7, %8 : vector<32x128xf32>
    %cst_7 = arith.constant 0.000000e+00 : f32
    %10 = vector.broadcast %cst_7 : f32 to vector<32x128xf32>
    %11 = arith.cmpf oge, %9, %10 : vector<32x128xf32>
    %12 = vector.broadcast %5 : vector<1x128xf32> to vector<32x128xf32>
    %13 = arith.mulf %9, %12 : vector<32x128xf32>
    %14 = arith.select %11, %9, %13 : vector<32x128xi1>, vector<32x128xf32>
    %c0_8 = arith.constant 0 : index
    %c0_9 = arith.constant 0 : index
    %15 = vector.load %arg4[%c0_8, %c0_9] : memref<32x128xf32, #tpu.memory_space<vmem>>, vector<32x128xf32>
    tpu.vector_store %arg4[%c0_8, %c0_9], %14 {strides = array<i32>} : memref<32x128xf32, #tpu.memory_space<vmem>>, vector<32x128xf32>,
    return
  }
  func.func @transform_0(%arg0: i32) -> (i32, i32) {
    %c0_i32 = arith.constant 0 : i32
    %c0_i32_0 = arith.constant 0 : i32
    return %arg0, %c0_i32 : i32, i32
  }
  func.func @transform_1(%arg0: i32) -> (i32, i32) {
    %c0_i32 = arith.constant 0 : i32
    %c0_i32_0 = arith.constant 0 : i32
    %c0_i32_1 = arith.constant 0 : i32
    return %c0_i32, %c0_i32_0 : i32, i32
  }
  func.func @transform_2(%arg0: i32) -> (i32, i32) {
    %c0_i32 = arith.constant 0 : i32
    %c0_i32_0 = arith.constant 0 : i32
    %c0_i32_1 = arith.constant 0 : i32
    return %c0_i32, %c0_i32_0 : i32, i32
  }
  func.func @transform_3(%arg0: i32) -> (i32, i32) {
    %c0_i32 = arith.constant 0 : i32
    %c0_i32_0 = arith.constant 0 : i32
    return %arg0, %c0_i32 : i32, i32
  }
}

module attributes {stable_mosaic.version = 11 : i64} {
  func.func @kernel(%arg0: i32, %arg1: memref<128x256xbf16, #tpu.memory_space<vmem>>, %arg2: memref<256x128xbf16, #tpu.memory_space<vmem>>, %arg3: memref<4x128xf32, #tpu.memory_space<vmem>>, %arg4: memref<128x128xbf16, #tpu.memory_space<vmem>>) attributes {dimension_semantics = [#tpu.dimension_semantics<parallel>], iteration_bounds = array<i64: 1>, scalar_prefetch = 0 : i64, scratch_operands = 0 : i64, tpu.core_type = #tpu.core_type<tc>, window_params = [{transform_indices = @transform_0, window_bounds = array<i64: 128, 256>}, {pipeline_mode = #tpu.pipeline_mode<synchronous>, transform_indices = @transform_1, window_bounds = array<i64: 256, 128>}, {pipeline_mode = #tpu.pipeline_mode<synchronous>, transform_indices = @transform_2, window_bounds = array<i64: 4, 128>}, {transform_indices = @transform_3, window_bounds = array<i64: 128, 128>}]} {
    %c0 = arith.constant 0 : index
    %c0_0 = arith.constant 0 : index
    %0 = vector.load %arg1[%c0, %c0_0] : memref<128x256xbf16, #tpu.memory_space<vmem>>, vector<128x256xbf16>
    %c0_1 = arith.constant 0 : index
    %c0_2 = arith.constant 0 : index
    %1 = vector.load %arg2[%c0_1, %c0_2] : memref<256x128xbf16, #tpu.memory_space<vmem>>, vector<256x128xbf16>
    %cst = arith.constant dense<0.000000e+00> : vector<128x128xf32>
    %2 = tpu.matmul %0, %1, %cst {dimension_numbers = #tpu.dot_dimension_numbers<[1], [0], [0], [1], [0, 0, 1, 1], [], []>} : vector<128x256xbf16>, vector<256x128xbf16>, vector<128x128xf32> -> vector<128x128xf32>
    %c0_3 = arith.constant 0 : index
    %c0_4 = arith.constant 0 : index
    %3 = vector.load %arg3[%c0_3, %c0_4] : memref<4x128xf32, #tpu.memory_space<vmem>>, vector<1x128xf32>
    %c1 = arith.constant 1 : index
    %c0_5 = arith.constant 0 : index
    %4 = vector.load %arg3[%c1, %c0_5] : memref<4x128xf32, #tpu.memory_space<vmem>>, vector<1x128xf32>
    %c2 = arith.constant 2 : index
    %c0_6 = arith.constant 0 : index
    %5 = vector.load %arg3[%c2, %c0_6] : memref<4x128xf32, #tpu.memory_space<vmem>>, vector<1x128xf32>
    %6 = vector.broadcast %3 : vector<1x128xf32> to vector<128x128xf32>
    %7 = arith.mulf %2, %6 : vector<128x128xf32>
    %8 = vector.broadcast %4 : vector<1x128xf32> to vector<128x128xf32>
    %9 = arith.addf %7, %8 : vector<128x128xf32>
    %cst_7 = arith.constant 0.000000e+00 : f32
    %10 = vector.broadcast %cst_7 : f32 to vector<128x128xf32>
    %11 = arith.cmpf oge, %9, %10 : vector<128x128xf32>
    %12 = vector.broadcast %5 : vector<1x128xf32> to vector<128x128xf32>
    %13 = arith.mulf %9, %12 : vector<128x128xf32>
    %14 = arith.select %11, %9, %13 : vector<128x128xi1>, vector<128x128xf32>
    %cst_8 = arith.constant 0.000000e+00 : f32
    %15 = vector.broadcast %cst_8 : f32 to vector<128x128xf32>
    %16 = arith.cmpf ogt, %14, %15 : vector<128x128xf32>
    %cst_9 = arith.constant 1.000000e+00 : f32
    %cst_10 = arith.constant -1.000000e+00 : f32
    %17 = vector.broadcast %cst_9 : f32 to vector<128x128xf32>
    %18 = vector.broadcast %cst_10 : f32 to vector<128x128xf32>
    %19 = arith.select %16, %17, %18 : vector<128x128xi1>, vector<128x128xf32>
    %20 = arith.truncf %19 : vector<128x128xf32> to vector<128x128xbf16>
    %c0_11 = arith.constant 0 : index
    %c0_12 = arith.constant 0 : index
    %21 = vector.load %arg4[%c0_11, %c0_12] : memref<128x128xbf16, #tpu.memory_space<vmem>>, vector<128x128xbf16>
    tpu.vector_store %arg4[%c0_11, %c0_12], %20 {strides = array<i32>} : memref<128x128xbf16, #tpu.memory_space<vmem>>, vector<128x128xbf16>,
    return
  }
  func.func @transform_0(%arg0: i32) -> (i32, i32) {
    %c0_i32 = arith.constant 0 : i32
    %c0_i32_0 = arith.constant 0 : i32
    return %arg0, %c0_i32 : i32, i32
  }
  func.func @transform_1(%arg0: i32) -> (i32, i32) {
    %c0_i32 = arith.constant 0 : i32
    %c0_i32_0 = arith.constant 0 : i32
    %c0_i32_1 = arith.constant 0 : i32
    return %c0_i32, %c0_i32_0 : i32, i32
  }
  func.func @transform_2(%arg0: i32) -> (i32, i32) {
    %c0_i32 = arith.constant 0 : i32
    %c0_i32_0 = arith.constant 0 : i32
    %c0_i32_1 = arith.constant 0 : i32
    return %c0_i32, %c0_i32_0 : i32, i32
  }
  func.func @transform_3(%arg0: i32) -> (i32, i32) {
    %c0_i32 = arith.constant 0 : i32
    %c0_i32_0 = arith.constant 0 : i32
    return %arg0, %c0_i32 : i32, i32
  }
}

module attributes {stable_mosaic.version = 11 : i64} {
  func.func @kernel(%arg0: i32, %arg1: memref<128x128xbf16, #tpu.memory_space<vmem>>, %arg2: memref<128x128xbf16, #tpu.memory_space<vmem>>, %arg3: memref<4x128xf32, #tpu.memory_space<vmem>>, %arg4: memref<128x128xf32, #tpu.memory_space<vmem>>, %arg5: memref<128x128xf32, #tpu.memory_space<vmem>>) attributes {dimension_semantics = [#tpu.dimension_semantics<parallel>], iteration_bounds = array<i64: 1>, scalar_prefetch = 0 : i64, scratch_operands = 0 : i64, tpu.core_type = #tpu.core_type<tc>, window_params = [{transform_indices = @transform_0, window_bounds = array<i64: 128, 128>}, {pipeline_mode = #tpu.pipeline_mode<synchronous>, transform_indices = @transform_1, window_bounds = array<i64: 128, 128>}, {pipeline_mode = #tpu.pipeline_mode<synchronous>, transform_indices = @transform_2, window_bounds = array<i64: 4, 128>}, {transform_indices = @transform_3, window_bounds = array<i64: 128, 128>}, {transform_indices = @transform_4, window_bounds = array<i64: 128, 128>}]} {
    %c0 = arith.constant 0 : index
    %c0_0 = arith.constant 0 : index
    %0 = vector.load %arg1[%c0, %c0_0] : memref<128x128xbf16, #tpu.memory_space<vmem>>, vector<128x128xbf16>
    %c0_1 = arith.constant 0 : index
    %c0_2 = arith.constant 0 : index
    %1 = vector.load %arg2[%c0_1, %c0_2] : memref<128x128xbf16, #tpu.memory_space<vmem>>, vector<128x128xbf16>
    %cst = arith.constant dense<0.000000e+00> : vector<128x128xf32>
    %2 = tpu.matmul %0, %1, %cst {dimension_numbers = #tpu.dot_dimension_numbers<[1], [0], [0], [1], [0, 0, 1, 1], [], []>} : vector<128x128xbf16>, vector<128x128xbf16>, vector<128x128xf32> -> vector<128x128xf32>
    %c0_3 = arith.constant 0 : index
    %c0_4 = arith.constant 0 : index
    %3 = vector.load %arg3[%c0_3, %c0_4] : memref<4x128xf32, #tpu.memory_space<vmem>>, vector<1x128xf32>
    %c1 = arith.constant 1 : index
    %c0_5 = arith.constant 0 : index
    %4 = vector.load %arg3[%c1, %c0_5] : memref<4x128xf32, #tpu.memory_space<vmem>>, vector<1x128xf32>
    %c2 = arith.constant 2 : index
    %c0_6 = arith.constant 0 : index
    %5 = vector.load %arg3[%c2, %c0_6] : memref<4x128xf32, #tpu.memory_space<vmem>>, vector<1x128xf32>
    %6 = vector.broadcast %3 : vector<1x128xf32> to vector<128x128xf32>
    %7 = arith.mulf %2, %6 : vector<128x128xf32>
    %8 = vector.broadcast %4 : vector<1x128xf32> to vector<128x128xf32>
    %9 = arith.addf %7, %8 : vector<128x128xf32>
    %cst_7 = arith.constant 0.000000e+00 : f32
    %10 = vector.broadcast %cst_7 : f32 to vector<128x128xf32>
    %11 = arith.cmpf oge, %9, %10 : vector<128x128xf32>
    %12 = vector.broadcast %5 : vector<1x128xf32> to vector<128x128xf32>
    %13 = arith.mulf %9, %12 : vector<128x128xf32>
    %14 = arith.select %11, %9, %13 : vector<128x128xi1>, vector<128x128xf32>
    %c3 = arith.constant 3 : index
    %c0_8 = arith.constant 0 : index
    %15 = vector.load %arg3[%c3, %c0_8] : memref<4x128xf32, #tpu.memory_space<vmem>>, vector<1x128xf32>
    %c0_9 = arith.constant 0 : index
    %c0_10 = arith.constant 0 : index
    %16 = vector.load %arg4[%c0_9, %c0_10] : memref<128x128xf32, #tpu.memory_space<vmem>>, vector<128x128xf32>
    %17 = arith.addf %14, %16 : vector<128x128xf32>
    %cst_11 = arith.constant 0.000000e+00 : f32
    %18 = vector.broadcast %cst_11 : f32 to vector<128x128xf32>
    %19 = arith.cmpf oge, %17, %18 : vector<128x128xf32>
    %20 = vector.broadcast %15 : vector<1x128xf32> to vector<128x128xf32>
    %21 = arith.mulf %17, %20 : vector<128x128xf32>
    %22 = arith.select %19, %17, %21 : vector<128x128xi1>, vector<128x128xf32>
    %c0_12 = arith.constant 0 : index
    %c0_13 = arith.constant 0 : index
    %23 = vector.load %arg5[%c0_12, %c0_13] : memref<128x128xf32, #tpu.memory_space<vmem>>, vector<128x128xf32>
    tpu.vector_store %arg5[%c0_12, %c0_13], %22 {strides = array<i32>} : memref<128x128xf32, #tpu.memory_space<vmem>>, vector<128x128xf32>,
    return
  }
  func.func @transform_0(%arg0: i32) -> (i32, i32) {
    %c0_i32 = arith.constant 0 : i32
    %c0_i32_0 = arith.constant 0 : i32
    return %arg0, %c0_i32 : i32, i32
  }
  func.func @transform_1(%arg0: i32) -> (i32, i32) {
    %c0_i32 = arith.constant 0 : i32
    %c0_i32_0 = arith.constant 0 : i32
    %c0_i32_1 = arith.constant 0 : i32
    return %c0_i32, %c0_i32_0 : i32, i32
  }
  func.func @transform_2(%arg0: i32) -> (i32, i32) {
    %c0_i32 = arith.constant 0 : i32
    %c0_i32_0 = arith.constant 0 : i32
    %c0_i32_1 = arith.constant 0 : i32
    return %c0_i32, %c0_i32_0 : i32, i32
  }
  func.func @transform_3(%arg0: i32) -> (i32, i32) {
    %c0_i32 = arith.constant 0 : i32
    %c0_i32_0 = arith.constant 0 : i32
    return %arg0, %c0_i32 : i32, i32
  }
  func.func @transform_4(%arg0: i32) -> (i32, i32) {
    %c0_i32 = arith.constant 0 : i32
    %c0_i32_0 = arith.constant 0 : i32
    return %arg0, %c0_i32 : i32, i32
  }
}

module attributes {stable_mosaic.version = 11 : i64} {
  func.func @kernel(%arg0: i32, %arg1: memref<128x128xf32, #tpu.memory_space<vmem>>, %arg2: memref<128x128xbf16, #tpu.memory_space<vmem>>, %arg3: memref<4x128xf32, #tpu.memory_space<vmem>>, %arg4: memref<128x128xbf16, #tpu.memory_space<vmem>>) attributes {dimension_semantics = [#tpu.dimension_semantics<parallel>], iteration_bounds = array<i64: 1>, scalar_prefetch = 0 : i64, scratch_operands = 0 : i64, tpu.core_type = #tpu.core_type<tc>, window_params = [{transform_indices = @transform_0, window_bounds = array<i64: 128, 128>}, {pipeline_mode = #tpu.pipeline_mode<synchronous>, transform_indices = @transform_1, window_bounds = array<i64: 128, 128>}, {pipeline_mode = #tpu.pipeline_mode<synchronous>, transform_indices = @transform_2, window_bounds = array<i64: 4, 128>}, {transform_indices = @transform_3, window_bounds = array<i64: 128, 128>}]} {
    %c0 = arith.constant 0 : index
    %c0_0 = arith.constant 0 : index
    %0 = vector.load %arg1[%c0, %c0_0] : memref<128x128xf32, #tpu.memory_space<vmem>>, vector<128x128xf32>
    %cst = arith.constant 0.000000e+00 : f32
    %1 = vector.broadcast %cst : f32 to vector<128x128xf32>
    %2 = arith.cmpf ogt, %0, %1 : vector<128x128xf32>
    %cst_1 = arith.constant 1.000000e+00 : f32
    %cst_2 = arith.constant -1.000000e+00 : f32
    %3 = vector.broadcast %cst_1 : f32 to vector<128x128xf32>
    %4 = vector.broadcast %cst_2 : f32 to vector<128x128xf32>
    %5 = arith.select %2, %3, %4 : vector<128x128xi1>, vector<128x128xf32>
    %6 = arith.truncf %5 : vector<128x128xf32> to vector<128x128xbf16>
    %c0_3 = arith.constant 0 : index
    %c0_4 = arith.constant 0 : index
    %7 = vector.load %arg2[%c0_3, %c0_4] : memref<128x128xbf16, #tpu.memory_space<vmem>>, vector<128x128xbf16>
    %cst_5 = arith.constant dense<0.000000e+00> : vector<128x128xf32>
    %8 = tpu.matmul %6, %7, %cst_5 {dimension_numbers = #tpu.dot_dimension_numbers<[1], [0], [0], [1], [0, 0, 1, 1], [], []>} : vector<128x128xbf16>, vector<128x128xbf16>, vector<128x128xf32> -> vector<128x128xf32>
    %c0_6 = arith.constant 0 : index
    %c0_7 = arith.constant 0 : index
    %9 = vector.load %arg3[%c0_6, %c0_7] : memref<4x128xf32, #tpu.memory_space<vmem>>, vector<1x128xf32>
    %c1 = arith.constant 1 : index
    %c0_8 = arith.constant 0 : index
    %10 = vector.load %arg3[%c1, %c0_8] : memref<4x128xf32, #tpu.memory_space<vmem>>, vector<1x128xf32>
    %c2 = arith.constant 2 : index
    %c0_9 = arith.constant 0 : index
    %11 = vector.load %arg3[%c2, %c0_9] : memref<4x128xf32, #tpu.memory_space<vmem>>, vector<1x128xf32>
    %12 = vector.broadcast %9 : vector<1x128xf32> to vector<128x128xf32>
    %13 = arith.mulf %8, %12 : vector<128x128xf32>
    %14 = vector.broadcast %10 : vector<1x128xf32> to vector<128x128xf32>
    %15 = arith.addf %13, %14 : vector<128x128xf32>
    %cst_10 = arith.constant 0.000000e+00 : f32
    %16 = vector.broadcast %cst_10 : f32 to vector<128x128xf32>
    %17 = arith.cmpf oge, %15, %16 : vector<128x128xf32>
    %18 = vector.broadcast %11 : vector<1x128xf32> to vector<128x128xf32>
    %19 = arith.mulf %15, %18 : vector<128x128xf32>
    %20 = arith.select %17, %15, %19 : vector<128x128xi1>, vector<128x128xf32>
    %cst_11 = arith.constant 0.000000e+00 : f32
    %21 = vector.broadcast %cst_11 : f32 to vector<128x128xf32>
    %22 = arith.cmpf ogt, %20, %21 : vector<128x128xf32>
    %cst_12 = arith.constant 1.000000e+00 : f32
    %cst_13 = arith.constant -1.000000e+00 : f32
    %23 = vector.broadcast %cst_12 : f32 to vector<128x128xf32>
    %24 = vector.broadcast %cst_13 : f32 to vector<128x128xf32>
    %25 = arith.select %22, %23, %24 : vector<128x128xi1>, vector<128x128xf32>
    %26 = arith.truncf %25 : vector<128x128xf32> to vector<128x128xbf16>
    %c0_14 = arith.constant 0 : index
    %c0_15 = arith.constant 0 : index
    %27 = vector.load %arg4[%c0_14, %c0_15] : memref<128x128xbf16, #tpu.memory_space<vmem>>, vector<128x128xbf16>
    tpu.vector_store %arg4[%c0_14, %c0_15], %26 {strides = array<i32>} : memref<128x128xbf16, #tpu.memory_space<vmem>>, vector<128x128xbf16>,
    return
  }
  func.func @transform_0(%arg0: i32) -> (i32, i32) {
    %c0_i32 = arith.constant 0 : i32
    %c0_i32_0 = arith.constant 0 : i32
    return %arg0, %c0_i32 : i32, i32
  }
  func.func @transform_1(%arg0: i32) -> (i32, i32) {
    %c0_i32 = arith.constant 0 : i32
    %c0_i32_0 = arith.constant 0 : i32
    %c0_i32_1 = arith.constant 0 : i32
    return %c0_i32, %c0_i32_0 : i32, i32
  }
  func.func @transform_2(%arg0: i32) -> (i32, i32) {
    %c0_i32 = arith.constant 0 : i32
    %c0_i32_0 = arith.constant 0 : i32
    %c0_i32_1 = arith.constant 0 : i32
    return %c0_i32, %c0_i32_0 : i32, i32
  }
  func.func @transform_3(%arg0: i32) -> (i32, i32) {
    %c0_i32 = arith.constant 0 : i32
    %c0_i32_0 = arith.constant 0 : i32
    return %arg0, %c0_i32 : i32, i32
  }
}

module attributes {stable_mosaic.version = 11 : i64} {
  func.func @kernel(%arg0: i32, %arg1: memref<128x128xbf16, #tpu.memory_space<vmem>>, %arg2: memref<128x128xbf16, #tpu.memory_space<vmem>>, %arg3: memref<4x128xf32, #tpu.memory_space<vmem>>, %arg4: memref<128x128xf32, #tpu.memory_space<vmem>>, %arg5: memref<128x128xbf16, #tpu.memory_space<vmem>>) attributes {dimension_semantics = [#tpu.dimension_semantics<parallel>], iteration_bounds = array<i64: 1>, scalar_prefetch = 0 : i64, scratch_operands = 0 : i64, tpu.core_type = #tpu.core_type<tc>, window_params = [{transform_indices = @transform_0, window_bounds = array<i64: 128, 128>}, {pipeline_mode = #tpu.pipeline_mode<synchronous>, transform_indices = @transform_1, window_bounds = array<i64: 128, 128>}, {pipeline_mode = #tpu.pipeline_mode<synchronous>, transform_indices = @transform_2, window_bounds = array<i64: 4, 128>}, {transform_indices = @transform_3, window_bounds = array<i64: 128, 128>}, {transform_indices = @transform_4, window_bounds = array<i64: 128, 128>}]} {
    %c0 = arith.constant 0 : index
    %c0_0 = arith.constant 0 : index
    %0 = vector.load %arg1[%c0, %c0_0] : memref<128x128xbf16, #tpu.memory_space<vmem>>, vector<128x128xbf16>
    %c0_1 = arith.constant 0 : index
    %c0_2 = arith.constant 0 : index
    %1 = vector.load %arg2[%c0_1, %c0_2] : memref<128x128xbf16, #tpu.memory_space<vmem>>, vector<128x128xbf16>
    %cst = arith.constant dense<0.000000e+00> : vector<128x128xf32>
    %2 = tpu.matmul %0, %1, %cst {dimension_numbers = #tpu.dot_dimension_numbers<[1], [0], [0], [1], [0, 0, 1, 1], [], []>} : vector<128x128xbf16>, vector<128x128xbf16>, vector<128x128xf32> -> vector<128x128xf32>
    %c0_3 = arith.constant 0 : index
    %c0_4 = arith.constant 0 : index
    %3 = vector.load %arg3[%c0_3, %c0_4] : memref<4x128xf32, #tpu.memory_space<vmem>>, vector<1x128xf32>
    %c1 = arith.constant 1 : index
    %c0_5 = arith.constant 0 : index
    %4 = vector.load %arg3[%c1, %c0_5] : memref<4x128xf32, #tpu.memory_space<vmem>>, vector<1x128xf32>
    %c2 = arith.constant 2 : index
    %c0_6 = arith.constant 0 : index
    %5 = vector.load %arg3[%c2, %c0_6] : memref<4x128xf32, #tpu.memory_space<vmem>>, vector<1x128xf32>
    %6 = vector.broadcast %3 : vector<1x128xf32> to vector<128x128xf32>
    %7 = arith.mulf %2, %6 : vector<128x128xf32>
    %8 = vector.broadcast %4 : vector<1x128xf32> to vector<128x128xf32>
    %9 = arith.addf %7, %8 : vector<128x128xf32>
    %cst_7 = arith.constant 0.000000e+00 : f32
    %10 = vector.broadcast %cst_7 : f32 to vector<128x128xf32>
    %11 = arith.cmpf oge, %9, %10 : vector<128x128xf32>
    %12 = vector.broadcast %5 : vector<1x128xf32> to vector<128x128xf32>
    %13 = arith.mulf %9, %12 : vector<128x128xf32>
    %14 = arith.select %11, %9, %13 : vector<128x128xi1>, vector<128x128xf32>
    %c3 = arith.constant 3 : index
    %c0_8 = arith.constant 0 : index
    %15 = vector.load %arg3[%c3, %c0_8] : memref<4x128xf32, #tpu.memory_space<vmem>>, vector<1x128xf32>
    %c0_9 = arith.constant 0 : index
    %c0_10 = arith.constant 0 : index
    %16 = vector.load %arg4[%c0_9, %c0_10] : memref<128x128xf32, #tpu.memory_space<vmem>>, vector<128x128xf32>
    %17 = arith.addf %14, %16 : vector<128x128xf32>
    %cst_11 = arith.constant 0.000000e+00 : f32
    %18 = vector.broadcast %cst_11 : f32 to vector<128x128xf32>
    %19 = arith.cmpf oge, %17, %18 : vector<128x128xf32>
    %20 = vector.broadcast %15 : vector<1x128xf32> to vector<128x128xf32>
    %21 = arith.mulf %17, %20 : vector<128x128xf32>
    %22 = arith.select %19, %17, %21 : vector<128x128xi1>, vector<128x128xf32>
    %cst_12 = arith.constant 0.000000e+00 : f32
    %23 = vector.broadcast %cst_12 : f32 to vector<128x128xf32>
    %24 = arith.cmpf ogt, %22, %23 : vector<128x128xf32>
    %cst_13 = arith.constant 1.000000e+00 : f32
    %cst_14 = arith.constant -1.000000e+00 : f32
    %25 = vector.broadcast %cst_13 : f32 to vector<128x128xf32>
    %26 = vector.broadcast %cst_14 : f32 to vector<128x128xf32>
    %27 = arith.select %24, %25, %26 : vector<128x128xi1>, vector<128x128xf32>
    %28 = arith.truncf %27 : vector<128x128xf32> to vector<128x128xbf16>
    %c0_15 = arith.constant 0 : index
    %c0_16 = arith.constant 0 : index
    %29 = vector.load %arg5[%c0_15, %c0_16] : memref<128x128xbf16, #tpu.memory_space<vmem>>, vector<128x128xbf16>
    tpu.vector_store %arg5[%c0_15, %c0_16], %28 {strides = array<i32>} : memref<128x128xbf16, #tpu.memory_space<vmem>>, vector<128x128xbf16>,
    return
  }
  func.func @transform_0(%arg0: i32) -> (i32, i32) {
    %c0_i32 = arith.constant 0 : i32
    %c0_i32_0 = arith.constant 0 : i32
    return %arg0, %c0_i32 : i32, i32
  }
  func.func @transform_1(%arg0: i32) -> (i32, i32) {
    %c0_i32 = arith.constant 0 : i32
    %c0_i32_0 = arith.constant 0 : i32
    %c0_i32_1 = arith.constant 0 : i32
    return %c0_i32, %c0_i32_0 : i32, i32
  }
  func.func @transform_2(%arg0: i32) -> (i32, i32) {
    %c0_i32 = arith.constant 0 : i32
    %c0_i32_0 = arith.constant 0 : i32
    %c0_i32_1 = arith.constant 0 : i32
    return %c0_i32, %c0_i32_0 : i32, i32
  }
  func.func @transform_3(%arg0: i32) -> (i32, i32) {
    %c0_i32 = arith.constant 0 : i32
    %c0_i32_0 = arith.constant 0 : i32
    return %arg0, %c0_i32 : i32, i32
  }
  func.func @transform_4(%arg0: i32) -> (i32, i32) {
    %c0_i32 = arith.constant 0 : i32
    %c0_i32_0 = arith.constant 0 : i32
    return %arg0, %c0_i32 : i32, i32
  }
}

module attributes {stable_mosaic.version = 11 : i64} {
  func.func @kernel(%arg0: i32, %arg1: memref<128x128xbf16, #tpu.memory_space<vmem>>, %arg2: memref<128x128xbf16, #tpu.memory_space<vmem>>, %arg3: memref<4x128xf32, #tpu.memory_space<vmem>>, %arg4: memref<128x128xbf16, #tpu.memory_space<vmem>>) attributes {dimension_semantics = [#tpu.dimension_semantics<parallel>], iteration_bounds = array<i64: 1>, scalar_prefetch = 0 : i64, scratch_operands = 0 : i64, tpu.core_type = #tpu.core_type<tc>, window_params = [{transform_indices = @transform_0, window_bounds = array<i64: 128, 128>}, {pipeline_mode = #tpu.pipeline_mode<synchronous>, transform_indices = @transform_1, window_bounds = array<i64: 128, 128>}, {pipeline_mode = #tpu.pipeline_mode<synchronous>, transform_indices = @transform_2, window_bounds = array<i64: 4, 128>}, {transform_indices = @transform_3, window_bounds = array<i64: 128, 128>}]} {
    %c0 = arith.constant 0 : index
    %c0_0 = arith.constant 0 : index
    %0 = vector.load %arg1[%c0, %c0_0] : memref<128x128xbf16, #tpu.memory_space<vmem>>, vector<128x128xbf16>
    %c0_1 = arith.constant 0 : index
    %c0_2 = arith.constant 0 : index
    %1 = vector.load %arg2[%c0_1, %c0_2] : memref<128x128xbf16, #tpu.memory_space<vmem>>, vector<128x128xbf16>
    %cst = arith.constant dense<0.000000e+00> : vector<128x128xf32>
    %2 = tpu.matmul %0, %1, %cst {dimension_numbers = #tpu.dot_dimension_numbers<[1], [0], [0], [1], [0, 0, 1, 1], [], []>} : vector<128x128xbf16>, vector<128x128xbf16>, vector<128x128xf32> -> vector<128x128xf32>
    %c0_3 = arith.constant 0 : index
    %c0_4 = arith.constant 0 : index
    %3 = vector.load %arg3[%c0_3, %c0_4] : memref<4x128xf32, #tpu.memory_space<vmem>>, vector<1x128xf32>
    %c1 = arith.constant 1 : index
    %c0_5 = arith.constant 0 : index
    %4 = vector.load %arg3[%c1, %c0_5] : memref<4x128xf32, #tpu.memory_space<vmem>>, vector<1x128xf32>
    %c2 = arith.constant 2 : index
    %c0_6 = arith.constant 0 : index
    %5 = vector.load %arg3[%c2, %c0_6] : memref<4x128xf32, #tpu.memory_space<vmem>>, vector<1x128xf32>
    %6 = vector.broadcast %3 : vector<1x128xf32> to vector<128x128xf32>
    %7 = arith.mulf %2, %6 : vector<128x128xf32>
    %8 = vector.broadcast %4 : vector<1x128xf32> to vector<128x128xf32>
    %9 = arith.addf %7, %8 : vector<128x128xf32>
    %cst_7 = arith.constant 0.000000e+00 : f32
    %10 = vector.broadcast %cst_7 : f32 to vector<128x128xf32>
    %11 = arith.cmpf oge, %9, %10 : vector<128x128xf32>
    %12 = vector.broadcast %5 : vector<1x128xf32> to vector<128x128xf32>
    %13 = arith.mulf %9, %12 : vector<128x128xf32>
    %14 = arith.select %11, %9, %13 : vector<128x128xi1>, vector<128x128xf32>
    %cst_8 = arith.constant 0.000000e+00 : f32
    %15 = vector.broadcast %cst_8 : f32 to vector<128x128xf32>
    %16 = arith.cmpf ogt, %14, %15 : vector<128x128xf32>
    %cst_9 = arith.constant 1.000000e+00 : f32
    %cst_10 = arith.constant -1.000000e+00 : f32
    %17 = vector.broadcast %cst_9 : f32 to vector<128x128xf32>
    %18 = vector.broadcast %cst_10 : f32 to vector<128x128xf32>
    %19 = arith.select %16, %17, %18 : vector<128x128xi1>, vector<128x128xf32>
    %20 = arith.truncf %19 : vector<128x128xf32> to vector<128x128xbf16>
    %c0_11 = arith.constant 0 : index
    %c0_12 = arith.constant 0 : index
    %21 = vector.load %arg4[%c0_11, %c0_12] : memref<128x128xbf16, #tpu.memory_space<vmem>>, vector<128x128xbf16>
    tpu.vector_store %arg4[%c0_11, %c0_12], %20 {strides = array<i32>} : memref<128x128xbf16, #tpu.memory_space<vmem>>, vector<128x128xbf16>,
    return
  }
  func.func @transform_0(%arg0: i32) -> (i32, i32) {
    %c0_i32 = arith.constant 0 : i32
    %c0_i32_0 = arith.constant 0 : i32
    return %arg0, %c0_i32 : i32, i32
  }
  func.func @transform_1(%arg0: i32) -> (i32, i32) {
    %c0_i32 = arith.constant 0 : i32
    %c0_i32_0 = arith.constant 0 : i32
    %c0_i32_1 = arith.constant 0 : i32
    return %c0_i32, %c0_i32_0 : i32, i32
  }
  func.func @transform_2(%arg0: i32) -> (i32, i32) {
    %c0_i32 = arith.constant 0 : i32
    %c0_i32_0 = arith.constant 0 : i32
    %c0_i32_1 = arith.constant 0 : i32
    return %c0_i32, %c0_i32_0 : i32, i32
  }
  func.func @transform_3(%arg0: i32) -> (i32, i32) {
    %c0_i32 = arith.constant 0 : i32
    %c0_i32_0 = arith.constant 0 : i32
    return %arg0, %c0_i32 : i32, i32
  }
}

module attributes {stable_mosaic.version = 11 : i64} {
  func.func @kernel(%arg0: i32, %arg1: memref<256x256xbf16, #tpu.memory_space<vmem>>, %arg2: memref<256x128xbf16, #tpu.memory_space<vmem>>, %arg3: memref<4x128xf32, #tpu.memory_space<vmem>>, %arg4: memref<256x128xf32, #tpu.memory_space<vmem>>) attributes {dimension_semantics = [#tpu.dimension_semantics<parallel>], iteration_bounds = array<i64: 2>, scalar_prefetch = 0 : i64, scratch_operands = 0 : i64, tpu.core_type = #tpu.core_type<tc>, window_params = [{transform_indices = @transform_0, window_bounds = array<i64: 256, 256>}, {pipeline_mode = #tpu.pipeline_mode<synchronous>, transform_indices = @transform_1, window_bounds = array<i64: 256, 128>}, {pipeline_mode = #tpu.pipeline_mode<synchronous>, transform_indices = @transform_2, window_bounds = array<i64: 4, 128>}, {transform_indices = @transform_3, window_bounds = array<i64: 256, 128>}]} {
    %c0 = arith.constant 0 : index
    %c0_0 = arith.constant 0 : index
    %0 = vector.load %arg1[%c0, %c0_0] : memref<256x256xbf16, #tpu.memory_space<vmem>>, vector<256x256xbf16>
    %c0_1 = arith.constant 0 : index
    %c0_2 = arith.constant 0 : index
    %1 = vector.load %arg2[%c0_1, %c0_2] : memref<256x128xbf16, #tpu.memory_space<vmem>>, vector<256x128xbf16>
    %cst = arith.constant dense<0.000000e+00> : vector<256x128xf32>
    %2 = tpu.matmul %0, %1, %cst {dimension_numbers = #tpu.dot_dimension_numbers<[1], [0], [0], [1], [0, 0, 1, 1], [], []>} : vector<256x256xbf16>, vector<256x128xbf16>, vector<256x128xf32> -> vector<256x128xf32>
    %c0_3 = arith.constant 0 : index
    %c0_4 = arith.constant 0 : index
    %3 = vector.load %arg3[%c0_3, %c0_4] : memref<4x128xf32, #tpu.memory_space<vmem>>, vector<1x128xf32>
    %c1 = arith.constant 1 : index
    %c0_5 = arith.constant 0 : index
    %4 = vector.load %arg3[%c1, %c0_5] : memref<4x128xf32, #tpu.memory_space<vmem>>, vector<1x128xf32>
    %c2 = arith.constant 2 : index
    %c0_6 = arith.constant 0 : index
    %5 = vector.load %arg3[%c2, %c0_6] : memref<4x128xf32, #tpu.memory_space<vmem>>, vector<1x128xf32>
    %6 = vector.broadcast %3 : vector<1x128xf32> to vector<256x128xf32>
    %7 = arith.mulf %2, %6 : vector<256x128xf32>
    %8 = vector.broadcast %4 : vector<1x128xf32> to vector<256x128xf32>
    %9 = arith.addf %7, %8 : vector<256x128xf32>
    %cst_7 = arith.constant 0.000000e+00 : f32
    %10 = vector.broadcast %cst_7 : f32 to vector<256x128xf32>
    %11 = arith.cmpf oge, %9, %10 : vector<256x128xf32>
    %12 = vector.broadcast %5 : vector<1x128xf32> to vector<256x128xf32>
    %13 = arith.mulf %9, %12 : vector<256x128xf32>
    %14 = arith.select %11, %9, %13 : vector<256x128xi1>, vector<256x128xf32>
    %c0_8 = arith.constant 0 : index
    %c0_9 = arith.constant 0 : index
    %15 = vector.load %arg4[%c0_8, %c0_9] : memref<256x128xf32, #tpu.memory_space<vmem>>, vector<256x128xf32>
    tpu.vector_store %arg4[%c0_8, %c0_9], %14 {strides = array<i32>} : memref<256x128xf32, #tpu.memory_space<vmem>>, vector<256x128xf32>,
    return
  }
  func.func @transform_0(%arg0: i32) -> (i32, i32) {
    %c0_i32 = arith.constant 0 : i32
    %c0_i32_0 = arith.constant 0 : i32
    return %arg0, %c0_i32 : i32, i32
  }
  func.func @transform_1(%arg0: i32) -> (i32, i32) {
    %c0_i32 = arith.constant 0 : i32
    %c0_i32_0 = arith.constant 0 : i32
    %c0_i32_1 = arith.constant 0 : i32
    return %c0_i32, %c0_i32_0 : i32, i32
  }
  func.func @transform_2(%arg0: i32) -> (i32, i32) {
    %c0_i32 = arith.constant 0 : i32
    %c0_i32_0 = arith.constant 0 : i32
    %c0_i32_1 = arith.constant 0 : i32
    return %c0_i32, %c0_i32_0 : i32, i32
  }
  func.func @transform_3(%arg0: i32) -> (i32, i32) {
    %c0_i32 = arith.constant 0 : i32
    %c0_i32_0 = arith.constant 0 : i32
    return %arg0, %c0_i32 : i32, i32
  }
}

</mosaic_0001>

<bundles_post_ra>
// kernel: _lambda_.91
= control target key start
LH: loop header
LB: loop body
LE: loop exit
PB: predicated region body
PF: predicated region fallthrough
CT: control target
= control target key end

     0   :  { %s672_s1 = inlined_call_operand.vmem [shape: f32[128,128], index: 1, kind: input, shape index: {}]   ;;  %s673_s0 = inlined_call_operand.vmem [shape: f32[128,128], index: 0, kind: input, shape index: {}]   ;;  %s674_s2 = inlined_call_operand.vmem [shape: f32[4,128], index: 2, kind: input, shape index: {}]   ;;  %s675_s3 = inlined_call_operand.vmem [shape: f32[128,128], index: 3, kind: output, shape index: {}]  }
   0x1   :  { %v30_v0 = vld [vmem:[%s672_s1] sm:$0xff]  ;;  %v31_v1 = vld [vmem:[%s672_s1 + $0x8] sm:$0xff]  ;;  %v32_v2 = vld [vmem:[%s672_s1 + $0x10] sm:$0xff] }
   0x2   :  { %v397_v3 = vpack.c.bf16 %v31_v1, %v30_v0  ;;  %v33_v4 = vld [vmem:[%s672_s1 + $0x18] sm:$0xff]  ;;  %v34_v6 = vld [vmem:[%s672_s1 + $0x20] sm:$0xff]  ;;  %v35_v7 = vld [vmem:[%s672_s1 + $0x28] sm:$0xff] }
   0x3   :  { %v401_v5 = vpack.c.bf16 %v33_v4, %v32_v2  ;;  %v405_v8 = vpack.c.bf16 %v35_v7, %v34_v6  ;;  %v14_v9 = vld [vmem:[%s673_s0] sm:$0xff]  ;;  %v36_v11 = vld [vmem:[%s672_s1 + $0x30] sm:$0xff]  ;;  %v37_v12 = vld [vmem:[%s672_s1 + $0x38] sm:$0xff] }
   0x4   :  { %398 = vmatprep.subr.bf16.mxu0 %v397_v3  ;;  %429 = vmatprep.subr.bf16.mxu1 %v397_v3  ;;  %v22_v10 = vld [vmem:[%s673_s0 + $0x40] sm:$0xff]  ;;  %v409_v13 = vpack.c.bf16 %v37_v12, %v36_v11  ;;  %v39_v15 = vld [vmem:[%s672_s1 + $0x48] sm:$0xff]  ;;  %v40_v17 = vld [vmem:[%s672_s1 + $0x50] sm:$0xff] }
   0x5   :  { %400 = vmatpush3.bf16.msra.mxu0 %v397_v3  ;;  %437 = vmatpush3.bf16.msra.mxu1 %v397_v3  ;;  %v38_v14 = vld [vmem:[%s672_s1 + $0x40] sm:$0xff]  ;;  %v41_v18 = vld [vmem:[%s672_s1 + $0x58] sm:$0xff]  ;;  %v43_v21 = vld [vmem:[%s672_s1 + $0x68] sm:$0xff] }
   0x6   :  { %402 = vmatprep.subr.bf16.mxu0 %v401_v5  ;;  %430 = vmatprep.subr.bf16.mxu1 %v401_v5  ;;  %v413_v16 = vpack.c.bf16 %v39_v15, %v38_v14  ;;  %v417_v19 = vpack.c.bf16 %v41_v18, %v40_v17  ;;  %v42_v20 = vld [vmem:[%s672_s1 + $0x60] sm:$0xff]  ;;  %v44_v23 = vld [vmem:[%s672_s1 + $0x70] sm:$0xff]  ;;  %v45_v24 = vld [vmem:[%s672_s1 + $0x78] sm:$0xff] }
   0x7   :  { %373 = vmatprep.mubr.f32.mxu0 %v14_v9  ;;  %385 = vmatprep.mubr.f32.mxu1 %v22_v10  ;;  %v421_v22 = vpack.c.bf16 %v43_v21, %v42_v20  ;;  %v425_v25 = vpack.c.bf16 %v45_v24, %v44_v23  ;;  %v15_v26 = vld [vmem:[%s673_s0 + $0x8] sm:$0xff]  ;;  %v16_v28 = vld [vmem:[%s673_s0 + $0x10] sm:$0xff]  ;;  %v17_v30 = vld [vmem:[%s673_s0 + $0x18] sm:$0xff] }
   0x8   :  { %v23_v27 = vld [vmem:[%s673_s0 + $0x48] sm:$0xff]  ;;  %v24_v29 = vld [vmem:[%s673_s0 + $0x50] sm:$0xff]  ;;  %v25_v31 = vld [vmem:[%s673_s0 + $0x58] sm:$0xff] }
   0x9   :  { %404 = vmatpush3.bf16.msra.mxu0 %v401_v5  ;;  %438 = vmatpush3.bf16.msra.mxu1 %v401_v5  ;;  %v18_v32 = vld [vmem:[%s673_s0 + $0x20] sm:$0xff]  ;;  %v19_v34 = vld [vmem:[%s673_s0 + $0x28] sm:$0xff]  ;;  %v20_v36 = vld [vmem:[%s673_s0 + $0x30] sm:$0xff] }
   0xa   :  { %406 = vmatprep.subr.bf16.mxu0 %v405_v8  ;;  %431 = vmatprep.subr.bf16.mxu1 %v405_v8  ;;  %v26_v33 = vld [vmem:[%s673_s0 + $0x60] sm:$0xff]  ;;  %v27_v35 = vld [vmem:[%s673_s0 + $0x68] sm:$0xff]  ;;  %v28_v37 = vld [vmem:[%s673_s0 + $0x70] sm:$0xff] }
   0xb   :  { %v21_v38 = vld [vmem:[%s673_s0 + $0x38] sm:$0xff]  ;;  %v564_v40 = vld [vmem:[%s674_s2] ss:$0 sm:$0xff]  ;;  %v569_v42 = vld [vmem:[%s674_s2 + $0x1] ss:$0 sm:$0xff] }
   0xc   :  { %v29_v39 = vld [vmem:[%s673_s0 + $0x78] sm:$0xff]  ;;  %v576_v48 = vld [vmem:[%s674_s2 + $0x2] ss:$0 sm:$0xff] }
   0xd   :  { %408 = vmatpush3.bf16.msra.mxu0 %v405_v8  ;;  %439 = vmatpush3.bf16.msra.mxu1 %v405_v8 }
   0xe   :  { %410 = vmatprep.subr.bf16.mxu0 %v409_v13  ;;  %432 = vmatprep.subr.bf16.mxu1 %v409_v13 }
  0x11   :  { %412 = vmatpush3.bf16.msra.mxu0 %v409_v13  ;;  %440 = vmatpush3.bf16.msra.mxu1 %v409_v13 }
  0x12   :  { %414 = vmatprep.subr.bf16.mxu0 %v413_v16  ;;  %433 = vmatprep.subr.bf16.mxu1 %v413_v16 }
  0x15   :  { %416 = vmatpush3.bf16.msra.mxu0 %v413_v16  ;;  %441 = vmatpush3.bf16.msra.mxu1 %v413_v16 }
  0x16   :  { %418 = vmatprep.subr.bf16.mxu0 %v417_v19  ;;  %434 = vmatprep.subr.bf16.mxu1 %v417_v19 }
  0x19   :  { %420 = vmatpush3.bf16.msra.mxu0 %v417_v19  ;;  %442 = vmatpush3.bf16.msra.mxu1 %v417_v19 }
  0x1a   :  { %422 = vmatprep.subr.bf16.mxu0 %v421_v22  ;;  %435 = vmatprep.subr.bf16.mxu1 %v421_v22 }
  0x1d   :  { %424 = vmatpush3.bf16.msra.mxu0 %v421_v22  ;;  %443 = vmatpush3.bf16.msra.mxu1 %v421_v22 }
  0x1e   :  { %426 = vmatprep.subr.bf16.mxu0 %v425_v25  ;;  %436 = vmatprep.subr.bf16.mxu1 %v425_v25 }
  0x21   :  { %428 = vmatpush3.bf16.msra.mxu0 %v425_v25  ;;  %444 = vmatpush3.bf16.msra.mxu1 %v425_v25 }
  0x24   :  { %374 = vmatmul.mubr.f32.vlgmr.msra.gmra.mrb[0].mxu0 %v15_v26  ;;  %386 = vmatmul.mubr.f32.vlgmr.msra.gmra.mrb[0].mxu1 %v23_v27 }
  0x25   :  { %376 = vmatprep.mubr.f32.mxu0 %v16_v28  ;;  %388 = vmatprep.mubr.f32.mxu1 %v24_v29 }
  0x28   :  { %377 = vmatmul.mubr.f32.gmra.mrb[2].mxu0 %v17_v30  ;;  %389 = vmatmul.mubr.f32.gmra.mrb[2].mxu1 %v25_v31 }
  0x29   :  { %379 = vmatprep.mubr.f32.mxu0 %v18_v32  ;;  %391 = vmatprep.mubr.f32.mxu1 %v26_v33 }
  0x2c   :  { %380 = vmatmul.mubr.f32.gmra.mrb[4].mxu0 %v19_v34  ;;  %392 = vmatmul.mubr.f32.gmra.mrb[4].mxu1 %v27_v35 }
  0x2d   :  { %382 = vmatprep.mubr.f32.mxu0 %v20_v36  ;;  %394 = vmatprep.mubr.f32.mxu1 %v28_v37 }
  0x30   :  { %383 = vmatmul.mubr.f32.gmra.mrb[6].mxu0 %v21_v38  ;;  %395 = vmatmul.mubr.f32.gmra.mrb[6].mxu1 %v29_v39 }
  0xf7   :  { %v375_v41 = vpop.f32.mrb[0].mxu0  ;;  %v387_v43 = vpop.f32.mrb[0].mxu1 }
  0xf8   :  { %v199_v44 = vmul.f32 %v375_v41, %v564_v40  ;;  %v207_v45 = vmul.f32 %v387_v43, %v564_v40  ;;  %v112_v46 = vpop.f32.mrb[1].mxu0  ;;  %v152_v47 = vpop.f32.mrb[1].mxu1 }
  0xf9   :  { %v198_v49 = vmul.f32 %v564_v40, %v112_v46  ;;  %v206_v50 = vmul.f32 %v564_v40, %v152_v47 }
  0xfa   :  { %v219_v51 = vadd.f32 %v569_v42, %v199_v44  ;;  %v227_v52 = vadd.f32 %v569_v42, %v207_v45 }
  0xfb   :  { %v218_v53 = vadd.f32 %v569_v42, %v198_v49  ;;  %v226_v54 = vadd.f32 %v569_v42, %v206_v50  ;;  %v378_v55 = vpop.f32.mrb[2].mxu0  ;;  %v390_v56 = vpop.f32.mrb[2].mxu1 }
  0xfc   :  { %vm235_vm0 = vcmp.ge.f32.partialorder %v219_v51, 0.0  ;;  %v255_v57 = vmul.f32 %v576_v48, %v219_v51  ;;  %vm243_vm1 = vcmp.ge.f32.partialorder %v227_v52, 0.0  ;;  %v263_v58 = vmul.f32 %v576_v48, %v227_v52  ;;  %v122_v59 = vpop.f32.mrb[3].mxu0  ;;  %v162_v60 = vpop.f32.mrb[3].mxu1 }
  0xfd   :  { %vm234_vm2 = vcmp.ge.f32.partialorder %v218_v53, 0.0  ;;  %v254_v61 = vmul.f32 %v576_v48, %v218_v53  ;;  %vm242_vm3 = vcmp.ge.f32.partialorder %v226_v54, 0.0  ;;  %v262_v62 = vmul.f32 %v576_v48, %v226_v54 }
  0xfe   :  { %v271_v63 = vsel %vm235_vm0, %v219_v51, %v255_v57  ;;  %v279_v0 = vsel %vm243_vm1, %v227_v52, %v263_v58  ;;  %v201_v1 = vmul.f32 %v378_v55, %v564_v40  ;;  %v209_v2 = vmul.f32 %v390_v56, %v564_v40 }
  0xff   :  { %287 = vst [vmem:[%s675_s3 + $0x8] sm:$0xff] %v271_v63  ;;  %295 = vst [vmem:[%s675_s3 + $0x48] sm:$0xff] %v279_v0  ;;  %v270_v3 = vsel %vm234_vm2, %v218_v53, %v254_v61  ;;  %v278_v4 = vsel %vm242_vm3, %v226_v54, %v262_v62  ;;  %v200_v5 = vmul.f32 %v564_v40, %v122_v59  ;;  %v381_v7 = vpop.f32.mrb[4].mxu0  ;;  %v393_v8 = vpop.f32.mrb[4].mxu1 }
 0x100   :  { %v208_v6 = vmul.f32 %v564_v40, %v162_v60  ;;  %286 = vst [vmem:[%s675_s3] sm:$0xff] %v270_v3  ;;  %294 = vst [vmem:[%s675_s3 + $0x40] sm:$0xff] %v278_v4  ;;  %v221_v9 = vadd.f32 %v569_v42, %v201_v1  ;;  %v229_v10 = vadd.f32 %v569_v42, %v209_v2  ;;  %v132_v13 = vpop.f32.mrb[5].mxu0  ;;  %v172_v14 = vpop.f32.mrb[5].mxu1 }
 0x101   :  { %v203_v11 = vmul.f32 %v381_v7, %v564_v40  ;;  %v211_v12 = vmul.f32 %v393_v8, %v564_v40  ;;  %v220_v15 = vadd.f32 %v569_v42, %v200_v5  ;;  %v202_v17 = vmul.f32 %v564_v40, %v132_v13 }
 0x102   :  { %v228_v16 = vadd.f32 %v569_v42, %v208_v6  ;;  %v210_v18 = vmul.f32 %v564_v40, %v172_v14  ;;  %vm237_vm4 = vcmp.ge.f32.partialorder %v221_v9, 0.0  ;;  %v257_v19 = vmul.f32 %v576_v48, %v221_v9 }
 0x103   :  { %vm245_vm5 = vcmp.ge.f32.partialorder %v229_v10, 0.0  ;;  %v265_v20 = vmul.f32 %v576_v48, %v229_v10  ;;  %vm236_vm6 = vcmp.ge.f32.partialorder %v220_v15, 0.0  ;;  %v256_v21 = vmul.f32 %v576_v48, %v220_v15  ;;  %v384_v23 = vpop.f32.mrb[6].mxu0  ;;  %v396_v24 = vpop.f32.mrb[6].mxu1 }
 0x104   :  { %vm244_vm7 = vcmp.ge.f32.partialorder %v228_v16, 0.0  ;;  %v264_v22 = vmul.f32 %v576_v48, %v228_v16  ;;  %v273_v25 = vsel %vm237_vm4, %v221_v9, %v257_v19  ;;  %v223_v27 = vadd.f32 %v569_v42, %v203_v11  ;;  %v142_v29 = vpop.f32.mrb[7].mxu0  ;;  %v182_v30 = vpop.f32.mrb[7].mxu1 }
 0x105   :  { %v281_v26 = vsel %vm245_vm5, %v229_v10, %v265_v20  ;;  %v231_v28 = vadd.f32 %v569_v42, %v211_v12  ;;  %289 = vst [vmem:[%s675_s3 + $0x18] sm:$0xff] %v273_v25  ;;  %v272_v31 = vsel %vm236_vm6, %v220_v15, %v256_v21  ;;  %v222_v33 = vadd.f32 %v569_v42, %v202_v17 }
 0x106   :  { %297 = vst [vmem:[%s675_s3 + $0x58] sm:$0xff] %v281_v26  ;;  %v280_v32 = vsel %vm244_vm7, %v228_v16, %v264_v22  ;;  %v230_v34 = vadd.f32 %v569_v42, %v210_v18  ;;  %288 = vst [vmem:[%s675_s3 + $0x10] sm:$0xff] %v272_v31  ;;  %vm239_vm8 = vcmp.ge.f32.partialorder %v223_v27, 0.0  ;;  %v259_v35 = vmul.f32 %v576_v48, %v223_v27 }
 0x107   :  { %296 = vst [vmem:[%s675_s3 + $0x50] sm:$0xff] %v280_v32  ;;  %vm247_vm9 = vcmp.ge.f32.partialorder %v231_v28, 0.0  ;;  %v267_v36 = vmul.f32 %v576_v48, %v231_v28  ;;  %vm238_vm10 = vcmp.ge.f32.partialorder %v222_v33, 0.0  ;;  %v258_v37 = vmul.f32 %v576_v48, %v222_v33 }
 0x108   :  { %vm246_vm11 = vcmp.ge.f32.partialorder %v230_v34, 0.0  ;;  %v266_v38 = vmul.f32 %v576_v48, %v230_v34  ;;  %v275_v39 = vsel %vm239_vm8, %v223_v27, %v259_v35  ;;  %v205_v43 = vmul.f32 %v384_v23, %v564_v40 }
 0x109   :  { %v283_v41 = vsel %vm247_vm9, %v231_v28, %v267_v36  ;;  %v213_v44 = vmul.f32 %v396_v24, %v564_v40  ;;  %291 = vst [vmem:[%s675_s3 + $0x28] sm:$0xff] %v275_v39  ;;  %v274_v45 = vsel %vm238_vm10, %v222_v33, %v258_v37  ;;  %v204_v47 = vmul.f32 %v564_v40, %v142_v29 }
 0x10a   :  { %299 = vst [vmem:[%s675_s3 + $0x68] sm:$0xff] %v283_v41  ;;  %v282_v46 = vsel %vm246_vm11, %v230_v34, %v266_v38  ;;  %v212_v49 = vmul.f32 %v564_v40, %v182_v30  ;;  %290 = vst [vmem:[%s675_s3 + $0x20] sm:$0xff] %v274_v45  ;;  %v225_v50 = vadd.f32 %v569_v42, %v205_v43 }
 0x10b   :  { %298 = vst [vmem:[%s675_s3 + $0x60] sm:$0xff] %v282_v46  ;;  %v233_v51 = vadd.f32 %v569_v42, %v213_v44  ;;  %v224_v52 = vadd.f32 %v569_v42, %v204_v47 }
 0x10c   :  { %v232_v53 = vadd.f32 %v569_v42, %v212_v49  ;;  %vm241_vm12 = vcmp.ge.f32.partialorder %v225_v50, 0.0  ;;  %v261_v54 = vmul.f32 %v576_v48, %v225_v50 }
 0x10d   :  { %vm249_vm13 = vcmp.ge.f32.partialorder %v233_v51, 0.0  ;;  %v269_v40 = vmul.f32 %v576_v48, %v233_v51  ;;  %vm240_vm14 = vcmp.ge.f32.partialorder %v224_v52, 0.0  ;;  %v260_v55 = vmul.f32 %v576_v48, %v224_v52 }
 0x10e   :  { %vm248_vm15 = vcmp.ge.f32.partialorder %v232_v53, 0.0  ;;  %v268_v56 = vmul.f32 %v576_v48, %v232_v53  ;;  %v277_v57 = vsel %vm241_vm12, %v225_v50, %v261_v54 }
 0x10f   :  { %v285_v58 = vsel %vm249_vm13, %v233_v51, %v269_v40  ;;  %293 = vst [vmem:[%s675_s3 + $0x38] sm:$0xff] %v277_v57  ;;  %v276_v42 = vsel %vm240_vm14, %v224_v52, %v260_v55 }
 0x110   :  { %301 = vst [vmem:[%s675_s3 + $0x78] sm:$0xff] %v285_v58  ;;  %v284_v59 = vsel %vm248_vm15, %v232_v53, %v268_v56  ;;  %292 = vst [vmem:[%s675_s3 + $0x30] sm:$0xff] %v276_v42 }
 0x111   :  { %300 = vst [vmem:[%s675_s3 + $0x70] sm:$0xff] %v284_v59 }

// kernel: _lambda_.90
= control target key start
LH: loop header
LB: loop body
LE: loop exit
PB: predicated region body
PF: predicated region fallthrough
CT: control target
= control target key end

     0   :  { %vm134_vm0 = vcmask 23552   ;;  %s358_s0 = inlined_call_operand.vmem [shape: f32[128,3], index: 0, kind: input, shape index: {}]   ;;  %s359_s1 = inlined_call_operand.vmem [shape: f32[1,3], index: 1, kind: input, shape index: {}]   ;;  %s360_s2 = inlined_call_operand.vmem [shape: f32[1,3], index: 2, kind: input, shape index: {}]   ;;  %s361_s3 = inlined_call_operand.vmem [shape: f32[1,3], index: 3, kind: input, shape index: {}]   ;;  %s362_s4 = inlined_call_operand.vmem [shape: f32[128,3], index: 4, kind: output, shape index: {}]  }
   0x1   :  { %v17_v0 = vld [vmem:[%s358_s0] sm:$0xff]  ;;  %v18_v5 = vld [vmem:[%s358_s0 + $0x8] sm:$0xff]  ;;  %v19_v6 = vld [vmem:[%s358_s0 + $0x10] sm:$0xff] }
   0x2   :  { %v189_v1 = vld [vmem:[%s359_s1] ss:$0 sm:$0xff]  ;;  %v20_v9 = vld [vmem:[%s358_s0 + $0x18] sm:$0xff]  ;;  %v22_v11 = vld [vmem:[%s358_s0 + $0x28] sm:$0xff] }
   0x3   :  { %v194_v2 = vld [vmem:[%s360_s2] ss:$0 sm:$0xff]  ;;  %v40_v3 = vmul.f32 %v189_v1, %v17_v0  ;;  %v41_v7 = vmul.f32 %v189_v1, %v18_v5  ;;  %v42_v8 = vmul.f32 %v189_v1, %v19_v6  ;;  %v43_v13 = vmul.f32 %v189_v1, %v20_v9  ;;  %v23_v16 = vld [vmem:[%s358_s0 + $0x30] sm:$0xff]  ;;  %v24_v17 = vld [vmem:[%s358_s0 + $0x38] sm:$0xff] }
   0x4   :  { %v200_v4 = vld [vmem:[%s361_s3] ss:$0 sm:$0xff]  ;;  %v45_v15 = vmul.f32 %v189_v1, %v22_v11  ;;  %v46_v20 = vmul.f32 %v189_v1, %v23_v16  ;;  %v47_v21 = vmul.f32 %v189_v1, %v24_v17  ;;  %v26_v30 = vld [vmem:[%s358_s0 + $0x48] sm:$0xff]  ;;  %v27_v39 = vld [vmem:[%s358_s0 + $0x50] sm:$0xff] }
   0x5   :  { %v21_v10 = vld [vmem:[%s358_s0 + $0x20] sm:$0xff]  ;;  %v63_v12 = vadd.f32 %v194_v2, %v40_v3  ;;  %v64_v18 = vadd.f32 %v194_v2, %v41_v7  ;;  %v65_v19 = vadd.f32 %v194_v2, %v42_v8  ;;  %v66_v23 = vadd.f32 %v194_v2, %v43_v13  ;;  %v28_v43 = vld [vmem:[%s358_s0 + $0x58] sm:$0xff]  ;;  %v30_v51 = vld [vmem:[%s358_s0 + $0x68] sm:$0xff] }
   0x6   :  { %v44_v14 = vmul.f32 %v189_v1, %v21_v10  ;;  %v25_v27 = vld [vmem:[%s358_s0 + $0x40] sm:$0xff]  ;;  %v68_v34 = vadd.f32 %v194_v2, %v45_v15  ;;  %v69_v36 = vadd.f32 %v194_v2, %v46_v20  ;;  %v70_v37 = vadd.f32 %v194_v2, %v47_v21  ;;  %v31_v56 = vld [vmem:[%s358_s0 + $0x70] sm:$0xff]  ;;  %v32_v57 = vld [vmem:[%s358_s0 + $0x78] sm:$0xff] }
   0x7   :  { %vm79_vm1 = vcmp.ge.f32.partialorder %v63_v12, 0.0  ;;  %v102_v22 = vmul.f32 %v200_v4, %v63_v12  ;;  %vm80_vm2 = vcmp.ge.f32.partialorder %v64_v18, 0.0  ;;  %v103_v25 = vmul.f32 %v200_v4, %v64_v18  ;;  %v29_v44 = vld [vmem:[%s358_s0 + $0x60] sm:$0xff] }
   0x8   :  { %v67_v24 = vadd.f32 %v194_v2, %v44_v14  ;;  %vm81_vm3 = vcmp.ge.f32.partialorder %v65_v19, 0.0  ;;  %v104_v26 = vmul.f32 %v200_v4, %v65_v19  ;;  %vm82_vm4 = vcmp.ge.f32.partialorder %v66_v23, 0.0 }
   0x9   :  { %v118_v28 = vsel %vm79_vm1, %v63_v12, %v102_v22  ;;  %v105_v29 = vmul.f32 %v200_v4, %v66_v23  ;;  %v119_v31 = vsel %vm80_vm2, %v64_v18, %v103_v25  ;;  %v48_v38 = vmul.f32 %v189_v1, %v25_v27 }
   0xa   :  { %vm83_vm5 = vcmp.ge.f32.partialorder %v67_v24, 0.0  ;;  %135 = vst.msk [vmem:[%s362_s4] sm:$0xff] %vm134_vm0, %v118_v28  ;;  %v120_v32 = vsel %vm81_vm3, %v65_v19, %v104_v26  ;;  %v106_v33 = vmul.f32 %v200_v4, %v67_v24  ;;  %136 = vst.msk [vmem:[%s362_s4 + $0x8] sm:$0xff] %vm134_vm0, %v119_v31  ;;  %vm84_vm6 = vcmp.ge.f32.partialorder %v68_v34, 0.0 }
   0xb   :  { %137 = vst.msk [vmem:[%s362_s4 + $0x10] sm:$0xff] %vm134_vm0, %v120_v32  ;;  %v121_v35 = vsel %vm82_vm4, %v66_v23, %v105_v29  ;;  %v107_v41 = vmul.f32 %v200_v4, %v68_v34  ;;  %v49_v42 = vmul.f32 %v189_v1, %v26_v30  ;;  %vm85_vm7 = vcmp.ge.f32.partialorder %v69_v36, 0.0 }
   0xc   :  { %138 = vst.msk [vmem:[%s362_s4 + $0x18] sm:$0xff] %vm134_vm0, %v121_v35  ;;  %v122_v40 = vsel %vm83_vm5, %v67_v24, %v106_v33  ;;  %v108_v45 = vmul.f32 %v200_v4, %v69_v36  ;;  %vm86_vm8 = vcmp.ge.f32.partialorder %v70_v37, 0.0  ;;  %v109_v46 = vmul.f32 %v200_v4, %v70_v37 }
   0xd   :  { %139 = vst.msk [vmem:[%s362_s4 + $0x20] sm:$0xff] %vm134_vm0, %v122_v40  ;;  %v123_v47 = vsel %vm84_vm6, %v68_v34, %v107_v41  ;;  %v71_v48 = vadd.f32 %v194_v2, %v48_v38  ;;  %v72_v49 = vadd.f32 %v194_v2, %v49_v42  ;;  %v50_v50 = vmul.f32 %v189_v1, %v27_v39 }
   0xe   :  { %140 = vst.msk [vmem:[%s362_s4 + $0x28] sm:$0xff] %vm134_vm0, %v123_v47  ;;  %v124_v52 = vsel %vm85_vm7, %v69_v36, %v108_v45  ;;  %v125_v53 = vsel %vm86_vm8, %v70_v37, %v109_v46  ;;  %v51_v54 = vmul.f32 %v189_v1, %v28_v43  ;;  %v52_v55 = vmul.f32 %v189_v1, %v29_v44 }
   0xf   :  { %141 = vst.msk [vmem:[%s362_s4 + $0x30] sm:$0xff] %vm134_vm0, %v124_v52  ;;  %142 = vst.msk [vmem:[%s362_s4 + $0x38] sm:$0xff] %vm134_vm0, %v125_v53  ;;  %vm87_vm9 = vcmp.ge.f32.partialorder %v71_v48, 0.0  ;;  %v110_v58 = vmul.f32 %v200_v4, %v71_v48  ;;  %vm88_vm10 = vcmp.ge.f32.partialorder %v72_v49, 0.0  ;;  %v111_v59 = vmul.f32 %v200_v4, %v72_v49 }
  0x10   :  { %v73_v60 = vadd.f32 %v194_v2, %v50_v50  ;;  %v74_v61 = vadd.f32 %v194_v2, %v51_v54  ;;  %v75_v62 = vadd.f32 %v194_v2, %v52_v55  ;;  %v53_v63 = vmul.f32 %v189_v1, %v30_v51 }
  0x11   :  { %v126_v0 = vsel %vm87_vm9, %v71_v48, %v110_v58  ;;  %v127_v3 = vsel %vm88_vm10, %v72_v49, %v111_v59  ;;  %v54_v5 = vmul.f32 %v189_v1, %v31_v56  ;;  %v55_v6 = vmul.f32 %v189_v1, %v32_v57 }
  0x12   :  { %143 = vst.msk [vmem:[%s362_s4 + $0x40] sm:$0xff] %vm134_vm0, %v126_v0  ;;  %144 = vst.msk [vmem:[%s362_s4 + $0x48] sm:$0xff] %vm134_vm0, %v127_v3  ;;  %vm89_vm11 = vcmp.ge.f32.partialorder %v73_v60, 0.0  ;;  %v112_v7 = vmul.f32 %v200_v4, %v73_v60  ;;  %vm90_vm12 = vcmp.ge.f32.partialorder %v74_v61, 0.0  ;;  %v113_v8 = vmul.f32 %v200_v4, %v74_v61 }
  0x13   :  { %vm91_vm13 = vcmp.ge.f32.partialorder %v75_v62, 0.0  ;;  %v114_v9 = vmul.f32 %v200_v4, %v75_v62  ;;  %v76_v1 = vadd.f32 %v194_v2, %v53_v63  ;;  %v77_v10 = vadd.f32 %v194_v2, %v54_v5 }
  0x14   :  { %v128_v11 = vsel %vm89_vm11, %v73_v60, %v112_v7  ;;  %v129_v12 = vsel %vm90_vm12, %v74_v61, %v113_v8  ;;  %v78_v13 = vadd.f32 %v194_v2, %v55_v6 }
  0x15   :  { %145 = vst.msk [vmem:[%s362_s4 + $0x50] sm:$0xff] %vm134_vm0, %v128_v11  ;;  %146 = vst.msk [vmem:[%s362_s4 + $0x58] sm:$0xff] %vm134_vm0, %v129_v12  ;;  %v130_v14 = vsel %vm91_vm13, %v75_v62, %v114_v9  ;;  %vm92_vm14 = vcmp.ge.f32.partialorder %v76_v1, 0.0  ;;  %v115_v15 = vmul.f32 %v200_v4, %v76_v1  ;;  %vm93_vm15 = vcmp.ge.f32.partialorder %v77_v10, 0.0 }
  0x16   :  { %147 = vst.msk [vmem:[%s362_s4 + $0x60] sm:$0xff] %vm134_vm0, %v130_v14  ;;  %v116_v2 = vmul.f32 %v200_v4, %v77_v10  ;;  %vm94_vm1 = vcmp.ge.f32.partialorder %v78_v13, 0.0  ;;  %v117_v16 = vmul.f32 %v200_v4, %v78_v13 }
  0x17   :  { %v131_v17 = vsel %vm92_vm14, %v76_v1, %v115_v15 }
  0x18   :  { %148 = vst.msk [vmem:[%s362_s4 + $0x68] sm:$0xff] %vm134_vm0, %v131_v17  ;;  %v132_v18 = vsel %vm93_vm15, %v77_v10, %v116_v2  ;;  %v133_v19 = vsel %vm94_vm1, %v78_v13, %v117_v16 }
  0x19   :  { %149 = vst.msk [vmem:[%s362_s4 + $0x70] sm:$0xff] %vm134_vm0, %v132_v18  ;;  %150 = vst.msk [vmem:[%s362_s4 + $0x78] sm:$0xff] %vm134_vm0, %v133_v19 }

// kernel: _lambda_.92
= control target key start
LH: loop header
LB: loop body
LE: loop exit
PB: predicated region body
PF: predicated region fallthrough
CT: control target
= control target key end

     0   :  { %v274_v6 = vmov -1.0   ;;  %s354_s1 = inlined_call_operand.vmem [shape: bf16[128,128], index: 1, kind: input, shape index: {}]   ;;  %s355_s0 = inlined_call_operand.vmem [shape: f32[32,128], index: 0, kind: input, shape index: {}]   ;;  %s356_s2 = inlined_call_operand.vmem [shape: f32[4,128], index: 2, kind: input, shape index: {}]   ;;  %s357_s3 = inlined_call_operand.vmem [shape: bf16[32,128], index: 3, kind: output, shape index: {}]  }
   0x1   :  { %v266_v0 = vld [vmem:[%s354_s1] sm:$0xff]   ;;  %v267_v1 = vld [vmem:[%s354_s1 + $0x8] sm:$0xff]   ;;  %v268_v2 = vld [vmem:[%s354_s1 + $0x10] sm:$0xff]  }
   0x2   :  { %245 = vmatprep.subr.bf16.mxu0 %v266_v0  ;;  %v269_v3 = vld [vmem:[%s354_s1 + $0x18] sm:$0xff]   ;;  %v15_v4 = vld [vmem:[%s355_s0] sm:$0xff]  ;;  %v16_v5 = vld [vmem:[%s355_s0 + $0x8] sm:$0xff] }
   0x3   :  { %246 = vmatpush3.bf16.msra.mxu0 %v266_v0  ;;  %vm19_vm0 = vcmp.gt.f32.partialorder %v15_v4, 0.0  ;;  %vm20_vm1 = vcmp.gt.f32.partialorder %v16_v5, 0.0  ;;  %v270_v10 = vld [vmem:[%s354_s1 + $0x20] sm:$0xff]   ;;  %v271_v11 = vld [vmem:[%s354_s1 + $0x28] sm:$0xff]   ;;  %v272_v12 = vld [vmem:[%s354_s1 + $0x30] sm:$0xff]  }
   0x4   :  { %247 = vmatprep.subr.bf16.mxu0 %v267_v1  ;;  %v23_v7 = vsel %vm19_vm0, 1.0, %v274_v6  ;;  %v24_v8 = vsel %vm20_vm1, 1.0, %v274_v6  ;;  %v17_v13 = vld [vmem:[%s355_s0 + $0x10] sm:$0xff]  ;;  %v18_v14 = vld [vmem:[%s355_s0 + $0x18] sm:$0xff]  ;;  %v217_v19 = vld [vmem:[%s356_s2] ss:$0 sm:$0xff] }
   0x5   :  { %v27_v9 = vpack.c.bf16 %v24_v8, %v23_v7  ;;  %v273_v15 = vld [vmem:[%s354_s1 + $0x38] sm:$0xff]   ;;  %vm21_vm2 = vcmp.gt.f32.partialorder %v17_v13, 0.0  ;;  %vm22_vm3 = vcmp.gt.f32.partialorder %v18_v14, 0.0  ;;  %v218_v21 = vld [vmem:[%s356_s2 + $0x1] ss:$0 sm:$0xff] }
   0x6   :  { %v25_v16 = vsel %vm21_vm2, 1.0, %v274_v6  ;;  %v26_v17 = vsel %vm22_vm3, 1.0, %v274_v6  ;;  %v219_v24 = vld [vmem:[%s356_s2 + $0x2] ss:$0 sm:$0xff] }
   0x7   :  { %248 = vmatpush3.bf16.msra.mxu0 %v267_v1  ;;  %261 = vmatprep.mubr.bf16.mxu0 %v27_v9  ;;  %v28_v18 = vpack.c.bf16 %v26_v17, %v25_v16 }
   0x8   :  { %249 = vmatprep.subr.bf16.mxu0 %v268_v2 }
   0xb   :  { %250 = vmatpush3.bf16.msra.mxu0 %v268_v2 }
   0xc   :  { %251 = vmatprep.subr.bf16.mxu0 %v269_v3 }
   0xf   :  { %252 = vmatpush3.bf16.msra.mxu0 %v269_v3 }
  0x10   :  { %253 = vmatprep.subr.bf16.mxu0 %v270_v10 }
  0x13   :  { %254 = vmatpush3.bf16.msra.mxu0 %v270_v10 }
  0x14   :  { %255 = vmatprep.subr.bf16.mxu0 %v271_v11 }
  0x17   :  { %256 = vmatpush3.bf16.msra.mxu0 %v271_v11 }
  0x18   :  { %257 = vmatprep.subr.bf16.mxu0 %v272_v12 }
  0x1b   :  { %258 = vmatpush3.bf16.msra.mxu0 %v272_v12 }
  0x1c   :  { %259 = vmatprep.subr.bf16.mxu0 %v273_v15 }
  0x1f   :  { %260 = vmatpush3.bf16.msra.mxu0 %v273_v15 }
  0x22   :  { %262 = vmatmul.mubr.bf16.vlgmr.msra.gmra.mrb[0].mxu0 %v28_v18 }
  0xf5   :  { %v263_v20 = vpop.f32.mrb[0].mxu0 }
  0xf6   :  { %v151_v22 = vmul.f32 %v263_v20, %v217_v19  ;;  %v127_v23 = vpop.f32.mrb[1].mxu0 }
  0xf7   :  { %v149_v25 = vmul.f32 %v217_v19, %v127_v23  ;;  %v264_v26 = vpop.f32.mrb[2].mxu0 }
  0xf8   :  { %v159_v27 = vadd.f32 %v218_v21, %v151_v22  ;;  %v152_v28 = vmul.f32 %v264_v26, %v217_v19  ;;  %v130_v29 = vpop.f32.mrb[3].mxu0 }
  0xf9   :  { %v157_v30 = vadd.f32 %v218_v21, %v149_v25  ;;  %v150_v31 = vmul.f32 %v217_v19, %v130_v29 }
  0xfa   :  { %vm163_vm4 = vcmp.ge.f32.partialorder %v159_v27, 0.0  ;;  %v171_v32 = vmul.f32 %v219_v24, %v159_v27  ;;  %v160_v33 = vadd.f32 %v218_v21, %v152_v28 }
  0xfb   :  { %vm161_vm5 = vcmp.ge.f32.partialorder %v157_v30, 0.0  ;;  %v169_v34 = vmul.f32 %v219_v24, %v157_v30  ;;  %v158_v35 = vadd.f32 %v218_v21, %v150_v31 }
  0xfc   :  { %v175_v36 = vsel %vm163_vm4, %v159_v27, %v171_v32  ;;  %vm164_vm6 = vcmp.ge.f32.partialorder %v160_v33, 0.0  ;;  %v172_v37 = vmul.f32 %v219_v24, %v160_v33 }
  0xfd   :  { %vm179_vm7 = vcmp.gt.f32.partialorder %v175_v36, 0.0  ;;  %v173_v38 = vsel %vm161_vm5, %v157_v30, %v169_v34  ;;  %vm162_vm8 = vcmp.ge.f32.partialorder %v158_v35, 0.0  ;;  %v170_v39 = vmul.f32 %v219_v24, %v158_v35 }
  0xfe   :  { %vm177_vm9 = vcmp.gt.f32.partialorder %v173_v38, 0.0  ;;  %v176_v40 = vsel %vm164_vm6, %v160_v33, %v172_v37  ;;  %v183_v42 = vsel %vm179_vm7, 1.0, %v274_v6 }
  0xff   :  { %vm180_vm10 = vcmp.gt.f32.partialorder %v176_v40, 0.0  ;;  %v174_v41 = vsel %vm162_vm8, %v158_v35, %v170_v39  ;;  %v181_v44 = vsel %vm177_vm9, 1.0, %v274_v6 }
 0x100   :  { %v184_v43 = vsel %vm180_vm10, 1.0, %v274_v6  ;;  %vm178_vm11 = vcmp.gt.f32.partialorder %v174_v41, 0.0 }
 0x101   :  { %v232_v45 = vpack.c.bf16 %v184_v43, %v183_v42  ;;  %v182_v46 = vsel %vm178_vm11, 1.0, %v274_v6 }
 0x102   :  { %v229_v47 = vpack.c.bf16 %v182_v46, %v181_v44 }
 0x103   :  { %234 = vst [vmem:[%s357_s3 + $0x8] sm:$0xff] %v232_v45  }
 0x104   :  { %230 = vst [vmem:[%s357_s3] sm:$0xff] %v229_v47  }

// kernel: _lambda_.93
= control target key start
LH: loop header
LB: loop body
LE: loop exit
PB: predicated region body
PF: predicated region fallthrough
CT: control target
= control target key end

     0   :  { %v280_v33 = vmov -1.0   ;;  %s346_s1 = inlined_call_operand.vmem [shape: bf16[128,128], index: 1, kind: input, shape index: {}]   ;;  %s347_s0 = inlined_call_operand.vmem [shape: bf16[32,128], index: 0, kind: input, shape index: {}]   ;;  %s348_s2 = inlined_call_operand.vmem [shape: f32[4,128], index: 2, kind: input, shape index: {}]   ;;  %s349_s3 = inlined_call_operand.vmem [shape: bf16[32,128], index: 3, kind: output, shape index: {}]  }
   0x1   :  { %v270_v0 = vld [vmem:[%s346_s1] sm:$0xff]   ;;  %v271_v1 = vld [vmem:[%s346_s1 + $0x8] sm:$0xff]   ;;  %v272_v2 = vld [vmem:[%s346_s1 + $0x10] sm:$0xff]  }
   0x2   :  { %249 = vmatprep.subr.bf16.mxu0 %v270_v0  ;;  %v273_v3 = vld [vmem:[%s346_s1 + $0x18] sm:$0xff]   ;;  %v278_v4 = vld [vmem:[%s347_s0] sm:$0xff]   ;;  %v275_v6 = vld [vmem:[%s346_s1 + $0x28] sm:$0xff]  }
   0x3   :  { %250 = vmatpush3.bf16.msra.mxu0 %v270_v0  ;;  %265 = vmatprep.mubr.bf16.mxu0 %v278_v4  ;;  %v274_v5 = vld [vmem:[%s346_s1 + $0x20] sm:$0xff]   ;;  %v276_v7 = vld [vmem:[%s346_s1 + $0x30] sm:$0xff]   ;;  %v277_v8 = vld [vmem:[%s346_s1 + $0x38] sm:$0xff]  }
   0x4   :  { %251 = vmatprep.subr.bf16.mxu0 %v271_v1  ;;  %v279_v9 = vld [vmem:[%s347_s0 + $0x8] sm:$0xff]   ;;  %v221_v10 = vld [vmem:[%s348_s2] ss:$0 sm:$0xff]  ;;  %v222_v12 = vld [vmem:[%s348_s2 + $0x1] ss:$0 sm:$0xff] }
   0x5   :  { %v223_v15 = vld [vmem:[%s348_s2 + $0x2] ss:$0 sm:$0xff] }
   0x7   :  { %252 = vmatpush3.bf16.msra.mxu0 %v271_v1 }
   0x8   :  { %253 = vmatprep.subr.bf16.mxu0 %v272_v2 }
   0xb   :  { %254 = vmatpush3.bf16.msra.mxu0 %v272_v2 }
   0xc   :  { %255 = vmatprep.subr.bf16.mxu0 %v273_v3 }
   0xf   :  { %256 = vmatpush3.bf16.msra.mxu0 %v273_v3 }
  0x10   :  { %257 = vmatprep.subr.bf16.mxu0 %v274_v5 }
  0x13   :  { %258 = vmatpush3.bf16.msra.mxu0 %v274_v5 }
  0x14   :  { %259 = vmatprep.subr.bf16.mxu0 %v275_v6 }
  0x17   :  { %260 = vmatpush3.bf16.msra.mxu0 %v275_v6 }
  0x18   :  { %261 = vmatprep.subr.bf16.mxu0 %v276_v7 }
  0x1b   :  { %262 = vmatpush3.bf16.msra.mxu0 %v276_v7 }
  0x1c   :  { %263 = vmatprep.subr.bf16.mxu0 %v277_v8 }
  0x1f   :  { %264 = vmatpush3.bf16.msra.mxu0 %v277_v8 }
  0x22   :  { %266 = vmatmul.mubr.bf16.vlgmr.msra.gmra.mrb[0].mxu0 %v279_v9 }
  0xf5   :  { %v267_v11 = vpop.f32.mrb[0].mxu0 }
  0xf6   :  { %v153_v13 = vmul.f32 %v267_v11, %v221_v10  ;;  %v129_v14 = vpop.f32.mrb[1].mxu0 }
  0xf7   :  { %v151_v16 = vmul.f32 %v221_v10, %v129_v14  ;;  %v268_v17 = vpop.f32.mrb[2].mxu0 }
  0xf8   :  { %v161_v18 = vadd.f32 %v222_v12, %v153_v13  ;;  %v154_v19 = vmul.f32 %v268_v17, %v221_v10  ;;  %v132_v20 = vpop.f32.mrb[3].mxu0 }
  0xf9   :  { %v159_v21 = vadd.f32 %v222_v12, %v151_v16  ;;  %v152_v22 = vmul.f32 %v221_v10, %v132_v20 }
  0xfa   :  { %vm165_vm0 = vcmp.ge.f32.partialorder %v161_v18, 0.0  ;;  %v173_v23 = vmul.f32 %v223_v15, %v161_v18  ;;  %v162_v24 = vadd.f32 %v222_v12, %v154_v19 }
  0xfb   :  { %vm163_vm1 = vcmp.ge.f32.partialorder %v159_v21, 0.0  ;;  %v171_v25 = vmul.f32 %v223_v15, %v159_v21  ;;  %v160_v26 = vadd.f32 %v222_v12, %v152_v22 }
  0xfc   :  { %v177_v27 = vsel %vm165_vm0, %v161_v18, %v173_v23  ;;  %vm166_vm2 = vcmp.ge.f32.partialorder %v162_v24, 0.0  ;;  %v174_v28 = vmul.f32 %v223_v15, %v162_v24 }
  0xfd   :  { %vm181_vm3 = vcmp.gt.f32.partialorder %v177_v27, 0.0  ;;  %v175_v29 = vsel %vm163_vm1, %v159_v21, %v171_v25  ;;  %vm164_vm4 = vcmp.ge.f32.partialorder %v160_v26, 0.0  ;;  %v172_v30 = vmul.f32 %v223_v15, %v160_v26 }
  0xfe   :  { %vm179_vm5 = vcmp.gt.f32.partialorder %v175_v29, 0.0  ;;  %v178_v31 = vsel %vm166_vm2, %v162_v24, %v174_v28  ;;  %v185_v34 = vsel %vm181_vm3, 1.0, %v280_v33 }
  0xff   :  { %vm182_vm6 = vcmp.gt.f32.partialorder %v178_v31, 0.0  ;;  %v176_v32 = vsel %vm164_vm4, %v160_v26, %v172_v30  ;;  %v183_v36 = vsel %vm179_vm5, 1.0, %v280_v33 }
 0x100   :  { %v186_v35 = vsel %vm182_vm6, 1.0, %v280_v33  ;;  %vm180_vm7 = vcmp.gt.f32.partialorder %v176_v32, 0.0 }
 0x101   :  { %v236_v37 = vpack.c.bf16 %v186_v35, %v185_v34  ;;  %v184_v38 = vsel %vm180_vm7, 1.0, %v280_v33 }
 0x102   :  { %v233_v39 = vpack.c.bf16 %v184_v38, %v183_v36 }
 0x103   :  { %238 = vst [vmem:[%s349_s3 + $0x8] sm:$0xff] %v236_v37  }
 0x104   :  { %234 = vst [vmem:[%s349_s3] sm:$0xff] %v233_v39  }

// kernel: _lambda_.94
= control target key start
LH: loop header
LB: loop body
LE: loop exit
PB: predicated region body
PF: predicated region fallthrough
CT: control target
= control target key end

     0   :  { %s360_s1 = inlined_call_operand.vmem [shape: bf16[128,128], index: 1, kind: input, shape index: {}]   ;;  %s361_s0 = inlined_call_operand.vmem [shape: bf16[32,128], index: 0, kind: input, shape index: {}]   ;;  %s362_s2 = inlined_call_operand.vmem [shape: f32[4,128], index: 2, kind: input, shape index: {}]   ;;  %s363_s3 = inlined_call_operand.vmem [shape: f32[32,128], index: 3, kind: input, shape index: {}]   ;;  %s364_s4 = inlined_call_operand.vmem [shape: f32[32,128], index: 4, kind: output, shape index: {}]  }
   0x1   :  { %v259_v0 = vld [vmem:[%s360_s1] sm:$0xff]   ;;  %v260_v1 = vld [vmem:[%s360_s1 + $0x8] sm:$0xff]   ;;  %v261_v2 = vld [vmem:[%s360_s1 + $0x10] sm:$0xff]  }
   0x2   :  { %239 = vmatprep.subr.bf16.mxu0 %v259_v0  ;;  %v262_v3 = vld [vmem:[%s360_s1 + $0x18] sm:$0xff]   ;;  %v267_v4 = vld [vmem:[%s361_s0] sm:$0xff]   ;;  %v264_v6 = vld [vmem:[%s360_s1 + $0x28] sm:$0xff]  }
   0x3   :  { %240 = vmatpush3.bf16.msra.mxu0 %v259_v0  ;;  %255 = vmatprep.mubr.bf16.mxu0 %v267_v4  ;;  %v263_v5 = vld [vmem:[%s360_s1 + $0x20] sm:$0xff]   ;;  %v265_v7 = vld [vmem:[%s360_s1 + $0x30] sm:$0xff]   ;;  %v266_v8 = vld [vmem:[%s360_s1 + $0x38] sm:$0xff]  }
   0x4   :  { %241 = vmatprep.subr.bf16.mxu0 %v260_v1  ;;  %v268_v9 = vld [vmem:[%s361_s0 + $0x8] sm:$0xff]   ;;  %v225_v10 = vld [vmem:[%s362_s2] ss:$0 sm:$0xff]  ;;  %v226_v12 = vld [vmem:[%s362_s2 + $0x1] ss:$0 sm:$0xff] }
   0x5   :  { %v227_v15 = vld [vmem:[%s362_s2 + $0x2] ss:$0 sm:$0xff]  ;;  %v185_v24 = vld [vmem:[%s363_s3 + $0x10] sm:$0xff]  ;;  %v228_v30 = vld [vmem:[%s362_s2 + $0x3] ss:$0 sm:$0xff] }
   0x6   :  { %v183_v27 = vld [vmem:[%s363_s3] sm:$0xff]  ;;  %v186_v32 = vld [vmem:[%s363_s3 + $0x18] sm:$0xff]  ;;  %v184_v36 = vld [vmem:[%s363_s3 + $0x8] sm:$0xff] }
   0x7   :  { %242 = vmatpush3.bf16.msra.mxu0 %v260_v1 }
   0x8   :  { %243 = vmatprep.subr.bf16.mxu0 %v261_v2 }
   0xb   :  { %244 = vmatpush3.bf16.msra.mxu0 %v261_v2 }
   0xc   :  { %245 = vmatprep.subr.bf16.mxu0 %v262_v3 }
   0xf   :  { %246 = vmatpush3.bf16.msra.mxu0 %v262_v3 }
  0x10   :  { %247 = vmatprep.subr.bf16.mxu0 %v263_v5 }
  0x13   :  { %248 = vmatpush3.bf16.msra.mxu0 %v263_v5 }
  0x14   :  { %249 = vmatprep.subr.bf16.mxu0 %v264_v6 }
  0x17   :  { %250 = vmatpush3.bf16.msra.mxu0 %v264_v6 }
  0x18   :  { %251 = vmatprep.subr.bf16.mxu0 %v265_v7 }
  0x1b   :  { %252 = vmatpush3.bf16.msra.mxu0 %v265_v7 }
  0x1c   :  { %253 = vmatprep.subr.bf16.mxu0 %v266_v8 }
  0x1f   :  { %254 = vmatpush3.bf16.msra.mxu0 %v266_v8 }
  0x22   :  { %256 = vmatmul.mubr.bf16.vlgmr.msra.gmra.mrb[0].mxu0 %v268_v9 }
  0xf5   :  { %v257_v11 = vpop.f32.mrb[0].mxu0 }
  0xf6   :  { %v156_v13 = vmul.f32 %v257_v11, %v225_v10  ;;  %v132_v14 = vpop.f32.mrb[1].mxu0 }
  0xf7   :  { %v154_v16 = vmul.f32 %v225_v10, %v132_v14  ;;  %v258_v17 = vpop.f32.mrb[2].mxu0 }
  0xf8   :  { %v164_v18 = vadd.f32 %v226_v12, %v156_v13  ;;  %v157_v19 = vmul.f32 %v258_v17, %v225_v10  ;;  %v135_v20 = vpop.f32.mrb[3].mxu0 }
  0xf9   :  { %v162_v21 = vadd.f32 %v226_v12, %v154_v16  ;;  %v155_v22 = vmul.f32 %v225_v10, %v135_v20 }
  0xfa   :  { %vm168_vm0 = vcmp.ge.f32.partialorder %v164_v18, 0.0  ;;  %v176_v23 = vmul.f32 %v227_v15, %v164_v18  ;;  %v165_v25 = vadd.f32 %v226_v12, %v157_v19 }
  0xfb   :  { %vm166_vm1 = vcmp.ge.f32.partialorder %v162_v21, 0.0  ;;  %v174_v26 = vmul.f32 %v227_v15, %v162_v21  ;;  %v163_v28 = vadd.f32 %v226_v12, %v155_v22 }
  0xfc   :  { %v180_v29 = vsel %vm168_vm0, %v164_v18, %v176_v23  ;;  %vm169_vm2 = vcmp.ge.f32.partialorder %v165_v25, 0.0  ;;  %v177_v31 = vmul.f32 %v227_v15, %v165_v25 }
  0xfd   :  { %v189_v33 = vadd.f32 %v185_v24, %v180_v29  ;;  %v178_v34 = vsel %vm166_vm1, %v162_v21, %v174_v26  ;;  %vm167_vm3 = vcmp.ge.f32.partialorder %v163_v28, 0.0  ;;  %v175_v35 = vmul.f32 %v227_v15, %v163_v28 }
  0xfe   :  { %v187_v37 = vadd.f32 %v183_v27, %v178_v34  ;;  %v181_v38 = vsel %vm169_vm2, %v165_v25, %v177_v31 }
  0xff   :  { %vm193_vm4 = vcmp.ge.f32.partialorder %v189_v33, 0.0  ;;  %v201_v39 = vmul.f32 %v228_v30, %v189_v33  ;;  %v190_v40 = vadd.f32 %v186_v32, %v181_v38  ;;  %v179_v41 = vsel %vm167_vm3, %v163_v28, %v175_v35 }
 0x100   :  { %vm191_vm5 = vcmp.ge.f32.partialorder %v187_v37, 0.0  ;;  %v199_v42 = vmul.f32 %v228_v30, %v187_v37  ;;  %v188_v43 = vadd.f32 %v184_v36, %v179_v41 }
 0x101   :  { %v205_v44 = vsel %vm193_vm4, %v189_v33, %v201_v39  ;;  %vm194_vm6 = vcmp.ge.f32.partialorder %v190_v40, 0.0  ;;  %v202_v45 = vmul.f32 %v228_v30, %v190_v40 }
 0x102   :  { %209 = vst [vmem:[%s364_s4 + $0x10] sm:$0xff] %v205_v44  ;;  %v203_v46 = vsel %vm191_vm5, %v187_v37, %v199_v42  ;;  %vm192_vm7 = vcmp.ge.f32.partialorder %v188_v43, 0.0  ;;  %v200_v47 = vmul.f32 %v228_v30, %v188_v43 }
 0x103   :  { %207 = vst [vmem:[%s364_s4] sm:$0xff] %v203_v46  ;;  %v206_v48 = vsel %vm194_vm6, %v190_v40, %v202_v45 }
 0x104   :  { %210 = vst [vmem:[%s364_s4 + $0x18] sm:$0xff] %v206_v48  ;;  %v204_v49 = vsel %vm192_vm7, %v188_v43, %v200_v47 }
 0x105   :  { %208 = vst [vmem:[%s364_s4 + $0x8] sm:$0xff] %v204_v49 }

// kernel: _lambda_.96
= control target key start
LH: loop header
LB: loop body
LE: loop exit
PB: predicated region body
PF: predicated region fallthrough
CT: control target
= control target key end

     0   :  { %v388_v51 = vmov -1.0   ;;  %s484_s1 = inlined_call_operand.vmem [shape: bf16[256,128], index: 1, kind: input, shape index: {}]   ;;  %s485_s0 = inlined_call_operand.vmem [shape: bf16[32,256], index: 0, kind: input, shape index: {}]   ;;  %s486_s2 = inlined_call_operand.vmem [shape: f32[4,128], index: 2, kind: input, shape index: {}]   ;;  %s487_s3 = inlined_call_operand.vmem [shape: bf16[32,128], index: 3, kind: output, shape index: {}]  }
   0x1   :  { %v366_v0 = vld [vmem:[%s484_s1 + $0x40] sm:$0xff]   ;;  %v368_v2 = vld [vmem:[%s484_s1 + $0x48] sm:$0xff]   ;;  %v370_v4 = vld [vmem:[%s484_s1 + $0x50] sm:$0xff]  }
   0x2   :  { %v367_v1 = vld [vmem:[%s484_s1] sm:$0xff]   ;;  %321 = vmatprep.subr.bf16.mxu0 %v366_v0  ;;  %349 = vmatprep.subr.bf16.mxu1 %v366_v0  ;;  %v369_v3 = vld [vmem:[%s484_s1 + $0x8] sm:$0xff]   ;;  %v371_v5 = vld [vmem:[%s484_s1 + $0x10] sm:$0xff]  }
   0x3   :  { %322 = vmatpush3.bf16.msra.mxu0 %v367_v1  ;;  %357 = vmatpush3.bf16.msra.mxu1 %v367_v1  ;;  %v372_v6 = vld [vmem:[%s484_s1 + $0x58] sm:$0xff]   ;;  %v374_v8 = vld [vmem:[%s484_s1 + $0x60] sm:$0xff]   ;;  %v376_v10 = vld [vmem:[%s484_s1 + $0x68] sm:$0xff]  }
   0x4   :  { %323 = vmatprep.subr.bf16.mxu0 %v368_v2  ;;  %350 = vmatprep.subr.bf16.mxu1 %v368_v2  ;;  %v373_v7 = vld [vmem:[%s484_s1 + $0x18] sm:$0xff]   ;;  %v375_v9 = vld [vmem:[%s484_s1 + $0x20] sm:$0xff]   ;;  %v377_v13 = vld [vmem:[%s484_s1 + $0x28] sm:$0xff]  }
   0x5   :  { %v384_v11 = vld [vmem:[%s485_s0 + $0x4] ss:$8 sps:$4 sm:$0xff]   ;;  %v387_v12 = vld [vmem:[%s485_s0 + $0x14] ss:$8 sps:$4 sm:$0xff]   ;;  %v382_v18 = vld [vmem:[%s485_s0] ss:$8 sps:$4 sm:$0xff]  }
   0x6   :  { %v378_v14 = vld [vmem:[%s484_s1 + $0x70] sm:$0xff]   ;;  %199 = vmatprep.mubr.bf16.mxu0 %v384_v11  ;;  %207 = vmatprep.mubr.bf16.mxu1 %v387_v12  ;;  %v380_v16 = vld [vmem:[%s484_s1 + $0x78] sm:$0xff]   ;;  %v303_v23 = vld [vmem:[%s486_s2] ss:$0 sm:$0xff] }
   0x7   :  { %324 = vmatpush3.bf16.msra.mxu0 %v369_v3  ;;  %358 = vmatpush3.bf16.msra.mxu1 %v369_v3  ;;  %v379_v15 = vld [vmem:[%s484_s1 + $0x30] sm:$0xff]   ;;  %v381_v17 = vld [vmem:[%s484_s1 + $0x38] sm:$0xff]   ;;  %v304_v29 = vld [vmem:[%s486_s2 + $0x1] ss:$0 sm:$0xff] }
   0x8   :  { %325 = vmatprep.subr.bf16.mxu0 %v370_v4  ;;  %351 = vmatprep.subr.bf16.mxu1 %v370_v4  ;;  %v385_v19 = vld [vmem:[%s485_s0 + $0x10] ss:$8 sps:$4 sm:$0xff]   ;;  %v305_v36 = vld [vmem:[%s486_s2 + $0x2] ss:$0 sm:$0xff] }
   0xb   :  { %326 = vmatpush3.bf16.msra.mxu0 %v371_v5  ;;  %359 = vmatpush3.bf16.msra.mxu1 %v371_v5 }
   0xc   :  { %327 = vmatprep.subr.bf16.mxu0 %v372_v6  ;;  %352 = vmatprep.subr.bf16.mxu1 %v372_v6 }
   0xf   :  { %328 = vmatpush3.bf16.msra.mxu0 %v373_v7  ;;  %360 = vmatpush3.bf16.msra.mxu1 %v373_v7 }
  0x10   :  { %329 = vmatprep.subr.bf16.mxu0 %v374_v8  ;;  %353 = vmatprep.subr.bf16.mxu1 %v374_v8 }
  0x13   :  { %330 = vmatpush3.bf16.msra.mxu0 %v375_v9  ;;  %361 = vmatpush3.bf16.msra.mxu1 %v375_v9 }
  0x14   :  { %331 = vmatprep.subr.bf16.mxu0 %v376_v10  ;;  %354 = vmatprep.subr.bf16.mxu1 %v376_v10 }
  0x17   :  { %332 = vmatpush3.bf16.msra.mxu0 %v377_v13  ;;  %362 = vmatpush3.bf16.msra.mxu1 %v377_v13 }
  0x18   :  { %333 = vmatprep.subr.bf16.mxu0 %v378_v14  ;;  %355 = vmatprep.subr.bf16.mxu1 %v378_v14 }
  0x1b   :  { %334 = vmatpush3.bf16.msra.mxu0 %v379_v15  ;;  %363 = vmatpush3.bf16.msra.mxu1 %v379_v15 }
  0x1c   :  { %335 = vmatprep.subr.bf16.mxu0 %v380_v16  ;;  %356 = vmatprep.subr.bf16.mxu1 %v380_v16 }
  0x1f   :  { %336 = vmatpush3.bf16.msra.mxu0 %v381_v17  ;;  %364 = vmatpush3.bf16.msra.mxu1 %v381_v17 }
  0x22   :  { %200 = vmatmul.mubr.bf16.vlgmr.msra.gmra.mrb[0].mxu0 %v382_v18  ;;  %208 = vmatmul.mubr.bf16.vlgmr.msra.gmra.mrb[0].mxu1 %v385_v19 }
  0xf5   :  { %v337_v20 = vpop.f32.mrb[0].mxu0  ;;  %v343_v21 = vpop.f32.mrb[0].mxu1 }
  0xf6   :  { %v338_v22 = vpop.f32.mrb[1].mxu0  ;;  %v344_v24 = vpop.f32.mrb[1].mxu1 }
  0xf7   :  { %v339_v25 = vadd.f32 %v338_v22, %v337_v20  ;;  %v345_v26 = vadd.f32 %v344_v24, %v343_v21  ;;  %v340_v27 = vpop.f32.mrb[2].mxu0  ;;  %v346_v28 = vpop.f32.mrb[2].mxu1 }
  0xf8   :  { %v341_v30 = vpop.f32.mrb[3].mxu0  ;;  %v347_v31 = vpop.f32.mrb[3].mxu1 }
  0xf9   :  { %v223_v32 = vmul.f32 %v339_v25, %v303_v23  ;;  %v225_v33 = vmul.f32 %v345_v26, %v303_v23  ;;  %v342_v34 = vadd.f32 %v341_v30, %v340_v27  ;;  %v348_v35 = vadd.f32 %v347_v31, %v346_v28 }
  0xfb   :  { %v231_v37 = vadd.f32 %v304_v29, %v223_v32  ;;  %v233_v38 = vadd.f32 %v304_v29, %v225_v33  ;;  %v224_v39 = vmul.f32 %v342_v34, %v303_v23  ;;  %v226_v40 = vmul.f32 %v348_v35, %v303_v23 }
  0xfd   :  { %vm235_vm0 = vcmp.ge.f32.partialorder %v231_v37, 0.0  ;;  %v243_v41 = vmul.f32 %v305_v36, %v231_v37  ;;  %vm237_vm1 = vcmp.ge.f32.partialorder %v233_v38, 0.0  ;;  %v245_v42 = vmul.f32 %v305_v36, %v233_v38 }
  0xfe   :  { %v232_v43 = vadd.f32 %v304_v29, %v224_v39  ;;  %v234_v44 = vadd.f32 %v304_v29, %v226_v40 }
  0xff   :  { %v247_v45 = vsel %vm235_vm0, %v231_v37, %v243_v41  ;;  %v249_v46 = vsel %vm237_vm1, %v233_v38, %v245_v42 }
 0x100   :  { %vm236_vm2 = vcmp.ge.f32.partialorder %v232_v43, 0.0  ;;  %v244_v47 = vmul.f32 %v305_v36, %v232_v43  ;;  %vm251_vm3 = vcmp.gt.f32.partialorder %v247_v45, 0.0  ;;  %vm238_vm4 = vcmp.ge.f32.partialorder %v234_v44, 0.0 }
 0x101   :  { %v246_v48 = vmul.f32 %v305_v36, %v234_v44  ;;  %vm253_vm5 = vcmp.gt.f32.partialorder %v249_v46, 0.0  ;;  %v255_v52 = vsel %vm251_vm3, 1.0, %v388_v51 }
 0x102   :  { %v248_v49 = vsel %vm236_vm2, %v232_v43, %v244_v47  ;;  %v257_v54 = vsel %vm253_vm5, 1.0, %v388_v51 }
 0x103   :  { %vm252_vm6 = vcmp.gt.f32.partialorder %v248_v49, 0.0  ;;  %v250_v50 = vsel %vm238_vm4, %v234_v44, %v246_v48 }
 0x104   :  { %v256_v53 = vsel %vm252_vm6, 1.0, %v388_v51  ;;  %vm254_vm7 = vcmp.gt.f32.partialorder %v250_v50, 0.0 }
 0x105   :  { %v315_v55 = vpack.c.bf16 %v256_v53, %v255_v52  ;;  %v258_v56 = vsel %vm254_vm7, 1.0, %v388_v51 }
 0x106   :  { %v318_v57 = vpack.c.bf16 %v258_v56, %v257_v54 }
 0x107   :  { %316 = vst [vmem:[%s487_s3] sm:$0xff] %v315_v55  }
 0x108   :  { %320 = vst [vmem:[%s487_s3 + $0x8] sm:$0xff] %v318_v57  }

// kernel: _lambda_.107
= control target key start
LH: loop header
LB: loop body
LE: loop exit
PB: predicated region body
PF: predicated region fallthrough
CT: control target
= control target key end

     0   :  { %v277_v12 = vmov -1.0   ;;  %s364_s1 = inlined_call_operand.vmem [shape: bf16[256,128], index: 1, kind: input, shape index: {}]   ;;  %s365_s0 = inlined_call_operand.vmem [shape: f32[8,256], index: 0, kind: input, shape index: {}]   ;;  %s366_s2 = inlined_call_operand.vmem [shape: f32[4,128], index: 2, kind: input, shape index: {}]   ;;  %s367_s3 = inlined_call_operand.vmem [shape: bf16[8,128], index: 3, kind: output, shape index: {}]  }
   0x1   :  { %v261_v0 = vld [vmem:[%s364_s1 + $0x40] sm:$0xff]   ;;  %v263_v2 = vld [vmem:[%s364_s1 + $0x48] sm:$0xff]   ;;  %v265_v4 = vld [vmem:[%s364_s1 + $0x50] sm:$0xff]  }
   0x2   :  { %v262_v1 = vld [vmem:[%s364_s1] sm:$0xff]   ;;  %238 = vmatprep.subr.bf16.mxu0 %v261_v0  ;;  %v264_v3 = vld [vmem:[%s364_s1 + $0x8] sm:$0xff]   ;;  %v266_v5 = vld [vmem:[%s364_s1 + $0x10] sm:$0xff]  }
   0x3   :  { %239 = vmatpush3.bf16.msra.mxu0 %v262_v1  ;;  %v267_v6 = vld [vmem:[%s364_s1 + $0x58] sm:$0xff]   ;;  %v269_v8 = vld [vmem:[%s364_s1 + $0x60] sm:$0xff]   ;;  %v271_v10 = vld [vmem:[%s364_s1 + $0x68] sm:$0xff]  }
   0x4   :  { %240 = vmatprep.subr.bf16.mxu0 %v263_v2  ;;  %v268_v7 = vld [vmem:[%s364_s1 + $0x18] sm:$0xff]   ;;  %v270_v9 = vld [vmem:[%s364_s1 + $0x20] sm:$0xff]   ;;  %v16_v11 = vld [vmem:[%s365_s0 + $0x8] sm:$0xff] }
   0x5   :  { %vm18_vm0 = vcmp.gt.f32.partialorder %v16_v11, 0.0  ;;  %v272_v14 = vld [vmem:[%s364_s1 + $0x28] sm:$0xff]   ;;  %v273_v16 = vld [vmem:[%s364_s1 + $0x70] sm:$0xff]   ;;  %v15_v17 = vld [vmem:[%s365_s0] sm:$0xff] }
   0x6   :  { %v20_v13 = vsel %vm18_vm0, 1.0, %v277_v12  ;;  %v274_v18 = vld [vmem:[%s364_s1 + $0x30] sm:$0xff]   ;;  %v275_v19 = vld [vmem:[%s364_s1 + $0x78] sm:$0xff]   ;;  %vm17_vm1 = vcmp.gt.f32.partialorder %v15_v17, 0.0  ;;  %v235_v25 = vld [vmem:[%s366_s2] ss:$0 sm:$0xff] }
   0x7   :  { %241 = vmatpush3.bf16.msra.mxu0 %v264_v3  ;;  %v22_v15 = vpack.c.bf16 %v20_v13, %v20_v13  ;;  %v276_v20 = vld [vmem:[%s364_s1 + $0x38] sm:$0xff]   ;;  %v19_v21 = vsel %vm17_vm1, 1.0, %v277_v12  ;;  %v236_v28 = vld [vmem:[%s366_s2 + $0x1] ss:$0 sm:$0xff]  ;;  %v237_v31 = vld [vmem:[%s366_s2 + $0x2] ss:$0 sm:$0xff] }
   0x8   :  { %242 = vmatprep.subr.bf16.mxu0 %v265_v4  ;;  %v21_v22 = vpack.c.bf16 %v19_v21, %v19_v21 }
   0x9   :  { %183 = vmatprep.mubr.bf16.mxu0 %v22_v15 }
   0xb   :  { %243 = vmatpush3.bf16.msra.mxu0 %v266_v5 }
   0xc   :  { %244 = vmatprep.subr.bf16.mxu0 %v267_v6 }
   0xf   :  { %245 = vmatpush3.bf16.msra.mxu0 %v268_v7 }
  0x10   :  { %246 = vmatprep.subr.bf16.mxu0 %v269_v8 }
  0x13   :  { %247 = vmatpush3.bf16.msra.mxu0 %v270_v9 }
  0x14   :  { %248 = vmatprep.subr.bf16.mxu0 %v271_v10 }
  0x17   :  { %249 = vmatpush3.bf16.msra.mxu0 %v272_v14 }
  0x18   :  { %250 = vmatprep.subr.bf16.mxu0 %v273_v16 }
  0x1b   :  { %251 = vmatpush3.bf16.msra.mxu0 %v274_v18 }
  0x1c   :  { %252 = vmatprep.subr.bf16.mxu0 %v275_v19 }
  0x1f   :  { %253 = vmatpush3.bf16.msra.mxu0 %v276_v20 }
  0x22   :  { %184 = vmatmul.mubr.bf16.vlgmr.msra.gmra.mrb[0].mxu0 %v21_v22 }
  0xf5   :  { %v254_v23 = vpop.f32.mrb[0].mxu0 }
  0xf6   :  { %v255_v24 = vpop.f32.mrb[1].mxu0 }
  0xf7   :  { %v256_v26 = vadd.f32 %v255_v24, %v254_v23  ;;  %v257_v27 = vpop.f32.mrb[2].mxu0 }
  0xf8   :  { %v258_v29 = vpop.f32.mrb[3].mxu0 }
  0xf9   :  { %v198_v30 = vmul.f32 %v256_v26, %v235_v25 }
  0xfb   :  { %v203_v32 = vadd.f32 %v236_v28, %v198_v30 }
  0xfd   :  { %vm204_vm2 = vcmp.ge.f32.partialorder %v203_v32, 0.0  ;;  %v209_v33 = vmul.f32 %v237_v31, %v203_v32 }
  0xff   :  { %v210_v34 = vsel %vm204_vm2, %v203_v32, %v209_v33 }
 0x100   :  { %vm211_vm3 = vcmp.gt.f32.partialorder %v210_v34, 0.0 }
 0x101   :  { %v212_v35 = vsel %vm211_vm3, 1.0, %v277_v12 }
 0x102   :  { %v213_v36 = vpack.c.bf16 %v212_v35, %v212_v35 }
 0x104   :  { %214 = vst [vmem:[%s367_s3] sm:$0xf] %v213_v36 }

// kernel: _lambda_.110
= control target key start
LH: loop header
LB: loop body
LE: loop exit
PB: predicated region body
PF: predicated region fallthrough
CT: control target
= control target key end

     0   :  { %v202_v0 = vmov 0.0   ;;  %vm203_vm0 = vmmov 0   ;;  %v204_v10 = vmov -1.0   ;;  %s264_s1 = inlined_call_operand.vmem [shape: bf16[128,128], index: 1, kind: input, shape index: {}]   ;;  %s265_s0 = inlined_call_operand.vmem [shape: f32[8,128], index: 0, kind: input, shape index: {}]   ;;  %s266_s2 = inlined_call_operand.vmem [shape: f32[4,128], index: 2, kind: input, shape index: {}]   ;;  %s267_s3 = inlined_call_operand.vmem [shape: bf16[8,128], index: 3, kind: output, shape index: {}]  }
   0x1   :  { %171 = vmatprep.subr.bf16.mxu0 %v202_v0  ;;  %v194_v1 = vld [vmem:[%s264_s1] sm:$0xff]   ;;  %187 = vmatprep.mubr.msk.bf16.mxu0 %vm203_vm0, %v202_v0  ;;  %v195_v2 = vld [vmem:[%s264_s1 + $0x8] sm:$0xff]   ;;  %v196_v3 = vld [vmem:[%s264_s1 + $0x10] sm:$0xff]  }
   0x2   :  { %172 = vmatpush3.bf16.msra.mxu0 %v194_v1  ;;  %v197_v4 = vld [vmem:[%s264_s1 + $0x18] sm:$0xff]   ;;  %v198_v5 = vld [vmem:[%s264_s1 + $0x20] sm:$0xff]   ;;  %v199_v6 = vld [vmem:[%s264_s1 + $0x28] sm:$0xff]  }
   0x3   :  { %173 = vmatprep.subr.bf16.mxu0 %v202_v0  ;;  %v15_v7 = vld [vmem:[%s265_s0] sm:$0xff]  ;;  %v200_v8 = vld [vmem:[%s264_s1 + $0x30] sm:$0xff]   ;;  %v201_v9 = vld [vmem:[%s264_s1 + $0x38] sm:$0xff]  }
   0x4   :  { %vm16_vm1 = vcmp.gt.f32.partialorder %v15_v7, 0.0  ;;  %v159_v13 = vld [vmem:[%s266_s2] ss:$0 sm:$0xff]  ;;  %v160_v15 = vld [vmem:[%s266_s2 + $0x1] ss:$0 sm:$0xff] }
   0x5   :  { %v17_v11 = vsel %vm16_vm1, 1.0, %v204_v10  ;;  %v161_v18 = vld [vmem:[%s266_s2 + $0x2] ss:$0 sm:$0xff] }
   0x6   :  { %174 = vmatpush3.bf16.msra.mxu0 %v195_v2  ;;  %v18_v12 = vpack.c.bf16 %v17_v11, %v17_v11 }
   0x7   :  { %175 = vmatprep.subr.bf16.mxu0 %v202_v0 }
   0xa   :  { %176 = vmatpush3.bf16.msra.mxu0 %v196_v3 }
   0xb   :  { %177 = vmatprep.subr.bf16.mxu0 %v202_v0 }
   0xe   :  { %178 = vmatpush3.bf16.msra.mxu0 %v197_v4 }
   0xf   :  { %179 = vmatprep.subr.bf16.mxu0 %v202_v0 }
  0x12   :  { %180 = vmatpush3.bf16.msra.mxu0 %v198_v5 }
  0x13   :  { %181 = vmatprep.subr.bf16.mxu0 %v202_v0 }
  0x16   :  { %182 = vmatpush3.bf16.msra.mxu0 %v199_v6 }
  0x17   :  { %183 = vmatprep.subr.bf16.mxu0 %v202_v0 }
  0x1a   :  { %184 = vmatpush3.bf16.msra.mxu0 %v200_v8 }
  0x1b   :  { %185 = vmatprep.subr.bf16.mxu0 %v202_v0 }
  0x1e   :  { %186 = vmatpush3.bf16.msra.mxu0 %v201_v9 }
  0x21   :  { %188 = vmatmul.mubr.bf16.vlgmr.msra.gmra.mrb[0].mxu0 %v18_v12 }
  0xf4   :  { %v117_v14 = vpop.f32.mrb[0].mxu0 }
  0xf5   :  { %v130_v16 = vmul.f32 %v159_v13, %v117_v14  ;;  %v189_v17 = vpop.f32.mrb[1].mxu0 }
  0xf6   :  { %v120_v19 = vpop.f32.mrb[2].mxu0 }
  0xf7   :  { %v135_v20 = vadd.f32 %v160_v15, %v130_v16  ;;  %v190_v21 = vpop.f32.mrb[3].mxu0 }
  0xf9   :  { %vm136_vm2 = vcmp.ge.f32.partialorder %v135_v20, 0.0  ;;  %v141_v22 = vmul.f32 %v161_v18, %v135_v20 }
  0xfb   :  { %v142_v23 = vsel %vm136_vm2, %v135_v20, %v141_v22 }
  0xfc   :  { %vm143_vm3 = vcmp.gt.f32.partialorder %v142_v23, 0.0 }
  0xfd   :  { %v144_v24 = vsel %vm143_vm3, 1.0, %v204_v10 }
  0xfe   :  { %v145_v25 = vpack.c.bf16 %v144_v24, %v144_v24 }
 0x100   :  { %146 = vst [vmem:[%s267_s3] sm:$0xf] %v145_v25 }

// kernel: _lambda_.108
= control target key start
LH: loop header
LB: loop body
LE: loop exit
PB: predicated region body
PF: predicated region fallthrough
CT: control target
= control target key end

     0   :  { %v281_v31 = vmov -1.0   ;;  %s365_s1 = inlined_call_operand.vmem [shape: bf16[256,128], index: 1, kind: input, shape index: {}]   ;;  %s366_s0 = inlined_call_operand.vmem [shape: bf16[8,256], index: 0, kind: input, shape index: {}]   ;;  %s367_s2 = inlined_call_operand.vmem [shape: f32[4,128], index: 2, kind: input, shape index: {}]   ;;  %s368_s3 = inlined_call_operand.vmem [shape: bf16[8,128], index: 3, kind: output, shape index: {}]  }
   0x1   :  { %v263_v0 = vld [vmem:[%s365_s1 + $0x40] sm:$0xff]   ;;  %v265_v2 = vld [vmem:[%s365_s1 + $0x48] sm:$0xff]   ;;  %v267_v4 = vld [vmem:[%s365_s1 + $0x50] sm:$0xff]  }
   0x2   :  { %v264_v1 = vld [vmem:[%s365_s1] sm:$0xff]   ;;  %240 = vmatprep.subr.bf16.mxu0 %v263_v0  ;;  %v266_v3 = vld [vmem:[%s365_s1 + $0x8] sm:$0xff]   ;;  %v268_v5 = vld [vmem:[%s365_s1 + $0x10] sm:$0xff]  }
   0x3   :  { %241 = vmatpush3.bf16.msra.mxu0 %v264_v1  ;;  %v269_v6 = vld [vmem:[%s365_s1 + $0x58] sm:$0xff]   ;;  %v271_v8 = vld [vmem:[%s365_s1 + $0x60] sm:$0xff]   ;;  %v273_v10 = vld [vmem:[%s365_s1 + $0x68] sm:$0xff]  }
   0x4   :  { %242 = vmatprep.subr.bf16.mxu0 %v265_v2  ;;  %v270_v7 = vld [vmem:[%s365_s1 + $0x18] sm:$0xff]   ;;  %v272_v9 = vld [vmem:[%s365_s1 + $0x20] sm:$0xff]   ;;  %v274_v13 = vld [vmem:[%s365_s1 + $0x28] sm:$0xff]  }
   0x5   :  { %v15_v11 = vld [vmem:[%s366_s0] sm:$0xff]  ;;  %v275_v14 = vld [vmem:[%s365_s1 + $0x70] sm:$0xff]   ;;  %v277_v16 = vld [vmem:[%s365_s1 + $0x78] sm:$0xff]  }
   0x6   :  { %v220_v12 = vcombine.high %v15_v11, %v15_v11  ;;  %v276_v15 = vld [vmem:[%s365_s1 + $0x30] sm:$0xff]   ;;  %v278_v17 = vld [vmem:[%s365_s1 + $0x38] sm:$0xff]   ;;  %v219_v18 = vcombine.low %v15_v11, %v15_v11  ;;  %v237_v21 = vld [vmem:[%s367_s2] ss:$0 sm:$0xff] }
   0x7   :  { %243 = vmatpush3.bf16.msra.mxu0 %v266_v3  ;;  %v238_v24 = vld [vmem:[%s367_s2 + $0x1] ss:$0 sm:$0xff]  ;;  %v239_v27 = vld [vmem:[%s367_s2 + $0x2] ss:$0 sm:$0xff] }
   0x8   :  { %244 = vmatprep.subr.bf16.mxu0 %v267_v4  ;;  %183 = vmatprep.mubr.bf16.mxu0 %v220_v12 }
   0xb   :  { %245 = vmatpush3.bf16.msra.mxu0 %v268_v5 }
   0xc   :  { %246 = vmatprep.subr.bf16.mxu0 %v269_v6 }
   0xf   :  { %247 = vmatpush3.bf16.msra.mxu0 %v270_v7 }
  0x10   :  { %248 = vmatprep.subr.bf16.mxu0 %v271_v8 }
  0x13   :  { %249 = vmatpush3.bf16.msra.mxu0 %v272_v9 }
  0x14   :  { %250 = vmatprep.subr.bf16.mxu0 %v273_v10 }
  0x17   :  { %251 = vmatpush3.bf16.msra.mxu0 %v274_v13 }
  0x18   :  { %252 = vmatprep.subr.bf16.mxu0 %v275_v14 }
  0x1b   :  { %253 = vmatpush3.bf16.msra.mxu0 %v276_v15 }
  0x1c   :  { %254 = vmatprep.subr.bf16.mxu0 %v277_v16 }
  0x1f   :  { %255 = vmatpush3.bf16.msra.mxu0 %v278_v17 }
  0x22   :  { %184 = vmatmul.mubr.bf16.vlgmr.msra.gmra.mrb[0].mxu0 %v219_v18 }
  0xf5   :  { %v256_v19 = vpop.f32.mrb[0].mxu0 }
  0xf6   :  { %v257_v20 = vpop.f32.mrb[1].mxu0 }
  0xf7   :  { %v258_v22 = vadd.f32 %v257_v20, %v256_v19  ;;  %v259_v23 = vpop.f32.mrb[2].mxu0 }
  0xf8   :  { %v260_v25 = vpop.f32.mrb[3].mxu0 }
  0xf9   :  { %v198_v26 = vmul.f32 %v258_v22, %v237_v21 }
  0xfb   :  { %v203_v28 = vadd.f32 %v238_v24, %v198_v26 }
  0xfd   :  { %vm204_vm0 = vcmp.ge.f32.partialorder %v203_v28, 0.0  ;;  %v209_v29 = vmul.f32 %v239_v27, %v203_v28 }
  0xff   :  { %v210_v30 = vsel %vm204_vm0, %v203_v28, %v209_v29 }
 0x100   :  { %vm211_vm1 = vcmp.gt.f32.partialorder %v210_v30, 0.0 }
 0x101   :  { %v212_v32 = vsel %vm211_vm1, 1.0, %v281_v31 }
 0x102   :  { %v213_v33 = vpack.c.bf16 %v212_v32, %v212_v32 }
 0x104   :  { %214 = vst [vmem:[%s368_s3] sm:$0xf] %v213_v33 }

// kernel: _lambda_.109
= control target key start
LH: loop header
LB: loop body
LE: loop exit
PB: predicated region body
PF: predicated region fallthrough
CT: control target
= control target key end

     0   :  { %v209_v0 = vmov 0.0   ;;  %vm210_vm0 = vmmov 0   ;;  %s281_s1 = inlined_call_operand.vmem [shape: bf16[128,128], index: 1, kind: input, shape index: {}]   ;;  %s282_s0 = inlined_call_operand.vmem [shape: bf16[8,128], index: 0, kind: input, shape index: {}]   ;;  %s283_s2 = inlined_call_operand.vmem [shape: f32[4,128], index: 2, kind: input, shape index: {}]   ;;  %s284_s3 = inlined_call_operand.vmem [shape: f32[8,128], index: 3, kind: input, shape index: {}]   ;;  %s285_s4 = inlined_call_operand.vmem [shape: f32[8,128], index: 4, kind: output, shape index: {}]  }
   0x1   :  { %179 = vmatprep.subr.bf16.mxu0 %v209_v0  ;;  %v201_v1 = vld [vmem:[%s281_s1] sm:$0xff]   ;;  %195 = vmatprep.mubr.msk.bf16.mxu0 %vm210_vm0, %v209_v0  ;;  %v202_v2 = vld [vmem:[%s281_s1 + $0x8] sm:$0xff]   ;;  %v203_v3 = vld [vmem:[%s281_s1 + $0x10] sm:$0xff]  }
   0x2   :  { %180 = vmatpush3.bf16.msra.mxu0 %v201_v1  ;;  %v204_v4 = vld [vmem:[%s281_s1 + $0x18] sm:$0xff]   ;;  %v205_v5 = vld [vmem:[%s281_s1 + $0x20] sm:$0xff]   ;;  %v206_v6 = vld [vmem:[%s281_s1 + $0x28] sm:$0xff]  }
   0x3   :  { %181 = vmatprep.subr.bf16.mxu0 %v209_v0  ;;  %v207_v7 = vld [vmem:[%s281_s1 + $0x30] sm:$0xff]   ;;  %v208_v8 = vld [vmem:[%s281_s1 + $0x38] sm:$0xff]   ;;  %v18_v9 = vld [vmem:[%s282_s0] sm:$0xf] }
   0x4   :  { %v166_v10 = vld [vmem:[%s283_s2] ss:$0 sm:$0xff]  ;;  %v167_v12 = vld [vmem:[%s283_s2 + $0x1] ss:$0 sm:$0xff]  ;;  %v168_v15 = vld [vmem:[%s283_s2 + $0x2] ss:$0 sm:$0xff] }
   0x5   :  { %v144_v20 = vld [vmem:[%s284_s3] sm:$0xff] }
   0x6   :  { %182 = vmatpush3.bf16.msra.mxu0 %v202_v2  ;;  %v169_v22 = vld [vmem:[%s283_s2 + $0x3] ss:$0 sm:$0xff] }
   0x7   :  { %183 = vmatprep.subr.bf16.mxu0 %v209_v0 }
   0xa   :  { %184 = vmatpush3.bf16.msra.mxu0 %v203_v3 }
   0xb   :  { %185 = vmatprep.subr.bf16.mxu0 %v209_v0 }
   0xe   :  { %186 = vmatpush3.bf16.msra.mxu0 %v204_v4 }
   0xf   :  { %187 = vmatprep.subr.bf16.mxu0 %v209_v0 }
  0x12   :  { %188 = vmatpush3.bf16.msra.mxu0 %v205_v5 }
  0x13   :  { %189 = vmatprep.subr.bf16.mxu0 %v209_v0 }
  0x16   :  { %190 = vmatpush3.bf16.msra.mxu0 %v206_v6 }
  0x17   :  { %191 = vmatprep.subr.bf16.mxu0 %v209_v0 }
  0x1a   :  { %192 = vmatpush3.bf16.msra.mxu0 %v207_v7 }
  0x1b   :  { %193 = vmatprep.subr.bf16.mxu0 %v209_v0 }
  0x1e   :  { %194 = vmatpush3.bf16.msra.mxu0 %v208_v8 }
  0x21   :  { %196 = vmatmul.mubr.bf16.vlgmr.msra.gmra.mrb[0].mxu0 %v18_v9 }
  0xf4   :  { %v117_v11 = vpop.f32.mrb[0].mxu0 }
  0xf5   :  { %v130_v13 = vmul.f32 %v166_v10, %v117_v11  ;;  %v197_v14 = vpop.f32.mrb[1].mxu0 }
  0xf6   :  { %v120_v16 = vpop.f32.mrb[2].mxu0 }
  0xf7   :  { %v135_v17 = vadd.f32 %v167_v12, %v130_v13  ;;  %v198_v18 = vpop.f32.mrb[3].mxu0 }
  0xf9   :  { %vm136_vm1 = vcmp.ge.f32.partialorder %v135_v17, 0.0  ;;  %v141_v19 = vmul.f32 %v168_v15, %v135_v17 }
  0xfb   :  { %v142_v21 = vsel %vm136_vm1, %v135_v17, %v141_v19 }
  0xfc   :  { %v145_v23 = vadd.f32 %v144_v20, %v142_v21 }
  0xfe   :  { %vm146_vm2 = vcmp.ge.f32.partialorder %v145_v23, 0.0  ;;  %v151_v24 = vmul.f32 %v169_v22, %v145_v23 }
 0x100   :  { %v152_v25 = vsel %vm146_vm2, %v145_v23, %v151_v24 }
 0x101   :  { %153 = vst [vmem:[%s285_s4] sm:$0xff] %v152_v25 }

// kernel: _lambda_.111
= control target key start
LH: loop header
LB: loop body
LE: loop exit
PB: predicated region body
PF: predicated region fallthrough
CT: control target
= control target key end

     0   :  { %v439_v1 = vmov 0.0   ;;  %vm440_vm0 = vmmov 0   ;;  %v441_v46 = vmov -1.0   ;;  %s552_s1 = inlined_call_operand.vmem [shape: bf16[384,128], index: 1, kind: input, shape index: {}]   ;;  %s553_s0 = inlined_call_operand.vmem [shape: bf16[8,384], index: 0, kind: input, shape index: {}]   ;;  %s554_s2 = inlined_call_operand.vmem [shape: f32[4,128], index: 2, kind: input, shape index: {}]   ;;  %s555_s3 = inlined_call_operand.vmem [shape: bf16[8,128], index: 3, kind: output, shape index: {}]  }
   0x1   :  { %v412_v0 = vld [vmem:[%s552_s1 + $0x40] sm:$0xff]   ;;  %389 = vmatprep.subr.bf16.mxu1 %v439_v1  ;;  %405 = vmatprep.mubr.msk.bf16.mxu1 %vm440_vm0, %v439_v1  ;;  %v415_v4 = vld [vmem:[%s552_s1 + $0x48] sm:$0xff]   ;;  %v418_v7 = vld [vmem:[%s552_s1 + $0x50] sm:$0xff]  }
   0x2   :  { %v413_v2 = vld [vmem:[%s552_s1] sm:$0xff]   ;;  %358 = vmatprep.subr.bf16.mxu0 %v412_v0  ;;  %v416_v5 = vld [vmem:[%s552_s1 + $0x8] sm:$0xff]   ;;  %v419_v8 = vld [vmem:[%s552_s1 + $0x10] sm:$0xff]  }
   0x3   :  { %v414_v3 = vld [vmem:[%s552_s1 + $0x80] sm:$0xff]   ;;  %359 = vmatpush3.bf16.msra.mxu0 %v413_v2  ;;  %v417_v6 = vld [vmem:[%s552_s1 + $0x88] sm:$0xff]   ;;  %v420_v9 = vld [vmem:[%s552_s1 + $0x90] sm:$0xff]  }
   0x4   :  { %390 = vmatpush3.bf16.msra.mxu1 %v414_v3  ;;  %360 = vmatprep.subr.bf16.mxu0 %v415_v4  ;;  %v421_v10 = vld [vmem:[%s552_s1 + $0x58] sm:$0xff]   ;;  %v424_v13 = vld [vmem:[%s552_s1 + $0x60] sm:$0xff]   ;;  %v427_v16 = vld [vmem:[%s552_s1 + $0x68] sm:$0xff]  }
   0x5   :  { %391 = vmatprep.subr.bf16.mxu1 %v439_v1  ;;  %v422_v11 = vld [vmem:[%s552_s1 + $0x18] sm:$0xff]   ;;  %v425_v14 = vld [vmem:[%s552_s1 + $0x20] sm:$0xff]   ;;  %v428_v17 = vld [vmem:[%s552_s1 + $0x28] sm:$0xff]  }
   0x6   :  { %v423_v12 = vld [vmem:[%s552_s1 + $0x98] sm:$0xff]   ;;  %v426_v15 = vld [vmem:[%s552_s1 + $0xa0] sm:$0xff]   ;;  %v429_v18 = vld [vmem:[%s552_s1 + $0xa8] sm:$0xff]  }
   0x7   :  { %361 = vmatpush3.bf16.msra.mxu0 %v416_v5  ;;  %v430_v19 = vld [vmem:[%s552_s1 + $0x70] sm:$0xff]   ;;  %v433_v22 = vld [vmem:[%s552_s1 + $0x78] sm:$0xff]   ;;  %v15_v23 = vld [vmem:[%s553_s0] sm:$0xff] }
   0x8   :  { %392 = vmatpush3.bf16.msra.mxu1 %v417_v6  ;;  %362 = vmatprep.subr.bf16.mxu0 %v418_v7  ;;  %v431_v20 = vld [vmem:[%s552_s1 + $0x30] sm:$0xff]   ;;  %v329_v24 = vcombine.high %v15_v23, %v15_v23  ;;  %v434_v25 = vld [vmem:[%s552_s1 + $0x38] sm:$0xff]   ;;  %v328_v27 = vcombine.low %v15_v23, %v15_v23  ;;  %v438_v28 = vld [vmem:[%s553_s0 + $0x8] ss:$0 sps:$4 sm:$0xff]  }
   0x9   :  { %393 = vmatprep.subr.bf16.mxu1 %v439_v1  ;;  %v432_v21 = vld [vmem:[%s552_s1 + $0xb0] sm:$0xff]   ;;  %v435_v26 = vld [vmem:[%s552_s1 + $0xb8] sm:$0xff]   ;;  %v355_v35 = vld [vmem:[%s554_s2] ss:$0 sm:$0xff] }
   0xa   :  { %252 = vmatprep.mubr.bf16.mxu0 %v329_v24  ;;  %v356_v40 = vld [vmem:[%s554_s2 + $0x1] ss:$0 sm:$0xff]  ;;  %v357_v42 = vld [vmem:[%s554_s2 + $0x2] ss:$0 sm:$0xff] }
   0xb   :  { %363 = vmatpush3.bf16.msra.mxu0 %v419_v8 }
   0xc   :  { %394 = vmatpush3.bf16.msra.mxu1 %v420_v9  ;;  %364 = vmatprep.subr.bf16.mxu0 %v421_v10 }
   0xd   :  { %395 = vmatprep.subr.bf16.mxu1 %v439_v1 }
   0xf   :  { %365 = vmatpush3.bf16.msra.mxu0 %v422_v11 }
  0x10   :  { %396 = vmatpush3.bf16.msra.mxu1 %v423_v12  ;;  %366 = vmatprep.subr.bf16.mxu0 %v424_v13 }
  0x11   :  { %397 = vmatprep.subr.bf16.mxu1 %v439_v1 }
  0x13   :  { %367 = vmatpush3.bf16.msra.mxu0 %v425_v14 }
  0x14   :  { %398 = vmatpush3.bf16.msra.mxu1 %v426_v15  ;;  %368 = vmatprep.subr.bf16.mxu0 %v427_v16 }
  0x15   :  { %399 = vmatprep.subr.bf16.mxu1 %v439_v1 }
  0x17   :  { %369 = vmatpush3.bf16.msra.mxu0 %v428_v17 }
  0x18   :  { %400 = vmatpush3.bf16.msra.mxu1 %v429_v18  ;;  %370 = vmatprep.subr.bf16.mxu0 %v430_v19 }
  0x19   :  { %401 = vmatprep.subr.bf16.mxu1 %v439_v1 }
  0x1b   :  { %371 = vmatpush3.bf16.msra.mxu0 %v431_v20 }
  0x1c   :  { %402 = vmatpush3.bf16.msra.mxu1 %v432_v21  ;;  %372 = vmatprep.subr.bf16.mxu0 %v433_v22 }
  0x1d   :  { %403 = vmatprep.subr.bf16.mxu1 %v439_v1 }
  0x1f   :  { %373 = vmatpush3.bf16.msra.mxu0 %v434_v25 }
  0x20   :  { %404 = vmatpush3.bf16.msra.mxu1 %v435_v26 }
  0x22   :  { %253 = vmatmul.mubr.bf16.vlgmr.msra.gmra.mrb[0].mxu0 %v328_v27 }
  0x23   :  { %406 = vmatmul.mubr.bf16.vlgmr.msra.gmra.mrb[0].mxu1 %v438_v28 }
  0xf5   :  { %v374_v29 = vpop.f32.mrb[0].mxu0 }
  0xf6   :  { %v294_v30 = vpop.f32.mrb[0].mxu1  ;;  %v375_v31 = vpop.f32.mrb[1].mxu0 }
  0xf7   :  { %v376_v32 = vadd.f32 %v375_v31, %v374_v29  ;;  %v407_v33 = vpop.f32.mrb[1].mxu1  ;;  %v377_v34 = vpop.f32.mrb[2].mxu0 }
  0xf8   :  { %v297_v36 = vpop.f32.mrb[2].mxu1  ;;  %v378_v37 = vpop.f32.mrb[3].mxu0 }
  0xf9   :  { %v295_v38 = vadd.f32 %v376_v32, %v294_v30  ;;  %v408_v39 = vpop.f32.mrb[3].mxu1 }
  0xfb   :  { %v307_v41 = vmul.f32 %v355_v35, %v295_v38 }
  0xfd   :  { %v312_v43 = vadd.f32 %v356_v40, %v307_v41 }
  0xff   :  { %vm313_vm1 = vcmp.ge.f32.partialorder %v312_v43, 0.0  ;;  %v318_v44 = vmul.f32 %v357_v42, %v312_v43 }
 0x101   :  { %v319_v45 = vsel %vm313_vm1, %v312_v43, %v318_v44 }
 0x102   :  { %vm320_vm2 = vcmp.gt.f32.partialorder %v319_v45, 0.0 }
 0x103   :  { %v321_v47 = vsel %vm320_vm2, 1.0, %v441_v46 }
 0x104   :  { %v322_v48 = vpack.c.bf16 %v321_v47, %v321_v47 }
 0x106   :  { %323 = vst [vmem:[%s555_s3] sm:$0xf] %v322_v48 }

// kernel: _lambda_.161
= control target key start
LH: loop header
LB: loop body
LE: loop exit
PB: predicated region body
PF: predicated region fallthrough
CT: control target
= control target key end

     0   :  { %v213_v0 = vmov 0.0   ;;  %vm214_vm0 = vmmov 0   ;;  %v215_v26 = vmov -1.0   ;;  %s286_s1 = inlined_call_operand.vmem [shape: bf16[128,128], index: 1, kind: input, shape index: {}]   ;;  %s287_s0 = inlined_call_operand.vmem [shape: bf16[8,128], index: 0, kind: input, shape index: {}]   ;;  %s288_s2 = inlined_call_operand.vmem [shape: f32[4,128], index: 2, kind: input, shape index: {}]   ;;  %s289_s3 = inlined_call_operand.vmem [shape: f32[8,128], index: 3, kind: input, shape index: {}]   ;;  %s290_s4 = inlined_call_operand.vmem [shape: bf16[8,128], index: 4, kind: output, shape index: {}]  }
   0x1   :  { %182 = vmatprep.subr.bf16.mxu0 %v213_v0  ;;  %v205_v1 = vld [vmem:[%s286_s1] sm:$0xff]   ;;  %198 = vmatprep.mubr.msk.bf16.mxu0 %vm214_vm0, %v213_v0  ;;  %v206_v2 = vld [vmem:[%s286_s1 + $0x8] sm:$0xff]   ;;  %v207_v3 = vld [vmem:[%s286_s1 + $0x10] sm:$0xff]  }
   0x2   :  { %183 = vmatpush3.bf16.msra.mxu0 %v205_v1  ;;  %v208_v4 = vld [vmem:[%s286_s1 + $0x18] sm:$0xff]   ;;  %v209_v5 = vld [vmem:[%s286_s1 + $0x20] sm:$0xff]   ;;  %v210_v6 = vld [vmem:[%s286_s1 + $0x28] sm:$0xff]  }
   0x3   :  { %184 = vmatprep.subr.bf16.mxu0 %v213_v0  ;;  %v211_v7 = vld [vmem:[%s286_s1 + $0x30] sm:$0xff]   ;;  %v212_v8 = vld [vmem:[%s286_s1 + $0x38] sm:$0xff]   ;;  %v18_v9 = vld [vmem:[%s287_s0] sm:$0xf] }
   0x4   :  { %v169_v10 = vld [vmem:[%s288_s2] ss:$0 sm:$0xff]  ;;  %v170_v12 = vld [vmem:[%s288_s2 + $0x1] ss:$0 sm:$0xff]  ;;  %v171_v15 = vld [vmem:[%s288_s2 + $0x2] ss:$0 sm:$0xff] }
   0x5   :  { %v144_v20 = vld [vmem:[%s289_s3] sm:$0xff] }
   0x6   :  { %185 = vmatpush3.bf16.msra.mxu0 %v206_v2  ;;  %v172_v22 = vld [vmem:[%s288_s2 + $0x3] ss:$0 sm:$0xff] }
   0x7   :  { %186 = vmatprep.subr.bf16.mxu0 %v213_v0 }
   0xa   :  { %187 = vmatpush3.bf16.msra.mxu0 %v207_v3 }
   0xb   :  { %188 = vmatprep.subr.bf16.mxu0 %v213_v0 }
   0xe   :  { %189 = vmatpush3.bf16.msra.mxu0 %v208_v4 }
   0xf   :  { %190 = vmatprep.subr.bf16.mxu0 %v213_v0 }
  0x12   :  { %191 = vmatpush3.bf16.msra.mxu0 %v209_v5 }
  0x13   :  { %192 = vmatprep.subr.bf16.mxu0 %v213_v0 }
  0x16   :  { %193 = vmatpush3.bf16.msra.mxu0 %v210_v6 }
  0x17   :  { %194 = vmatprep.subr.bf16.mxu0 %v213_v0 }
  0x1a   :  { %195 = vmatpush3.bf16.msra.mxu0 %v211_v7 }
  0x1b   :  { %196 = vmatprep.subr.bf16.mxu0 %v213_v0 }
  0x1e   :  { %197 = vmatpush3.bf16.msra.mxu0 %v212_v8 }
  0x21   :  { %199 = vmatmul.mubr.bf16.vlgmr.msra.gmra.mrb[0].mxu0 %v18_v9 }
  0xf4   :  { %v117_v11 = vpop.f32.mrb[0].mxu0 }
  0xf5   :  { %v130_v13 = vmul.f32 %v169_v10, %v117_v11  ;;  %v200_v14 = vpop.f32.mrb[1].mxu0 }
  0xf6   :  { %v120_v16 = vpop.f32.mrb[2].mxu0 }
  0xf7   :  { %v135_v17 = vadd.f32 %v170_v12, %v130_v13  ;;  %v201_v18 = vpop.f32.mrb[3].mxu0 }
  0xf9   :  { %vm136_vm1 = vcmp.ge.f32.partialorder %v135_v17, 0.0  ;;  %v141_v19 = vmul.f32 %v171_v15, %v135_v17 }
  0xfb   :  { %v142_v21 = vsel %vm136_vm1, %v135_v17, %v141_v19 }
  0xfc   :  { %v145_v23 = vadd.f32 %v144_v20, %v142_v21 }
  0xfe   :  { %vm146_vm2 = vcmp.ge.f32.partialorder %v145_v23, 0.0  ;;  %v151_v24 = vmul.f32 %v172_v22, %v145_v23 }
 0x100   :  { %v152_v25 = vsel %vm146_vm2, %v145_v23, %v151_v24 }
 0x101   :  { %vm153_vm3 = vcmp.gt.f32.partialorder %v152_v25, 0.0 }
 0x102   :  { %v154_v27 = vsel %vm153_vm3, 1.0, %v215_v26 }
 0x103   :  { %v155_v28 = vpack.c.bf16 %v154_v27, %v154_v27 }
 0x105   :  { %156 = vst [vmem:[%s290_s4] sm:$0xf] %v155_v28 }

// kernel: _lambda_.163
= control target key start
LH: loop header
LB: loop body
LE: loop exit
PB: predicated region body
PF: predicated region fallthrough
CT: control target
= control target key end

     0   :  { %v199_v0 = vmov 0.0   ;;  %vm200_vm0 = vmmov 0   ;;  %v201_v21 = vmov -1.0   ;;  %s261_s1 = inlined_call_operand.vmem [shape: bf16[128,128], index: 1, kind: input, shape index: {}]   ;;  %s262_s0 = inlined_call_operand.vmem [shape: bf16[8,128], index: 0, kind: input, shape index: {}]   ;;  %s263_s2 = inlined_call_operand.vmem [shape: f32[4,128], index: 2, kind: input, shape index: {}]   ;;  %s264_s3 = inlined_call_operand.vmem [shape: bf16[8,128], index: 3, kind: output, shape index: {}]  }
   0x1   :  { %168 = vmatprep.subr.bf16.mxu0 %v199_v0  ;;  %v191_v1 = vld [vmem:[%s261_s1] sm:$0xff]   ;;  %184 = vmatprep.mubr.msk.bf16.mxu0 %vm200_vm0, %v199_v0  ;;  %v192_v2 = vld [vmem:[%s261_s1 + $0x8] sm:$0xff]   ;;  %v193_v3 = vld [vmem:[%s261_s1 + $0x10] sm:$0xff]  }
   0x2   :  { %169 = vmatpush3.bf16.msra.mxu0 %v191_v1  ;;  %v194_v4 = vld [vmem:[%s261_s1 + $0x18] sm:$0xff]   ;;  %v195_v5 = vld [vmem:[%s261_s1 + $0x20] sm:$0xff]   ;;  %v196_v6 = vld [vmem:[%s261_s1 + $0x28] sm:$0xff]  }
   0x3   :  { %170 = vmatprep.subr.bf16.mxu0 %v199_v0  ;;  %v197_v7 = vld [vmem:[%s261_s1 + $0x30] sm:$0xff]   ;;  %v198_v8 = vld [vmem:[%s261_s1 + $0x38] sm:$0xff]   ;;  %v15_v9 = vld [vmem:[%s262_s0] sm:$0xf] }
   0x4   :  { %v156_v10 = vld [vmem:[%s263_s2] ss:$0 sm:$0xff]  ;;  %v157_v12 = vld [vmem:[%s263_s2 + $0x1] ss:$0 sm:$0xff]  ;;  %v158_v15 = vld [vmem:[%s263_s2 + $0x2] ss:$0 sm:$0xff] }
   0x6   :  { %171 = vmatpush3.bf16.msra.mxu0 %v192_v2 }
   0x7   :  { %172 = vmatprep.subr.bf16.mxu0 %v199_v0 }
   0xa   :  { %173 = vmatpush3.bf16.msra.mxu0 %v193_v3 }
   0xb   :  { %174 = vmatprep.subr.bf16.mxu0 %v199_v0 }
   0xe   :  { %175 = vmatpush3.bf16.msra.mxu0 %v194_v4 }
   0xf   :  { %176 = vmatprep.subr.bf16.mxu0 %v199_v0 }
  0x12   :  { %177 = vmatpush3.bf16.msra.mxu0 %v195_v5 }
  0x13   :  { %178 = vmatprep.subr.bf16.mxu0 %v199_v0 }
  0x16   :  { %179 = vmatpush3.bf16.msra.mxu0 %v196_v6 }
  0x17   :  { %180 = vmatprep.subr.bf16.mxu0 %v199_v0 }
  0x1a   :  { %181 = vmatpush3.bf16.msra.mxu0 %v197_v7 }
  0x1b   :  { %182 = vmatprep.subr.bf16.mxu0 %v199_v0 }
  0x1e   :  { %183 = vmatpush3.bf16.msra.mxu0 %v198_v8 }
  0x21   :  { %185 = vmatmul.mubr.bf16.vlgmr.msra.gmra.mrb[0].mxu0 %v15_v9 }
  0xf4   :  { %v114_v11 = vpop.f32.mrb[0].mxu0 }
  0xf5   :  { %v127_v13 = vmul.f32 %v156_v10, %v114_v11  ;;  %v186_v14 = vpop.f32.mrb[1].mxu0 }
  0xf6   :  { %v117_v16 = vpop.f32.mrb[2].mxu0 }
  0xf7   :  { %v132_v17 = vadd.f32 %v157_v12, %v127_v13  ;;  %v187_v18 = vpop.f32.mrb[3].mxu0 }
  0xf9   :  { %vm133_vm1 = vcmp.ge.f32.partialorder %v132_v17, 0.0  ;;  %v138_v19 = vmul.f32 %v158_v15, %v132_v17 }
  0xfb   :  { %v139_v20 = vsel %vm133_vm1, %v132_v17, %v138_v19 }
  0xfc   :  { %vm140_vm2 = vcmp.gt.f32.partialorder %v139_v20, 0.0 }
  0xfd   :  { %v141_v22 = vsel %vm140_vm2, 1.0, %v201_v21 }
  0xfe   :  { %v142_v23 = vpack.c.bf16 %v141_v22, %v141_v22 }
 0x100   :  { %143 = vst [vmem:[%s264_s3] sm:$0xf] %v142_v23 }

// kernel: _lambda_.162
= control target key start
LH: loop header
LB: loop body
LE: loop exit
PB: predicated region body
PF: predicated region fallthrough
CT: control target
= control target key end

     0   :  { %v195_v0 = vmov 0.0   ;;  %vm196_vm0 = vmmov 0   ;;  %s256_s1 = inlined_call_operand.vmem [shape: bf16[128,128], index: 1, kind: input, shape index: {}]   ;;  %s257_s0 = inlined_call_operand.vmem [shape: bf16[8,128], index: 0, kind: input, shape index: {}]   ;;  %s258_s2 = inlined_call_operand.vmem [shape: f32[4,128], index: 2, kind: input, shape index: {}]   ;;  %s259_s3 = inlined_call_operand.vmem [shape: f32[8,128], index: 3, kind: output, shape index: {}]  }
   0x1   :  { %165 = vmatprep.subr.bf16.mxu0 %v195_v0  ;;  %v187_v1 = vld [vmem:[%s256_s1] sm:$0xff]   ;;  %181 = vmatprep.mubr.msk.bf16.mxu0 %vm196_vm0, %v195_v0  ;;  %v188_v2 = vld [vmem:[%s256_s1 + $0x8] sm:$0xff]   ;;  %v189_v3 = vld [vmem:[%s256_s1 + $0x10] sm:$0xff]  }
   0x2   :  { %166 = vmatpush3.bf16.msra.mxu0 %v187_v1  ;;  %v190_v4 = vld [vmem:[%s256_s1 + $0x18] sm:$0xff]   ;;  %v191_v5 = vld [vmem:[%s256_s1 + $0x20] sm:$0xff]   ;;  %v192_v6 = vld [vmem:[%s256_s1 + $0x28] sm:$0xff]  }
   0x3   :  { %167 = vmatprep.subr.bf16.mxu0 %v195_v0  ;;  %v193_v7 = vld [vmem:[%s256_s1 + $0x30] sm:$0xff]   ;;  %v194_v8 = vld [vmem:[%s256_s1 + $0x38] sm:$0xff]   ;;  %v15_v9 = vld [vmem:[%s257_s0] sm:$0xf] }
   0x4   :  { %v153_v10 = vld [vmem:[%s258_s2] ss:$0 sm:$0xff]  ;;  %v154_v12 = vld [vmem:[%s258_s2 + $0x1] ss:$0 sm:$0xff]  ;;  %v155_v15 = vld [vmem:[%s258_s2 + $0x2] ss:$0 sm:$0xff] }
   0x6   :  { %168 = vmatpush3.bf16.msra.mxu0 %v188_v2 }
   0x7   :  { %169 = vmatprep.subr.bf16.mxu0 %v195_v0 }
   0xa   :  { %170 = vmatpush3.bf16.msra.mxu0 %v189_v3 }
   0xb   :  { %171 = vmatprep.subr.bf16.mxu0 %v195_v0 }
   0xe   :  { %172 = vmatpush3.bf16.msra.mxu0 %v190_v4 }
   0xf   :  { %173 = vmatprep.subr.bf16.mxu0 %v195_v0 }
  0x12   :  { %174 = vmatpush3.bf16.msra.mxu0 %v191_v5 }
  0x13   :  { %175 = vmatprep.subr.bf16.mxu0 %v195_v0 }
  0x16   :  { %176 = vmatpush3.bf16.msra.mxu0 %v192_v6 }
  0x17   :  { %177 = vmatprep.subr.bf16.mxu0 %v195_v0 }
  0x1a   :  { %178 = vmatpush3.bf16.msra.mxu0 %v193_v7 }
  0x1b   :  { %179 = vmatprep.subr.bf16.mxu0 %v195_v0 }
  0x1e   :  { %180 = vmatpush3.bf16.msra.mxu0 %v194_v8 }
  0x21   :  { %182 = vmatmul.mubr.bf16.vlgmr.msra.gmra.mrb[0].mxu0 %v15_v9 }
  0xf4   :  { %v114_v11 = vpop.f32.mrb[0].mxu0 }
  0xf5   :  { %v127_v13 = vmul.f32 %v153_v10, %v114_v11  ;;  %v183_v14 = vpop.f32.mrb[1].mxu0 }
  0xf6   :  { %v117_v16 = vpop.f32.mrb[2].mxu0 }
  0xf7   :  { %v132_v17 = vadd.f32 %v154_v12, %v127_v13  ;;  %v184_v18 = vpop.f32.mrb[3].mxu0 }
  0xf9   :  { %vm133_vm1 = vcmp.ge.f32.partialorder %v132_v17, 0.0  ;;  %v138_v19 = vmul.f32 %v155_v15, %v132_v17 }
  0xfb   :  { %v139_v20 = vsel %vm133_vm1, %v132_v17, %v138_v19 }
  0xfc   :  { %140 = vst [vmem:[%s259_s3] sm:$0xff] %v139_v20 }

// kernel: _lambda_.171
= control target key start
LH: loop header
LB: loop body
LE: loop exit
PB: predicated region body
PF: predicated region fallthrough
CT: control target
= control target key end

     0   :  { %v309_v50 = vmov -1.0   ;;  %s395_s1 = inlined_call_operand.vmem [shape: bf16[128,128], index: 1, kind: input, shape index: {}]   ;;  %s396_s0 = inlined_call_operand.vmem [shape: bf16[32,128], index: 0, kind: input, shape index: {}]   ;;  %s397_s2 = inlined_call_operand.vmem [shape: f32[4,128], index: 2, kind: input, shape index: {}]   ;;  %s398_s3 = inlined_call_operand.vmem [shape: f32[32,128], index: 3, kind: input, shape index: {}]   ;;  %s399_s4 = inlined_call_operand.vmem [shape: bf16[32,128], index: 4, kind: output, shape index: {}]  }
   0x1   :  { %v299_v0 = vld [vmem:[%s395_s1] sm:$0xff]   ;;  %v300_v1 = vld [vmem:[%s395_s1 + $0x8] sm:$0xff]   ;;  %v301_v2 = vld [vmem:[%s395_s1 + $0x10] sm:$0xff]  }
   0x2   :  { %278 = vmatprep.subr.bf16.mxu0 %v299_v0  ;;  %v302_v3 = vld [vmem:[%s395_s1 + $0x18] sm:$0xff]   ;;  %v307_v4 = vld [vmem:[%s396_s0] sm:$0xff]   ;;  %v304_v6 = vld [vmem:[%s395_s1 + $0x28] sm:$0xff]  }
   0x3   :  { %279 = vmatpush3.bf16.msra.mxu0 %v299_v0  ;;  %294 = vmatprep.mubr.bf16.mxu0 %v307_v4  ;;  %v303_v5 = vld [vmem:[%s395_s1 + $0x20] sm:$0xff]   ;;  %v305_v7 = vld [vmem:[%s395_s1 + $0x30] sm:$0xff]   ;;  %v306_v8 = vld [vmem:[%s395_s1 + $0x38] sm:$0xff]  }
   0x4   :  { %280 = vmatprep.subr.bf16.mxu0 %v300_v1  ;;  %v308_v9 = vld [vmem:[%s396_s0 + $0x8] sm:$0xff]   ;;  %v249_v10 = vld [vmem:[%s397_s2] ss:$0 sm:$0xff]  ;;  %v250_v12 = vld [vmem:[%s397_s2 + $0x1] ss:$0 sm:$0xff] }
   0x5   :  { %v251_v15 = vld [vmem:[%s397_s2 + $0x2] ss:$0 sm:$0xff]  ;;  %v185_v24 = vld [vmem:[%s398_s3 + $0x10] sm:$0xff]  ;;  %v252_v30 = vld [vmem:[%s397_s2 + $0x3] ss:$0 sm:$0xff] }
   0x6   :  { %v183_v27 = vld [vmem:[%s398_s3] sm:$0xff]  ;;  %v186_v32 = vld [vmem:[%s398_s3 + $0x18] sm:$0xff]  ;;  %v184_v36 = vld [vmem:[%s398_s3 + $0x8] sm:$0xff] }
   0x7   :  { %281 = vmatpush3.bf16.msra.mxu0 %v300_v1 }
   0x8   :  { %282 = vmatprep.subr.bf16.mxu0 %v301_v2 }
   0xb   :  { %283 = vmatpush3.bf16.msra.mxu0 %v301_v2 }
   0xc   :  { %284 = vmatprep.subr.bf16.mxu0 %v302_v3 }
   0xf   :  { %285 = vmatpush3.bf16.msra.mxu0 %v302_v3 }
  0x10   :  { %286 = vmatprep.subr.bf16.mxu0 %v303_v5 }
  0x13   :  { %287 = vmatpush3.bf16.msra.mxu0 %v303_v5 }
  0x14   :  { %288 = vmatprep.subr.bf16.mxu0 %v304_v6 }
  0x17   :  { %289 = vmatpush3.bf16.msra.mxu0 %v304_v6 }
  0x18   :  { %290 = vmatprep.subr.bf16.mxu0 %v305_v7 }
  0x1b   :  { %291 = vmatpush3.bf16.msra.mxu0 %v305_v7 }
  0x1c   :  { %292 = vmatprep.subr.bf16.mxu0 %v306_v8 }
  0x1f   :  { %293 = vmatpush3.bf16.msra.mxu0 %v306_v8 }
  0x22   :  { %295 = vmatmul.mubr.bf16.vlgmr.msra.gmra.mrb[0].mxu0 %v308_v9 }
  0xf5   :  { %v296_v11 = vpop.f32.mrb[0].mxu0 }
  0xf6   :  { %v156_v13 = vmul.f32 %v296_v11, %v249_v10  ;;  %v132_v14 = vpop.f32.mrb[1].mxu0 }
  0xf7   :  { %v154_v16 = vmul.f32 %v249_v10, %v132_v14  ;;  %v297_v17 = vpop.f32.mrb[2].mxu0 }
  0xf8   :  { %v164_v18 = vadd.f32 %v250_v12, %v156_v13  ;;  %v157_v19 = vmul.f32 %v297_v17, %v249_v10  ;;  %v135_v20 = vpop.f32.mrb[3].mxu0 }
  0xf9   :  { %v162_v21 = vadd.f32 %v250_v12, %v154_v16  ;;  %v155_v22 = vmul.f32 %v249_v10, %v135_v20 }
  0xfa   :  { %vm168_vm0 = vcmp.ge.f32.partialorder %v164_v18, 0.0  ;;  %v176_v23 = vmul.f32 %v251_v15, %v164_v18  ;;  %v165_v25 = vadd.f32 %v250_v12, %v157_v19 }
  0xfb   :  { %vm166_vm1 = vcmp.ge.f32.partialorder %v162_v21, 0.0  ;;  %v174_v26 = vmul.f32 %v251_v15, %v162_v21  ;;  %v163_v28 = vadd.f32 %v250_v12, %v155_v22 }
  0xfc   :  { %v180_v29 = vsel %vm168_vm0, %v164_v18, %v176_v23  ;;  %vm169_vm2 = vcmp.ge.f32.partialorder %v165_v25, 0.0  ;;  %v177_v31 = vmul.f32 %v251_v15, %v165_v25 }
  0xfd   :  { %v189_v33 = vadd.f32 %v185_v24, %v180_v29  ;;  %v178_v34 = vsel %vm166_vm1, %v162_v21, %v174_v26  ;;  %vm167_vm3 = vcmp.ge.f32.partialorder %v163_v28, 0.0  ;;  %v175_v35 = vmul.f32 %v251_v15, %v163_v28 }
  0xfe   :  { %v187_v37 = vadd.f32 %v183_v27, %v178_v34  ;;  %v181_v38 = vsel %vm169_vm2, %v165_v25, %v177_v31 }
  0xff   :  { %vm193_vm4 = vcmp.ge.f32.partialorder %v189_v33, 0.0  ;;  %v201_v39 = vmul.f32 %v252_v30, %v189_v33  ;;  %v190_v40 = vadd.f32 %v186_v32, %v181_v38  ;;  %v179_v41 = vsel %vm167_vm3, %v163_v28, %v175_v35 }
 0x100   :  { %vm191_vm5 = vcmp.ge.f32.partialorder %v187_v37, 0.0  ;;  %v199_v42 = vmul.f32 %v252_v30, %v187_v37  ;;  %v188_v43 = vadd.f32 %v184_v36, %v179_v41 }
 0x101   :  { %v205_v44 = vsel %vm193_vm4, %v189_v33, %v201_v39  ;;  %vm194_vm6 = vcmp.ge.f32.partialorder %v190_v40, 0.0  ;;  %v202_v45 = vmul.f32 %v252_v30, %v190_v40 }
 0x102   :  { %vm209_vm7 = vcmp.gt.f32.partialorder %v205_v44, 0.0  ;;  %v203_v46 = vsel %vm191_vm5, %v187_v37, %v199_v42  ;;  %vm192_vm8 = vcmp.ge.f32.partialorder %v188_v43, 0.0  ;;  %v200_v47 = vmul.f32 %v252_v30, %v188_v43 }
 0x103   :  { %vm207_vm9 = vcmp.gt.f32.partialorder %v203_v46, 0.0  ;;  %v206_v48 = vsel %vm194_vm6, %v190_v40, %v202_v45  ;;  %v213_v51 = vsel %vm209_vm7, 1.0, %v309_v50 }
 0x104   :  { %vm210_vm10 = vcmp.gt.f32.partialorder %v206_v48, 0.0  ;;  %v204_v49 = vsel %vm192_vm8, %v188_v43, %v200_v47  ;;  %v211_v53 = vsel %vm207_vm9, 1.0, %v309_v50 }
 0x105   :  { %v214_v52 = vsel %vm210_vm10, 1.0, %v309_v50  ;;  %vm208_vm11 = vcmp.gt.f32.partialorder %v204_v49, 0.0 }
 0x106   :  { %v265_v54 = vpack.c.bf16 %v214_v52, %v213_v51  ;;  %v212_v55 = vsel %vm208_vm11, 1.0, %v309_v50 }
 0x107   :  { %v262_v56 = vpack.c.bf16 %v212_v55, %v211_v53 }
 0x108   :  { %267 = vst [vmem:[%s399_s4 + $0x8] sm:$0xff] %v265_v54  }
 0x109   :  { %263 = vst [vmem:[%s399_s4] sm:$0xff] %v262_v56  }

// kernel: _lambda_.164
= control target key start
LH: loop header
LB: loop body
LE: loop exit
PB: predicated region body
PF: predicated region fallthrough
CT: control target
= control target key end

     0   :  { %v551_v62 = vmov -1.0   ;;  %s677_s1 = inlined_call_operand.vmem [shape: bf16[384,128], index: 1, kind: input, shape index: {}]   ;;  %s678_s0 = inlined_call_operand.vmem [shape: bf16[32,384], index: 0, kind: input, shape index: {}]   ;;  %s679_s2 = inlined_call_operand.vmem [shape: f32[4,128], index: 2, kind: input, shape index: {}]   ;;  %s680_s3 = inlined_call_operand.vmem [shape: bf16[32,128], index: 3, kind: output, shape index: {}]  }
   0x1   :  { %v519_v0 = vld [vmem:[%s677_s1 + $0x40] sm:$0xff]   ;;  %v522_v3 = vld [vmem:[%s677_s1 + $0x48] sm:$0xff]   ;;  %v525_v6 = vld [vmem:[%s677_s1 + $0x50] sm:$0xff]  }
   0x2   :  { %v520_v1 = vld [vmem:[%s677_s1] sm:$0xff]   ;;  %460 = vmatprep.subr.bf16.mxu0 %v519_v0  ;;  %v523_v4 = vld [vmem:[%s677_s1 + $0x8] sm:$0xff]   ;;  %v526_v7 = vld [vmem:[%s677_s1 + $0x10] sm:$0xff]  }
   0x3   :  { %v521_v2 = vld [vmem:[%s677_s1 + $0x80] sm:$0xff]   ;;  %461 = vmatpush3.bf16.msra.mxu0 %v520_v1  ;;  %v524_v5 = vld [vmem:[%s677_s1 + $0x88] sm:$0xff]   ;;  %v527_v8 = vld [vmem:[%s677_s1 + $0x90] sm:$0xff]  }
   0x4   :  { %498 = vmatprep.subr.bf16.mxu1 %v521_v2  ;;  %462 = vmatprep.subr.bf16.mxu0 %v522_v3  ;;  %v528_v9 = vld [vmem:[%s677_s1 + $0x58] sm:$0xff]   ;;  %v531_v12 = vld [vmem:[%s677_s1 + $0x60] sm:$0xff]   ;;  %v534_v15 = vld [vmem:[%s677_s1 + $0x68] sm:$0xff]  }
   0x5   :  { %499 = vmatpush3.bf16.msra.mxu1 %v521_v2  ;;  %v529_v10 = vld [vmem:[%s677_s1 + $0x18] sm:$0xff]   ;;  %v533_v13 = vld [vmem:[%s677_s1 + $0xa0] sm:$0xff]   ;;  %v536_v16 = vld [vmem:[%s677_s1 + $0xa8] sm:$0xff]  }
   0x6   :  { %500 = vmatprep.subr.bf16.mxu1 %v524_v5  ;;  %v530_v11 = vld [vmem:[%s677_s1 + $0x98] sm:$0xff]   ;;  %v532_v14 = vld [vmem:[%s677_s1 + $0x20] sm:$0xff]   ;;  %v535_v17 = vld [vmem:[%s677_s1 + $0x28] sm:$0xff]  }
   0x7   :  { %463 = vmatpush3.bf16.msra.mxu0 %v523_v4  ;;  %v537_v18 = vld [vmem:[%s677_s1 + $0x70] sm:$0xff]   ;;  %v540_v21 = vld [vmem:[%s677_s1 + $0x78] sm:$0xff]   ;;  %v543_v26 = vld [vmem:[%s678_s0] ss:$12 sps:$4 sm:$0xff]  }
   0x8   :  { %464 = vmatprep.subr.bf16.mxu0 %v525_v6  ;;  %v538_v19 = vld [vmem:[%s677_s1 + $0x30] sm:$0xff]   ;;  %v542_v22 = vld [vmem:[%s677_s1 + $0xb8] sm:$0xff]   ;;  %v547_v28 = vld [vmem:[%s678_s0 + $0x20] ss:$12 sps:$4 sm:$0xff]  }
   0x9   :  { %501 = vmatpush3.bf16.msra.mxu1 %v524_v5  ;;  %v539_v20 = vld [vmem:[%s677_s1 + $0xb0] sm:$0xff]   ;;  %v541_v25 = vld [vmem:[%s677_s1 + $0x38] sm:$0xff]   ;;  %v442_v37 = vld [vmem:[%s679_s2] ss:$0 sm:$0xff] }
   0xa   :  { %502 = vmatprep.subr.bf16.mxu1 %v527_v8  ;;  %v545_v23 = vld [vmem:[%s678_s0 + $0x4] ss:$12 sps:$4 sm:$0xff]   ;;  %v546_v24 = vld [vmem:[%s678_s0 + $0x8] ss:$12 sps:$4 sm:$0xff]   ;;  %v443_v41 = vld [vmem:[%s679_s2 + $0x1] ss:$0 sm:$0xff] }
   0xb   :  { %465 = vmatpush3.bf16.msra.mxu0 %v526_v7  ;;  %279 = vmatprep.mubr.bf16.mxu0 %v545_v23  ;;  %v548_v27 = vld [vmem:[%s678_s0 + $0x1c] ss:$12 sps:$4 sm:$0xff]   ;;  %v550_v29 = vld [vmem:[%s678_s0 + $0x18] ss:$12 sps:$4 sm:$0xff]   ;;  %v444_v45 = vld [vmem:[%s679_s2 + $0x2] ss:$0 sm:$0xff] }
   0xc   :  { %466 = vmatprep.subr.bf16.mxu0 %v528_v9  ;;  %514 = vmatprep.mubr.bf16.mxu1 %v546_v24 }
   0xd   :  { %503 = vmatpush3.bf16.msra.mxu1 %v527_v8 }
   0xe   :  { %504 = vmatprep.subr.bf16.mxu1 %v530_v11 }
   0xf   :  { %467 = vmatpush3.bf16.msra.mxu0 %v529_v10 }
  0x10   :  { %468 = vmatprep.subr.bf16.mxu0 %v531_v12 }
  0x11   :  { %505 = vmatpush3.bf16.msra.mxu1 %v530_v11 }
  0x12   :  { %506 = vmatprep.subr.bf16.mxu1 %v533_v13 }
  0x13   :  { %469 = vmatpush3.bf16.msra.mxu0 %v532_v14 }
  0x14   :  { %470 = vmatprep.subr.bf16.mxu0 %v534_v15 }
  0x15   :  { %507 = vmatpush3.bf16.msra.mxu1 %v533_v13 }
  0x16   :  { %508 = vmatprep.subr.bf16.mxu1 %v536_v16 }
  0x17   :  { %471 = vmatpush3.bf16.msra.mxu0 %v535_v17 }
  0x18   :  { %472 = vmatprep.subr.bf16.mxu0 %v537_v18 }
  0x19   :  { %509 = vmatpush3.bf16.msra.mxu1 %v536_v16 }
  0x1a   :  { %510 = vmatprep.subr.bf16.mxu1 %v539_v20 }
  0x1b   :  { %473 = vmatpush3.bf16.msra.mxu0 %v538_v19 }
  0x1c   :  { %474 = vmatprep.subr.bf16.mxu0 %v540_v21 }
  0x1d   :  { %511 = vmatpush3.bf16.msra.mxu1 %v539_v20 }
  0x1e   :  { %512 = vmatprep.subr.bf16.mxu1 %v542_v22 }
  0x1f   :  { %475 = vmatpush3.bf16.msra.mxu0 %v541_v25 }
  0x21   :  { %513 = vmatpush3.bf16.msra.mxu1 %v542_v22 }
  0x22   :  { %280 = vmatmul.mubr.bf16.vlgmr.msra.gmra.mrb[0].mxu0 %v543_v26 }
  0x23   :  { %287 = vmatprep.mubr.bf16.mxu0 %v548_v27 }
  0x24   :  { %515 = vmatmul.mubr.bf16.vlgmr.msra.gmra.mrb[0].mxu1 %v547_v28 }
  0x2a   :  { %288 = vmatmul.mubr.bf16.gmra.mrb[4].mxu0 %v550_v29 }
  0xf5   :  { %v476_v30 = vpop.f32.mrb[0].mxu0 }
  0xf6   :  { %v477_v31 = vpop.f32.mrb[1].mxu0 }
  0xf7   :  { %v478_v32 = vadd.f32 %v477_v31, %v476_v30  ;;  %v479_v33 = vpop.f32.mrb[2].mxu0  ;;  %v516_v34 = vpop.f32.mrb[0].mxu1 }
  0xf8   :  { %v480_v35 = vpop.f32.mrb[3].mxu0  ;;  %v330_v36 = vpop.f32.mrb[1].mxu1 }
  0xf9   :  { %v481_v38 = vadd.f32 %v480_v35, %v479_v33  ;;  %v331_v39 = vadd.f32 %v478_v32, %v330_v36  ;;  %v517_v40 = vpop.f32.mrb[2].mxu1 }
  0xfa   :  { %v333_v42 = vpop.f32.mrb[3].mxu1 }
  0xfb   :  { %v352_v43 = vmul.f32 %v442_v37, %v331_v39  ;;  %v334_v44 = vadd.f32 %v481_v38, %v333_v42 }
  0xfd   :  { %v360_v46 = vadd.f32 %v443_v41, %v352_v43  ;;  %v353_v47 = vmul.f32 %v442_v37, %v334_v44  ;;  %v482_v48 = vpop.f32.mrb[4].mxu0 }
  0xfe   :  { %v483_v49 = vpop.f32.mrb[5].mxu0 }
  0xff   :  { %vm364_vm0 = vcmp.ge.f32.partialorder %v360_v46, 0.0  ;;  %v372_v50 = vmul.f32 %v444_v45, %v360_v46  ;;  %v361_v51 = vadd.f32 %v443_v41, %v353_v47  ;;  %v484_v52 = vadd.f32 %v483_v49, %v482_v48  ;;  %v485_v53 = vpop.f32.mrb[6].mxu0 }
 0x100   :  { %v486_v54 = vpop.f32.mrb[7].mxu0 }
 0x101   :  { %v376_v55 = vsel %vm364_vm0, %v360_v46, %v372_v50  ;;  %vm365_vm1 = vcmp.ge.f32.partialorder %v361_v51, 0.0  ;;  %v373_v56 = vmul.f32 %v444_v45, %v361_v51  ;;  %v339_v57 = vadd.f32 %v516_v34, %v484_v52 }
 0x102   :  { %vm380_vm2 = vcmp.gt.f32.partialorder %v376_v55, 0.0  ;;  %v487_v58 = vadd.f32 %v486_v54, %v485_v53 }
 0x103   :  { %v377_v59 = vsel %vm365_vm1, %v361_v51, %v373_v56  ;;  %v354_v60 = vmul.f32 %v442_v37, %v339_v57  ;;  %v384_v63 = vsel %vm380_vm2, 1.0, %v551_v62 }
 0x104   :  { %vm381_vm3 = vcmp.gt.f32.partialorder %v377_v59, 0.0  ;;  %v342_v61 = vadd.f32 %v517_v40, %v487_v58 }
 0x105   :  { %v385_v0 = vsel %vm381_vm3, 1.0, %v551_v62  ;;  %v362_v1 = vadd.f32 %v443_v41, %v354_v60 }
 0x106   :  { %v454_v2 = vpack.c.bf16 %v385_v0, %v384_v63  ;;  %v355_v3 = vmul.f32 %v442_v37, %v342_v61 }
 0x107   :  { %vm366_vm4 = vcmp.ge.f32.partialorder %v362_v1, 0.0  ;;  %v374_v4 = vmul.f32 %v444_v45, %v362_v1 }
 0x108   :  { %455 = vst [vmem:[%s680_s3] sm:$0xff] %v454_v2   ;;  %v363_v5 = vadd.f32 %v443_v41, %v355_v3 }
 0x109   :  { %v378_v6 = vsel %vm366_vm4, %v362_v1, %v374_v4 }
 0x10a   :  { %vm367_vm5 = vcmp.ge.f32.partialorder %v363_v5, 0.0  ;;  %v375_v7 = vmul.f32 %v444_v45, %v363_v5  ;;  %vm382_vm6 = vcmp.gt.f32.partialorder %v378_v6, 0.0 }
 0x10b   :  { %v386_v9 = vsel %vm382_vm6, 1.0, %v551_v62 }
 0x10c   :  { %v379_v8 = vsel %vm367_vm5, %v363_v5, %v375_v7 }
 0x10d   :  { %vm383_vm7 = vcmp.gt.f32.partialorder %v379_v8, 0.0 }
 0x10e   :  { %v387_v10 = vsel %vm383_vm7, 1.0, %v551_v62 }
 0x10f   :  { %v457_v11 = vpack.c.bf16 %v387_v10, %v386_v9 }
 0x111   :  { %459 = vst [vmem:[%s680_s3 + $0x8] sm:$0xff] %v457_v11  }

// kernel: _lambda_.172
= control target key start
LH: loop header
LB: loop body
LE: loop exit
PB: predicated region body
PF: predicated region fallthrough
CT: control target
= control target key end

     0   :  { %s311_s1 = inlined_call_operand.vmem [shape: bf16[128,128], index: 1, kind: input, shape index: {}]   ;;  %s312_s0 = inlined_call_operand.vmem [shape: bf16[32,128], index: 0, kind: input, shape index: {}]   ;;  %s313_s2 = inlined_call_operand.vmem [shape: f32[4,128], index: 2, kind: input, shape index: {}]   ;;  %s314_s3 = inlined_call_operand.vmem [shape: f32[32,128], index: 3, kind: output, shape index: {}]  }
   0x1   :  { %v230_v0 = vld [vmem:[%s311_s1] sm:$0xff]   ;;  %v231_v1 = vld [vmem:[%s311_s1 + $0x8] sm:$0xff]   ;;  %v232_v2 = vld [vmem:[%s311_s1 + $0x10] sm:$0xff]  }
   0x2   :  { %210 = vmatprep.subr.bf16.mxu0 %v230_v0  ;;  %v233_v3 = vld [vmem:[%s311_s1 + $0x18] sm:$0xff]   ;;  %v238_v4 = vld [vmem:[%s312_s0] sm:$0xff]   ;;  %v235_v6 = vld [vmem:[%s311_s1 + $0x28] sm:$0xff]  }
   0x3   :  { %211 = vmatpush3.bf16.msra.mxu0 %v230_v0  ;;  %226 = vmatprep.mubr.bf16.mxu0 %v238_v4  ;;  %v234_v5 = vld [vmem:[%s311_s1 + $0x20] sm:$0xff]   ;;  %v236_v7 = vld [vmem:[%s311_s1 + $0x30] sm:$0xff]   ;;  %v237_v8 = vld [vmem:[%s311_s1 + $0x38] sm:$0xff]  }
   0x4   :  { %212 = vmatprep.subr.bf16.mxu0 %v231_v1  ;;  %v239_v9 = vld [vmem:[%s312_s0 + $0x8] sm:$0xff]   ;;  %v197_v10 = vld [vmem:[%s313_s2] ss:$0 sm:$0xff]  ;;  %v198_v12 = vld [vmem:[%s313_s2 + $0x1] ss:$0 sm:$0xff] }
   0x5   :  { %v199_v15 = vld [vmem:[%s313_s2 + $0x2] ss:$0 sm:$0xff] }
   0x7   :  { %213 = vmatpush3.bf16.msra.mxu0 %v231_v1 }
   0x8   :  { %214 = vmatprep.subr.bf16.mxu0 %v232_v2 }
   0xb   :  { %215 = vmatpush3.bf16.msra.mxu0 %v232_v2 }
   0xc   :  { %216 = vmatprep.subr.bf16.mxu0 %v233_v3 }
   0xf   :  { %217 = vmatpush3.bf16.msra.mxu0 %v233_v3 }
  0x10   :  { %218 = vmatprep.subr.bf16.mxu0 %v234_v5 }
  0x13   :  { %219 = vmatpush3.bf16.msra.mxu0 %v234_v5 }
  0x14   :  { %220 = vmatprep.subr.bf16.mxu0 %v235_v6 }
  0x17   :  { %221 = vmatpush3.bf16.msra.mxu0 %v235_v6 }
  0x18   :  { %222 = vmatprep.subr.bf16.mxu0 %v236_v7 }
  0x1b   :  { %223 = vmatpush3.bf16.msra.mxu0 %v236_v7 }
  0x1c   :  { %224 = vmatprep.subr.bf16.mxu0 %v237_v8 }
  0x1f   :  { %225 = vmatpush3.bf16.msra.mxu0 %v237_v8 }
  0x22   :  { %227 = vmatmul.mubr.bf16.vlgmr.msra.gmra.mrb[0].mxu0 %v239_v9 }
  0xf5   :  { %v228_v11 = vpop.f32.mrb[0].mxu0 }
  0xf6   :  { %v153_v13 = vmul.f32 %v228_v11, %v197_v10  ;;  %v129_v14 = vpop.f32.mrb[1].mxu0 }
  0xf7   :  { %v151_v16 = vmul.f32 %v197_v10, %v129_v14  ;;  %v229_v17 = vpop.f32.mrb[2].mxu0 }
  0xf8   :  { %v161_v18 = vadd.f32 %v198_v12, %v153_v13  ;;  %v154_v19 = vmul.f32 %v229_v17, %v197_v10  ;;  %v132_v20 = vpop.f32.mrb[3].mxu0 }
  0xf9   :  { %v159_v21 = vadd.f32 %v198_v12, %v151_v16  ;;  %v152_v22 = vmul.f32 %v197_v10, %v132_v20 }
  0xfa   :  { %vm165_vm0 = vcmp.ge.f32.partialorder %v161_v18, 0.0  ;;  %v173_v23 = vmul.f32 %v199_v15, %v161_v18  ;;  %v162_v24 = vadd.f32 %v198_v12, %v154_v19 }
  0xfb   :  { %vm163_vm1 = vcmp.ge.f32.partialorder %v159_v21, 0.0  ;;  %v171_v25 = vmul.f32 %v199_v15, %v159_v21  ;;  %v160_v26 = vadd.f32 %v198_v12, %v152_v22 }
  0xfc   :  { %v177_v27 = vsel %vm165_vm0, %v161_v18, %v173_v23  ;;  %vm166_vm2 = vcmp.ge.f32.partialorder %v162_v24, 0.0  ;;  %v174_v28 = vmul.f32 %v199_v15, %v162_v24 }
  0xfd   :  { %181 = vst [vmem:[%s314_s3 + $0x10] sm:$0xff] %v177_v27  ;;  %v175_v29 = vsel %vm163_vm1, %v159_v21, %v171_v25  ;;  %vm164_vm3 = vcmp.ge.f32.partialorder %v160_v26, 0.0  ;;  %v172_v30 = vmul.f32 %v199_v15, %v160_v26 }
  0xfe   :  { %179 = vst [vmem:[%s314_s3] sm:$0xff] %v175_v29  ;;  %v178_v31 = vsel %vm166_vm2, %v162_v24, %v174_v28 }
  0xff   :  { %182 = vst [vmem:[%s314_s3 + $0x18] sm:$0xff] %v178_v31  ;;  %v176_v32 = vsel %vm164_vm3, %v160_v26, %v172_v30 }
 0x100   :  { %180 = vst [vmem:[%s314_s3 + $0x8] sm:$0xff] %v176_v32 }

// kernel: _lambda_.175
= control target key start
LH: loop header
LB: loop body
LE: loop exit
PB: predicated region body
PF: predicated region fallthrough
CT: control target
= control target key end

     0   :  { %s814_s1 = inlined_call_operand.vmem [shape: bf16[128,128], index: 1, kind: input, shape index: {}]   ;;  %s815_s0 = inlined_call_operand.vmem [shape: bf16[128,128], index: 0, kind: input, shape index: {}]   ;;  %s816_s2 = inlined_call_operand.vmem [shape: f32[4,128], index: 2, kind: input, shape index: {}]   ;;  %s817_s3 = inlined_call_operand.vmem [shape: f32[128,128], index: 3, kind: input, shape index: {}]   ;;  %s818_s4 = inlined_call_operand.vmem [shape: f32[128,128], index: 4, kind: output, shape index: {}]  }
   0x1   :  { %v527_v0 = vld [vmem:[%s814_s1] sm:$0xff]   ;;  %v528_v1 = vld [vmem:[%s814_s1 + $0x8] sm:$0xff]   ;;  %v529_v2 = vld [vmem:[%s814_s1 + $0x10] sm:$0xff]  }
   0x2   :  { %479 = vmatprep.subr.bf16.mxu0 %v527_v0  ;;  %511 = vmatprep.subr.bf16.mxu1 %v527_v0  ;;  %v530_v3 = vld [vmem:[%s814_s1 + $0x18] sm:$0xff]   ;;  %v535_v4 = vld [vmem:[%s815_s0] sm:$0xff]   ;;  %v532_v7 = vld [vmem:[%s814_s1 + $0x28] sm:$0xff]  }
   0x3   :  { %480 = vmatpush3.bf16.msra.mxu0 %v527_v0  ;;  %519 = vmatpush3.bf16.msra.mxu1 %v527_v0  ;;  %v536_v5 = vld [vmem:[%s815_s0 + $0x20] sm:$0xff]   ;;  %v533_v8 = vld [vmem:[%s814_s1 + $0x30] sm:$0xff]   ;;  %v534_v9 = vld [vmem:[%s814_s1 + $0x38] sm:$0xff]  }
   0x4   :  { %481 = vmatprep.subr.bf16.mxu0 %v528_v1  ;;  %512 = vmatprep.subr.bf16.mxu1 %v528_v1  ;;  %v531_v6 = vld [vmem:[%s814_s1 + $0x20] sm:$0xff]   ;;  %v537_v10 = vld [vmem:[%s815_s0 + $0x8] sm:$0xff]   ;;  %v539_v12 = vld [vmem:[%s815_s0 + $0x10] sm:$0xff]  }
   0x5   :  { %495 = vmatprep.mubr.bf16.mxu0 %v535_v4  ;;  %503 = vmatprep.mubr.bf16.mxu1 %v536_v5  ;;  %v538_v11 = vld [vmem:[%s815_s0 + $0x28] sm:$0xff]   ;;  %v540_v13 = vld [vmem:[%s815_s0 + $0x30] sm:$0xff]   ;;  %v541_v14 = vld [vmem:[%s815_s0 + $0x18] sm:$0xff]  }
   0x6   :  { %v542_v15 = vld [vmem:[%s815_s0 + $0x38] sm:$0xff]   ;;  %v619_v16 = vld [vmem:[%s816_s2] ss:$0 sm:$0xff]  ;;  %v624_v18 = vld [vmem:[%s816_s2 + $0x1] ss:$0 sm:$0xff] }
   0x7   :  { %482 = vmatpush3.bf16.msra.mxu0 %v528_v1  ;;  %520 = vmatpush3.bf16.msra.mxu1 %v528_v1  ;;  %v631_v24 = vld [vmem:[%s816_s2 + $0x2] ss:$0 sm:$0xff]  ;;  %v341_v40 = vld [vmem:[%s817_s3 + $0x10] sm:$0xff]  ;;  %v662_v48 = vld [vmem:[%s816_s2 + $0x3] ss:$0 sm:$0xff] }
   0x8   :  { %483 = vmatprep.subr.bf16.mxu0 %v529_v2  ;;  %513 = vmatprep.subr.bf16.mxu1 %v529_v2  ;;  %v349_v42 = vld [vmem:[%s817_s3 + $0x50] sm:$0xff]  ;;  %v339_v44 = vld [vmem:[%s817_s3] sm:$0xff]  ;;  %v342_v1 = vld [vmem:[%s817_s3 + $0x18] sm:$0xff] }
   0x9   :  { %v347_v46 = vld [vmem:[%s817_s3 + $0x40] sm:$0xff] }
   0xb   :  { %484 = vmatpush3.bf16.msra.mxu0 %v529_v2  ;;  %521 = vmatpush3.bf16.msra.mxu1 %v529_v2 }
   0xc   :  { %485 = vmatprep.subr.bf16.mxu0 %v530_v3  ;;  %514 = vmatprep.subr.bf16.mxu1 %v530_v3 }
   0xf   :  { %486 = vmatpush3.bf16.msra.mxu0 %v530_v3  ;;  %522 = vmatpush3.bf16.msra.mxu1 %v530_v3 }
  0x10   :  { %487 = vmatprep.subr.bf16.mxu0 %v531_v6  ;;  %515 = vmatprep.subr.bf16.mxu1 %v531_v6 }
  0x13   :  { %488 = vmatpush3.bf16.msra.mxu0 %v531_v6  ;;  %523 = vmatpush3.bf16.msra.mxu1 %v531_v6 }
  0x14   :  { %489 = vmatprep.subr.bf16.mxu0 %v532_v7  ;;  %516 = vmatprep.subr.bf16.mxu1 %v532_v7 }
  0x17   :  { %490 = vmatpush3.bf16.msra.mxu0 %v532_v7  ;;  %524 = vmatpush3.bf16.msra.mxu1 %v532_v7 }
  0x18   :  { %491 = vmatprep.subr.bf16.mxu0 %v533_v8  ;;  %517 = vmatprep.subr.bf16.mxu1 %v533_v8 }
  0x1b   :  { %492 = vmatpush3.bf16.msra.mxu0 %v533_v8  ;;  %525 = vmatpush3.bf16.msra.mxu1 %v533_v8 }
  0x1c   :  { %493 = vmatprep.subr.bf16.mxu0 %v534_v9  ;;  %518 = vmatprep.subr.bf16.mxu1 %v534_v9 }
  0x1f   :  { %494 = vmatpush3.bf16.msra.mxu0 %v534_v9  ;;  %526 = vmatpush3.bf16.msra.mxu1 %v534_v9 }
  0x22   :  { %496 = vmatmul.mubr.bf16.vlgmr.msra.gmra.mrb[0].mxu0 %v537_v10  ;;  %504 = vmatmul.mubr.bf16.vlgmr.msra.gmra.mrb[0].mxu1 %v538_v11 }
  0x23   :  { %499 = vmatprep.mubr.bf16.mxu0 %v539_v12  ;;  %507 = vmatprep.mubr.bf16.mxu1 %v540_v13 }
  0x2a   :  { %500 = vmatmul.mubr.bf16.gmra.mrb[4].mxu0 %v541_v14  ;;  %508 = vmatmul.mubr.bf16.gmra.mrb[4].mxu1 %v542_v15  ;;  %v350_v15 = vld [vmem:[%s817_s3 + $0x58] sm:$0xff] }
  0xf5   :  { %v497_v17 = vpop.f32.mrb[0].mxu0  ;;  %v505_v19 = vpop.f32.mrb[0].mxu1 }
  0xf6   :  { %v252_v20 = vmul.f32 %v497_v17, %v619_v16  ;;  %v260_v21 = vmul.f32 %v505_v19, %v619_v16  ;;  %v180_v22 = vpop.f32.mrb[1].mxu0  ;;  %v212_v23 = vpop.f32.mrb[1].mxu1 }
  0xf7   :  { %v250_v25 = vmul.f32 %v619_v16, %v180_v22  ;;  %v258_v26 = vmul.f32 %v619_v16, %v212_v23  ;;  %v498_v27 = vpop.f32.mrb[2].mxu0  ;;  %v506_v28 = vpop.f32.mrb[2].mxu1 }
  0xf8   :  { %v272_v29 = vadd.f32 %v624_v18, %v252_v20  ;;  %v280_v30 = vadd.f32 %v624_v18, %v260_v21  ;;  %v253_v31 = vmul.f32 %v498_v27, %v619_v16  ;;  %v261_v32 = vmul.f32 %v506_v28, %v619_v16  ;;  %v183_v33 = vpop.f32.mrb[3].mxu0  ;;  %v215_v34 = vpop.f32.mrb[3].mxu1  ;;  %v340_v28 = vld [vmem:[%s817_s3 + $0x8] sm:$0xff] }
  0xf9   :  { %v270_v35 = vadd.f32 %v624_v18, %v250_v25  ;;  %v278_v36 = vadd.f32 %v624_v18, %v258_v26  ;;  %v251_v37 = vmul.f32 %v619_v16, %v183_v33  ;;  %v259_v38 = vmul.f32 %v619_v16, %v215_v34 }
  0xfa   :  { %vm288_vm0 = vcmp.ge.f32.partialorder %v272_v29, 0.0  ;;  %v308_v39 = vmul.f32 %v631_v24, %v272_v29  ;;  %vm296_vm1 = vcmp.ge.f32.partialorder %v280_v30, 0.0  ;;  %v316_v41 = vmul.f32 %v631_v24, %v280_v30 }
  0xfb   :  { %vm286_vm2 = vcmp.ge.f32.partialorder %v270_v35, 0.0  ;;  %v306_v43 = vmul.f32 %v631_v24, %v270_v35  ;;  %vm294_vm3 = vcmp.ge.f32.partialorder %v278_v36, 0.0  ;;  %v314_v45 = vmul.f32 %v631_v24, %v278_v36 }
  0xfc   :  { %v324_v47 = vsel %vm288_vm0, %v272_v29, %v308_v39  ;;  %v332_v49 = vsel %vm296_vm1, %v280_v30, %v316_v41  ;;  %v273_v50 = vadd.f32 %v624_v18, %v253_v31  ;;  %v281_v51 = vadd.f32 %v624_v18, %v261_v32  ;;  %v348_v31 = vld [vmem:[%s817_s3 + $0x48] sm:$0xff] }
  0xfd   :  { %v357_v52 = vadd.f32 %v341_v40, %v324_v47  ;;  %v365_v53 = vadd.f32 %v349_v42, %v332_v49  ;;  %v322_v54 = vsel %vm286_vm2, %v270_v35, %v306_v43  ;;  %v330_v55 = vsel %vm294_vm3, %v278_v36, %v314_v45  ;;  %v501_v56 = vpop.f32.mrb[4].mxu0  ;;  %v509_v57 = vpop.f32.mrb[4].mxu1  ;;  %v345_v40 = vld [vmem:[%s817_s3 + $0x30] sm:$0xff] }
  0xfe   :  { %v355_v58 = vadd.f32 %v339_v44, %v322_v54  ;;  %v363_v59 = vadd.f32 %v347_v46, %v330_v55  ;;  %vm289_vm4 = vcmp.ge.f32.partialorder %v273_v50, 0.0  ;;  %v309_v60 = vmul.f32 %v631_v24, %v273_v50  ;;  %v196_v61 = vpop.f32.mrb[5].mxu0  ;;  %v667_v62 = vpop.f32.mrb[5].mxu1  ;;  %v353_v44 = vld [vmem:[%s817_s3 + $0x70] sm:$0xff]  ;;  %v343_v54 = vld [vmem:[%s817_s3 + $0x20] sm:$0xff] }
  0xff   :  { %vm373_vm5 = vcmp.ge.f32.partialorder %v357_v52, 0.0  ;;  %v393_v63 = vmul.f32 %v662_v48, %v357_v52  ;;  %vm381_vm6 = vcmp.ge.f32.partialorder %v365_v53, 0.0  ;;  %v401_v0 = vmul.f32 %v662_v48, %v365_v53  ;;  %v674_v2 = vpop.f32.mrb[6].mxu0  ;;  %v676_v3 = vpop.f32.mrb[6].mxu1 }
 0x100   :  { %vm371_vm7 = vcmp.ge.f32.partialorder %v355_v58, 0.0  ;;  %v391_v4 = vmul.f32 %v662_v48, %v355_v58  ;;  %vm379_vm8 = vcmp.ge.f32.partialorder %v363_v59, 0.0  ;;  %v399_v5 = vmul.f32 %v662_v48, %v363_v59  ;;  %v680_v6 = vpop.f32.mrb[7].mxu0  ;;  %v682_v7 = vpop.f32.mrb[7].mxu1 }
 0x101   :  { %v409_v8 = vsel %vm373_vm5, %v357_v52, %v393_v63  ;;  %v417_v9 = vsel %vm381_vm6, %v365_v53, %v401_v0  ;;  %v325_v10 = vsel %vm289_vm4, %v273_v50, %v309_v60  ;;  %vm297_vm9 = vcmp.ge.f32.partialorder %v281_v51, 0.0 }
 0x102   :  { %425 = vst [vmem:[%s818_s4 + $0x10] sm:$0xff] %v409_v8  ;;  %433 = vst [vmem:[%s818_s4 + $0x50] sm:$0xff] %v417_v9  ;;  %v407_v11 = vsel %vm371_vm7, %v355_v58, %v391_v4  ;;  %v415_v12 = vsel %vm379_vm8, %v363_v59, %v399_v5  ;;  %v358_v13 = vadd.f32 %v342_v1, %v325_v10  ;;  %v351_v5 = vld [vmem:[%s817_s3 + $0x60] sm:$0xff]  ;;  %v346_v10 = vld [vmem:[%s817_s3 + $0x38] sm:$0xff] }
 0x103   :  { %v317_v14 = vmul.f32 %v631_v24, %v281_v51  ;;  %423 = vst [vmem:[%s818_s4] sm:$0xff] %v407_v11  ;;  %431 = vst [vmem:[%s818_s4 + $0x40] sm:$0xff] %v415_v12  ;;  %v271_v17 = vadd.f32 %v624_v18, %v251_v37  ;;  %v279_v19 = vadd.f32 %v624_v18, %v259_v38 }
 0x104   :  { %v256_v20 = vmul.f32 %v501_v56, %v619_v16  ;;  %v264_v21 = vmul.f32 %v509_v57, %v619_v16  ;;  %vm374_vm10 = vcmp.ge.f32.partialorder %v358_v13, 0.0  ;;  %v394_v22 = vmul.f32 %v662_v48, %v358_v13 }
 0x105   :  { %v333_v23 = vsel %vm297_vm9, %v281_v51, %v317_v14  ;;  %v254_v25 = vmul.f32 %v619_v16, %v196_v61  ;;  %vm287_vm11 = vcmp.ge.f32.partialorder %v271_v17, 0.0  ;;  %v307_v27 = vmul.f32 %v631_v24, %v271_v17 }
 0x106   :  { %v366_v26 = vadd.f32 %v350_v15, %v333_v23  ;;  %vm295_vm12 = vcmp.ge.f32.partialorder %v279_v19, 0.0  ;;  %v410_v29 = vsel %vm374_vm10, %v358_v13, %v394_v22  ;;  %v315_v30 = vmul.f32 %v631_v24, %v279_v19 }
 0x107   :  { %v276_v32 = vadd.f32 %v624_v18, %v256_v20  ;;  %v284_v33 = vadd.f32 %v624_v18, %v264_v21  ;;  %426 = vst [vmem:[%s818_s4 + $0x18] sm:$0xff] %v410_v29  ;;  %v323_v35 = vsel %vm287_vm11, %v271_v17, %v307_v27  ;;  %v274_v36 = vadd.f32 %v624_v18, %v254_v25  ;;  %v354_v21 = vld [vmem:[%s817_s3 + $0x78] sm:$0xff] }
 0x108   :  { %vm382_vm13 = vcmp.ge.f32.partialorder %v366_v26, 0.0  ;;  %v402_v34 = vmul.f32 %v662_v48, %v366_v26  ;;  %v356_v37 = vadd.f32 %v340_v28, %v323_v35  ;;  %v331_v38 = vsel %vm295_vm12, %v279_v19, %v315_v30 }
 0x109   :  { %vm292_vm14 = vcmp.ge.f32.partialorder %v276_v32, 0.0  ;;  %v312_v39 = vmul.f32 %v631_v24, %v276_v32  ;;  %v364_v42 = vadd.f32 %v348_v31, %v331_v38  ;;  %vm300_vm15 = vcmp.ge.f32.partialorder %v284_v33, 0.0 }
 0x10a   :  { %v418_v41 = vsel %vm382_vm13, %v366_v26, %v402_v34  ;;  %v320_v43 = vmul.f32 %v631_v24, %v284_v33  ;;  %vm372_vm0 = vcmp.ge.f32.partialorder %v356_v37, 0.0  ;;  %v392_v45 = vmul.f32 %v662_v48, %v356_v37 }
 0x10b   :  { %434 = vst [vmem:[%s818_s4 + $0x58] sm:$0xff] %v418_v41  ;;  %v328_v46 = vsel %vm292_vm14, %v276_v32, %v312_v39  ;;  %vm290_vm1 = vcmp.ge.f32.partialorder %v274_v36, 0.0  ;;  %vm380_vm2 = vcmp.ge.f32.partialorder %v364_v42, 0.0  ;;  %v400_v47 = vmul.f32 %v662_v48, %v364_v42 }
 0x10c   :  { %v361_v49 = vadd.f32 %v345_v40, %v328_v46  ;;  %v336_v50 = vsel %vm300_vm15, %v284_v33, %v320_v43  ;;  %v408_v51 = vsel %vm372_vm0, %v356_v37, %v392_v45  ;;  %v310_v53 = vmul.f32 %v631_v24, %v274_v36 }
 0x10d   :  { %v369_v52 = vadd.f32 %v353_v44, %v336_v50  ;;  %v262_v55 = vmul.f32 %v619_v16, %v667_v62  ;;  %424 = vst [vmem:[%s818_s4 + $0x8] sm:$0xff] %v408_v51  ;;  %v416_v56 = vsel %vm380_vm2, %v364_v42, %v400_v47  ;;  %v257_v58 = vmul.f32 %v674_v2, %v619_v16 }
 0x10e   :  { %vm377_vm3 = vcmp.ge.f32.partialorder %v361_v49, 0.0  ;;  %v397_v57 = vmul.f32 %v662_v48, %v361_v49  ;;  %432 = vst [vmem:[%s818_s4 + $0x48] sm:$0xff] %v416_v56  ;;  %v326_v60 = vsel %vm290_vm1, %v274_v36, %v310_v53  ;;  %v265_v1 = vmul.f32 %v676_v3, %v619_v16 }
 0x10f   :  { %vm385_vm4 = vcmp.ge.f32.partialorder %v369_v52, 0.0  ;;  %v405_v59 = vmul.f32 %v662_v48, %v369_v52  ;;  %v282_v61 = vadd.f32 %v624_v18, %v262_v55  ;;  %v359_v63 = vadd.f32 %v343_v54, %v326_v60 }
 0x110   :  { %v413_v62 = vsel %vm377_vm3, %v361_v49, %v397_v57  ;;  %v277_v0 = vadd.f32 %v624_v18, %v257_v58  ;;  %v255_v8 = vmul.f32 %v619_v16, %v680_v6  ;;  %v285_v12 = vadd.f32 %v624_v18, %v265_v1 }
 0x111   :  { %429 = vst [vmem:[%s818_s4 + $0x30] sm:$0xff] %v413_v62  ;;  %v421_v2 = vsel %vm385_vm4, %v369_v52, %v405_v59  ;;  %vm298_vm5 = vcmp.ge.f32.partialorder %v282_v61, 0.0  ;;  %v318_v4 = vmul.f32 %v631_v24, %v282_v61  ;;  %vm375_vm6 = vcmp.ge.f32.partialorder %v359_v63, 0.0 }
 0x112   :  { %437 = vst [vmem:[%s818_s4 + $0x70] sm:$0xff] %v421_v2  ;;  %v395_v3 = vmul.f32 %v662_v48, %v359_v63  ;;  %vm293_vm7 = vcmp.ge.f32.partialorder %v277_v0, 0.0  ;;  %v313_v9 = vmul.f32 %v631_v24, %v277_v0  ;;  %v275_v13 = vadd.f32 %v624_v18, %v255_v8 }
 0x113   :  { %v334_v11 = vsel %vm298_vm5, %v282_v61, %v318_v4  ;;  %v263_v6 = vmul.f32 %v619_v16, %v682_v7  ;;  %vm301_vm8 = vcmp.ge.f32.partialorder %v285_v12, 0.0  ;;  %v321_v20 = vmul.f32 %v631_v24, %v285_v12  ;;  %v344_v7 = vld [vmem:[%s817_s3 + $0x28] sm:$0xff] }
 0x114   :  { %v411_v14 = vsel %vm375_vm6, %v359_v63, %v395_v3  ;;  %v367_v15 = vadd.f32 %v351_v5, %v334_v11  ;;  %v329_v17 = vsel %vm293_vm7, %v277_v0, %v313_v9  ;;  %vm291_vm9 = vcmp.ge.f32.partialorder %v275_v13, 0.0 }
 0x115   :  { %427 = vst [vmem:[%s818_s4 + $0x20] sm:$0xff] %v411_v14  ;;  %v362_v19 = vadd.f32 %v346_v10, %v329_v17  ;;  %v311_v16 = vmul.f32 %v631_v24, %v275_v13  ;;  %v283_v23 = vadd.f32 %v624_v18, %v263_v6  ;;  %v337_v26 = vsel %vm301_vm8, %v285_v12, %v321_v20  ;;  %v352_v18 = vld [vmem:[%s817_s3 + $0x68] sm:$0xff] }
 0x116   :  { %vm383_vm10 = vcmp.ge.f32.partialorder %v367_v15, 0.0  ;;  %v403_v22 = vmul.f32 %v662_v48, %v367_v15  ;;  %v370_v28 = vadd.f32 %v354_v21, %v337_v26 }
 0x117   :  { %vm378_vm11 = vcmp.ge.f32.partialorder %v362_v19, 0.0  ;;  %v398_v25 = vmul.f32 %v662_v48, %v362_v19  ;;  %v327_v29 = vsel %vm291_vm9, %v275_v13, %v311_v16  ;;  %vm299_vm12 = vcmp.ge.f32.partialorder %v283_v23, 0.0 }
 0x118   :  { %v419_v27 = vsel %vm383_vm10, %v367_v15, %v403_v22  ;;  %v360_v31 = vadd.f32 %v344_v7, %v327_v29  ;;  %v319_v32 = vmul.f32 %v631_v24, %v283_v23  ;;  %vm386_vm13 = vcmp.ge.f32.partialorder %v370_v28, 0.0 }
 0x119   :  { %435 = vst [vmem:[%s818_s4 + $0x60] sm:$0xff] %v419_v27  ;;  %v414_v30 = vsel %vm378_vm11, %v362_v19, %v398_v25  ;;  %v406_v33 = vmul.f32 %v662_v48, %v370_v28 }
 0x11a   :  { %430 = vst [vmem:[%s818_s4 + $0x38] sm:$0xff] %v414_v30  ;;  %vm376_vm14 = vcmp.ge.f32.partialorder %v360_v31, 0.0  ;;  %v396_v34 = vmul.f32 %v662_v48, %v360_v31  ;;  %v335_v35 = vsel %vm299_vm12, %v283_v23, %v319_v32 }
 0x11b   :  { %v422_v36 = vsel %vm386_vm13, %v370_v28, %v406_v33  ;;  %v368_v37 = vadd.f32 %v352_v18, %v335_v35 }
 0x11c   :  { %438 = vst [vmem:[%s818_s4 + $0x78] sm:$0xff] %v422_v36  ;;  %v412_v24 = vsel %vm376_vm14, %v360_v31, %v396_v34 }
 0x11d   :  { %428 = vst [vmem:[%s818_s4 + $0x28] sm:$0xff] %v412_v24  ;;  %vm384_vm15 = vcmp.ge.f32.partialorder %v368_v37, 0.0  ;;  %v404_v38 = vmul.f32 %v662_v48, %v368_v37 }
 0x11f   :  { %v420_v39 = vsel %vm384_vm15, %v368_v37, %v404_v38 }
 0x120   :  { %436 = vst [vmem:[%s818_s4 + $0x68] sm:$0xff] %v420_v39 }

// kernel: _lambda_.174
= control target key start
LH: loop header
LB: loop body
LE: loop exit
PB: predicated region body
PF: predicated region fallthrough
CT: control target
= control target key end

     0   :  { %s988_s1 = inlined_call_operand.vmem [shape: bf16[256,128], index: 1, kind: input, shape index: {}]   ;;  %s989_s0 = inlined_call_operand.vmem [shape: bf16[128,256], index: 0, kind: input, shape index: {}]   ;;  %s990_s2 = inlined_call_operand.vmem [shape: f32[4,128], index: 2, kind: input, shape index: {}]   ;;  %s991_s3 = inlined_call_operand.vmem [shape: bf16[128,128], index: 3, kind: output, shape index: {}]  }
   0x1   :  { %v726_v0 = vld [vmem:[%s988_s1 + $0x40] sm:$0xff]   ;;  %v728_v2 = vld [vmem:[%s988_s1 + $0x48] sm:$0xff]   ;;  %v730_v4 = vld [vmem:[%s988_s1 + $0x50] sm:$0xff]  }
   0x2   :  { %v727_v1 = vld [vmem:[%s988_s1] sm:$0xff]   ;;  %645 = vmatprep.subr.bf16.mxu0 %v726_v0  ;;  %709 = vmatprep.subr.bf16.mxu1 %v726_v0  ;;  %v729_v3 = vld [vmem:[%s988_s1 + $0x8] sm:$0xff]   ;;  %v731_v5 = vld [vmem:[%s988_s1 + $0x10] sm:$0xff]  }
   0x3   :  { %646 = vmatpush3.bf16.msra.mxu0 %v727_v1  ;;  %717 = vmatpush3.bf16.msra.mxu1 %v727_v1  ;;  %v732_v6 = vld [vmem:[%s988_s1 + $0x58] sm:$0xff]   ;;  %v734_v8 = vld [vmem:[%s988_s1 + $0x60] sm:$0xff]   ;;  %v736_v10 = vld [vmem:[%s988_s1 + $0x68] sm:$0xff]  }
   0x4   :  { %647 = vmatprep.subr.bf16.mxu0 %v728_v2  ;;  %710 = vmatprep.subr.bf16.mxu1 %v728_v2  ;;  %v733_v7 = vld [vmem:[%s988_s1 + $0x18] sm:$0xff]   ;;  %v735_v9 = vld [vmem:[%s988_s1 + $0x20] sm:$0xff]   ;;  %v737_v13 = vld [vmem:[%s988_s1 + $0x28] sm:$0xff]  }
   0x5   :  { %v744_v11 = vld [vmem:[%s989_s0 + $0x4] ss:$8 sps:$4 sm:$0xff]   ;;  %v738_v14 = vld [vmem:[%s988_s1 + $0x70] sm:$0xff]   ;;  %v740_v16 = vld [vmem:[%s988_s1 + $0x78] sm:$0xff]  }
   0x6   :  { %v747_v12 = vld [vmem:[%s989_s0 + $0x44] ss:$8 sps:$4 sm:$0xff]   ;;  %271 = vmatprep.mubr.bf16.mxu0 %v744_v11  ;;  %v739_v15 = vld [vmem:[%s988_s1 + $0x30] sm:$0xff]   ;;  %v741_v17 = vld [vmem:[%s988_s1 + $0x38] sm:$0xff]  }
   0x7   :  { %648 = vmatpush3.bf16.msra.mxu0 %v729_v3  ;;  %718 = vmatpush3.bf16.msra.mxu1 %v729_v3  ;;  %v742_v18 = vld [vmem:[%s989_s0] ss:$8 sps:$4 sm:$0xff]   ;;  %v748_v20 = vld [vmem:[%s989_s0 + $0x14] ss:$8 sps:$4 sm:$0xff]   ;;  %v752_v22 = vld [vmem:[%s989_s0 + $0x10] ss:$8 sps:$4 sm:$0xff]  }
   0x8   :  { %649 = vmatprep.subr.bf16.mxu0 %v730_v4  ;;  %711 = vmatprep.subr.bf16.mxu1 %v730_v4  ;;  %v745_v19 = vld [vmem:[%s989_s0 + $0x40] ss:$8 sps:$4 sm:$0xff]   ;;  %v750_v21 = vld [vmem:[%s989_s0 + $0x54] ss:$8 sps:$4 sm:$0xff]   ;;  %v753_v23 = vld [vmem:[%s989_s0 + $0x50] ss:$8 sps:$4 sm:$0xff]  }
   0x9   :  { %303 = vmatprep.mubr.bf16.mxu1 %v747_v12  ;;  %v754_v24 = vld [vmem:[%s989_s0 + $0x24] ss:$8 sps:$4 sm:$0xff]   ;;  %v758_v26 = vld [vmem:[%s989_s0 + $0x20] ss:$8 sps:$4 sm:$0xff]   ;;  %v760_v28 = vld [vmem:[%s989_s0 + $0x34] ss:$8 sps:$4 sm:$0xff]  }
   0xa   :  { %v756_v25 = vld [vmem:[%s989_s0 + $0x64] ss:$8 sps:$4 sm:$0xff]   ;;  %v759_v27 = vld [vmem:[%s989_s0 + $0x60] ss:$8 sps:$4 sm:$0xff]   ;;  %v762_v29 = vld [vmem:[%s989_s0 + $0x74] ss:$8 sps:$4 sm:$0xff]  }
   0xb   :  { %650 = vmatpush3.bf16.msra.mxu0 %v731_v5  ;;  %719 = vmatpush3.bf16.msra.mxu1 %v731_v5  ;;  %v764_v30 = vld [vmem:[%s989_s0 + $0x30] ss:$8 sps:$4 sm:$0xff]   ;;  %v886_v35 = vld [vmem:[%s990_s2] ss:$0 sm:$0xff]  ;;  %v891_v41 = vld [vmem:[%s990_s2 + $0x1] ss:$0 sm:$0xff] }
   0xc   :  { %651 = vmatprep.subr.bf16.mxu0 %v732_v6  ;;  %712 = vmatprep.subr.bf16.mxu1 %v732_v6  ;;  %v765_v31 = vld [vmem:[%s989_s0 + $0x70] ss:$8 sps:$4 sm:$0xff]   ;;  %v898_v48 = vld [vmem:[%s990_s2 + $0x2] ss:$0 sm:$0xff]  ;;  %v766_v6 = vmov -1.0  }
   0xf   :  { %652 = vmatpush3.bf16.msra.mxu0 %v733_v7  ;;  %720 = vmatpush3.bf16.msra.mxu1 %v733_v7 }
  0x10   :  { %653 = vmatprep.subr.bf16.mxu0 %v734_v8  ;;  %713 = vmatprep.subr.bf16.mxu1 %v734_v8 }
  0x13   :  { %654 = vmatpush3.bf16.msra.mxu0 %v735_v9  ;;  %721 = vmatpush3.bf16.msra.mxu1 %v735_v9 }
  0x14   :  { %655 = vmatprep.subr.bf16.mxu0 %v736_v10  ;;  %714 = vmatprep.subr.bf16.mxu1 %v736_v10 }
  0x17   :  { %656 = vmatpush3.bf16.msra.mxu0 %v737_v13  ;;  %722 = vmatpush3.bf16.msra.mxu1 %v737_v13 }
  0x18   :  { %657 = vmatprep.subr.bf16.mxu0 %v738_v14  ;;  %715 = vmatprep.subr.bf16.mxu1 %v738_v14 }
  0x1b   :  { %658 = vmatpush3.bf16.msra.mxu0 %v739_v15  ;;  %723 = vmatpush3.bf16.msra.mxu1 %v739_v15 }
  0x1c   :  { %659 = vmatprep.subr.bf16.mxu0 %v740_v16  ;;  %716 = vmatprep.subr.bf16.mxu1 %v740_v16 }
  0x1f   :  { %660 = vmatpush3.bf16.msra.mxu0 %v741_v17  ;;  %724 = vmatpush3.bf16.msra.mxu1 %v741_v17 }
  0x22   :  { %272 = vmatmul.mubr.bf16.vlgmr.msra.gmra.mrb[0].mxu0 %v742_v18  ;;  %304 = vmatmul.mubr.bf16.vlgmr.msra.gmra.mrb[0].mxu1 %v745_v19 }
  0x23   :  { %279 = vmatprep.mubr.bf16.mxu0 %v748_v20  ;;  %311 = vmatprep.mubr.bf16.mxu1 %v750_v21 }
  0x2a   :  { %280 = vmatmul.mubr.bf16.gmra.mrb[4].mxu0 %v752_v22  ;;  %312 = vmatmul.mubr.bf16.gmra.mrb[4].mxu1 %v753_v23 }
  0x2b   :  { %287 = vmatprep.mubr.bf16.mxu0 %v754_v24  ;;  %319 = vmatprep.mubr.bf16.mxu1 %v756_v25 }
  0x32   :  { %288 = vmatmul.mubr.bf16.gmra.mrb[8].mxu0 %v758_v26  ;;  %320 = vmatmul.mubr.bf16.gmra.mrb[8].mxu1 %v759_v27 }
  0x33   :  { %295 = vmatprep.mubr.bf16.mxu0 %v760_v28  ;;  %327 = vmatprep.mubr.bf16.mxu1 %v762_v29 }
  0x3a   :  { %296 = vmatmul.mubr.bf16.gmra.mrb[12].mxu0 %v764_v30  ;;  %328 = vmatmul.mubr.bf16.gmra.mrb[12].mxu1 %v765_v31 }
  0xf5   :  { %v661_v32 = vpop.f32.mrb[0].mxu0  ;;  %v685_v33 = vpop.f32.mrb[0].mxu1 }
  0xf6   :  { %v662_v34 = vpop.f32.mrb[1].mxu0  ;;  %v686_v36 = vpop.f32.mrb[1].mxu1 }
  0xf7   :  { %v663_v37 = vadd.f32 %v662_v34, %v661_v32  ;;  %v687_v38 = vadd.f32 %v686_v36, %v685_v33  ;;  %v664_v39 = vpop.f32.mrb[2].mxu0  ;;  %v688_v40 = vpop.f32.mrb[2].mxu1 }
  0xf8   :  { %v665_v42 = vpop.f32.mrb[3].mxu0  ;;  %v689_v43 = vpop.f32.mrb[3].mxu1 }
  0xf9   :  { %v343_v44 = vmul.f32 %v663_v37, %v886_v35  ;;  %v351_v45 = vmul.f32 %v687_v38, %v886_v35  ;;  %v666_v46 = vadd.f32 %v665_v42, %v664_v39  ;;  %v690_v47 = vadd.f32 %v689_v43, %v688_v40 }
  0xfb   :  { %v363_v49 = vadd.f32 %v891_v41, %v343_v44  ;;  %v371_v50 = vadd.f32 %v891_v41, %v351_v45  ;;  %v344_v51 = vmul.f32 %v666_v46, %v886_v35  ;;  %v352_v52 = vmul.f32 %v690_v47, %v886_v35 }
  0xfd   :  { %vm379_vm0 = vcmp.ge.f32.partialorder %v363_v49, 0.0  ;;  %v399_v53 = vmul.f32 %v898_v48, %v363_v49  ;;  %vm387_vm1 = vcmp.ge.f32.partialorder %v371_v50, 0.0  ;;  %v407_v54 = vmul.f32 %v898_v48, %v371_v50  ;;  %v667_v55 = vpop.f32.mrb[4].mxu0  ;;  %v691_v56 = vpop.f32.mrb[4].mxu1 }
  0xfe   :  { %v364_v57 = vadd.f32 %v891_v41, %v344_v51  ;;  %v372_v58 = vadd.f32 %v891_v41, %v352_v52  ;;  %v668_v59 = vpop.f32.mrb[5].mxu0  ;;  %v692_v60 = vpop.f32.mrb[5].mxu1 }
  0xff   :  { %v415_v61 = vsel %vm379_vm0, %v363_v49, %v399_v53  ;;  %v423_v62 = vsel %vm387_vm1, %v371_v50, %v407_v54  ;;  %v669_v63 = vadd.f32 %v668_v59, %v667_v55  ;;  %v693_v0 = vadd.f32 %v692_v60, %v691_v56  ;;  %v670_v1 = vpop.f32.mrb[6].mxu0  ;;  %v694_v2 = vpop.f32.mrb[6].mxu1 }
 0x100   :  { %vm431_vm2 = vcmp.gt.f32.partialorder %v415_v61, 0.0  ;;  %vm439_vm3 = vcmp.gt.f32.partialorder %v423_v62, 0.0  ;;  %vm380_vm4 = vcmp.ge.f32.partialorder %v364_v57, 0.0  ;;  %v400_v3 = vmul.f32 %v898_v48, %v364_v57  ;;  %v671_v4 = vpop.f32.mrb[7].mxu0  ;;  %v695_v5 = vpop.f32.mrb[7].mxu1 }
 0x101   :  { %v447_v7 = vsel %vm431_vm2, 1.0, %v766_v6  ;;  %vm388_vm5 = vcmp.ge.f32.partialorder %v372_v58, 0.0  ;;  %v408_v8 = vmul.f32 %v898_v48, %v372_v58  ;;  %v345_v10 = vmul.f32 %v669_v63, %v886_v35 }
 0x102   :  { %v416_v9 = vsel %vm380_vm4, %v364_v57, %v400_v3  ;;  %v353_v11 = vmul.f32 %v693_v0, %v886_v35  ;;  %v672_v12 = vadd.f32 %v671_v4, %v670_v1  ;;  %v455_v13 = vsel %vm439_vm3, 1.0, %v766_v6 }
 0x103   :  { %vm432_vm6 = vcmp.gt.f32.partialorder %v416_v9, 0.0  ;;  %v424_v14 = vsel %vm388_vm5, %v372_v58, %v408_v8  ;;  %v696_v15 = vadd.f32 %v695_v5, %v694_v2  ;;  %v365_v17 = vadd.f32 %v891_v41, %v345_v10 }
 0x104   :  { %v448_v16 = vsel %vm432_vm6, 1.0, %v766_v6  ;;  %vm440_vm7 = vcmp.gt.f32.partialorder %v424_v14, 0.0  ;;  %v373_v18 = vadd.f32 %v891_v41, %v353_v11  ;;  %v346_v21 = vmul.f32 %v672_v12, %v886_v35 }
 0x105   :  { %v615_v19 = vpack.c.bf16 %v448_v16, %v447_v7  ;;  %v456_v20 = vsel %vm440_vm7, 1.0, %v766_v6  ;;  %v354_v22 = vmul.f32 %v696_v15, %v886_v35  ;;  %v673_v23 = vpop.f32.mrb[8].mxu0  ;;  %v697_v24 = vpop.f32.mrb[8].mxu1  ;;  %vm381_vm8 = vcmp.ge.f32.partialorder %v365_v17, 0.0 }
 0x106   :  { %v627_v25 = vpack.c.bf16 %v456_v20, %v455_v13  ;;  %v401_v26 = vmul.f32 %v898_v48, %v365_v17  ;;  %vm389_vm9 = vcmp.ge.f32.partialorder %v373_v18, 0.0  ;;  %v674_v27 = vpop.f32.mrb[9].mxu0  ;;  %v698_v28 = vpop.f32.mrb[9].mxu1  ;;  %v409_v29 = vmul.f32 %v898_v48, %v373_v18 }
 0x107   :  { %616 = vst [vmem:[%s991_s3] sm:$0xff] %v615_v19   ;;  %v366_v30 = vadd.f32 %v891_v41, %v346_v21  ;;  %v374_v31 = vadd.f32 %v891_v41, %v354_v22  ;;  %v675_v32 = vadd.f32 %v674_v27, %v673_v23  ;;  %v676_v33 = vpop.f32.mrb[10].mxu0  ;;  %v700_v34 = vpop.f32.mrb[10].mxu1  ;;  %v699_v37 = vadd.f32 %v698_v28, %v697_v24 }
 0x108   :  { %641 = vst [vmem:[%s991_s3 + $0x20] sm:$0xff] %v627_v25   ;;  %v417_v36 = vsel %vm381_vm8, %v365_v17, %v401_v26  ;;  %v677_v38 = vpop.f32.mrb[11].mxu0  ;;  %v701_v39 = vpop.f32.mrb[11].mxu1  ;;  %v425_v40 = vsel %vm389_vm9, %v373_v18, %v409_v29 }
 0x109   :  { %vm433_vm10 = vcmp.gt.f32.partialorder %v417_v36, 0.0  ;;  %vm382_vm11 = vcmp.ge.f32.partialorder %v366_v30, 0.0  ;;  %v402_v42 = vmul.f32 %v898_v48, %v366_v30  ;;  %vm441_vm12 = vcmp.gt.f32.partialorder %v425_v40, 0.0 }
 0x10a   :  { %v449_v43 = vsel %vm433_vm10, 1.0, %v766_v6  ;;  %vm390_vm13 = vcmp.ge.f32.partialorder %v374_v31, 0.0  ;;  %v410_v44 = vmul.f32 %v898_v48, %v374_v31  ;;  %v457_v45 = vsel %vm441_vm12, 1.0, %v766_v6 }
 0x10b   :  { %v418_v46 = vsel %vm382_vm11, %v366_v30, %v402_v42  ;;  %v347_v47 = vmul.f32 %v675_v32, %v886_v35  ;;  %v355_v49 = vmul.f32 %v699_v37, %v886_v35  ;;  %v678_v51 = vadd.f32 %v677_v38, %v676_v33 }
 0x10c   :  { %vm434_vm14 = vcmp.gt.f32.partialorder %v418_v46, 0.0  ;;  %v426_v50 = vsel %vm390_vm13, %v374_v31, %v410_v44  ;;  %v702_v52 = vadd.f32 %v701_v39, %v700_v34 }
 0x10d   :  { %v450_v53 = vsel %vm434_vm14, 1.0, %v766_v6  ;;  %vm442_vm15 = vcmp.gt.f32.partialorder %v426_v50, 0.0  ;;  %v367_v54 = vadd.f32 %v891_v41, %v347_v47  ;;  %v375_v55 = vadd.f32 %v891_v41, %v355_v49  ;;  %v679_v56 = vpop.f32.mrb[12].mxu0  ;;  %v703_v57 = vpop.f32.mrb[12].mxu1 }
 0x10e   :  { %v618_v58 = vpack.c.bf16 %v450_v53, %v449_v43  ;;  %v458_v59 = vsel %vm442_vm15, 1.0, %v766_v6  ;;  %v348_v60 = vmul.f32 %v678_v51, %v886_v35  ;;  %v356_v61 = vmul.f32 %v702_v52, %v886_v35  ;;  %v680_v62 = vpop.f32.mrb[13].mxu0  ;;  %v704_v63 = vpop.f32.mrb[13].mxu1 }
 0x10f   :  { %v630_v0 = vpack.c.bf16 %v458_v59, %v457_v45  ;;  %vm383_vm0 = vcmp.ge.f32.partialorder %v367_v54, 0.0  ;;  %v403_v1 = vmul.f32 %v898_v48, %v367_v54  ;;  %vm391_vm1 = vcmp.ge.f32.partialorder %v375_v55, 0.0  ;;  %v682_v2 = vpop.f32.mrb[14].mxu0  ;;  %v706_v3 = vpop.f32.mrb[14].mxu1 }
 0x110   :  { %638 = vst [vmem:[%s991_s3 + $0x8] sm:$0xff] %v618_v58   ;;  %v411_v4 = vmul.f32 %v898_v48, %v375_v55  ;;  %v368_v5 = vadd.f32 %v891_v41, %v348_v60  ;;  %v376_v7 = vadd.f32 %v891_v41, %v356_v61  ;;  %v681_v8 = vadd.f32 %v680_v62, %v679_v56  ;;  %v683_v9 = vpop.f32.mrb[15].mxu0  ;;  %v707_v10 = vpop.f32.mrb[15].mxu1 }
 0x111   :  { %642 = vst [vmem:[%s991_s3 + $0x28] sm:$0xff] %v630_v0   ;;  %v419_v11 = vsel %vm383_vm0, %v367_v54, %v403_v1  ;;  %v705_v12 = vadd.f32 %v704_v63, %v703_v57  ;;  %v684_v13 = vadd.f32 %v683_v9, %v682_v2  ;;  %v708_v14 = vadd.f32 %v707_v10, %v706_v3 }
 0x112   :  { %vm435_vm2 = vcmp.gt.f32.partialorder %v419_v11, 0.0  ;;  %v427_v15 = vsel %vm391_vm1, %v375_v55, %v411_v4  ;;  %vm384_vm3 = vcmp.ge.f32.partialorder %v368_v5, 0.0  ;;  %v404_v16 = vmul.f32 %v898_v48, %v368_v5 }
 0x113   :  { %v451_v17 = vsel %vm435_vm2, 1.0, %v766_v6  ;;  %vm443_vm4 = vcmp.gt.f32.partialorder %v427_v15, 0.0  ;;  %vm392_vm5 = vcmp.ge.f32.partialorder %v376_v7, 0.0  ;;  %v412_v18 = vmul.f32 %v898_v48, %v376_v7 }
 0x114   :  { %v459_v19 = vsel %vm443_vm4, 1.0, %v766_v6  ;;  %v420_v20 = vsel %vm384_vm3, %v368_v5, %v404_v16  ;;  %v349_v21 = vmul.f32 %v681_v8, %v886_v35  ;;  %v357_v22 = vmul.f32 %v705_v12, %v886_v35 }
 0x115   :  { %vm436_vm6 = vcmp.gt.f32.partialorder %v420_v20, 0.0  ;;  %v428_v23 = vsel %vm392_vm5, %v376_v7, %v412_v18  ;;  %v350_v24 = vmul.f32 %v684_v13, %v886_v35  ;;  %v358_v25 = vmul.f32 %v708_v14, %v886_v35 }
 0x116   :  { %v452_v26 = vsel %vm436_vm6, 1.0, %v766_v6  ;;  %vm444_vm7 = vcmp.gt.f32.partialorder %v428_v23, 0.0  ;;  %v369_v27 = vadd.f32 %v891_v41, %v349_v21  ;;  %v377_v28 = vadd.f32 %v891_v41, %v357_v22 }
 0x117   :  { %v621_v29 = vpack.c.bf16 %v452_v26, %v451_v17  ;;  %v460_v30 = vsel %vm444_vm7, 1.0, %v766_v6  ;;  %v370_v31 = vadd.f32 %v891_v41, %v350_v24  ;;  %v378_v32 = vadd.f32 %v891_v41, %v358_v25 }
 0x118   :  { %v633_v33 = vpack.c.bf16 %v460_v30, %v459_v19  ;;  %vm385_vm8 = vcmp.ge.f32.partialorder %v369_v27, 0.0  ;;  %v405_v34 = vmul.f32 %v898_v48, %v369_v27  ;;  %vm393_vm9 = vcmp.ge.f32.partialorder %v377_v28, 0.0 }
 0x119   :  { %639 = vst [vmem:[%s991_s3 + $0x10] sm:$0xff] %v621_v29   ;;  %v413_v35 = vmul.f32 %v898_v48, %v377_v28  ;;  %vm386_vm10 = vcmp.ge.f32.partialorder %v370_v31, 0.0  ;;  %v406_v36 = vmul.f32 %v898_v48, %v370_v31  ;;  %vm394_vm11 = vcmp.ge.f32.partialorder %v378_v32, 0.0 }
 0x11a   :  { %643 = vst [vmem:[%s991_s3 + $0x30] sm:$0xff] %v633_v33   ;;  %v421_v41 = vsel %vm385_vm8, %v369_v27, %v405_v34  ;;  %v414_v37 = vmul.f32 %v898_v48, %v378_v32 }
 0x11b   :  { %vm437_vm12 = vcmp.gt.f32.partialorder %v421_v41, 0.0  ;;  %v429_v38 = vsel %vm393_vm9, %v377_v28, %v413_v35  ;;  %v422_v39 = vsel %vm386_vm10, %v370_v31, %v406_v36 }
 0x11c   :  { %vm445_vm13 = vcmp.gt.f32.partialorder %v429_v38, 0.0  ;;  %vm438_vm14 = vcmp.gt.f32.partialorder %v422_v39, 0.0  ;;  %v430_v40 = vsel %vm394_vm11, %v378_v32, %v414_v37  ;;  %v453_v42 = vsel %vm437_vm12, 1.0, %v766_v6 }
 0x11d   :  { %v454_v43 = vsel %vm438_vm14, 1.0, %v766_v6  ;;  %vm446_vm15 = vcmp.gt.f32.partialorder %v430_v40, 0.0  ;;  %v461_v44 = vsel %vm445_vm13, 1.0, %v766_v6 }
 0x11e   :  { %v624_v45 = vpack.c.bf16 %v454_v43, %v453_v42  ;;  %v462_v46 = vsel %vm446_vm15, 1.0, %v766_v6 }
 0x11f   :  { %v636_v47 = vpack.c.bf16 %v462_v46, %v461_v44 }
 0x120   :  { %640 = vst [vmem:[%s991_s3 + $0x18] sm:$0xff] %v624_v45  }
 0x121   :  { %644 = vst [vmem:[%s991_s3 + $0x38] sm:$0xff] %v636_v47  }

// kernel: _lambda_.176
= control target key start
LH: loop header
LB: loop body
LE: loop exit
PB: predicated region body
PF: predicated region fallthrough
CT: control target
= control target key end

     0   :  { %v590_v8 = vmov -1.0   ;;  %s802_s1 = inlined_call_operand.vmem [shape: bf16[128,128], index: 1, kind: input, shape index: {}]   ;;  %s803_s0 = inlined_call_operand.vmem [shape: f32[128,128], index: 0, kind: input, shape index: {}]   ;;  %s804_s2 = inlined_call_operand.vmem [shape: f32[4,128], index: 2, kind: input, shape index: {}]   ;;  %s805_s3 = inlined_call_operand.vmem [shape: bf16[128,128], index: 3, kind: output, shape index: {}]  }
   0x1   :  { %v582_v0 = vld [vmem:[%s802_s1] sm:$0xff]   ;;  %v583_v1 = vld [vmem:[%s802_s1 + $0x8] sm:$0xff]   ;;  %v584_v2 = vld [vmem:[%s802_s1 + $0x10] sm:$0xff]  }
   0x2   :  { %533 = vmatprep.subr.bf16.mxu0 %v582_v0  ;;  %565 = vmatprep.subr.bf16.mxu1 %v582_v0  ;;  %v585_v3 = vld [vmem:[%s802_s1 + $0x18] sm:$0xff]   ;;  %v15_v4 = vld [vmem:[%s803_s0] sm:$0xff]  ;;  %v16_v5 = vld [vmem:[%s803_s0 + $0x8] sm:$0xff] }
   0x3   :  { %534 = vmatpush3.bf16.msra.mxu0 %v582_v0  ;;  %573 = vmatpush3.bf16.msra.mxu1 %v582_v0  ;;  %v23_v6 = vld [vmem:[%s803_s0 + $0x40] sm:$0xff]  ;;  %vm31_vm0 = vcmp.gt.f32.partialorder %v15_v4, 0.0  ;;  %vm32_vm1 = vcmp.gt.f32.partialorder %v16_v5, 0.0  ;;  %v24_v7 = vld [vmem:[%s803_s0 + $0x48] sm:$0xff]  ;;  %v588_v17 = vld [vmem:[%s802_s1 + $0x30] sm:$0xff]  }
   0x4   :  { %535 = vmatprep.subr.bf16.mxu0 %v583_v1  ;;  %566 = vmatprep.subr.bf16.mxu1 %v583_v1  ;;  %vm39_vm2 = vcmp.gt.f32.partialorder %v23_v6, 0.0  ;;  %v47_v9 = vsel %vm31_vm0, 1.0, %v590_v8  ;;  %v48_v10 = vsel %vm32_vm1, 1.0, %v590_v8  ;;  %vm40_vm3 = vcmp.gt.f32.partialorder %v24_v7, 0.0  ;;  %v586_v14 = vld [vmem:[%s802_s1 + $0x20] sm:$0xff]   ;;  %v587_v16 = vld [vmem:[%s802_s1 + $0x28] sm:$0xff]  }
   0x5   :  { %v55_v11 = vsel %vm39_vm2, 1.0, %v590_v8  ;;  %v63_v12 = vpack.c.bf16 %v48_v10, %v47_v9  ;;  %v56_v13 = vsel %vm40_vm3, 1.0, %v590_v8  ;;  %v17_v18 = vld [vmem:[%s803_s0 + $0x10] sm:$0xff]  ;;  %v18_v19 = vld [vmem:[%s803_s0 + $0x18] sm:$0xff]  ;;  %v19_v22 = vld [vmem:[%s803_s0 + $0x20] sm:$0xff] }
   0x6   :  { %v67_v15 = vpack.c.bf16 %v56_v13, %v55_v11  ;;  %v25_v20 = vld [vmem:[%s803_s0 + $0x50] sm:$0xff]  ;;  %v26_v21 = vld [vmem:[%s803_s0 + $0x58] sm:$0xff]  ;;  %v20_v23 = vld [vmem:[%s803_s0 + $0x28] sm:$0xff]  ;;  %vm33_vm4 = vcmp.gt.f32.partialorder %v17_v18, 0.0  ;;  %vm34_vm5 = vcmp.gt.f32.partialorder %v18_v19, 0.0  ;;  %vm35_vm8 = vcmp.gt.f32.partialorder %v19_v22, 0.0 }
   0x7   :  { %536 = vmatpush3.bf16.msra.mxu0 %v583_v1  ;;  %574 = vmatpush3.bf16.msra.mxu1 %v583_v1  ;;  %v27_v24 = vld [vmem:[%s803_s0 + $0x60] sm:$0xff]  ;;  %v28_v25 = vld [vmem:[%s803_s0 + $0x68] sm:$0xff]  ;;  %v589_v26 = vld [vmem:[%s802_s1 + $0x38] sm:$0xff]   ;;  %vm41_vm6 = vcmp.gt.f32.partialorder %v25_v20, 0.0  ;;  %vm42_vm7 = vcmp.gt.f32.partialorder %v26_v21, 0.0  ;;  %vm36_vm9 = vcmp.gt.f32.partialorder %v20_v23, 0.0 }
   0x8   :  { %537 = vmatprep.subr.bf16.mxu0 %v584_v2  ;;  %567 = vmatprep.subr.bf16.mxu1 %v584_v2  ;;  %vm43_vm10 = vcmp.gt.f32.partialorder %v27_v24, 0.0  ;;  %vm44_vm11 = vcmp.gt.f32.partialorder %v28_v25, 0.0  ;;  %v49_v27 = vsel %vm33_vm4, 1.0, %v590_v8  ;;  %v50_v28 = vsel %vm34_vm5, 1.0, %v590_v8  ;;  %v21_v35 = vld [vmem:[%s803_s0 + $0x30] sm:$0xff]  ;;  %v22_v36 = vld [vmem:[%s803_s0 + $0x38] sm:$0xff] }
   0x9   :  { %549 = vmatprep.mubr.bf16.mxu0 %v63_v12  ;;  %557 = vmatprep.mubr.bf16.mxu1 %v67_v15  ;;  %v57_v29 = vsel %vm41_vm6, 1.0, %v590_v8  ;;  %v58_v30 = vsel %vm42_vm7, 1.0, %v590_v8  ;;  %v51_v31 = vsel %vm35_vm8, 1.0, %v590_v8  ;;  %v52_v32 = vsel %vm36_vm9, 1.0, %v590_v8  ;;  %v29_v37 = vld [vmem:[%s803_s0 + $0x70] sm:$0xff]  ;;  %v30_v38 = vld [vmem:[%s803_s0 + $0x78] sm:$0xff] }
   0xa   :  { %v59_v33 = vsel %vm43_vm10, 1.0, %v590_v8  ;;  %v60_v34 = vsel %vm44_vm11, 1.0, %v590_v8  ;;  %v64_v39 = vpack.c.bf16 %v50_v28, %v49_v27  ;;  %v68_v40 = vpack.c.bf16 %v58_v30, %v57_v29  ;;  %v702_v49 = vld [vmem:[%s804_s2] ss:$0 sm:$0xff]  ;;  %v707_v51 = vld [vmem:[%s804_s2 + $0x1] ss:$0 sm:$0xff] }
   0xb   :  { %538 = vmatpush3.bf16.msra.mxu0 %v584_v2  ;;  %575 = vmatpush3.bf16.msra.mxu1 %v584_v2  ;;  %v65_v41 = vpack.c.bf16 %v52_v32, %v51_v31  ;;  %v69_v42 = vpack.c.bf16 %v60_v34, %v59_v33  ;;  %vm37_vm12 = vcmp.gt.f32.partialorder %v21_v35, 0.0  ;;  %vm38_vm13 = vcmp.gt.f32.partialorder %v22_v36, 0.0  ;;  %v714_v57 = vld [vmem:[%s804_s2 + $0x2] ss:$0 sm:$0xff] }
   0xc   :  { %539 = vmatprep.subr.bf16.mxu0 %v585_v3  ;;  %568 = vmatprep.subr.bf16.mxu1 %v585_v3  ;;  %vm45_vm14 = vcmp.gt.f32.partialorder %v29_v37, 0.0  ;;  %vm46_vm15 = vcmp.gt.f32.partialorder %v30_v38, 0.0  ;;  %v53_v43 = vsel %vm37_vm12, 1.0, %v590_v8  ;;  %v54_v44 = vsel %vm38_vm13, 1.0, %v590_v8 }
   0xd   :  { %v61_v45 = vsel %vm45_vm14, 1.0, %v590_v8  ;;  %v62_v46 = vsel %vm46_vm15, 1.0, %v590_v8  ;;  %v66_v47 = vpack.c.bf16 %v54_v44, %v53_v43 }
   0xe   :  { %v70_v48 = vpack.c.bf16 %v62_v46, %v61_v45 }
   0xf   :  { %540 = vmatpush3.bf16.msra.mxu0 %v585_v3  ;;  %576 = vmatpush3.bf16.msra.mxu1 %v585_v3 }
  0x10   :  { %541 = vmatprep.subr.bf16.mxu0 %v586_v14  ;;  %569 = vmatprep.subr.bf16.mxu1 %v586_v14 }
  0x13   :  { %542 = vmatpush3.bf16.msra.mxu0 %v586_v14  ;;  %577 = vmatpush3.bf16.msra.mxu1 %v586_v14 }
  0x14   :  { %543 = vmatprep.subr.bf16.mxu0 %v587_v16  ;;  %570 = vmatprep.subr.bf16.mxu1 %v587_v16 }
  0x17   :  { %544 = vmatpush3.bf16.msra.mxu0 %v587_v16  ;;  %578 = vmatpush3.bf16.msra.mxu1 %v587_v16 }
  0x18   :  { %545 = vmatprep.subr.bf16.mxu0 %v588_v17  ;;  %571 = vmatprep.subr.bf16.mxu1 %v588_v17 }
  0x1b   :  { %546 = vmatpush3.bf16.msra.mxu0 %v588_v17  ;;  %579 = vmatpush3.bf16.msra.mxu1 %v588_v17 }
  0x1c   :  { %547 = vmatprep.subr.bf16.mxu0 %v589_v26  ;;  %572 = vmatprep.subr.bf16.mxu1 %v589_v26 }
  0x1f   :  { %548 = vmatpush3.bf16.msra.mxu0 %v589_v26  ;;  %580 = vmatpush3.bf16.msra.mxu1 %v589_v26 }
  0x22   :  { %550 = vmatmul.mubr.bf16.vlgmr.msra.gmra.mrb[0].mxu0 %v64_v39  ;;  %558 = vmatmul.mubr.bf16.vlgmr.msra.gmra.mrb[0].mxu1 %v68_v40 }
  0x23   :  { %553 = vmatprep.mubr.bf16.mxu0 %v65_v41  ;;  %561 = vmatprep.mubr.bf16.mxu1 %v69_v42 }
  0x2a   :  { %554 = vmatmul.mubr.bf16.gmra.mrb[4].mxu0 %v66_v47  ;;  %562 = vmatmul.mubr.bf16.gmra.mrb[4].mxu1 %v70_v48 }
  0xf5   :  { %v551_v50 = vpop.f32.mrb[0].mxu0  ;;  %v559_v52 = vpop.f32.mrb[0].mxu1 }
  0xf6   :  { %v241_v53 = vmul.f32 %v551_v50, %v702_v49  ;;  %v249_v54 = vmul.f32 %v559_v52, %v702_v49  ;;  %v169_v55 = vpop.f32.mrb[1].mxu0  ;;  %v201_v56 = vpop.f32.mrb[1].mxu1 }
  0xf7   :  { %v239_v58 = vmul.f32 %v702_v49, %v169_v55  ;;  %v247_v59 = vmul.f32 %v702_v49, %v201_v56  ;;  %v552_v60 = vpop.f32.mrb[2].mxu0  ;;  %v560_v61 = vpop.f32.mrb[2].mxu1 }
  0xf8   :  { %v261_v62 = vadd.f32 %v707_v51, %v241_v53  ;;  %v269_v63 = vadd.f32 %v707_v51, %v249_v54  ;;  %v242_v0 = vmul.f32 %v552_v60, %v702_v49  ;;  %v250_v1 = vmul.f32 %v560_v61, %v702_v49  ;;  %v172_v2 = vpop.f32.mrb[3].mxu0  ;;  %v204_v3 = vpop.f32.mrb[3].mxu1 }
  0xf9   :  { %v259_v4 = vadd.f32 %v707_v51, %v239_v58  ;;  %v267_v5 = vadd.f32 %v707_v51, %v247_v59  ;;  %v240_v6 = vmul.f32 %v702_v49, %v172_v2  ;;  %v248_v7 = vmul.f32 %v702_v49, %v204_v3 }
  0xfa   :  { %vm277_vm0 = vcmp.ge.f32.partialorder %v261_v62, 0.0  ;;  %v297_v9 = vmul.f32 %v714_v57, %v261_v62  ;;  %vm285_vm1 = vcmp.ge.f32.partialorder %v269_v63, 0.0  ;;  %v305_v10 = vmul.f32 %v714_v57, %v269_v63 }
  0xfb   :  { %vm275_vm2 = vcmp.ge.f32.partialorder %v259_v4, 0.0  ;;  %v295_v11 = vmul.f32 %v714_v57, %v259_v4  ;;  %vm283_vm3 = vcmp.ge.f32.partialorder %v267_v5, 0.0  ;;  %v303_v12 = vmul.f32 %v714_v57, %v267_v5 }
  0xfc   :  { %v313_v13 = vsel %vm277_vm0, %v261_v62, %v297_v9  ;;  %v321_v14 = vsel %vm285_vm1, %v269_v63, %v305_v10  ;;  %v262_v15 = vadd.f32 %v707_v51, %v242_v0  ;;  %v270_v16 = vadd.f32 %v707_v51, %v250_v1 }
  0xfd   :  { %vm329_vm4 = vcmp.gt.f32.partialorder %v313_v13, 0.0  ;;  %vm337_vm5 = vcmp.gt.f32.partialorder %v321_v14, 0.0  ;;  %v311_v17 = vsel %vm275_vm2, %v259_v4, %v295_v11  ;;  %v319_v18 = vsel %vm283_vm3, %v267_v5, %v303_v12  ;;  %v555_v19 = vpop.f32.mrb[4].mxu0  ;;  %v563_v20 = vpop.f32.mrb[4].mxu1 }
  0xfe   :  { %v345_v21 = vsel %vm329_vm4, 1.0, %v590_v8  ;;  %v353_v22 = vsel %vm337_vm5, 1.0, %v590_v8  ;;  %vm327_vm6 = vcmp.gt.f32.partialorder %v311_v17, 0.0  ;;  %vm335_vm7 = vcmp.gt.f32.partialorder %v319_v18, 0.0  ;;  %v185_v23 = vpop.f32.mrb[5].mxu0  ;;  %v217_v24 = vpop.f32.mrb[5].mxu1 }
  0xff   :  { %v343_v25 = vsel %vm327_vm6, 1.0, %v590_v8  ;;  %v351_v26 = vsel %vm335_vm7, 1.0, %v590_v8  ;;  %vm278_vm8 = vcmp.ge.f32.partialorder %v262_v15, 0.0  ;;  %v298_v27 = vmul.f32 %v714_v57, %v262_v15  ;;  %v556_v28 = vpop.f32.mrb[6].mxu0  ;;  %v564_v29 = vpop.f32.mrb[6].mxu1 }
 0x100   :  { %vm286_vm9 = vcmp.ge.f32.partialorder %v270_v16, 0.0  ;;  %v306_v30 = vmul.f32 %v714_v57, %v270_v16  ;;  %v260_v31 = vadd.f32 %v707_v51, %v240_v6  ;;  %v268_v32 = vadd.f32 %v707_v51, %v248_v7  ;;  %v188_v33 = vpop.f32.mrb[7].mxu0  ;;  %v220_v34 = vpop.f32.mrb[7].mxu1 }
 0x101   :  { %v314_v35 = vsel %vm278_vm8, %v262_v15, %v298_v27  ;;  %v245_v36 = vmul.f32 %v555_v19, %v702_v49  ;;  %v253_v37 = vmul.f32 %v563_v20, %v702_v49  ;;  %v243_v38 = vmul.f32 %v702_v49, %v185_v23 }
 0x102   :  { %vm330_vm10 = vcmp.gt.f32.partialorder %v314_v35, 0.0  ;;  %v322_v39 = vsel %vm286_vm9, %v270_v16, %v306_v30  ;;  %vm276_vm11 = vcmp.ge.f32.partialorder %v260_v31, 0.0  ;;  %v296_v40 = vmul.f32 %v714_v57, %v260_v31 }
 0x103   :  { %v346_v41 = vsel %vm330_vm10, 1.0, %v590_v8  ;;  %vm338_vm12 = vcmp.gt.f32.partialorder %v322_v39, 0.0  ;;  %vm284_vm13 = vcmp.ge.f32.partialorder %v268_v32, 0.0  ;;  %v304_v42 = vmul.f32 %v714_v57, %v268_v32 }
 0x104   :  { %v490_v43 = vpack.c.bf16 %v346_v41, %v345_v21  ;;  %v354_v44 = vsel %vm338_vm12, 1.0, %v590_v8  ;;  %v312_v45 = vsel %vm276_vm11, %v260_v31, %v296_v40  ;;  %v265_v46 = vadd.f32 %v707_v51, %v245_v36 }
 0x105   :  { %v502_v47 = vpack.c.bf16 %v354_v44, %v353_v22  ;;  %vm328_vm14 = vcmp.gt.f32.partialorder %v312_v45, 0.0  ;;  %v320_v48 = vsel %vm284_vm13, %v268_v32, %v304_v42  ;;  %v273_v50 = vadd.f32 %v707_v51, %v253_v37 }
 0x106   :  { %510 = vst [vmem:[%s805_s3 + $0x8] sm:$0xff] %v490_v43   ;;  %v344_v52 = vsel %vm328_vm14, 1.0, %v590_v8  ;;  %vm336_vm15 = vcmp.gt.f32.partialorder %v320_v48, 0.0  ;;  %vm281_vm0 = vcmp.ge.f32.partialorder %v265_v46, 0.0  ;;  %v301_v53 = vmul.f32 %v714_v57, %v265_v46 }
 0x107   :  { %514 = vst [vmem:[%s805_s3 + $0x28] sm:$0xff] %v502_v47   ;;  %v487_v54 = vpack.c.bf16 %v344_v52, %v343_v25  ;;  %v352_v55 = vsel %vm336_vm15, 1.0, %v590_v8  ;;  %vm289_vm1 = vcmp.ge.f32.partialorder %v273_v50, 0.0  ;;  %v309_v56 = vmul.f32 %v714_v57, %v273_v50 }
 0x108   :  { %v499_v58 = vpack.c.bf16 %v352_v55, %v351_v26  ;;  %v263_v59 = vadd.f32 %v707_v51, %v243_v38  ;;  %v251_v60 = vmul.f32 %v702_v49, %v217_v24  ;;  %v317_v61 = vsel %vm281_vm0, %v265_v46, %v301_v53 }
 0x109   :  { %488 = vst [vmem:[%s805_s3] sm:$0xff] %v487_v54   ;;  %v246_v62 = vmul.f32 %v556_v28, %v702_v49  ;;  %v254_v63 = vmul.f32 %v564_v29, %v702_v49  ;;  %v325_v0 = vsel %vm289_vm1, %v273_v50, %v309_v56  ;;  %vm333_vm2 = vcmp.gt.f32.partialorder %v317_v61, 0.0 }
 0x10a   :  { %513 = vst [vmem:[%s805_s3 + $0x20] sm:$0xff] %v499_v58   ;;  %v271_v1 = vadd.f32 %v707_v51, %v251_v60  ;;  %v299_v4 = vmul.f32 %v714_v57, %v263_v59  ;;  %v244_v5 = vmul.f32 %v702_v49, %v188_v33  ;;  %v252_v6 = vmul.f32 %v702_v49, %v220_v34 }
 0x10b   :  { %v266_v2 = vadd.f32 %v707_v51, %v246_v62  ;;  %v274_v3 = vadd.f32 %v707_v51, %v254_v63  ;;  %vm341_vm3 = vcmp.gt.f32.partialorder %v325_v0, 0.0  ;;  %vm279_vm4 = vcmp.ge.f32.partialorder %v263_v59, 0.0 }
 0x10c   :  { %v307_v7 = vmul.f32 %v714_v57, %v271_v1  ;;  %vm287_vm6 = vcmp.ge.f32.partialorder %v271_v1, 0.0  ;;  %v349_v11 = vsel %vm333_vm2, 1.0, %v590_v8  ;;  %v264_v12 = vadd.f32 %v707_v51, %v244_v5 }
 0x10d   :  { %vm282_vm5 = vcmp.ge.f32.partialorder %v266_v2, 0.0  ;;  %v302_v9 = vmul.f32 %v714_v57, %v266_v2  ;;  %vm290_vm7 = vcmp.ge.f32.partialorder %v274_v3, 0.0  ;;  %v310_v10 = vmul.f32 %v714_v57, %v274_v3 }
 0x10e   :  { %v272_v13 = vadd.f32 %v707_v51, %v252_v6  ;;  %v357_v14 = vsel %vm341_vm3, 1.0, %v590_v8  ;;  %v315_v49 = vsel %vm279_vm4, %v263_v59, %v299_v4  ;;  %v323_v17 = vsel %vm287_vm6, %v271_v1, %v307_v7 }
 0x10f   :  { %v318_v15 = vsel %vm282_vm5, %v266_v2, %v302_v9  ;;  %v326_v16 = vsel %vm290_vm7, %v274_v3, %v310_v10  ;;  %vm280_vm10 = vcmp.ge.f32.partialorder %v264_v12, 0.0  ;;  %v300_v20 = vmul.f32 %v714_v57, %v264_v12 }
 0x110   :  { %vm334_vm8 = vcmp.gt.f32.partialorder %v318_v15, 0.0  ;;  %vm342_vm9 = vcmp.gt.f32.partialorder %v326_v16, 0.0  ;;  %vm288_vm11 = vcmp.ge.f32.partialorder %v272_v13, 0.0  ;;  %vm331_vm12 = vcmp.gt.f32.partialorder %v315_v49, 0.0 }
 0x111   :  { %v350_v18 = vsel %vm334_vm8, 1.0, %v590_v8  ;;  %v358_v19 = vsel %vm342_vm9, 1.0, %v590_v8  ;;  %v308_v51 = vmul.f32 %v714_v57, %v272_v13  ;;  %vm339_vm13 = vcmp.gt.f32.partialorder %v323_v17, 0.0 }
 0x112   :  { %v496_v21 = vpack.c.bf16 %v350_v18, %v349_v11  ;;  %v508_v22 = vpack.c.bf16 %v358_v19, %v357_v14  ;;  %v316_v23 = vsel %vm280_vm10, %v264_v12, %v300_v20  ;;  %v347_v25 = vsel %vm331_vm12, 1.0, %v590_v8 }
 0x113   :  { %vm332_vm14 = vcmp.gt.f32.partialorder %v316_v23, 0.0  ;;  %v324_v24 = vsel %vm288_vm11, %v272_v13, %v308_v51  ;;  %v355_v27 = vsel %vm339_vm13, 1.0, %v590_v8 }
 0x114   :  { %512 = vst [vmem:[%s805_s3 + $0x18] sm:$0xff] %v496_v21   ;;  %516 = vst [vmem:[%s805_s3 + $0x38] sm:$0xff] %v508_v22   ;;  %v348_v26 = vsel %vm332_vm14, 1.0, %v590_v8  ;;  %vm340_vm15 = vcmp.gt.f32.partialorder %v324_v24, 0.0 }
 0x115   :  { %v493_v57 = vpack.c.bf16 %v348_v26, %v347_v25  ;;  %v356_v28 = vsel %vm340_vm15, 1.0, %v590_v8 }
 0x116   :  { %v505_v29 = vpack.c.bf16 %v356_v28, %v355_v27 }
 0x117   :  { %511 = vst [vmem:[%s805_s3 + $0x10] sm:$0xff] %v493_v57  }
 0x118   :  { %515 = vst [vmem:[%s805_s3 + $0x30] sm:$0xff] %v505_v29  }

// kernel: _lambda_.178
= control target key start
LH: loop header
LB: loop body
LE: loop exit
PB: predicated region body
PF: predicated region fallthrough
CT: control target
= control target key end

     0   :  { %s974_s1 = inlined_call_operand.vmem [shape: bf16[128,128], index: 1, kind: input, shape index: {}]   ;;  %s975_s0 = inlined_call_operand.vmem [shape: bf16[128,128], index: 0, kind: input, shape index: {}]   ;;  %s976_s2 = inlined_call_operand.vmem [shape: f32[4,128], index: 2, kind: input, shape index: {}]   ;;  %s977_s3 = inlined_call_operand.vmem [shape: f32[128,128], index: 3, kind: input, shape index: {}]   ;;  %s978_s4 = inlined_call_operand.vmem [shape: bf16[128,128], index: 4, kind: output, shape index: {}]  }
   0x1   :  { %v687_v0 = vld [vmem:[%s974_s1] sm:$0xff]   ;;  %v688_v1 = vld [vmem:[%s974_s1 + $0x8] sm:$0xff]   ;;  %v689_v2 = vld [vmem:[%s974_s1 + $0x10] sm:$0xff]  }
   0x2   :  { %638 = vmatprep.subr.bf16.mxu0 %v687_v0  ;;  %670 = vmatprep.subr.bf16.mxu1 %v687_v0  ;;  %v690_v3 = vld [vmem:[%s974_s1 + $0x18] sm:$0xff]   ;;  %v695_v4 = vld [vmem:[%s975_s0] sm:$0xff]   ;;  %v692_v7 = vld [vmem:[%s974_s1 + $0x28] sm:$0xff]  }
   0x3   :  { %639 = vmatpush3.bf16.msra.mxu0 %v687_v0  ;;  %678 = vmatpush3.bf16.msra.mxu1 %v687_v0  ;;  %v696_v5 = vld [vmem:[%s975_s0 + $0x20] sm:$0xff]   ;;  %v693_v8 = vld [vmem:[%s974_s1 + $0x30] sm:$0xff]   ;;  %v694_v9 = vld [vmem:[%s974_s1 + $0x38] sm:$0xff]  }
   0x4   :  { %640 = vmatprep.subr.bf16.mxu0 %v688_v1  ;;  %671 = vmatprep.subr.bf16.mxu1 %v688_v1  ;;  %v691_v6 = vld [vmem:[%s974_s1 + $0x20] sm:$0xff]   ;;  %v697_v10 = vld [vmem:[%s975_s0 + $0x8] sm:$0xff]   ;;  %v699_v12 = vld [vmem:[%s975_s0 + $0x10] sm:$0xff]  }
   0x5   :  { %654 = vmatprep.mubr.bf16.mxu0 %v695_v4  ;;  %662 = vmatprep.mubr.bf16.mxu1 %v696_v5  ;;  %v698_v11 = vld [vmem:[%s975_s0 + $0x28] sm:$0xff]   ;;  %v700_v13 = vld [vmem:[%s975_s0 + $0x30] sm:$0xff]   ;;  %v701_v14 = vld [vmem:[%s975_s0 + $0x18] sm:$0xff]  }
   0x6   :  { %v702_v15 = vld [vmem:[%s975_s0 + $0x38] sm:$0xff]   ;;  %v780_v16 = vld [vmem:[%s976_s2] ss:$0 sm:$0xff]  ;;  %v785_v18 = vld [vmem:[%s976_s2 + $0x1] ss:$0 sm:$0xff] }
   0x7   :  { %641 = vmatpush3.bf16.msra.mxu0 %v688_v1  ;;  %679 = vmatpush3.bf16.msra.mxu1 %v688_v1  ;;  %v792_v24 = vld [vmem:[%s976_s2 + $0x2] ss:$0 sm:$0xff]  ;;  %v341_v40 = vld [vmem:[%s977_s3 + $0x10] sm:$0xff]  ;;  %v823_v48 = vld [vmem:[%s976_s2 + $0x3] ss:$0 sm:$0xff] }
   0x8   :  { %642 = vmatprep.subr.bf16.mxu0 %v689_v2  ;;  %672 = vmatprep.subr.bf16.mxu1 %v689_v2  ;;  %v349_v42 = vld [vmem:[%s977_s3 + $0x50] sm:$0xff]  ;;  %v339_v44 = vld [vmem:[%s977_s3] sm:$0xff] }
   0x9   :  { %v347_v46 = vld [vmem:[%s977_s3 + $0x40] sm:$0xff] }
   0xb   :  { %643 = vmatpush3.bf16.msra.mxu0 %v689_v2  ;;  %680 = vmatpush3.bf16.msra.mxu1 %v689_v2 }
   0xc   :  { %644 = vmatprep.subr.bf16.mxu0 %v690_v3  ;;  %673 = vmatprep.subr.bf16.mxu1 %v690_v3 }
   0xf   :  { %645 = vmatpush3.bf16.msra.mxu0 %v690_v3  ;;  %681 = vmatpush3.bf16.msra.mxu1 %v690_v3 }
  0x10   :  { %646 = vmatprep.subr.bf16.mxu0 %v691_v6  ;;  %674 = vmatprep.subr.bf16.mxu1 %v691_v6 }
  0x13   :  { %647 = vmatpush3.bf16.msra.mxu0 %v691_v6  ;;  %682 = vmatpush3.bf16.msra.mxu1 %v691_v6 }
  0x14   :  { %648 = vmatprep.subr.bf16.mxu0 %v692_v7  ;;  %675 = vmatprep.subr.bf16.mxu1 %v692_v7 }
  0x17   :  { %649 = vmatpush3.bf16.msra.mxu0 %v692_v7  ;;  %683 = vmatpush3.bf16.msra.mxu1 %v692_v7 }
  0x18   :  { %650 = vmatprep.subr.bf16.mxu0 %v693_v8  ;;  %676 = vmatprep.subr.bf16.mxu1 %v693_v8 }
  0x1b   :  { %651 = vmatpush3.bf16.msra.mxu0 %v693_v8  ;;  %684 = vmatpush3.bf16.msra.mxu1 %v693_v8 }
  0x1c   :  { %652 = vmatprep.subr.bf16.mxu0 %v694_v9  ;;  %677 = vmatprep.subr.bf16.mxu1 %v694_v9 }
  0x1f   :  { %653 = vmatpush3.bf16.msra.mxu0 %v694_v9  ;;  %685 = vmatpush3.bf16.msra.mxu1 %v694_v9 }
  0x22   :  { %655 = vmatmul.mubr.bf16.vlgmr.msra.gmra.mrb[0].mxu0 %v697_v10  ;;  %663 = vmatmul.mubr.bf16.vlgmr.msra.gmra.mrb[0].mxu1 %v698_v11  ;;  %v342_v10 = vld [vmem:[%s977_s3 + $0x18] sm:$0xff] }
  0x23   :  { %658 = vmatprep.mubr.bf16.mxu0 %v699_v12  ;;  %666 = vmatprep.mubr.bf16.mxu1 %v700_v13  ;;  %v703_v13 = vmov -1.0  }
  0x2a   :  { %659 = vmatmul.mubr.bf16.gmra.mrb[4].mxu0 %v701_v14  ;;  %667 = vmatmul.mubr.bf16.gmra.mrb[4].mxu1 %v702_v15 }
  0xf5   :  { %v656_v17 = vpop.f32.mrb[0].mxu0  ;;  %v664_v19 = vpop.f32.mrb[0].mxu1 }
  0xf6   :  { %v252_v20 = vmul.f32 %v656_v17, %v780_v16  ;;  %v260_v21 = vmul.f32 %v664_v19, %v780_v16  ;;  %v180_v22 = vpop.f32.mrb[1].mxu0  ;;  %v212_v23 = vpop.f32.mrb[1].mxu1 }
  0xf7   :  { %v250_v25 = vmul.f32 %v780_v16, %v180_v22  ;;  %v258_v26 = vmul.f32 %v780_v16, %v212_v23  ;;  %v657_v27 = vpop.f32.mrb[2].mxu0  ;;  %v665_v28 = vpop.f32.mrb[2].mxu1  ;;  %v350_v22 = vld [vmem:[%s977_s3 + $0x58] sm:$0xff] }
  0xf8   :  { %v272_v29 = vadd.f32 %v785_v18, %v252_v20  ;;  %v280_v30 = vadd.f32 %v785_v18, %v260_v21  ;;  %v253_v31 = vmul.f32 %v657_v27, %v780_v16  ;;  %v261_v32 = vmul.f32 %v665_v28, %v780_v16  ;;  %v183_v33 = vpop.f32.mrb[3].mxu0  ;;  %v215_v34 = vpop.f32.mrb[3].mxu1 }
  0xf9   :  { %v270_v35 = vadd.f32 %v785_v18, %v250_v25  ;;  %v278_v36 = vadd.f32 %v785_v18, %v258_v26  ;;  %v251_v37 = vmul.f32 %v780_v16, %v183_v33  ;;  %v259_v38 = vmul.f32 %v780_v16, %v215_v34  ;;  %v340_v33 = vld [vmem:[%s977_s3 + $0x8] sm:$0xff] }
  0xfa   :  { %vm288_vm0 = vcmp.ge.f32.partialorder %v272_v29, 0.0  ;;  %v308_v39 = vmul.f32 %v792_v24, %v272_v29  ;;  %vm296_vm1 = vcmp.ge.f32.partialorder %v280_v30, 0.0  ;;  %v316_v41 = vmul.f32 %v792_v24, %v280_v30 }
  0xfb   :  { %vm286_vm2 = vcmp.ge.f32.partialorder %v270_v35, 0.0  ;;  %v306_v43 = vmul.f32 %v792_v24, %v270_v35  ;;  %vm294_vm3 = vcmp.ge.f32.partialorder %v278_v36, 0.0  ;;  %v314_v45 = vmul.f32 %v792_v24, %v278_v36 }
  0xfc   :  { %v324_v47 = vsel %vm288_vm0, %v272_v29, %v308_v39  ;;  %v332_v49 = vsel %vm296_vm1, %v280_v30, %v316_v41  ;;  %v273_v50 = vadd.f32 %v785_v18, %v253_v31  ;;  %v281_v51 = vadd.f32 %v785_v18, %v261_v32 }
  0xfd   :  { %v357_v52 = vadd.f32 %v341_v40, %v324_v47  ;;  %v365_v53 = vadd.f32 %v349_v42, %v332_v49  ;;  %v322_v54 = vsel %vm286_vm2, %v270_v35, %v306_v43  ;;  %v330_v55 = vsel %vm294_vm3, %v278_v36, %v314_v45  ;;  %v660_v56 = vpop.f32.mrb[4].mxu0  ;;  %v668_v57 = vpop.f32.mrb[4].mxu1  ;;  %v348_v36 = vld [vmem:[%s977_s3 + $0x48] sm:$0xff]  ;;  %v345_v49 = vld [vmem:[%s977_s3 + $0x30] sm:$0xff] }
  0xfe   :  { %v355_v58 = vadd.f32 %v339_v44, %v322_v54  ;;  %v363_v59 = vadd.f32 %v347_v46, %v330_v55  ;;  %vm289_vm4 = vcmp.ge.f32.partialorder %v273_v50, 0.0  ;;  %v309_v60 = vmul.f32 %v792_v24, %v273_v50  ;;  %v196_v61 = vpop.f32.mrb[5].mxu0  ;;  %v828_v62 = vpop.f32.mrb[5].mxu1 }
  0xff   :  { %vm373_vm5 = vcmp.ge.f32.partialorder %v357_v52, 0.0  ;;  %v393_v63 = vmul.f32 %v823_v48, %v357_v52  ;;  %vm381_vm6 = vcmp.ge.f32.partialorder %v365_v53, 0.0  ;;  %v401_v0 = vmul.f32 %v823_v48, %v365_v53  ;;  %v832_v1 = vpop.f32.mrb[6].mxu0  ;;  %v834_v2 = vpop.f32.mrb[6].mxu1 }
 0x100   :  { %vm371_vm7 = vcmp.ge.f32.partialorder %v355_v58, 0.0  ;;  %v391_v3 = vmul.f32 %v823_v48, %v355_v58  ;;  %vm379_vm8 = vcmp.ge.f32.partialorder %v363_v59, 0.0  ;;  %v399_v4 = vmul.f32 %v823_v48, %v363_v59  ;;  %v838_v5 = vpop.f32.mrb[7].mxu0  ;;  %v840_v6 = vpop.f32.mrb[7].mxu1 }
 0x101   :  { %v409_v7 = vsel %vm373_vm5, %v357_v52, %v393_v63  ;;  %v417_v8 = vsel %vm381_vm6, %v365_v53, %v401_v0  ;;  %v325_v9 = vsel %vm289_vm4, %v273_v50, %v309_v60  ;;  %vm297_vm9 = vcmp.ge.f32.partialorder %v281_v51, 0.0 }
 0x102   :  { %vm425_vm10 = vcmp.gt.f32.partialorder %v409_v7, 0.0  ;;  %vm433_vm11 = vcmp.gt.f32.partialorder %v417_v8, 0.0  ;;  %v407_v11 = vsel %vm371_vm7, %v355_v58, %v391_v3  ;;  %v415_v12 = vsel %vm379_vm8, %v363_v59, %v399_v4  ;;  %v353_v59 = vld [vmem:[%s977_s3 + $0x70] sm:$0xff] }
 0x103   :  { %v441_v14 = vsel %vm425_vm10, 1.0, %v703_v13  ;;  %v449_v15 = vsel %vm433_vm11, 1.0, %v703_v13  ;;  %vm423_vm12 = vcmp.gt.f32.partialorder %v407_v11, 0.0  ;;  %vm431_vm13 = vcmp.gt.f32.partialorder %v415_v12, 0.0 }
 0x104   :  { %v849_v17 = vsel %vm423_vm12, 1.0, %v703_v13  ;;  %v852_v19 = vsel %vm431_vm13, 1.0, %v703_v13  ;;  %v358_v20 = vadd.f32 %v342_v10, %v325_v9  ;;  %v317_v21 = vmul.f32 %v792_v24, %v281_v51  ;;  %v343_v10 = vld [vmem:[%s977_s3 + $0x20] sm:$0xff] }
 0x105   :  { %v271_v23 = vadd.f32 %v785_v18, %v251_v37  ;;  %v279_v25 = vadd.f32 %v785_v18, %v259_v38  ;;  %v256_v26 = vmul.f32 %v660_v56, %v780_v16  ;;  %v264_v27 = vmul.f32 %v668_v57, %v780_v16 }
 0x106   :  { %vm374_vm14 = vcmp.ge.f32.partialorder %v358_v20, 0.0  ;;  %v394_v28 = vmul.f32 %v823_v48, %v358_v20  ;;  %v333_v29 = vsel %vm297_vm9, %v281_v51, %v317_v21  ;;  %v254_v30 = vmul.f32 %v780_v16, %v196_v61 }
 0x107   :  { %v366_v31 = vadd.f32 %v350_v22, %v333_v29  ;;  %vm287_vm15 = vcmp.ge.f32.partialorder %v271_v23, 0.0  ;;  %v307_v32 = vmul.f32 %v792_v24, %v271_v23  ;;  %vm295_vm0 = vcmp.ge.f32.partialorder %v279_v25, 0.0 }
 0x108   :  { %v410_v34 = vsel %vm374_vm14, %v358_v20, %v394_v28  ;;  %v315_v35 = vmul.f32 %v792_v24, %v279_v25  ;;  %v276_v37 = vadd.f32 %v785_v18, %v256_v26  ;;  %v284_v38 = vadd.f32 %v785_v18, %v264_v27  ;;  %v346_v27 = vld [vmem:[%s977_s3 + $0x38] sm:$0xff] }
 0x109   :  { %vm426_vm1 = vcmp.gt.f32.partialorder %v410_v34, 0.0  ;;  %vm382_vm2 = vcmp.ge.f32.partialorder %v366_v31, 0.0  ;;  %v402_v39 = vmul.f32 %v823_v48, %v366_v31  ;;  %v323_v40 = vsel %vm287_vm15, %v271_v23, %v307_v32 }
 0x10a   :  { %v442_v41 = vsel %vm426_vm1, 1.0, %v703_v13  ;;  %v356_v42 = vadd.f32 %v340_v33, %v323_v40  ;;  %v331_v43 = vsel %vm295_vm0, %v279_v25, %v315_v35  ;;  %vm292_vm3 = vcmp.ge.f32.partialorder %v276_v37, 0.0  ;;  %v351_v25 = vld [vmem:[%s977_s3 + $0x60] sm:$0xff] }
 0x10b   :  { %v595_v44 = vpack.c.bf16 %v442_v41, %v441_v14  ;;  %v418_v45 = vsel %vm382_vm2, %v366_v31, %v402_v39  ;;  %v364_v46 = vadd.f32 %v348_v36, %v331_v43  ;;  %v312_v47 = vmul.f32 %v792_v24, %v276_v37 }
 0x10c   :  { %vm434_vm4 = vcmp.gt.f32.partialorder %v418_v45, 0.0  ;;  %vm372_vm5 = vcmp.ge.f32.partialorder %v356_v42, 0.0  ;;  %v392_v50 = vmul.f32 %v823_v48, %v356_v42  ;;  %vm300_vm6 = vcmp.ge.f32.partialorder %v284_v38, 0.0 }
 0x10d   :  { %615 = vst [vmem:[%s978_s4 + $0x8] sm:$0xff] %v595_v44   ;;  %v450_v51 = vsel %vm434_vm4, 1.0, %v703_v13  ;;  %vm380_vm7 = vcmp.ge.f32.partialorder %v364_v46, 0.0  ;;  %v400_v52 = vmul.f32 %v823_v48, %v364_v46  ;;  %v328_v53 = vsel %vm292_vm3, %v276_v37, %v312_v47 }
 0x10e   :  { %v607_v54 = vpack.c.bf16 %v450_v51, %v449_v15  ;;  %v408_v55 = vsel %vm372_vm5, %v356_v42, %v392_v50  ;;  %v361_v56 = vadd.f32 %v345_v49, %v328_v53  ;;  %v320_v57 = vmul.f32 %v792_v24, %v284_v38  ;;  %v352_v50 = vld [vmem:[%s977_s3 + $0x68] sm:$0xff] }
 0x10f   :  { %vm424_vm8 = vcmp.gt.f32.partialorder %v408_v55, 0.0  ;;  %v416_v58 = vsel %vm380_vm7, %v364_v46, %v400_v52  ;;  %v274_v60 = vadd.f32 %v785_v18, %v254_v30  ;;  %v262_v61 = vmul.f32 %v780_v16, %v828_v62  ;;  %v354_v30 = vld [vmem:[%s977_s3 + $0x78] sm:$0xff] }
 0x110   :  { %619 = vst [vmem:[%s978_s4 + $0x28] sm:$0xff] %v607_v54   ;;  %v440_v63 = vsel %vm424_vm8, 1.0, %v703_v13  ;;  %vm432_vm9 = vcmp.gt.f32.partialorder %v416_v58, 0.0  ;;  %vm377_vm10 = vcmp.ge.f32.partialorder %v361_v56, 0.0  ;;  %v397_v0 = vmul.f32 %v823_v48, %v361_v56 }
 0x111   :  { %v592_v3 = vpack.c.bf16 %v440_v63, %v849_v17  ;;  %v448_v4 = vsel %vm432_vm9, 1.0, %v703_v13  ;;  %v336_v7 = vsel %vm300_vm6, %v284_v38, %v320_v57  ;;  %vm290_vm11 = vcmp.ge.f32.partialorder %v274_v60, 0.0  ;;  %v344_v38 = vld [vmem:[%s977_s3 + $0x28] sm:$0xff] }
 0x112   :  { %v604_v8 = vpack.c.bf16 %v448_v4, %v852_v19  ;;  %v369_v62 = vadd.f32 %v353_v59, %v336_v7  ;;  %v310_v9 = vmul.f32 %v792_v24, %v274_v60  ;;  %v282_v11 = vadd.f32 %v785_v18, %v262_v61 }
 0x113   :  { %593 = vst [vmem:[%s978_s4] sm:$0xff] %v592_v3   ;;  %v257_v12 = vmul.f32 %v832_v1, %v780_v16  ;;  %v265_v14 = vmul.f32 %v834_v2, %v780_v16  ;;  %v413_v15 = vsel %vm377_vm10, %v361_v56, %v397_v0  ;;  %v255_v1 = vmul.f32 %v780_v16, %v838_v5 }
 0x114   :  { %618 = vst [vmem:[%s978_s4 + $0x20] sm:$0xff] %v604_v8   ;;  %v326_v17 = vsel %vm290_vm11, %v274_v60, %v310_v9  ;;  %vm298_vm12 = vcmp.ge.f32.partialorder %v282_v11, 0.0  ;;  %v318_v20 = vmul.f32 %v792_v24, %v282_v11  ;;  %v405_v22 = vmul.f32 %v823_v48, %v369_v62 }
 0x115   :  { %v359_v19 = vadd.f32 %v343_v10, %v326_v17  ;;  %v277_v21 = vadd.f32 %v785_v18, %v257_v12  ;;  %v285_v23 = vadd.f32 %v785_v18, %v265_v14  ;;  %vm385_vm13 = vcmp.ge.f32.partialorder %v369_v62, 0.0 }
 0x116   :  { %v334_v2 = vsel %vm298_vm12, %v282_v11, %v318_v20  ;;  %vm429_vm14 = vcmp.gt.f32.partialorder %v413_v15, 0.0  ;;  %v263_v28 = vmul.f32 %v780_v16, %v840_v6  ;;  %v275_v31 = vadd.f32 %v785_v18, %v255_v1 }
 0x117   :  { %vm293_vm15 = vcmp.ge.f32.partialorder %v277_v21, 0.0  ;;  %v313_v26 = vmul.f32 %v792_v24, %v277_v21  ;;  %v395_v29 = vmul.f32 %v823_v48, %v359_v19  ;;  %vm301_vm0 = vcmp.ge.f32.partialorder %v285_v23, 0.0 }
 0x118   :  { %v321_v5 = vmul.f32 %v792_v24, %v285_v23  ;;  %v421_v32 = vsel %vm385_vm13, %v369_v62, %v405_v22  ;;  %vm375_vm1 = vcmp.ge.f32.partialorder %v359_v19, 0.0  ;;  %v367_v33 = vadd.f32 %v351_v25, %v334_v2 }
 0x119   :  { %v329_v34 = vsel %vm293_vm15, %v277_v21, %v313_v26  ;;  %vm291_vm2 = vcmp.ge.f32.partialorder %v275_v31, 0.0  ;;  %v445_v16 = vsel %vm429_vm14, 1.0, %v703_v13  ;;  %v311_v37 = vmul.f32 %v792_v24, %v275_v31 }
 0x11a   :  { %v362_v35 = vadd.f32 %v346_v27, %v329_v34  ;;  %v337_v36 = vsel %vm301_vm0, %v285_v23, %v321_v5  ;;  %v283_v39 = vadd.f32 %v785_v18, %v263_v28  ;;  %vm437_vm3 = vcmp.gt.f32.partialorder %v421_v32, 0.0 }
 0x11b   :  { %v370_v6 = vadd.f32 %v354_v30, %v337_v36  ;;  %v411_v40 = vsel %vm375_vm1, %v359_v19, %v395_v29  ;;  %v403_v42 = vmul.f32 %v823_v48, %v367_v33  ;;  %v327_v44 = vsel %vm291_vm2, %v275_v31, %v311_v37 }
 0x11c   :  { %vm378_vm4 = vcmp.ge.f32.partialorder %v362_v35, 0.0  ;;  %v398_v41 = vmul.f32 %v823_v48, %v362_v35  ;;  %v360_v46 = vadd.f32 %v344_v38, %v327_v44  ;;  %vm299_vm6 = vcmp.ge.f32.partialorder %v283_v39, 0.0 }
 0x11d   :  { %vm386_vm5 = vcmp.ge.f32.partialorder %v370_v6, 0.0  ;;  %v406_v43 = vmul.f32 %v823_v48, %v370_v6  ;;  %v319_v47 = vmul.f32 %v792_v24, %v283_v39  ;;  %v453_v49 = vsel %vm437_vm3, 1.0, %v703_v13 }
 0x11e   :  { %v414_v45 = vsel %vm378_vm4, %v362_v35, %v398_v41  ;;  %vm383_vm7 = vcmp.ge.f32.partialorder %v367_v33, 0.0  ;;  %vm376_vm10 = vcmp.ge.f32.partialorder %v360_v46, 0.0  ;;  %v396_v52 = vmul.f32 %v823_v48, %v360_v46 }
 0x11f   :  { %vm430_vm8 = vcmp.gt.f32.partialorder %v414_v45, 0.0  ;;  %v422_v18 = vsel %vm386_vm5, %v370_v6, %v406_v43  ;;  %vm427_vm11 = vcmp.gt.f32.partialorder %v411_v40, 0.0  ;;  %v335_v24 = vsel %vm299_vm6, %v283_v39, %v319_v47 }
 0x120   :  { %v446_v51 = vsel %vm430_vm8, 1.0, %v703_v13  ;;  %vm438_vm9 = vcmp.gt.f32.partialorder %v422_v18, 0.0  ;;  %v419_v55 = vsel %vm383_vm7, %v367_v33, %v403_v42  ;;  %v412_v57 = vsel %vm376_vm10, %v360_v46, %v396_v52 }
 0x121   :  { %v601_v53 = vpack.c.bf16 %v446_v51, %v445_v16  ;;  %v454_v54 = vsel %vm438_vm9, 1.0, %v703_v13  ;;  %v368_v58 = vadd.f32 %v352_v50, %v335_v24  ;;  %vm428_vm12 = vcmp.gt.f32.partialorder %v412_v57, 0.0 }
 0x122   :  { %v613_v56 = vpack.c.bf16 %v454_v54, %v453_v49  ;;  %v443_v59 = vsel %vm427_vm11, 1.0, %v703_v13  ;;  %v444_v60 = vsel %vm428_vm12, 1.0, %v703_v13  ;;  %vm435_vm14 = vcmp.gt.f32.partialorder %v419_v55, 0.0 }
 0x123   :  { %617 = vst [vmem:[%s978_s4 + $0x18] sm:$0xff] %v601_v53   ;;  %vm384_vm13 = vcmp.ge.f32.partialorder %v368_v58, 0.0  ;;  %v404_v61 = vmul.f32 %v823_v48, %v368_v58  ;;  %v598_v63 = vpack.c.bf16 %v444_v60, %v443_v59  ;;  %v451_v3 = vsel %vm435_vm14, 1.0, %v703_v13 }
 0x124   :  { %621 = vst [vmem:[%s978_s4 + $0x38] sm:$0xff] %v613_v56  }
 0x125   :  { %v420_v0 = vsel %vm384_vm13, %v368_v58, %v404_v61  ;;  %616 = vst [vmem:[%s978_s4 + $0x10] sm:$0xff] %v598_v63  }
 0x126   :  { %vm436_vm15 = vcmp.gt.f32.partialorder %v420_v0, 0.0 }
 0x127   :  { %v452_v4 = vsel %vm436_vm15, 1.0, %v703_v13 }
 0x128   :  { %v610_v7 = vpack.c.bf16 %v452_v4, %v451_v3 }
 0x12a   :  { %620 = vst [vmem:[%s978_s4 + $0x30] sm:$0xff] %v610_v7  }

// kernel: _lambda_.177
= control target key start
LH: loop header
LB: loop body
LE: loop exit
PB: predicated region body
PF: predicated region fallthrough
CT: control target
= control target key end

     0   :  { %v614_v51 = vmov -1.0   ;;  %s786_s1 = inlined_call_operand.vmem [shape: bf16[128,128], index: 1, kind: input, shape index: {}]   ;;  %s787_s0 = inlined_call_operand.vmem [shape: bf16[128,128], index: 0, kind: input, shape index: {}]   ;;  %s788_s2 = inlined_call_operand.vmem [shape: f32[4,128], index: 2, kind: input, shape index: {}]   ;;  %s789_s3 = inlined_call_operand.vmem [shape: bf16[128,128], index: 3, kind: output, shape index: {}]  }
   0x1   :  { %v598_v0 = vld [vmem:[%s786_s1] sm:$0xff]   ;;  %v599_v1 = vld [vmem:[%s786_s1 + $0x8] sm:$0xff]   ;;  %v600_v2 = vld [vmem:[%s786_s1 + $0x10] sm:$0xff]  }
   0x2   :  { %549 = vmatprep.subr.bf16.mxu0 %v598_v0  ;;  %581 = vmatprep.subr.bf16.mxu1 %v598_v0  ;;  %v601_v3 = vld [vmem:[%s786_s1 + $0x18] sm:$0xff]   ;;  %v606_v4 = vld [vmem:[%s787_s0] sm:$0xff]   ;;  %v603_v7 = vld [vmem:[%s786_s1 + $0x28] sm:$0xff]  }
   0x3   :  { %550 = vmatpush3.bf16.msra.mxu0 %v598_v0  ;;  %589 = vmatpush3.bf16.msra.mxu1 %v598_v0  ;;  %v607_v5 = vld [vmem:[%s787_s0 + $0x20] sm:$0xff]   ;;  %v604_v8 = vld [vmem:[%s786_s1 + $0x30] sm:$0xff]   ;;  %v605_v9 = vld [vmem:[%s786_s1 + $0x38] sm:$0xff]  }
   0x4   :  { %551 = vmatprep.subr.bf16.mxu0 %v599_v1  ;;  %582 = vmatprep.subr.bf16.mxu1 %v599_v1  ;;  %v602_v6 = vld [vmem:[%s786_s1 + $0x20] sm:$0xff]   ;;  %v608_v10 = vld [vmem:[%s787_s0 + $0x8] sm:$0xff]   ;;  %v610_v12 = vld [vmem:[%s787_s0 + $0x10] sm:$0xff]  }
   0x5   :  { %565 = vmatprep.mubr.bf16.mxu0 %v606_v4  ;;  %573 = vmatprep.mubr.bf16.mxu1 %v607_v5  ;;  %v609_v11 = vld [vmem:[%s787_s0 + $0x28] sm:$0xff]   ;;  %v611_v13 = vld [vmem:[%s787_s0 + $0x30] sm:$0xff]   ;;  %v612_v14 = vld [vmem:[%s787_s0 + $0x18] sm:$0xff]  }
   0x6   :  { %v613_v15 = vld [vmem:[%s787_s0 + $0x38] sm:$0xff]   ;;  %v686_v16 = vld [vmem:[%s788_s2] ss:$0 sm:$0xff]  ;;  %v691_v18 = vld [vmem:[%s788_s2 + $0x1] ss:$0 sm:$0xff] }
   0x7   :  { %552 = vmatpush3.bf16.msra.mxu0 %v599_v1  ;;  %590 = vmatpush3.bf16.msra.mxu1 %v599_v1  ;;  %v698_v24 = vld [vmem:[%s788_s2 + $0x2] ss:$0 sm:$0xff] }
   0x8   :  { %553 = vmatprep.subr.bf16.mxu0 %v600_v2  ;;  %583 = vmatprep.subr.bf16.mxu1 %v600_v2 }
   0xb   :  { %554 = vmatpush3.bf16.msra.mxu0 %v600_v2  ;;  %591 = vmatpush3.bf16.msra.mxu1 %v600_v2 }
   0xc   :  { %555 = vmatprep.subr.bf16.mxu0 %v601_v3  ;;  %584 = vmatprep.subr.bf16.mxu1 %v601_v3 }
   0xf   :  { %556 = vmatpush3.bf16.msra.mxu0 %v601_v3  ;;  %592 = vmatpush3.bf16.msra.mxu1 %v601_v3 }
  0x10   :  { %557 = vmatprep.subr.bf16.mxu0 %v602_v6  ;;  %585 = vmatprep.subr.bf16.mxu1 %v602_v6 }
  0x13   :  { %558 = vmatpush3.bf16.msra.mxu0 %v602_v6  ;;  %593 = vmatpush3.bf16.msra.mxu1 %v602_v6 }
  0x14   :  { %559 = vmatprep.subr.bf16.mxu0 %v603_v7  ;;  %586 = vmatprep.subr.bf16.mxu1 %v603_v7 }
  0x17   :  { %560 = vmatpush3.bf16.msra.mxu0 %v603_v7  ;;  %594 = vmatpush3.bf16.msra.mxu1 %v603_v7 }
  0x18   :  { %561 = vmatprep.subr.bf16.mxu0 %v604_v8  ;;  %587 = vmatprep.subr.bf16.mxu1 %v604_v8 }
  0x1b   :  { %562 = vmatpush3.bf16.msra.mxu0 %v604_v8  ;;  %595 = vmatpush3.bf16.msra.mxu1 %v604_v8 }
  0x1c   :  { %563 = vmatprep.subr.bf16.mxu0 %v605_v9  ;;  %588 = vmatprep.subr.bf16.mxu1 %v605_v9 }
  0x1f   :  { %564 = vmatpush3.bf16.msra.mxu0 %v605_v9  ;;  %596 = vmatpush3.bf16.msra.mxu1 %v605_v9 }
  0x22   :  { %566 = vmatmul.mubr.bf16.vlgmr.msra.gmra.mrb[0].mxu0 %v608_v10  ;;  %574 = vmatmul.mubr.bf16.vlgmr.msra.gmra.mrb[0].mxu1 %v609_v11 }
  0x23   :  { %569 = vmatprep.mubr.bf16.mxu0 %v610_v12  ;;  %577 = vmatprep.mubr.bf16.mxu1 %v611_v13 }
  0x2a   :  { %570 = vmatmul.mubr.bf16.gmra.mrb[4].mxu0 %v612_v14  ;;  %578 = vmatmul.mubr.bf16.gmra.mrb[4].mxu1 %v613_v15 }
  0xf5   :  { %v567_v17 = vpop.f32.mrb[0].mxu0  ;;  %v575_v19 = vpop.f32.mrb[0].mxu1 }
  0xf6   :  { %v249_v20 = vmul.f32 %v567_v17, %v686_v16  ;;  %v257_v21 = vmul.f32 %v575_v19, %v686_v16  ;;  %v177_v22 = vpop.f32.mrb[1].mxu0  ;;  %v209_v23 = vpop.f32.mrb[1].mxu1 }
  0xf7   :  { %v247_v25 = vmul.f32 %v686_v16, %v177_v22  ;;  %v255_v26 = vmul.f32 %v686_v16, %v209_v23  ;;  %v568_v27 = vpop.f32.mrb[2].mxu0  ;;  %v576_v28 = vpop.f32.mrb[2].mxu1 }
  0xf8   :  { %v269_v29 = vadd.f32 %v691_v18, %v249_v20  ;;  %v277_v30 = vadd.f32 %v691_v18, %v257_v21  ;;  %v250_v31 = vmul.f32 %v568_v27, %v686_v16  ;;  %v258_v32 = vmul.f32 %v576_v28, %v686_v16  ;;  %v180_v33 = vpop.f32.mrb[3].mxu0  ;;  %v212_v34 = vpop.f32.mrb[3].mxu1 }
  0xf9   :  { %v267_v35 = vadd.f32 %v691_v18, %v247_v25  ;;  %v275_v36 = vadd.f32 %v691_v18, %v255_v26  ;;  %v248_v37 = vmul.f32 %v686_v16, %v180_v33  ;;  %v256_v38 = vmul.f32 %v686_v16, %v212_v34 }
  0xfa   :  { %vm285_vm0 = vcmp.ge.f32.partialorder %v269_v29, 0.0  ;;  %v305_v39 = vmul.f32 %v698_v24, %v269_v29  ;;  %vm293_vm1 = vcmp.ge.f32.partialorder %v277_v30, 0.0  ;;  %v313_v40 = vmul.f32 %v698_v24, %v277_v30 }
  0xfb   :  { %vm283_vm2 = vcmp.ge.f32.partialorder %v267_v35, 0.0  ;;  %v303_v41 = vmul.f32 %v698_v24, %v267_v35  ;;  %vm291_vm3 = vcmp.ge.f32.partialorder %v275_v36, 0.0  ;;  %v311_v42 = vmul.f32 %v698_v24, %v275_v36 }
  0xfc   :  { %v321_v43 = vsel %vm285_vm0, %v269_v29, %v305_v39  ;;  %v329_v44 = vsel %vm293_vm1, %v277_v30, %v313_v40  ;;  %v270_v45 = vadd.f32 %v691_v18, %v250_v31  ;;  %v278_v46 = vadd.f32 %v691_v18, %v258_v32 }
  0xfd   :  { %vm337_vm4 = vcmp.gt.f32.partialorder %v321_v43, 0.0  ;;  %vm345_vm5 = vcmp.gt.f32.partialorder %v329_v44, 0.0  ;;  %v319_v47 = vsel %vm283_vm2, %v267_v35, %v303_v41  ;;  %v327_v48 = vsel %vm291_vm3, %v275_v36, %v311_v42  ;;  %v571_v49 = vpop.f32.mrb[4].mxu0  ;;  %v579_v50 = vpop.f32.mrb[4].mxu1 }
  0xfe   :  { %v353_v52 = vsel %vm337_vm4, 1.0, %v614_v51  ;;  %v361_v53 = vsel %vm345_vm5, 1.0, %v614_v51  ;;  %vm335_vm6 = vcmp.gt.f32.partialorder %v319_v47, 0.0  ;;  %vm343_vm7 = vcmp.gt.f32.partialorder %v327_v48, 0.0  ;;  %v193_v54 = vpop.f32.mrb[5].mxu0  ;;  %v225_v55 = vpop.f32.mrb[5].mxu1 }
  0xff   :  { %v351_v56 = vsel %vm335_vm6, 1.0, %v614_v51  ;;  %v359_v57 = vsel %vm343_vm7, 1.0, %v614_v51  ;;  %vm286_vm8 = vcmp.ge.f32.partialorder %v270_v45, 0.0  ;;  %v306_v58 = vmul.f32 %v698_v24, %v270_v45  ;;  %v572_v59 = vpop.f32.mrb[6].mxu0  ;;  %v580_v60 = vpop.f32.mrb[6].mxu1 }
 0x100   :  { %vm294_vm9 = vcmp.ge.f32.partialorder %v278_v46, 0.0  ;;  %v314_v61 = vmul.f32 %v698_v24, %v278_v46  ;;  %v268_v62 = vadd.f32 %v691_v18, %v248_v37  ;;  %v276_v63 = vadd.f32 %v691_v18, %v256_v38  ;;  %v196_v0 = vpop.f32.mrb[7].mxu0  ;;  %v228_v1 = vpop.f32.mrb[7].mxu1 }
 0x101   :  { %v322_v2 = vsel %vm286_vm8, %v270_v45, %v306_v58  ;;  %v253_v3 = vmul.f32 %v571_v49, %v686_v16  ;;  %v261_v4 = vmul.f32 %v579_v50, %v686_v16  ;;  %v251_v5 = vmul.f32 %v686_v16, %v193_v54 }
 0x102   :  { %vm338_vm10 = vcmp.gt.f32.partialorder %v322_v2, 0.0  ;;  %v330_v6 = vsel %vm294_vm9, %v278_v46, %v314_v61  ;;  %vm284_vm11 = vcmp.ge.f32.partialorder %v268_v62, 0.0  ;;  %v304_v7 = vmul.f32 %v698_v24, %v268_v62 }
 0x103   :  { %v354_v8 = vsel %vm338_vm10, 1.0, %v614_v51  ;;  %vm346_vm12 = vcmp.gt.f32.partialorder %v330_v6, 0.0  ;;  %vm292_vm13 = vcmp.ge.f32.partialorder %v276_v63, 0.0  ;;  %v312_v9 = vmul.f32 %v698_v24, %v276_v63 }
 0x104   :  { %v506_v10 = vpack.c.bf16 %v354_v8, %v353_v52  ;;  %v362_v11 = vsel %vm346_vm12, 1.0, %v614_v51  ;;  %v320_v12 = vsel %vm284_vm11, %v268_v62, %v304_v7  ;;  %v273_v13 = vadd.f32 %v691_v18, %v253_v3 }
 0x105   :  { %v518_v14 = vpack.c.bf16 %v362_v11, %v361_v53  ;;  %vm336_vm14 = vcmp.gt.f32.partialorder %v320_v12, 0.0  ;;  %v328_v15 = vsel %vm292_vm13, %v276_v63, %v312_v9  ;;  %v281_v17 = vadd.f32 %v691_v18, %v261_v4 }
 0x106   :  { %526 = vst [vmem:[%s789_s3 + $0x8] sm:$0xff] %v506_v10   ;;  %v352_v19 = vsel %vm336_vm14, 1.0, %v614_v51  ;;  %vm344_vm15 = vcmp.gt.f32.partialorder %v328_v15, 0.0  ;;  %vm289_vm0 = vcmp.ge.f32.partialorder %v273_v13, 0.0  ;;  %v309_v20 = vmul.f32 %v698_v24, %v273_v13 }
 0x107   :  { %530 = vst [vmem:[%s789_s3 + $0x28] sm:$0xff] %v518_v14   ;;  %v503_v21 = vpack.c.bf16 %v352_v19, %v351_v56  ;;  %v360_v22 = vsel %vm344_vm15, 1.0, %v614_v51  ;;  %vm297_vm1 = vcmp.ge.f32.partialorder %v281_v17, 0.0  ;;  %v317_v23 = vmul.f32 %v698_v24, %v281_v17 }
 0x108   :  { %v515_v25 = vpack.c.bf16 %v360_v22, %v359_v57  ;;  %v271_v26 = vadd.f32 %v691_v18, %v251_v5  ;;  %v259_v27 = vmul.f32 %v686_v16, %v225_v55  ;;  %v325_v28 = vsel %vm289_vm0, %v273_v13, %v309_v20 }
 0x109   :  { %504 = vst [vmem:[%s789_s3] sm:$0xff] %v503_v21   ;;  %v254_v29 = vmul.f32 %v572_v59, %v686_v16  ;;  %v262_v30 = vmul.f32 %v580_v60, %v686_v16  ;;  %v333_v31 = vsel %vm297_vm1, %v281_v17, %v317_v23  ;;  %vm341_vm2 = vcmp.gt.f32.partialorder %v325_v28, 0.0 }
 0x10a   :  { %529 = vst [vmem:[%s789_s3 + $0x20] sm:$0xff] %v515_v25   ;;  %v279_v32 = vadd.f32 %v691_v18, %v259_v27  ;;  %v307_v35 = vmul.f32 %v698_v24, %v271_v26  ;;  %v252_v36 = vmul.f32 %v686_v16, %v196_v0  ;;  %v260_v37 = vmul.f32 %v686_v16, %v228_v1 }
 0x10b   :  { %v274_v33 = vadd.f32 %v691_v18, %v254_v29  ;;  %v282_v34 = vadd.f32 %v691_v18, %v262_v30  ;;  %vm349_vm3 = vcmp.gt.f32.partialorder %v333_v31, 0.0  ;;  %vm287_vm4 = vcmp.ge.f32.partialorder %v271_v26, 0.0 }
 0x10c   :  { %v315_v38 = vmul.f32 %v698_v24, %v279_v32  ;;  %vm295_vm6 = vcmp.ge.f32.partialorder %v279_v32, 0.0  ;;  %v357_v41 = vsel %vm341_vm2, 1.0, %v614_v51  ;;  %v272_v42 = vadd.f32 %v691_v18, %v252_v36 }
 0x10d   :  { %vm290_vm5 = vcmp.ge.f32.partialorder %v274_v33, 0.0  ;;  %v310_v39 = vmul.f32 %v698_v24, %v274_v33  ;;  %vm298_vm7 = vcmp.ge.f32.partialorder %v282_v34, 0.0  ;;  %v318_v40 = vmul.f32 %v698_v24, %v282_v34 }
 0x10e   :  { %v280_v43 = vadd.f32 %v691_v18, %v260_v37  ;;  %v365_v44 = vsel %vm349_vm3, 1.0, %v614_v51  ;;  %v323_v16 = vsel %vm287_vm4, %v271_v26, %v307_v35  ;;  %v331_v47 = vsel %vm295_vm6, %v279_v32, %v315_v38 }
 0x10f   :  { %v326_v45 = vsel %vm290_vm5, %v274_v33, %v310_v39  ;;  %v334_v46 = vsel %vm298_vm7, %v282_v34, %v318_v40  ;;  %vm288_vm10 = vcmp.ge.f32.partialorder %v272_v42, 0.0  ;;  %v308_v50 = vmul.f32 %v698_v24, %v272_v42 }
 0x110   :  { %vm342_vm8 = vcmp.gt.f32.partialorder %v326_v45, 0.0  ;;  %vm350_vm9 = vcmp.gt.f32.partialorder %v334_v46, 0.0  ;;  %vm296_vm11 = vcmp.ge.f32.partialorder %v280_v43, 0.0  ;;  %vm339_vm12 = vcmp.gt.f32.partialorder %v323_v16, 0.0 }
 0x111   :  { %v358_v48 = vsel %vm342_vm8, 1.0, %v614_v51  ;;  %v366_v49 = vsel %vm350_vm9, 1.0, %v614_v51  ;;  %v316_v18 = vmul.f32 %v698_v24, %v280_v43  ;;  %vm347_vm13 = vcmp.gt.f32.partialorder %v331_v47, 0.0 }
 0x112   :  { %v512_v52 = vpack.c.bf16 %v358_v48, %v357_v41  ;;  %v524_v53 = vpack.c.bf16 %v366_v49, %v365_v44  ;;  %v324_v54 = vsel %vm288_vm10, %v272_v42, %v308_v50  ;;  %v355_v56 = vsel %vm339_vm12, 1.0, %v614_v51 }
 0x113   :  { %vm340_vm14 = vcmp.gt.f32.partialorder %v324_v54, 0.0  ;;  %v332_v55 = vsel %vm296_vm11, %v280_v43, %v316_v18  ;;  %v363_v58 = vsel %vm347_vm13, 1.0, %v614_v51 }
 0x114   :  { %528 = vst [vmem:[%s789_s3 + $0x18] sm:$0xff] %v512_v52   ;;  %532 = vst [vmem:[%s789_s3 + $0x38] sm:$0xff] %v524_v53   ;;  %v356_v57 = vsel %vm340_vm14, 1.0, %v614_v51  ;;  %vm348_vm15 = vcmp.gt.f32.partialorder %v332_v55, 0.0 }
 0x115   :  { %v509_v24 = vpack.c.bf16 %v356_v57, %v355_v56  ;;  %v364_v59 = vsel %vm348_vm15, 1.0, %v614_v51 }
 0x116   :  { %v521_v60 = vpack.c.bf16 %v364_v59, %v363_v58 }
 0x117   :  { %527 = vst [vmem:[%s789_s3 + $0x10] sm:$0xff] %v509_v24  }
 0x118   :  { %531 = vst [vmem:[%s789_s3 + $0x30] sm:$0xff] %v521_v60  }

// kernel: _lambda_.179
= control target key start
LH: loop header
LB: loop body
LE: loop exit
PB: predicated region body
PF: predicated region fallthrough
CT: control target
= control target key end

     0   :  { %s1214_s12 = smov 0   ;;  %s1465_s0 = inlined_call_operand.vmem [shape: bf16[512,256], index: 0, kind: input, shape index: {}]   ;;  %s1466_s1 = inlined_call_operand.vmem [shape: bf16[256,128], index: 1, kind: input, shape index: {}]   ;;  %s1467_s2 = inlined_call_operand.vmem [shape: f32[4,128], index: 2, kind: input, shape index: {}]   ;;  %s1468_s3 = inlined_call_operand.vmem [shape: f32[512,128], index: 3, kind: output, shape index: {}]  }
   0x1 LB: > { %s922_s13 = sadd.s32 4294967295, %s1192_s12   ;;  %p926_p0 = scmp.ge.s32.totalorder %s1192_s12, 1  ;;  %s1192_s12 = sphi %s1214_s12, %s13_s12  }
   0x2   : > { %p139_p1 = scmp.lt.s32.totalorder %s1192_s12, 3 }
   0x4   : > { %p140_p2 = pnand %p926_p0, %p139_p1 }
   0x5   : > { %v1122_v0 = vld [vmem:[%s1466_s1 + $0x40] sm:$0xff] (!%p140_p2)   ;;  %s927_s16 = sshll.u32 (!%p140_p2), %s922_s13, 5  ;;  %v1124_v2 = vld [vmem:[%s1466_s1 + $0x48] sm:$0xff] (!%p140_p2)   ;;  %v1126_v4 = vld [vmem:[%s1466_s1 + $0x50] sm:$0xff] (!%p140_p2)  }
   0x6   : > { %143 = sbr.rel (%p140_p2) target bundleno = 320 (0x140), region = 32  ;;  %v1123_v1 = vld [vmem:[%s1466_s1] sm:$0xff] (!%p140_p2)   ;;  %986 = vmatprep.subr.bf16.mxu0 (!%p140_p2), %v1122_v0  ;;  %1098 = vmatprep.subr.bf16.mxu1 (!%p140_p2), %v1122_v0  ;;  %v1125_v3 = vld [vmem:[%s1466_s1 + $0x8] sm:$0xff] (!%p140_p2)   ;;  %p165_p3 = scmp.lt.s32.totalorder (!%p140_p2), %s927_s16, 63  ;;  %v1127_v5 = vld [vmem:[%s1466_s1 + $0x10] sm:$0xff] (!%p140_p2)  }
   0x7   : > { %987 = vmatpush3.bf16.msra.mxu0 (!%p140_p2), %v1123_v1  ;;  %1106 = vmatpush3.bf16.msra.mxu1 (!%p140_p2), %v1123_v1  ;;  %v1128_v6 = vld [vmem:[%s1466_s1 + $0x58] sm:$0xff] (!%p140_p2)   ;;  %v1130_v8 = vld [vmem:[%s1466_s1 + $0x60] sm:$0xff] (!%p140_p2)   ;;  %v1132_v10 = vld [vmem:[%s1466_s1 + $0x68] sm:$0xff] (!%p140_p2)  }
   0x8   : > { %988 = vmatprep.subr.bf16.mxu0 (!%p140_p2), %v1124_v2  ;;  %1099 = vmatprep.subr.bf16.mxu1 (!%p140_p2), %v1124_v2  ;;  %v1129_v7 = vld [vmem:[%s1466_s1 + $0x18] sm:$0xff] (!%p140_p2)   ;;  %v1131_v9 = vld [vmem:[%s1466_s1 + $0x20] sm:$0xff] (!%p140_p2)   ;;  %v1133_v13 = vld [vmem:[%s1466_s1 + $0x28] sm:$0xff] (!%p140_p2)  }
   0x9   : > { %v1134_v14 = vld [vmem:[%s1466_s1 + $0x70] sm:$0xff] (!%p140_p2)   ;;  %v1136_v16 = vld [vmem:[%s1466_s1 + $0x78] sm:$0xff] (!%p140_p2)   ;;  %v1315_v51 = vld [vmem:[%s1467_s2] ss:$0 sm:$0xff] (!%p140_p2) }
   0xa   : > { %v1135_v15 = vld [vmem:[%s1466_s1 + $0x30] sm:$0xff] (!%p140_p2)   ;;  %v1137_v17 = vld [vmem:[%s1466_s1 + $0x38] sm:$0xff] (!%p140_p2)   ;;  %v1320_v57 = vld [vmem:[%s1467_s2 + $0x1] ss:$0 sm:$0xff] (!%p140_p2) }
   0xb   : > { %989 = vmatpush3.bf16.msra.mxu0 (!%p140_p2), %v1125_v3  ;;  %1107 = vmatpush3.bf16.msra.mxu1 (!%p140_p2), %v1125_v3  ;;  %v1327_v0 = vld [vmem:[%s1467_s2 + $0x2] ss:$0 sm:$0xff] (!%p140_p2) }
   0xc   : > { %990 = vmatprep.subr.bf16.mxu0 (!%p140_p2), %v1126_v4  ;;  %1100 = vmatprep.subr.bf16.mxu1 (!%p140_p2), %v1126_v4 }
   0xd   : > { %s1470_s16 = smov (!%p165_p3, %s927_s16), 63 }
   0xe   : > { %s985_s4 = sshll.u32 %s1470_s16, 3 }
   0xf   : > { %991 = vmatpush3.bf16.msra.mxu0 %v1127_v5  ;;  %1108 = vmatpush3.bf16.msra.mxu1 %v1127_v5  ;;  %s1257_s9 = scalar_lea.vmem %s1465_s0, %s985_s4  ;;  %s1338_s8 = scalar_lea.vmem %s1468_s3, %s985_s4 }
  0x10   : > { %992 = vmatprep.subr.bf16.mxu0 %v1128_v6  ;;  %1101 = vmatprep.subr.bf16.mxu1 %v1128_v6  ;;  %v1140_v11 = vld [vmem:[%s1257_s9 + $0x4] ss:$8 sps:$4 sm:$0xff]   ;;  %v1138_v18 = vld [vmem:[%s1257_s9] ss:$8 sps:$4 sm:$0xff]   ;;  %v1144_v20 = vld [vmem:[%s1257_s9 + $0x14] ss:$8 sps:$4 sm:$0xff]  }
  0x11   : > { %v1143_v12 = vld [vmem:[%s1257_s9 + $0x84] ss:$8 sps:$4 sm:$0xff]   ;;  %530 = vmatprep.mubr.bf16.mxu0 %v1140_v11  ;;  %v1141_v19 = vld [vmem:[%s1257_s9 + $0x80] ss:$8 sps:$4 sm:$0xff]   ;;  %v1146_v21 = vld [vmem:[%s1257_s9 + $0x94] ss:$8 sps:$4 sm:$0xff]  }
  0x12   : > { %594 = vmatprep.mubr.bf16.mxu1 %v1143_v12  ;;  %v1148_v22 = vld [vmem:[%s1257_s9 + $0x10] ss:$8 sps:$4 sm:$0xff]   ;;  %v1150_v24 = vld [vmem:[%s1257_s9 + $0x24] ss:$8 sps:$4 sm:$0xff]   ;;  %v1154_v26 = vld [vmem:[%s1257_s9 + $0x20] ss:$8 sps:$4 sm:$0xff]  }
  0x13   : > { %993 = vmatpush3.bf16.msra.mxu0 %v1129_v7  ;;  %1109 = vmatpush3.bf16.msra.mxu1 %v1129_v7  ;;  %v1149_v23 = vld [vmem:[%s1257_s9 + $0x90] ss:$8 sps:$4 sm:$0xff]   ;;  %v1152_v25 = vld [vmem:[%s1257_s9 + $0xa4] ss:$8 sps:$4 sm:$0xff]   ;;  %v1155_v27 = vld [vmem:[%s1257_s9 + $0xa0] ss:$8 sps:$4 sm:$0xff]  }
  0x14   : > { %994 = vmatprep.subr.bf16.mxu0 %v1130_v8  ;;  %1102 = vmatprep.subr.bf16.mxu1 %v1130_v8  ;;  %v1156_v28 = vld [vmem:[%s1257_s9 + $0x34] ss:$8 sps:$4 sm:$0xff]   ;;  %v1160_v30 = vld [vmem:[%s1257_s9 + $0x30] ss:$8 sps:$4 sm:$0xff]   ;;  %v1162_v32 = vld [vmem:[%s1257_s9 + $0x44] ss:$8 sps:$4 sm:$0xff]  }
  0x15   : > { %v1158_v29 = vld [vmem:[%s1257_s9 + $0xb4] ss:$8 sps:$4 sm:$0xff]   ;;  %v1161_v31 = vld [vmem:[%s1257_s9 + $0xb0] ss:$8 sps:$4 sm:$0xff]   ;;  %v1164_v33 = vld [vmem:[%s1257_s9 + $0xc4] ss:$8 sps:$4 sm:$0xff]  }
  0x16   : > { %v1166_v34 = vld [vmem:[%s1257_s9 + $0x40] ss:$8 sps:$4 sm:$0xff]   ;;  %v1168_v36 = vld [vmem:[%s1257_s9 + $0x54] ss:$8 sps:$4 sm:$0xff]   ;;  %v1172_v38 = vld [vmem:[%s1257_s9 + $0x50] ss:$8 sps:$4 sm:$0xff]  }
  0x17   : > { %995 = vmatpush3.bf16.msra.mxu0 %v1131_v9  ;;  %1110 = vmatpush3.bf16.msra.mxu1 %v1131_v9  ;;  %v1167_v35 = vld [vmem:[%s1257_s9 + $0xc0] ss:$8 sps:$4 sm:$0xff]   ;;  %v1170_v37 = vld [vmem:[%s1257_s9 + $0xd4] ss:$8 sps:$4 sm:$0xff]   ;;  %v1173_v39 = vld [vmem:[%s1257_s9 + $0xd0] ss:$8 sps:$4 sm:$0xff]  }
  0x18   : > { %996 = vmatprep.subr.bf16.mxu0 %v1132_v10  ;;  %1103 = vmatprep.subr.bf16.mxu1 %v1132_v10  ;;  %v1174_v40 = vld [vmem:[%s1257_s9 + $0x64] ss:$8 sps:$4 sm:$0xff]   ;;  %v1178_v42 = vld [vmem:[%s1257_s9 + $0x60] ss:$8 sps:$4 sm:$0xff]   ;;  %v1180_v44 = vld [vmem:[%s1257_s9 + $0x74] ss:$8 sps:$4 sm:$0xff]  }
  0x19   : > { %v1176_v41 = vld [vmem:[%s1257_s9 + $0xe4] ss:$8 sps:$4 sm:$0xff]   ;;  %v1179_v43 = vld [vmem:[%s1257_s9 + $0xe0] ss:$8 sps:$4 sm:$0xff]   ;;  %v1182_v45 = vld [vmem:[%s1257_s9 + $0xf4] ss:$8 sps:$4 sm:$0xff]  }
  0x1a   : > { %v1184_v46 = vld [vmem:[%s1257_s9 + $0x70] ss:$8 sps:$4 sm:$0xff]  }
  0x1b   : > { %997 = vmatpush3.bf16.msra.mxu0 %v1133_v13  ;;  %1111 = vmatpush3.bf16.msra.mxu1 %v1133_v13  ;;  %v1185_v47 = vld [vmem:[%s1257_s9 + $0xf0] ss:$8 sps:$4 sm:$0xff]  }
  0x1c   : > { %998 = vmatprep.subr.bf16.mxu0 %v1134_v14  ;;  %1104 = vmatprep.subr.bf16.mxu1 %v1134_v14 }
  0x1f   : > { %999 = vmatpush3.bf16.msra.mxu0 %v1135_v15  ;;  %1112 = vmatpush3.bf16.msra.mxu1 %v1135_v15 }
  0x20   : > { %1000 = vmatprep.subr.bf16.mxu0 %v1136_v16  ;;  %1105 = vmatprep.subr.bf16.mxu1 %v1136_v16 }
  0x23   : > { %1001 = vmatpush3.bf16.msra.mxu0 %v1137_v17  ;;  %1113 = vmatpush3.bf16.msra.mxu1 %v1137_v17 }
  0x26   : > { %531 = vmatmul.mubr.bf16.vlgmr.msra.gmra.mrb[0].mxu0 %v1138_v18  ;;  %595 = vmatmul.mubr.bf16.vlgmr.msra.gmra.mrb[0].mxu1 %v1141_v19 }
  0x27   : > { %538 = vmatprep.mubr.bf16.mxu0 %v1144_v20  ;;  %602 = vmatprep.mubr.bf16.mxu1 %v1146_v21 }
  0x2e   : > { %539 = vmatmul.mubr.bf16.gmra.mrb[4].mxu0 %v1148_v22  ;;  %603 = vmatmul.mubr.bf16.gmra.mrb[4].mxu1 %v1149_v23 }
  0x2f   : > { %546 = vmatprep.mubr.bf16.mxu0 %v1150_v24  ;;  %610 = vmatprep.mubr.bf16.mxu1 %v1152_v25 }
  0x36   : > { %547 = vmatmul.mubr.bf16.gmra.mrb[8].mxu0 %v1154_v26  ;;  %611 = vmatmul.mubr.bf16.gmra.mrb[8].mxu1 %v1155_v27 }
  0x37   : > { %554 = vmatprep.mubr.bf16.mxu0 %v1156_v28  ;;  %618 = vmatprep.mubr.bf16.mxu1 %v1158_v29 }
  0x3e   : > { %555 = vmatmul.mubr.bf16.gmra.mrb[12].mxu0 %v1160_v30  ;;  %619 = vmatmul.mubr.bf16.gmra.mrb[12].mxu1 %v1161_v31 }
  0x3f   : > { %562 = vmatprep.mubr.bf16.mxu0 %v1162_v32  ;;  %626 = vmatprep.mubr.bf16.mxu1 %v1164_v33 }
  0x46   : > { %563 = vmatmul.mubr.bf16.gmra.mrb[16].mxu0 %v1166_v34  ;;  %627 = vmatmul.mubr.bf16.gmra.mrb[16].mxu1 %v1167_v35 }
  0x47   : > { %570 = vmatprep.mubr.bf16.mxu0 %v1168_v36  ;;  %634 = vmatprep.mubr.bf16.mxu1 %v1170_v37 }
  0x4e   : > { %571 = vmatmul.mubr.bf16.gmra.mrb[20].mxu0 %v1172_v38  ;;  %635 = vmatmul.mubr.bf16.gmra.mrb[20].mxu1 %v1173_v39 }
  0x4f   : > { %578 = vmatprep.mubr.bf16.mxu0 %v1174_v40  ;;  %642 = vmatprep.mubr.bf16.mxu1 %v1176_v41 }
  0x56   : > { %579 = vmatmul.mubr.bf16.gmra.mrb[24].mxu0 %v1178_v42  ;;  %643 = vmatmul.mubr.bf16.gmra.mrb[24].mxu1 %v1179_v43 }
  0x57   : > { %586 = vmatprep.mubr.bf16.mxu0 %v1180_v44  ;;  %650 = vmatprep.mubr.bf16.mxu1 %v1182_v45 }
  0x5e   : > { %587 = vmatmul.mubr.bf16.gmra.mrb[28].mxu0 %v1184_v46  ;;  %651 = vmatmul.mubr.bf16.gmra.mrb[28].mxu1 %v1185_v47 }
  0xf9   : > { %v1002_v48 = vpop.f32.mrb[0].mxu0  ;;  %v1050_v49 = vpop.f32.mrb[0].mxu1 }
  0xfa   : > { %v1003_v50 = vpop.f32.mrb[1].mxu0  ;;  %v1051_v52 = vpop.f32.mrb[1].mxu1 }
  0xfb   : > { %v1004_v53 = vadd.f32 %v1003_v50, %v1002_v48  ;;  %v1052_v54 = vadd.f32 %v1051_v52, %v1050_v49  ;;  %v1005_v55 = vpop.f32.mrb[2].mxu0  ;;  %v1053_v56 = vpop.f32.mrb[2].mxu1 }
  0xfc   : > { %v1006_v58 = vpop.f32.mrb[3].mxu0  ;;  %v1054_v59 = vpop.f32.mrb[3].mxu1 }
  0xfd   : > { %v666_v60 = vmul.f32 %v1004_v53, %v1315_v51  ;;  %v682_v61 = vmul.f32 %v1052_v54, %v1315_v51  ;;  %v1007_v62 = vadd.f32 %v1006_v58, %v1005_v55  ;;  %v1055_v63 = vadd.f32 %v1054_v59, %v1053_v56 }
  0xff   : > { %v702_v1 = vadd.f32 %v1320_v57, %v666_v60  ;;  %v718_v2 = vadd.f32 %v1320_v57, %v682_v61  ;;  %v667_v3 = vmul.f32 %v1007_v62, %v1315_v51  ;;  %v683_v4 = vmul.f32 %v1055_v63, %v1315_v51 }
 0x101   : > { %vm734_vm0 = vcmp.ge.f32.partialorder %v702_v1, 0.0  ;;  %v770_v5 = vmul.f32 %v1327_v0, %v702_v1  ;;  %vm750_vm1 = vcmp.ge.f32.partialorder %v718_v2, 0.0  ;;  %v786_v6 = vmul.f32 %v1327_v0, %v718_v2  ;;  %v1008_v7 = vpop.f32.mrb[4].mxu0  ;;  %v1056_v8 = vpop.f32.mrb[4].mxu1 }
 0x102   : > { %v703_v9 = vadd.f32 %v1320_v57, %v667_v3  ;;  %v719_v10 = vadd.f32 %v1320_v57, %v683_v4  ;;  %v1009_v11 = vpop.f32.mrb[5].mxu0  ;;  %v1057_v12 = vpop.f32.mrb[5].mxu1 }
 0x103   : > { %v802_v13 = vsel %vm734_vm0, %v702_v1, %v770_v5  ;;  %v818_v14 = vsel %vm750_vm1, %v718_v2, %v786_v6  ;;  %v1010_v15 = vadd.f32 %v1009_v11, %v1008_v7  ;;  %v1058_v16 = vadd.f32 %v1057_v12, %v1056_v8  ;;  %v1011_v17 = vpop.f32.mrb[6].mxu0  ;;  %v1059_v18 = vpop.f32.mrb[6].mxu1 }
 0x104   : > { %834 = vst [vmem:[%s1338_s8] sm:$0xff] %v802_v13  ;;  %850 = vst [vmem:[%s1338_s8 + $0x80] sm:$0xff] %v818_v14  ;;  %vm735_vm2 = vcmp.ge.f32.partialorder %v703_v9, 0.0  ;;  %v771_v19 = vmul.f32 %v1327_v0, %v703_v9  ;;  %vm751_vm3 = vcmp.ge.f32.partialorder %v719_v10, 0.0  ;;  %v787_v20 = vmul.f32 %v1327_v0, %v719_v10  ;;  %v1012_v21 = vpop.f32.mrb[7].mxu0  ;;  %v1060_v22 = vpop.f32.mrb[7].mxu1 }
 0x105   : > { %v668_v23 = vmul.f32 %v1010_v15, %v1315_v51  ;;  %v684_v24 = vmul.f32 %v1058_v16, %v1315_v51  ;;  %v1013_v25 = vadd.f32 %v1012_v21, %v1011_v17  ;;  %v1061_v26 = vadd.f32 %v1060_v22, %v1059_v18 }
 0x106   : > { %v803_v27 = vsel %vm735_vm2, %v703_v9, %v771_v19  ;;  %v819_v28 = vsel %vm751_vm3, %v719_v10, %v787_v20 }
 0x107   : > { %835 = vst [vmem:[%s1338_s8 + $0x8] sm:$0xff] %v803_v27  ;;  %851 = vst [vmem:[%s1338_s8 + $0x88] sm:$0xff] %v819_v28  ;;  %v704_v29 = vadd.f32 %v1320_v57, %v668_v23  ;;  %v720_v30 = vadd.f32 %v1320_v57, %v684_v24  ;;  %v669_v31 = vmul.f32 %v1013_v25, %v1315_v51 }
 0x108   : > { %v685_v32 = vmul.f32 %v1061_v26, %v1315_v51 }
 0x109   : > { %vm736_vm4 = vcmp.ge.f32.partialorder %v704_v29, 0.0  ;;  %v772_v33 = vmul.f32 %v1327_v0, %v704_v29  ;;  %vm752_vm5 = vcmp.ge.f32.partialorder %v720_v30, 0.0  ;;  %v788_v34 = vmul.f32 %v1327_v0, %v720_v30  ;;  %v1014_v35 = vpop.f32.mrb[8].mxu0  ;;  %v1062_v36 = vpop.f32.mrb[8].mxu1 }
 0x10a   : > { %v705_v37 = vadd.f32 %v1320_v57, %v669_v31  ;;  %v721_v38 = vadd.f32 %v1320_v57, %v685_v32  ;;  %v1015_v39 = vpop.f32.mrb[9].mxu0  ;;  %v1063_v40 = vpop.f32.mrb[9].mxu1 }
 0x10b   : > { %v804_v41 = vsel %vm736_vm4, %v704_v29, %v772_v33  ;;  %v820_v42 = vsel %vm752_vm5, %v720_v30, %v788_v34  ;;  %v1016_v43 = vadd.f32 %v1015_v39, %v1014_v35  ;;  %v1064_v44 = vadd.f32 %v1063_v40, %v1062_v36  ;;  %v1017_v45 = vpop.f32.mrb[10].mxu0  ;;  %v1065_v46 = vpop.f32.mrb[10].mxu1 }
 0x10c   : > { %836 = vst [vmem:[%s1338_s8 + $0x10] sm:$0xff] %v804_v41  ;;  %852 = vst [vmem:[%s1338_s8 + $0x90] sm:$0xff] %v820_v42  ;;  %vm737_vm6 = vcmp.ge.f32.partialorder %v705_v37, 0.0  ;;  %v773_v47 = vmul.f32 %v1327_v0, %v705_v37  ;;  %vm753_vm7 = vcmp.ge.f32.partialorder %v721_v38, 0.0  ;;  %v789_v48 = vmul.f32 %v1327_v0, %v721_v38  ;;  %v1018_v49 = vpop.f32.mrb[11].mxu0  ;;  %v1066_v50 = vpop.f32.mrb[11].mxu1 }
 0x10d   : > { %v670_v52 = vmul.f32 %v1016_v43, %v1315_v51  ;;  %v686_v53 = vmul.f32 %v1064_v44, %v1315_v51  ;;  %v1019_v54 = vadd.f32 %v1018_v49, %v1017_v45  ;;  %v1067_v55 = vadd.f32 %v1066_v50, %v1065_v46 }
 0x10e   : > { %v805_v56 = vsel %vm737_vm6, %v705_v37, %v773_v47  ;;  %v821_v58 = vsel %vm753_vm7, %v721_v38, %v789_v48 }
 0x10f   : > { %837 = vst [vmem:[%s1338_s8 + $0x18] sm:$0xff] %v805_v56  ;;  %853 = vst [vmem:[%s1338_s8 + $0x98] sm:$0xff] %v821_v58  ;;  %v706_v59 = vadd.f32 %v1320_v57, %v670_v52  ;;  %v722_v60 = vadd.f32 %v1320_v57, %v686_v53  ;;  %v671_v61 = vmul.f32 %v1019_v54, %v1315_v51 }
 0x110   : > { %v687_v62 = vmul.f32 %v1067_v55, %v1315_v51 }
 0x111   : > { %vm738_vm8 = vcmp.ge.f32.partialorder %v706_v59, 0.0  ;;  %v774_v63 = vmul.f32 %v1327_v0, %v706_v59  ;;  %vm754_vm9 = vcmp.ge.f32.partialorder %v722_v60, 0.0  ;;  %v790_v1 = vmul.f32 %v1327_v0, %v722_v60  ;;  %v1020_v2 = vpop.f32.mrb[12].mxu0  ;;  %v1068_v3 = vpop.f32.mrb[12].mxu1 }
 0x112   : > { %v707_v4 = vadd.f32 %v1320_v57, %v671_v61  ;;  %v723_v5 = vadd.f32 %v1320_v57, %v687_v62  ;;  %v1021_v6 = vpop.f32.mrb[13].mxu0  ;;  %v1069_v7 = vpop.f32.mrb[13].mxu1 }
 0x113   : > { %v806_v8 = vsel %vm738_vm8, %v706_v59, %v774_v63  ;;  %v822_v9 = vsel %vm754_vm9, %v722_v60, %v790_v1  ;;  %v1022_v10 = vadd.f32 %v1021_v6, %v1020_v2  ;;  %v1070_v11 = vadd.f32 %v1069_v7, %v1068_v3  ;;  %v1023_v12 = vpop.f32.mrb[14].mxu0  ;;  %v1071_v13 = vpop.f32.mrb[14].mxu1 }
 0x114   : > { %838 = vst [vmem:[%s1338_s8 + $0x20] sm:$0xff] %v806_v8  ;;  %854 = vst [vmem:[%s1338_s8 + $0xa0] sm:$0xff] %v822_v9  ;;  %vm739_vm10 = vcmp.ge.f32.partialorder %v707_v4, 0.0  ;;  %v775_v14 = vmul.f32 %v1327_v0, %v707_v4  ;;  %vm755_vm11 = vcmp.ge.f32.partialorder %v723_v5, 0.0  ;;  %v791_v15 = vmul.f32 %v1327_v0, %v723_v5  ;;  %v1024_v16 = vpop.f32.mrb[15].mxu0  ;;  %v1072_v17 = vpop.f32.mrb[15].mxu1 }
 0x115   : > { %v672_v18 = vmul.f32 %v1022_v10, %v1315_v51  ;;  %v688_v19 = vmul.f32 %v1070_v11, %v1315_v51  ;;  %v1025_v20 = vadd.f32 %v1024_v16, %v1023_v12  ;;  %v1073_v21 = vadd.f32 %v1072_v17, %v1071_v13 }
 0x116   : > { %v807_v22 = vsel %vm739_vm10, %v707_v4, %v775_v14  ;;  %v823_v23 = vsel %vm755_vm11, %v723_v5, %v791_v15 }
 0x117   : > { %839 = vst [vmem:[%s1338_s8 + $0x28] sm:$0xff] %v807_v22  ;;  %855 = vst [vmem:[%s1338_s8 + $0xa8] sm:$0xff] %v823_v23  ;;  %v708_v24 = vadd.f32 %v1320_v57, %v672_v18  ;;  %v724_v25 = vadd.f32 %v1320_v57, %v688_v19  ;;  %v673_v26 = vmul.f32 %v1025_v20, %v1315_v51 }
 0x118   : > { %v689_v27 = vmul.f32 %v1073_v21, %v1315_v51 }
 0x119   : > { %vm740_vm12 = vcmp.ge.f32.partialorder %v708_v24, 0.0  ;;  %v776_v28 = vmul.f32 %v1327_v0, %v708_v24  ;;  %vm756_vm13 = vcmp.ge.f32.partialorder %v724_v25, 0.0  ;;  %v792_v29 = vmul.f32 %v1327_v0, %v724_v25  ;;  %v1026_v30 = vpop.f32.mrb[16].mxu0  ;;  %v1074_v31 = vpop.f32.mrb[16].mxu1 }
 0x11a   : > { %v709_v32 = vadd.f32 %v1320_v57, %v673_v26  ;;  %v725_v33 = vadd.f32 %v1320_v57, %v689_v27  ;;  %v1027_v34 = vpop.f32.mrb[17].mxu0  ;;  %v1075_v35 = vpop.f32.mrb[17].mxu1 }
 0x11b   : > { %v808_v36 = vsel %vm740_vm12, %v708_v24, %v776_v28  ;;  %v824_v37 = vsel %vm756_vm13, %v724_v25, %v792_v29  ;;  %v1028_v38 = vadd.f32 %v1027_v34, %v1026_v30  ;;  %v1076_v39 = vadd.f32 %v1075_v35, %v1074_v31  ;;  %v1029_v40 = vpop.f32.mrb[18].mxu0  ;;  %v1077_v41 = vpop.f32.mrb[18].mxu1 }
 0x11c   : > { %840 = vst [vmem:[%s1338_s8 + $0x30] sm:$0xff] %v808_v36  ;;  %856 = vst [vmem:[%s1338_s8 + $0xb0] sm:$0xff] %v824_v37  ;;  %vm741_vm14 = vcmp.ge.f32.partialorder %v709_v32, 0.0  ;;  %v777_v42 = vmul.f32 %v1327_v0, %v709_v32  ;;  %vm757_vm15 = vcmp.ge.f32.partialorder %v725_v33, 0.0  ;;  %v793_v43 = vmul.f32 %v1327_v0, %v725_v33  ;;  %v1030_v44 = vpop.f32.mrb[19].mxu0  ;;  %v1078_v45 = vpop.f32.mrb[19].mxu1 }
 0x11d   : > { %v674_v46 = vmul.f32 %v1028_v38, %v1315_v51  ;;  %v690_v47 = vmul.f32 %v1076_v39, %v1315_v51  ;;  %v1031_v48 = vadd.f32 %v1030_v44, %v1029_v40  ;;  %v1079_v49 = vadd.f32 %v1078_v45, %v1077_v41 }
 0x11e   : > { %v809_v50 = vsel %vm741_vm14, %v709_v32, %v777_v42  ;;  %v825_v52 = vsel %vm757_vm15, %v725_v33, %v793_v43 }
 0x11f   : > { %841 = vst [vmem:[%s1338_s8 + $0x38] sm:$0xff] %v809_v50  ;;  %857 = vst [vmem:[%s1338_s8 + $0xb8] sm:$0xff] %v825_v52  ;;  %v710_v53 = vadd.f32 %v1320_v57, %v674_v46  ;;  %v726_v54 = vadd.f32 %v1320_v57, %v690_v47  ;;  %v675_v55 = vmul.f32 %v1031_v48, %v1315_v51 }
 0x120   : > { %v691_v56 = vmul.f32 %v1079_v49, %v1315_v51 }
 0x121   : > { %vm742_vm0 = vcmp.ge.f32.partialorder %v710_v53, 0.0  ;;  %v778_v58 = vmul.f32 %v1327_v0, %v710_v53  ;;  %vm758_vm1 = vcmp.ge.f32.partialorder %v726_v54, 0.0  ;;  %v794_v59 = vmul.f32 %v1327_v0, %v726_v54  ;;  %v1032_v60 = vpop.f32.mrb[20].mxu0  ;;  %v1080_v61 = vpop.f32.mrb[20].mxu1 }
 0x122   : > { %v711_v62 = vadd.f32 %v1320_v57, %v675_v55  ;;  %v727_v63 = vadd.f32 %v1320_v57, %v691_v56  ;;  %v1033_v1 = vpop.f32.mrb[21].mxu0  ;;  %v1081_v2 = vpop.f32.mrb[21].mxu1 }
 0x123   : > { %v810_v3 = vsel %vm742_vm0, %v710_v53, %v778_v58  ;;  %v826_v4 = vsel %vm758_vm1, %v726_v54, %v794_v59  ;;  %v1034_v5 = vadd.f32 %v1033_v1, %v1032_v60  ;;  %v1082_v6 = vadd.f32 %v1081_v2, %v1080_v61  ;;  %v1035_v7 = vpop.f32.mrb[22].mxu0  ;;  %v1083_v8 = vpop.f32.mrb[22].mxu1 }
 0x124   : > { %842 = vst [vmem:[%s1338_s8 + $0x40] sm:$0xff] %v810_v3  ;;  %858 = vst [vmem:[%s1338_s8 + $0xc0] sm:$0xff] %v826_v4  ;;  %vm743_vm2 = vcmp.ge.f32.partialorder %v711_v62, 0.0  ;;  %v779_v9 = vmul.f32 %v1327_v0, %v711_v62  ;;  %vm759_vm3 = vcmp.ge.f32.partialorder %v727_v63, 0.0  ;;  %v795_v10 = vmul.f32 %v1327_v0, %v727_v63  ;;  %v1036_v11 = vpop.f32.mrb[23].mxu0  ;;  %v1084_v12 = vpop.f32.mrb[23].mxu1 }
 0x125   : > { %v676_v13 = vmul.f32 %v1034_v5, %v1315_v51  ;;  %v692_v14 = vmul.f32 %v1082_v6, %v1315_v51  ;;  %v1037_v15 = vadd.f32 %v1036_v11, %v1035_v7  ;;  %v1085_v16 = vadd.f32 %v1084_v12, %v1083_v8 }
 0x126   : > { %v811_v17 = vsel %vm743_vm2, %v711_v62, %v779_v9  ;;  %v827_v18 = vsel %vm759_vm3, %v727_v63, %v795_v10 }
 0x127   : > { %843 = vst [vmem:[%s1338_s8 + $0x48] sm:$0xff] %v811_v17  ;;  %859 = vst [vmem:[%s1338_s8 + $0xc8] sm:$0xff] %v827_v18  ;;  %v712_v19 = vadd.f32 %v1320_v57, %v676_v13  ;;  %v728_v20 = vadd.f32 %v1320_v57, %v692_v14  ;;  %v677_v21 = vmul.f32 %v1037_v15, %v1315_v51 }
 0x128   : > { %v693_v22 = vmul.f32 %v1085_v16, %v1315_v51 }
 0x129   : > { %vm744_vm4 = vcmp.ge.f32.partialorder %v712_v19, 0.0  ;;  %v780_v23 = vmul.f32 %v1327_v0, %v712_v19  ;;  %vm760_vm5 = vcmp.ge.f32.partialorder %v728_v20, 0.0  ;;  %v796_v24 = vmul.f32 %v1327_v0, %v728_v20  ;;  %v1038_v25 = vpop.f32.mrb[24].mxu0  ;;  %v1086_v26 = vpop.f32.mrb[24].mxu1 }
 0x12a   : > { %v713_v27 = vadd.f32 %v1320_v57, %v677_v21  ;;  %v729_v28 = vadd.f32 %v1320_v57, %v693_v22  ;;  %v1039_v29 = vpop.f32.mrb[25].mxu0  ;;  %v1087_v30 = vpop.f32.mrb[25].mxu1 }
 0x12b   : > { %v812_v31 = vsel %vm744_vm4, %v712_v19, %v780_v23  ;;  %v828_v32 = vsel %vm760_vm5, %v728_v20, %v796_v24  ;;  %v1040_v33 = vadd.f32 %v1039_v29, %v1038_v25  ;;  %v1088_v34 = vadd.f32 %v1087_v30, %v1086_v26  ;;  %v1041_v35 = vpop.f32.mrb[26].mxu0  ;;  %v1089_v36 = vpop.f32.mrb[26].mxu1 }
 0x12c   : > { %844 = vst [vmem:[%s1338_s8 + $0x50] sm:$0xff] %v812_v31  ;;  %860 = vst [vmem:[%s1338_s8 + $0xd0] sm:$0xff] %v828_v32  ;;  %vm745_vm6 = vcmp.ge.f32.partialorder %v713_v27, 0.0  ;;  %v781_v37 = vmul.f32 %v1327_v0, %v713_v27  ;;  %vm761_vm7 = vcmp.ge.f32.partialorder %v729_v28, 0.0  ;;  %v797_v38 = vmul.f32 %v1327_v0, %v729_v28  ;;  %v1042_v39 = vpop.f32.mrb[27].mxu0  ;;  %v1090_v40 = vpop.f32.mrb[27].mxu1 }
 0x12d   : > { %v678_v41 = vmul.f32 %v1040_v33, %v1315_v51  ;;  %v694_v42 = vmul.f32 %v1088_v34, %v1315_v51  ;;  %v1043_v43 = vadd.f32 %v1042_v39, %v1041_v35  ;;  %v1091_v44 = vadd.f32 %v1090_v40, %v1089_v36 }
 0x12e   : > { %v813_v45 = vsel %vm745_vm6, %v713_v27, %v781_v37  ;;  %v829_v46 = vsel %vm761_vm7, %v729_v28, %v797_v38 }
 0x12f   : > { %845 = vst [vmem:[%s1338_s8 + $0x58] sm:$0xff] %v813_v45  ;;  %861 = vst [vmem:[%s1338_s8 + $0xd8] sm:$0xff] %v829_v46  ;;  %v714_v47 = vadd.f32 %v1320_v57, %v678_v41  ;;  %v730_v48 = vadd.f32 %v1320_v57, %v694_v42  ;;  %v679_v49 = vmul.f32 %v1043_v43, %v1315_v51 }
 0x130   : > { %v695_v50 = vmul.f32 %v1091_v44, %v1315_v51 }
 0x131   : > { %vm746_vm8 = vcmp.ge.f32.partialorder %v714_v47, 0.0  ;;  %v782_v52 = vmul.f32 %v1327_v0, %v714_v47  ;;  %vm762_vm9 = vcmp.ge.f32.partialorder %v730_v48, 0.0  ;;  %v798_v53 = vmul.f32 %v1327_v0, %v730_v48  ;;  %v1044_v54 = vpop.f32.mrb[28].mxu0  ;;  %v1092_v55 = vpop.f32.mrb[28].mxu1 }
 0x132   : > { %v715_v56 = vadd.f32 %v1320_v57, %v679_v49  ;;  %v731_v58 = vadd.f32 %v1320_v57, %v695_v50  ;;  %v1045_v59 = vpop.f32.mrb[29].mxu0  ;;  %v1093_v60 = vpop.f32.mrb[29].mxu1 }
 0x133   : > { %v814_v61 = vsel %vm746_vm8, %v714_v47, %v782_v52  ;;  %v830_v62 = vsel %vm762_vm9, %v730_v48, %v798_v53  ;;  %v1046_v63 = vadd.f32 %v1045_v59, %v1044_v54  ;;  %v1094_v1 = vadd.f32 %v1093_v60, %v1092_v55  ;;  %v1047_v2 = vpop.f32.mrb[30].mxu0  ;;  %v1095_v3 = vpop.f32.mrb[30].mxu1 }
 0x134   : > { %846 = vst [vmem:[%s1338_s8 + $0x60] sm:$0xff] %v814_v61  ;;  %862 = vst [vmem:[%s1338_s8 + $0xe0] sm:$0xff] %v830_v62  ;;  %vm747_vm10 = vcmp.ge.f32.partialorder %v715_v56, 0.0  ;;  %v783_v4 = vmul.f32 %v1327_v0, %v715_v56  ;;  %vm763_vm11 = vcmp.ge.f32.partialorder %v731_v58, 0.0  ;;  %v799_v5 = vmul.f32 %v1327_v0, %v731_v58  ;;  %v1048_v6 = vpop.f32.mrb[31].mxu0  ;;  %v1096_v7 = vpop.f32.mrb[31].mxu1 }
 0x135   : > { %v680_v8 = vmul.f32 %v1046_v63, %v1315_v51  ;;  %v696_v9 = vmul.f32 %v1094_v1, %v1315_v51  ;;  %v1049_v10 = vadd.f32 %v1048_v6, %v1047_v2  ;;  %v1097_v11 = vadd.f32 %v1096_v7, %v1095_v3 }
 0x136   : > { %v815_v12 = vsel %vm747_vm10, %v715_v56, %v783_v4  ;;  %v831_v13 = vsel %vm763_vm11, %v731_v58, %v799_v5 }
 0x137   : > { %847 = vst [vmem:[%s1338_s8 + $0x68] sm:$0xff] %v815_v12  ;;  %863 = vst [vmem:[%s1338_s8 + $0xe8] sm:$0xff] %v831_v13  ;;  %v716_v14 = vadd.f32 %v1320_v57, %v680_v8  ;;  %v732_v15 = vadd.f32 %v1320_v57, %v696_v9  ;;  %v681_v16 = vmul.f32 %v1049_v10, %v1315_v51 }
 0x138   : > { %v697_v17 = vmul.f32 %v1097_v11, %v1315_v51 }
 0x139   : > { %vm748_vm12 = vcmp.ge.f32.partialorder %v716_v14, 0.0  ;;  %v784_v18 = vmul.f32 %v1327_v0, %v716_v14  ;;  %vm764_vm13 = vcmp.ge.f32.partialorder %v732_v15, 0.0  ;;  %v800_v19 = vmul.f32 %v1327_v0, %v732_v15 }
 0x13a   : > { %v717_v20 = vadd.f32 %v1320_v57, %v681_v16  ;;  %v733_v21 = vadd.f32 %v1320_v57, %v697_v17 }
 0x13b   : > { %v816_v22 = vsel %vm748_vm12, %v716_v14, %v784_v18  ;;  %v832_v23 = vsel %vm764_vm13, %v732_v15, %v800_v19 }
 0x13c   : > { %848 = vst [vmem:[%s1338_s8 + $0x70] sm:$0xff] %v816_v22  ;;  %864 = vst [vmem:[%s1338_s8 + $0xf0] sm:$0xff] %v832_v23  ;;  %vm749_vm14 = vcmp.ge.f32.partialorder %v717_v20, 0.0  ;;  %v785_v24 = vmul.f32 %v1327_v0, %v717_v20  ;;  %vm765_vm15 = vcmp.ge.f32.partialorder %v733_v21, 0.0  ;;  %v801_v51 = vmul.f32 %v1327_v0, %v733_v21 }
 0x13e   : > { %v817_v25 = vsel %vm749_vm14, %v717_v20, %v785_v24  ;;  %v833_v26 = vsel %vm765_vm15, %v733_v21, %v801_v51 }
 0x13f   : > { %849 = vst [vmem:[%s1338_s8 + $0x78] sm:$0xff] %v817_v25  ;;  %865 = vst [vmem:[%s1338_s8 + $0xf8] sm:$0xff] %v833_v26 }
 0x140 PF: > { %s13_s12 = sadd.s32 1, %s1192_s12  }
 0x141   : > { %p10_p4 = scmp.ge.s32.totalorder %s13_s12, 4  }
 0x143   :  { %12 = sbr.rel (!%p10_p4) target bundleno = 1 (0x1), region = 62 }

</bundles_post_ra>
